<compile_context>
chip_gen: v7x
topology: tpu7x:2x2x1
jax: 0.10.0
libtpu: 0.0.40
codegen_flags: <defaults>
</compile_context>

<pallas_src>
import functools
import math

import jax
import jax.numpy as jnp
from jax.experimental import pallas as pl
from jax.experimental.pallas import tpu as pltpu


# MXU operand dtype (accumulation stays f32 via preferred_element_type).
# bf16 is MXU-native on v5e and ~2x MXU rate on v6e/v7x; outputs diverge from
# an all-f32 reference at ~1e-2 relative.
MXU_DTYPE = jnp.bfloat16
WEIGHT_DTYPE = MXU_DTYPE          # weights stored pre-cast: half DMA + VMEM
_VMEM_LIMIT = 32 * 1024 * 1024    # explicit scoped-VMEM budget (safe on v5e-v7x)

_EMERGENCE_KEYS = ("wqkv", "bqkv", "wo", "bo", "w1", "b1", "w2", "b2", "w3", "b3")
_CROSS_KEYS = ("wq", "bq", "wkv", "bkv", "wf", "bf")
_FUSION_KEYS = ("w1a", "w1b", "b1", "w2", "b2")


# ---------------------------------------------------------------------------
# In-kernel helpers (all operate on values; no scratch, no masked stores)
# ---------------------------------------------------------------------------

def _gelu(x):
    # TODO(synk): torch.nn.GELU() defaults to the exact erf form; erf has no
    # guaranteed Mosaic lowering, so the tanh approximation is used (~1e-3).
    c = math.sqrt(2.0 / math.pi)
    return 0.5 * x * (1.0 + jnp.tanh(c * (x + 0.044715 * x * x * x)))


def _mm(a, w):
    """(rows, K) @ (K, N) on the MXU, bf16 operands, f32 accumulation."""
    return jnp.dot(a.astype(MXU_DTYPE), w.astype(MXU_DTYPE),
                   preferred_element_type=jnp.float32)


def _softmax_last(s):
    # Exact divide (not approx reciprocal) for parity with torch.softmax.
    s = s - jnp.max(s, axis=-1, keepdims=True)
    p = jnp.exp(s)
    return p / jnp.sum(p, axis=-1, keepdims=True)


def _attn_proj(q, k, v, wo_ref, num_heads):
    """Multi-head attention followed by the output projection.

    q: (Bb, Lq, D) pre-scaled, k/v: (Bb, Lk, D).  Heads are sliced from the
    values; instead of concatenating head outputs (16-lane pieces) the merged
    tensor is folded into the projection:
        merged @ Wo == sum_h head_h @ Wo[h*hd:(h+1)*hd, :]
    Returns (Bb*Lq, D) f32 (projection bias NOT added here).
    """
    Bb, Lq, D = q.shape
    hd = D // num_heads
    rows = Bb * Lq
    out = jnp.zeros((rows, D), jnp.float32)
    for h in range(num_heads):
        lo = h * hd
        s = jnp.einsum("bqd,bkd->bqk",
                       q[:, :, lo:lo + hd].astype(MXU_DTYPE),
                       k[:, :, lo:lo + hd].astype(MXU_DTYPE),
                       preferred_element_type=jnp.float32)          # (Bb,Lq,Lk)
        p = _softmax_last(s).astype(MXU_DTYPE)
        oh = jnp.einsum("bqk,bkd->bqd", p,
                        v[:, :, lo:lo + hd].astype(MXU_DTYPE),
                        preferred_element_type=jnp.float32)          # (Bb,Lq,hd)
        out = out + _mm(oh.reshape(rows, hd), wo_ref[lo:lo + hd, :])
    return out


def _emergence(x, w, num_heads, scale):
    """EmergenceCore: MHA(x,x,x) -> GELU MLP -> + x.  x: (Bb, L, D) f32.

    Returns the row-flattened (Bb*L, D) result so downstream shared stages can
    batch text+image rows into single matmuls.
    """
    wqkv, bqkv, wo, bo, w1, b1, w2, b2, w3, b3 = w
    Bb, L, D = x.shape
    xf = x.reshape(Bb * L, D)
    # Fused QKV projection over all Bb*L rows at once (x read once).
    qkv = (_mm(xf, wqkv[...]) + bqkv[...]).reshape(Bb, L, 3 * D)
    a = _attn_proj(qkv[:, :, :D] * scale, qkv[:, :, D:2 * D], qkv[:, :, 2 * D:],
                   wo, num_heads) + bo[...]
    # critical_mlp: dim -> 4*dim -> 2*dim -> dim, residual from the ORIGINAL x.
    h1 = _gelu(_mm(a, w1[...]) + b1[...])
    h2 = _gelu(_mm(h1, w2[...]) + b2[...])
    return _mm(h2, w3[...]) + b3[...] + xf                    # (Bb*L, D) f32


# ---------------------------------------------------------------------------
# The single fused kernel (one grid step == Bb batch elements, both modalities)
# ---------------------------------------------------------------------------

def _fused_kernel(text_ref, image_ref, *refs, num_heads, scale):
    *w_refs, t_out_ref, i_out_ref = refs
    te_w, ie_w = w_refs[0:10], w_refs[10:20]
    wq, bq, wkv, bkv, wf, bf = w_refs[20:26]
    fw1a, fw1b, fb1, fw2, fb2 = w_refs[26:31]

    Bb, S, D = text_ref.shape
    _, R, _ = image_ref.shape
    nt, ni = Bb * S, Bb * R

    # --- EmergenceCore x2 (independent weights) --------------------------------
    te_f = _emergence(text_ref[...].astype(jnp.float32), te_w, num_heads, scale)
    ie_f = _emergence(image_ref[...].astype(jnp.float32), ie_w, num_heads, scale)

    # --- Shared CrossModalAttention, both directions ---------------------------
    # Q / KV projections for the two directions are batched through the same
    # weights in single (nt+ni, D) matmuls (row concat is sublane-aligned).
    q_all = (_mm(jnp.concatenate([te_f, ie_f], axis=0), wq[...]) + bq[...]) * scale
    kv_all = _mm(jnp.concatenate([ie_f, te_f], axis=0), wkv[...]) + bkv[...]

    q_t = q_all[:nt].reshape(Bb, S, D)            # text queries
    q_i = q_all[nt:].reshape(Bb, R, D)            # image queries
    kv_t = kv_all[:ni].reshape(Bb, R, 2 * D)      # image-derived K|V (text path)
    kv_i = kv_all[ni:].reshape(Bb, S, 2 * D)      # text-derived  K|V (image path)

    att_t = _attn_proj(q_t, kv_t[:, :, :D], kv_t[:, :, D:], wf, num_heads)
    att_i = _attn_proj(q_i, kv_i[:, :, :D], kv_i[:, :, D:], wf, num_heads)
    tc_f = att_t + bf[...] + te_f                 # text_context  (+ residual)
    ic_f = att_i + bf[...] + ie_f                 # image_context (+ residual)

    # --- Shared fusion MLP on cat([emerged, context], -1) ----------------------
    # W1 pre-split (W1a for emerged, W1b for context) so the concat never
    # materializes; text+image rows batched into one matmul per layer.
    a_all = jnp.concatenate([te_f, ie_f], axis=0)
    b_all = jnp.concatenate([tc_f, ic_f], axis=0)
    h = _gelu(_mm(a_all, fw1a[...]) + _mm(b_all, fw1b[...]) + fb1[...])
    out = _mm(h, fw2[...]) + fb2[...]

    t_out_ref[...] = out[:nt].reshape(Bb, S, D).astype(t_out_ref.dtype)
    i_out_ref[...] = out[nt:].reshape(Bb, R, D).astype(i_out_ref.dtype)


# ---------------------------------------------------------------------------
# pallas_call wrapper
# ---------------------------------------------------------------------------

def _pick_batch_block(batch, rows_per_batch, target_rows=256, max_rows=2048):
    """Batch elements per grid step: smallest divisor of `batch` that gives the
    MXU >= target rows per matmul (keeping the grid as long as possible for
    v7x's two TensorCores), bounded so per-step activations stay small."""
    divisors = [d for d in range(1, batch + 1) if batch % d == 0]
    fits = [d for d in divisors if d * rows_per_batch <= max_rows]
    if not fits:
        return 1
    hits = [d for d in fits if d * rows_per_batch >= target_rows]
    return min(hits) if hits else max(fits)


def bidirectional_emergence_core(text_feat, image_feat, params, num_heads=8):
    B, S, D = text_feat.shape
    Bi, R, Di = image_feat.shape
    assert B == Bi and D == Di and D % num_heads == 0
    scale = 1.0 / math.sqrt(D // num_heads)

    Bb = _pick_batch_block(B, S + R)
    assert B % Bb == 0

    flat_w = ([params["text_emergence"][k] for k in _EMERGENCE_KEYS]
              + [params["image_emergence"][k] for k in _EMERGENCE_KEYS]
              + [params["cross_modal"][k] for k in _CROSS_KEYS]
              + [params["fusion"][k] for k in _FUSION_KEYS])

    # Grid-invariant weight blocks: constant index_map -> DMA'd once, Pallas
    # skips re-fetch when the block index does not change.
    # TODO(synk): for D >~ 1k on v7x (64 MiB VMEM), single-buffer these with
    # pipeline_mode=pl.Buffered(1) and k-tile the MLP matmuls with an f32
    # accumulator scratch; at D=128 the whole bf16 weight set is ~1.5 MiB so
    # whole-block residency is the right call.
    w_specs = [pl.BlockSpec(w.shape, lambda i: (0, 0)) for w in flat_w]

    return pl.pallas_call(
        functools.partial(_fused_kernel, num_heads=num_heads, scale=scale),
        out_shape=(jax.ShapeDtypeStruct((B, S, D), text_feat.dtype),
                   jax.ShapeDtypeStruct((B, R, D), image_feat.dtype)),
        grid=(B // Bb,),
        in_specs=[pl.BlockSpec((Bb, S, D), lambda i: (i, 0, 0)),
                  pl.BlockSpec((Bb, R, D), lambda i: (i, 0, 0))] + w_specs,
        out_specs=(pl.BlockSpec((Bb, S, D), lambda i: (i, 0, 0)),
                   pl.BlockSpec((Bb, R, D), lambda i: (i, 0, 0))),
        compiler_params=pltpu.CompilerParams(
            dimension_semantics=("parallel",),
            vmem_limit_bytes=_VMEM_LIMIT),
    )(text_feat, image_feat, *flat_w)


# ---------------------------------------------------------------------------
# Parameters: PyTorch (Dout, Din) layout -> one-time transposed / fused layout
# ---------------------------------------------------------------------------

def prepare_params(p):
    """One-time weight prep: transpose to (Din, Dout), cast matmul weights to
    bf16, fuse QKV / K|V, split the fusion W1 so the concat never materializes.
    Biases stay f32 (added post-accumulation) and are stored as (1, N)."""
    Tw = lambda w: jnp.asarray(w, jnp.float32).T.astype(WEIGHT_DTYPE)
    Bv = lambda b: jnp.asarray(b, jnp.float32)[None, :]

    def prep_emergence(e):
        m = e["mha"]
        wqkv = jnp.concatenate([jnp.asarray(m["wq"], jnp.float32).T,
                                jnp.asarray(m["wk"], jnp.float32).T,
                                jnp.asarray(m["wv"], jnp.float32).T], axis=1)
        return {
            "wqkv": wqkv.astype(WEIGHT_DTYPE),
            "bqkv": jnp.concatenate([m["bq"], m["bk"], m["bv"]]).astype(jnp.float32)[None, :],
            "wo": Tw(m["wo"]), "bo": Bv(m["bo"]),
            "w1": Tw(e["w1"]), "b1": Bv(e["b1"]),
            "w2": Tw(e["w2"]), "b2": Bv(e["b2"]),
            "w3": Tw(e["w3"]), "b3": Bv(e["b3"]),
        }

    cm, fu = p["cross_modal"], p["fusion"]
    dim = cm["wq"].shape[0]
    w1t = jnp.asarray(fu["w1"], jnp.float32).T                  # (2D, 2D)
    return {
        "text_emergence": prep_emergence(p["text_emergence"]),
        "image_emergence": prep_emergence(p["image_emergence"]),
        "cross_modal": {
            "wq": Tw(cm["wq"]), "bq": Bv(cm["bq"]),
            "wkv": jnp.concatenate([jnp.asarray(cm["wk"], jnp.float32).T,
                                    jnp.asarray(cm["wv"], jnp.float32).T],
                                   axis=1).astype(WEIGHT_DTYPE),
            "bkv": jnp.concatenate([cm["bk"], cm["bv"]]).astype(jnp.float32)[None, :],
            "wf": Tw(cm["wf"]), "bf": Bv(cm["bf"]),
        },
        "fusion": {
            "w1a": w1t[:dim].astype(WEIGHT_DTYPE),
            "w1b": w1t[dim:].astype(WEIGHT_DTYPE),
            "b1": Bv(fu["b1"]),
            "w2": Tw(fu["w2"]), "b2": Bv(fu["b2"]),
        },
    }


def init_params(key, dim):
    """Deterministic synthetic params in PyTorch nn.Linear (Dout, Din) layout."""
    keys = iter(jax.random.split(key, 64))

    def w(shape, s=0.05):
        return s * jax.random.normal(next(keys), shape, jnp.float32)

    def b(shape):
        return 0.01 * jax.random.normal(next(keys), shape, jnp.float32)

    def emergence(d):
        return {
            "mha": {"wq": w((d, d)), "bq": b((d,)),
                    "wk": w((d, d)), "bk": b((d,)),
                    "wv": w((d, d)), "bv": b((d,)),
                    "wo": w((d, d)), "bo": b((d,))},
            "w1": w((4 * d, d)), "b1": b((4 * d,)),
            "w2": w((2 * d, 4 * d)), "b2": b((2 * d,)),
            "w3": w((d, 2 * d)), "b3": b((d,)),
        }

    return {
        "text_emergence": emergence(dim),
        "image_emergence": emergence(dim),
        "cross_modal": {"wq": w((dim, dim)), "bq": b((dim,)),
                        "wk": w((dim, dim)), "bk": b((dim,)),
                        "wv": w((dim, dim)), "bv": b((dim,)),
                        "wf": w((dim, dim)), "bf": b((dim,))},
        "fusion": {"w1": w((2 * dim, 2 * dim)), "b1": b((2 * dim,)),
                   "w2": w((dim, 2 * dim)), "b2": b((2 * dim // 2,))},
    }


if __name__ == "__main__":
    # batch, text seq len, image regions, dim (multiple of 128 -> lane-dense)
    B, S, R, D = 2, 8, 16, 128
    key = jax.random.PRNGKey(0)
    k_text, k_img, k_params = jax.random.split(key, 3)
    text_feat = jax.random.normal(k_text, (B, S, D), jnp.float32)
    image_feat = jax.random.normal(k_img, (B, R, D), jnp.float32)

    params = prepare_params(init_params(k_params, D))   # one-time weight prep

    text_final, image_final = jax.jit(bidirectional_emergence_core)(
        text_feat, image_feat, params)
    jax.block_until_ready((text_final, image_final))

    assert text_final.shape == (B, S, D) and image_final.shape == (B, R, D)
    assert text_final.dtype == jnp.float32 and image_final.dtype == jnp.float32
    assert bool(jnp.all(jnp.isfinite(text_final)))
    assert bool(jnp.all(jnp.isfinite(image_final)))
    print("KERNEL_OK")
</pallas_src>

<mosaic_0001>
module attributes {stable_mosaic.version = 11 : i64} {
  func.func @_fused_kernel(%arg0: i32, %arg1: memref<2x8x128xf32, #tpu.memory_space<vmem>>, %arg2: memref<2x16x128xf32, #tpu.memory_space<vmem>>, %arg3: memref<128x384xbf16, #tpu.memory_space<vmem>>, %arg4: memref<1x384xf32, #tpu.memory_space<vmem>>, %arg5: memref<128x128xbf16, #tpu.memory_space<vmem>>, %arg6: memref<1x128xf32, #tpu.memory_space<vmem>>, %arg7: memref<128x512xbf16, #tpu.memory_space<vmem>>, %arg8: memref<1x512xf32, #tpu.memory_space<vmem>>, %arg9: memref<512x256xbf16, #tpu.memory_space<vmem>>, %arg10: memref<1x256xf32, #tpu.memory_space<vmem>>, %arg11: memref<256x128xbf16, #tpu.memory_space<vmem>>, %arg12: memref<1x128xf32, #tpu.memory_space<vmem>>, %arg13: memref<128x384xbf16, #tpu.memory_space<vmem>>, %arg14: memref<1x384xf32, #tpu.memory_space<vmem>>, %arg15: memref<128x128xbf16, #tpu.memory_space<vmem>>, %arg16: memref<1x128xf32, #tpu.memory_space<vmem>>, %arg17: memref<128x512xbf16, #tpu.memory_space<vmem>>, %arg18: memref<1x512xf32, #tpu.memory_space<vmem>>, %arg19: memref<512x256xbf16, #tpu.memory_space<vmem>>, %arg20: memref<1x256xf32, #tpu.memory_space<vmem>>, %arg21: memref<256x128xbf16, #tpu.memory_space<vmem>>, %arg22: memref<1x128xf32, #tpu.memory_space<vmem>>, %arg23: memref<128x128xbf16, #tpu.memory_space<vmem>>, %arg24: memref<1x128xf32, #tpu.memory_space<vmem>>, %arg25: memref<128x256xbf16, #tpu.memory_space<vmem>>, %arg26: memref<1x256xf32, #tpu.memory_space<vmem>>, %arg27: memref<128x128xbf16, #tpu.memory_space<vmem>>, %arg28: memref<1x128xf32, #tpu.memory_space<vmem>>, %arg29: memref<128x256xbf16, #tpu.memory_space<vmem>>, %arg30: memref<128x256xbf16, #tpu.memory_space<vmem>>, %arg31: memref<1x256xf32, #tpu.memory_space<vmem>>, %arg32: memref<256x128xbf16, #tpu.memory_space<vmem>>, %arg33: memref<1x128xf32, #tpu.memory_space<vmem>>, %arg34: memref<2x8x128xf32, #tpu.memory_space<vmem>>, %arg35: memref<2x16x128xf32, #tpu.memory_space<vmem>>) attributes {dimension_semantics = [#tpu.dimension_semantics<parallel>], iteration_bounds = array<i64: 1>, scalar_prefetch = 0 : i64, scratch_operands = 0 : i64, tpu.core_type = #tpu.core_type<tc>, window_params = [{transform_indices = @transform_0, window_bounds = array<i64: 2, 8, 128>}, {transform_indices = @transform_1, window_bounds = array<i64: 2, 16, 128>}, {pipeline_mode = #tpu.pipeline_mode<synchronous>, transform_indices = @transform_2, window_bounds = array<i64: 128, 384>}, {pipeline_mode = #tpu.pipeline_mode<synchronous>, transform_indices = @transform_3, window_bounds = array<i64: 1, 384>}, {pipeline_mode = #tpu.pipeline_mode<synchronous>, transform_indices = @transform_4, window_bounds = array<i64: 128, 128>}, {pipeline_mode = #tpu.pipeline_mode<synchronous>, transform_indices = @transform_5, window_bounds = array<i64: 1, 128>}, {pipeline_mode = #tpu.pipeline_mode<synchronous>, transform_indices = @transform_6, window_bounds = array<i64: 128, 512>}, {pipeline_mode = #tpu.pipeline_mode<synchronous>, transform_indices = @transform_7, window_bounds = array<i64: 1, 512>}, {pipeline_mode = #tpu.pipeline_mode<synchronous>, transform_indices = @transform_8, window_bounds = array<i64: 512, 256>}, {pipeline_mode = #tpu.pipeline_mode<synchronous>, transform_indices = @transform_9, window_bounds = array<i64: 1, 256>}, {pipeline_mode = #tpu.pipeline_mode<synchronous>, transform_indices = @transform_10, window_bounds = array<i64: 256, 128>}, {pipeline_mode = #tpu.pipeline_mode<synchronous>, transform_indices = @transform_11, window_bounds = array<i64: 1, 128>}, {pipeline_mode = #tpu.pipeline_mode<synchronous>, transform_indices = @transform_12, window_bounds = array<i64: 128, 384>}, {pipeline_mode = #tpu.pipeline_mode<synchronous>, transform_indices = @transform_13, window_bounds = array<i64: 1, 384>}, {pipeline_mode = #tpu.pipeline_mode<synchronous>, transform_indices = @transform_14, window_bounds = array<i64: 128, 128>}, {pipeline_mode = #tpu.pipeline_mode<synchronous>, transform_indices = @transform_15, window_bounds = array<i64: 1, 128>}, {pipeline_mode = #tpu.pipeline_mode<synchronous>, transform_indices = @transform_16, window_bounds = array<i64: 128, 512>}, {pipeline_mode = #tpu.pipeline_mode<synchronous>, transform_indices = @transform_17, window_bounds = array<i64: 1, 512>}, {pipeline_mode = #tpu.pipeline_mode<synchronous>, transform_indices = @transform_18, window_bounds = array<i64: 512, 256>}, {pipeline_mode = #tpu.pipeline_mode<synchronous>, transform_indices = @transform_19, window_bounds = array<i64: 1, 256>}, {pipeline_mode = #tpu.pipeline_mode<synchronous>, transform_indices = @transform_20, window_bounds = array<i64: 256, 128>}, {pipeline_mode = #tpu.pipeline_mode<synchronous>, transform_indices = @transform_21, window_bounds = array<i64: 1, 128>}, {pipeline_mode = #tpu.pipeline_mode<synchronous>, transform_indices = @transform_22, window_bounds = array<i64: 128, 128>}, {pipeline_mode = #tpu.pipeline_mode<synchronous>, transform_indices = @transform_23, window_bounds = array<i64: 1, 128>}, {pipeline_mode = #tpu.pipeline_mode<synchronous>, transform_indices = @transform_24, window_bounds = array<i64: 128, 256>}, {pipeline_mode = #tpu.pipeline_mode<synchronous>, transform_indices = @transform_25, window_bounds = array<i64: 1, 256>}, {pipeline_mode = #tpu.pipeline_mode<synchronous>, transform_indices = @transform_26, window_bounds = array<i64: 128, 128>}, {pipeline_mode = #tpu.pipeline_mode<synchronous>, transform_indices = @transform_27, window_bounds = array<i64: 1, 128>}, {pipeline_mode = #tpu.pipeline_mode<synchronous>, transform_indices = @transform_28, window_bounds = array<i64: 128, 256>}, {pipeline_mode = #tpu.pipeline_mode<synchronous>, transform_indices = @transform_29, window_bounds = array<i64: 128, 256>}, {pipeline_mode = #tpu.pipeline_mode<synchronous>, transform_indices = @transform_30, window_bounds = array<i64: 1, 256>}, {pipeline_mode = #tpu.pipeline_mode<synchronous>, transform_indices = @transform_31, window_bounds = array<i64: 256, 128>}, {pipeline_mode = #tpu.pipeline_mode<synchronous>, transform_indices = @transform_32, window_bounds = array<i64: 1, 128>}, {transform_indices = @transform_33, window_bounds = array<i64: 2, 8, 128>}, {transform_indices = @transform_34, window_bounds = array<i64: 2, 16, 128>}]} {
    %c0 = arith.constant 0 : index
    %c0_0 = arith.constant 0 : index
    %c0_1 = arith.constant 0 : index
    %0 = vector.load %arg1[%c0, %c0_0, %c0_1] : memref<2x8x128xf32, #tpu.memory_space<vmem>>, vector<2x8x128xf32>
    %1 = vector.shape_cast %0 : vector<2x8x128xf32> to vector<16x128xf32>
    %c0_2 = arith.constant 0 : index
    %c0_3 = arith.constant 0 : index
    %2 = vector.load %arg3[%c0_2, %c0_3] : memref<128x384xbf16, #tpu.memory_space<vmem>>, vector<128x384xbf16>
    %3 = arith.truncf %1 : vector<16x128xf32> to vector<16x128xbf16>
    %cst = arith.constant dense<0.000000e+00> : vector<16x384xf32>
    %4 = tpu.matmul %3, %2, %cst {dimension_numbers = #tpu.dot_dimension_numbers<[1], [0], [0], [1], [0, 0, 1, 1], [], []>} : vector<16x128xbf16>, vector<128x384xbf16>, vector<16x384xf32> -> vector<16x384xf32>
    %c0_4 = arith.constant 0 : index
    %c0_5 = arith.constant 0 : index
    %5 = vector.load %arg4[%c0_4, %c0_5] : memref<1x384xf32, #tpu.memory_space<vmem>>, vector<1x384xf32>
    %6 = vector.broadcast %5 : vector<1x384xf32> to vector<16x384xf32>
    %7 = arith.addf %4, %6 : vector<16x384xf32>
    %8 = vector.shape_cast %7 : vector<16x384xf32> to vector<2x8x384xf32>
    %9 = vector.extract_strided_slice %8 {offsets = [0, 0, 0], sizes = [2, 8, 128], strides = [1, 1, 1]} : vector<2x8x384xf32> to vector<2x8x128xf32>
    %cst_6 = arith.constant 2.500000e-01 : f32
    %10 = vector.broadcast %cst_6 : f32 to vector<2x8x128xf32>
    %11 = arith.mulf %9, %10 : vector<2x8x128xf32>
    %12 = vector.extract_strided_slice %8 {offsets = [0, 0, 128], sizes = [2, 8, 128], strides = [1, 1, 1]} : vector<2x8x384xf32> to vector<2x8x128xf32>
    %13 = vector.extract_strided_slice %8 {offsets = [0, 0, 256], sizes = [2, 8, 128], strides = [1, 1, 1]} : vector<2x8x384xf32> to vector<2x8x128xf32>
    %cst_7 = arith.constant 0.000000e+00 : f32
    %14 = vector.broadcast %cst_7 : f32 to vector<16x128xf32>
    %15 = vector.extract_strided_slice %11 {offsets = [0, 0, 0], sizes = [2, 8, 16], strides = [1, 1, 1]} : vector<2x8x128xf32> to vector<2x8x16xf32>
    %16 = arith.truncf %15 : vector<2x8x16xf32> to vector<2x8x16xbf16>
    %17 = vector.extract_strided_slice %12 {offsets = [0, 0, 0], sizes = [2, 8, 16], strides = [1, 1, 1]} : vector<2x8x128xf32> to vector<2x8x16xf32>
    %18 = arith.truncf %17 : vector<2x8x16xf32> to vector<2x8x16xbf16>
    "tpu.trace_start"() <{level = 10 : i32, message = "bqd,bkd->bqk"}> : () -> ()
    %cst_8 = arith.constant dense<0.000000e+00> : vector<2x8x8xf32>
    %19 = tpu.matmul %16, %18, %cst_8 {dimension_numbers = #tpu.dot_dimension_numbers<[2], [2], [1], [1], [0, 0, 0, 1, 1, 1], [0], [0]>} : vector<2x8x16xbf16>, vector<2x8x16xbf16>, vector<2x8x8xf32> -> vector<2x8x8xf32>
    "tpu.trace_stop"() : () -> ()
    %cst_9 = arith.constant dense<0xFF800000> : vector<2x8xf32>
    %20 = vector.multi_reduction <maximumf>, %19, %cst_9 [2] : vector<2x8x8xf32> to vector<2x8xf32>
    %21 = vector.shape_cast %20 : vector<2x8xf32> to vector<2x8x1xf32>
    %22 = vector.broadcast %21 : vector<2x8x1xf32> to vector<2x8x8xf32>
    %23 = arith.subf %19, %22 : vector<2x8x8xf32>
    %24 = math.exp %23 : vector<2x8x8xf32>
    %cst_10 = arith.constant dense<0.000000e+00> : vector<2x8xf32>
    %25 = vector.multi_reduction <add>, %24, %cst_10 [2] : vector<2x8x8xf32> to vector<2x8xf32>
    %26 = vector.shape_cast %25 : vector<2x8xf32> to vector<2x8x1xf32>
    %27 = vector.broadcast %26 : vector<2x8x1xf32> to vector<2x8x8xf32>
    %28 = arith.divf %24, %27 : vector<2x8x8xf32>
    %29 = arith.truncf %28 : vector<2x8x8xf32> to vector<2x8x8xbf16>
    %30 = vector.extract_strided_slice %13 {offsets = [0, 0, 0], sizes = [2, 8, 16], strides = [1, 1, 1]} : vector<2x8x128xf32> to vector<2x8x16xf32>
    %31 = arith.truncf %30 : vector<2x8x16xf32> to vector<2x8x16xbf16>
    "tpu.trace_start"() <{level = 10 : i32, message = "bqk,bkd->bqd"}> : () -> ()
    %cst_11 = arith.constant dense<0.000000e+00> : vector<2x8x16xf32>
    %32 = tpu.matmul %29, %31, %cst_11 {dimension_numbers = #tpu.dot_dimension_numbers<[2], [1], [1], [2], [0, 0, 0, 1, 1, 2], [0], [0]>} : vector<2x8x8xbf16>, vector<2x8x16xbf16>, vector<2x8x16xf32> -> vector<2x8x16xf32>
    "tpu.trace_stop"() : () -> ()
    %33 = vector.shape_cast %32 : vector<2x8x16xf32> to vector<16x16xf32>
    %c0_12 = arith.constant 0 : index
    %c0_13 = arith.constant 0 : index
    %34 = vector.load %arg5[%c0_12, %c0_13] : memref<128x128xbf16, #tpu.memory_space<vmem>>, vector<16x128xbf16>
    %35 = arith.truncf %33 : vector<16x16xf32> to vector<16x16xbf16>
    %cst_14 = arith.constant dense<0.000000e+00> : vector<16x128xf32>
    %36 = tpu.matmul %35, %34, %cst_14 {dimension_numbers = #tpu.dot_dimension_numbers<[1], [0], [0], [1], [0, 0, 1, 1], [], []>} : vector<16x16xbf16>, vector<16x128xbf16>, vector<16x128xf32> -> vector<16x128xf32>
    %37 = arith.addf %14, %36 : vector<16x128xf32>
    %38 = vector.extract_strided_slice %11 {offsets = [0, 0, 16], sizes = [2, 8, 16], strides = [1, 1, 1]} : vector<2x8x128xf32> to vector<2x8x16xf32>
    %39 = arith.truncf %38 : vector<2x8x16xf32> to vector<2x8x16xbf16>
    %40 = vector.extract_strided_slice %12 {offsets = [0, 0, 16], sizes = [2, 8, 16], strides = [1, 1, 1]} : vector<2x8x128xf32> to vector<2x8x16xf32>
    %41 = arith.truncf %40 : vector<2x8x16xf32> to vector<2x8x16xbf16>
    "tpu.trace_start"() <{level = 10 : i32, message = "bqd,bkd->bqk"}> : () -> ()
    %cst_15 = arith.constant dense<0.000000e+00> : vector<2x8x8xf32>
    %42 = tpu.matmul %39, %41, %cst_15 {dimension_numbers = #tpu.dot_dimension_numbers<[2], [2], [1], [1], [0, 0, 0, 1, 1, 1], [0], [0]>} : vector<2x8x16xbf16>, vector<2x8x16xbf16>, vector<2x8x8xf32> -> vector<2x8x8xf32>
    "tpu.trace_stop"() : () -> ()
    %cst_16 = arith.constant dense<0xFF800000> : vector<2x8xf32>
    %43 = vector.multi_reduction <maximumf>, %42, %cst_16 [2] : vector<2x8x8xf32> to vector<2x8xf32>
    %44 = vector.shape_cast %43 : vector<2x8xf32> to vector<2x8x1xf32>
    %45 = vector.broadcast %44 : vector<2x8x1xf32> to vector<2x8x8xf32>
    %46 = arith.subf %42, %45 : vector<2x8x8xf32>
    %47 = math.exp %46 : vector<2x8x8xf32>
    %cst_17 = arith.constant dense<0.000000e+00> : vector<2x8xf32>
    %48 = vector.multi_reduction <add>, %47, %cst_17 [2] : vector<2x8x8xf32> to vector<2x8xf32>
    %49 = vector.shape_cast %48 : vector<2x8xf32> to vector<2x8x1xf32>
    %50 = vector.broadcast %49 : vector<2x8x1xf32> to vector<2x8x8xf32>
    %51 = arith.divf %47, %50 : vector<2x8x8xf32>
    %52 = arith.truncf %51 : vector<2x8x8xf32> to vector<2x8x8xbf16>
    %53 = vector.extract_strided_slice %13 {offsets = [0, 0, 16], sizes = [2, 8, 16], strides = [1, 1, 1]} : vector<2x8x128xf32> to vector<2x8x16xf32>
    %54 = arith.truncf %53 : vector<2x8x16xf32> to vector<2x8x16xbf16>
    "tpu.trace_start"() <{level = 10 : i32, message = "bqk,bkd->bqd"}> : () -> ()
    %cst_18 = arith.constant dense<0.000000e+00> : vector<2x8x16xf32>
    %55 = tpu.matmul %52, %54, %cst_18 {dimension_numbers = #tpu.dot_dimension_numbers<[2], [1], [1], [2], [0, 0, 0, 1, 1, 2], [0], [0]>} : vector<2x8x8xbf16>, vector<2x8x16xbf16>, vector<2x8x16xf32> -> vector<2x8x16xf32>
    "tpu.trace_stop"() : () -> ()
    %56 = vector.shape_cast %55 : vector<2x8x16xf32> to vector<16x16xf32>
    %c16 = arith.constant 16 : index
    %c0_19 = arith.constant 0 : index
    %57 = vector.load %arg5[%c16, %c0_19] : memref<128x128xbf16, #tpu.memory_space<vmem>>, vector<16x128xbf16>
    %58 = arith.truncf %56 : vector<16x16xf32> to vector<16x16xbf16>
    %cst_20 = arith.constant dense<0.000000e+00> : vector<16x128xf32>
    %59 = tpu.matmul %58, %57, %cst_20 {dimension_numbers = #tpu.dot_dimension_numbers<[1], [0], [0], [1], [0, 0, 1, 1], [], []>} : vector<16x16xbf16>, vector<16x128xbf16>, vector<16x128xf32> -> vector<16x128xf32>
    %60 = arith.addf %37, %59 : vector<16x128xf32>
    %61 = vector.extract_strided_slice %11 {offsets = [0, 0, 32], sizes = [2, 8, 16], strides = [1, 1, 1]} : vector<2x8x128xf32> to vector<2x8x16xf32>
    %62 = arith.truncf %61 : vector<2x8x16xf32> to vector<2x8x16xbf16>
    %63 = vector.extract_strided_slice %12 {offsets = [0, 0, 32], sizes = [2, 8, 16], strides = [1, 1, 1]} : vector<2x8x128xf32> to vector<2x8x16xf32>
    %64 = arith.truncf %63 : vector<2x8x16xf32> to vector<2x8x16xbf16>
    "tpu.trace_start"() <{level = 10 : i32, message = "bqd,bkd->bqk"}> : () -> ()
    %cst_21 = arith.constant dense<0.000000e+00> : vector<2x8x8xf32>
    %65 = tpu.matmul %62, %64, %cst_21 {dimension_numbers = #tpu.dot_dimension_numbers<[2], [2], [1], [1], [0, 0, 0, 1, 1, 1], [0], [0]>} : vector<2x8x16xbf16>, vector<2x8x16xbf16>, vector<2x8x8xf32> -> vector<2x8x8xf32>
    "tpu.trace_stop"() : () -> ()
    %cst_22 = arith.constant dense<0xFF800000> : vector<2x8xf32>
    %66 = vector.multi_reduction <maximumf>, %65, %cst_22 [2] : vector<2x8x8xf32> to vector<2x8xf32>
    %67 = vector.shape_cast %66 : vector<2x8xf32> to vector<2x8x1xf32>
    %68 = vector.broadcast %67 : vector<2x8x1xf32> to vector<2x8x8xf32>
    %69 = arith.subf %65, %68 : vector<2x8x8xf32>
    %70 = math.exp %69 : vector<2x8x8xf32>
    %cst_23 = arith.constant dense<0.000000e+00> : vector<2x8xf32>
    %71 = vector.multi_reduction <add>, %70, %cst_23 [2] : vector<2x8x8xf32> to vector<2x8xf32>
    %72 = vector.shape_cast %71 : vector<2x8xf32> to vector<2x8x1xf32>
    %73 = vector.broadcast %72 : vector<2x8x1xf32> to vector<2x8x8xf32>
    %74 = arith.divf %70, %73 : vector<2x8x8xf32>
    %75 = arith.truncf %74 : vector<2x8x8xf32> to vector<2x8x8xbf16>
    %76 = vector.extract_strided_slice %13 {offsets = [0, 0, 32], sizes = [2, 8, 16], strides = [1, 1, 1]} : vector<2x8x128xf32> to vector<2x8x16xf32>
    %77 = arith.truncf %76 : vector<2x8x16xf32> to vector<2x8x16xbf16>
    "tpu.trace_start"() <{level = 10 : i32, message = "bqk,bkd->bqd"}> : () -> ()
    %cst_24 = arith.constant dense<0.000000e+00> : vector<2x8x16xf32>
    %78 = tpu.matmul %75, %77, %cst_24 {dimension_numbers = #tpu.dot_dimension_numbers<[2], [1], [1], [2], [0, 0, 0, 1, 1, 2], [0], [0]>} : vector<2x8x8xbf16>, vector<2x8x16xbf16>, vector<2x8x16xf32> -> vector<2x8x16xf32>
    "tpu.trace_stop"() : () -> ()
    %79 = vector.shape_cast %78 : vector<2x8x16xf32> to vector<16x16xf32>
    %c32 = arith.constant 32 : index
    %c0_25 = arith.constant 0 : index
    %80 = vector.load %arg5[%c32, %c0_25] : memref<128x128xbf16, #tpu.memory_space<vmem>>, vector<16x128xbf16>
    %81 = arith.truncf %79 : vector<16x16xf32> to vector<16x16xbf16>
    %cst_26 = arith.constant dense<0.000000e+00> : vector<16x128xf32>
    %82 = tpu.matmul %81, %80, %cst_26 {dimension_numbers = #tpu.dot_dimension_numbers<[1], [0], [0], [1], [0, 0, 1, 1], [], []>} : vector<16x16xbf16>, vector<16x128xbf16>, vector<16x128xf32> -> vector<16x128xf32>
    %83 = arith.addf %60, %82 : vector<16x128xf32>
    %84 = vector.extract_strided_slice %11 {offsets = [0, 0, 48], sizes = [2, 8, 16], strides = [1, 1, 1]} : vector<2x8x128xf32> to vector<2x8x16xf32>
    %85 = arith.truncf %84 : vector<2x8x16xf32> to vector<2x8x16xbf16>
    %86 = vector.extract_strided_slice %12 {offsets = [0, 0, 48], sizes = [2, 8, 16], strides = [1, 1, 1]} : vector<2x8x128xf32> to vector<2x8x16xf32>
    %87 = arith.truncf %86 : vector<2x8x16xf32> to vector<2x8x16xbf16>
    "tpu.trace_start"() <{level = 10 : i32, message = "bqd,bkd->bqk"}> : () -> ()
    %cst_27 = arith.constant dense<0.000000e+00> : vector<2x8x8xf32>
    %88 = tpu.matmul %85, %87, %cst_27 {dimension_numbers = #tpu.dot_dimension_numbers<[2], [2], [1], [1], [0, 0, 0, 1, 1, 1], [0], [0]>} : vector<2x8x16xbf16>, vector<2x8x16xbf16>, vector<2x8x8xf32> -> vector<2x8x8xf32>
    "tpu.trace_stop"() : () -> ()
    %cst_28 = arith.constant dense<0xFF800000> : vector<2x8xf32>
    %89 = vector.multi_reduction <maximumf>, %88, %cst_28 [2] : vector<2x8x8xf32> to vector<2x8xf32>
    %90 = vector.shape_cast %89 : vector<2x8xf32> to vector<2x8x1xf32>
    %91 = vector.broadcast %90 : vector<2x8x1xf32> to vector<2x8x8xf32>
    %92 = arith.subf %88, %91 : vector<2x8x8xf32>
    %93 = math.exp %92 : vector<2x8x8xf32>
    %cst_29 = arith.constant dense<0.000000e+00> : vector<2x8xf32>
    %94 = vector.multi_reduction <add>, %93, %cst_29 [2] : vector<2x8x8xf32> to vector<2x8xf32>
    %95 = vector.shape_cast %94 : vector<2x8xf32> to vector<2x8x1xf32>
    %96 = vector.broadcast %95 : vector<2x8x1xf32> to vector<2x8x8xf32>
    %97 = arith.divf %93, %96 : vector<2x8x8xf32>
    %98 = arith.truncf %97 : vector<2x8x8xf32> to vector<2x8x8xbf16>
    %99 = vector.extract_strided_slice %13 {offsets = [0, 0, 48], sizes = [2, 8, 16], strides = [1, 1, 1]} : vector<2x8x128xf32> to vector<2x8x16xf32>
    %100 = arith.truncf %99 : vector<2x8x16xf32> to vector<2x8x16xbf16>
    "tpu.trace_start"() <{level = 10 : i32, message = "bqk,bkd->bqd"}> : () -> ()
    %cst_30 = arith.constant dense<0.000000e+00> : vector<2x8x16xf32>
    %101 = tpu.matmul %98, %100, %cst_30 {dimension_numbers = #tpu.dot_dimension_numbers<[2], [1], [1], [2], [0, 0, 0, 1, 1, 2], [0], [0]>} : vector<2x8x8xbf16>, vector<2x8x16xbf16>, vector<2x8x16xf32> -> vector<2x8x16xf32>
    "tpu.trace_stop"() : () -> ()
    %102 = vector.shape_cast %101 : vector<2x8x16xf32> to vector<16x16xf32>
    %c48 = arith.constant 48 : index
    %c0_31 = arith.constant 0 : index
    %103 = vector.load %arg5[%c48, %c0_31] : memref<128x128xbf16, #tpu.memory_space<vmem>>, vector<16x128xbf16>
    %104 = arith.truncf %102 : vector<16x16xf32> to vector<16x16xbf16>
    %cst_32 = arith.constant dense<0.000000e+00> : vector<16x128xf32>
    %105 = tpu.matmul %104, %103, %cst_32 {dimension_numbers = #tpu.dot_dimension_numbers<[1], [0], [0], [1], [0, 0, 1, 1], [], []>} : vector<16x16xbf16>, vector<16x128xbf16>, vector<16x128xf32> -> vector<16x128xf32>
    %106 = arith.addf %83, %105 : vector<16x128xf32>
    %107 = vector.extract_strided_slice %11 {offsets = [0, 0, 64], sizes = [2, 8, 16], strides = [1, 1, 1]} : vector<2x8x128xf32> to vector<2x8x16xf32>
    %108 = arith.truncf %107 : vector<2x8x16xf32> to vector<2x8x16xbf16>
    %109 = vector.extract_strided_slice %12 {offsets = [0, 0, 64], sizes = [2, 8, 16], strides = [1, 1, 1]} : vector<2x8x128xf32> to vector<2x8x16xf32>
    %110 = arith.truncf %109 : vector<2x8x16xf32> to vector<2x8x16xbf16>
    "tpu.trace_start"() <{level = 10 : i32, message = "bqd,bkd->bqk"}> : () -> ()
    %cst_33 = arith.constant dense<0.000000e+00> : vector<2x8x8xf32>
    %111 = tpu.matmul %108, %110, %cst_33 {dimension_numbers = #tpu.dot_dimension_numbers<[2], [2], [1], [1], [0, 0, 0, 1, 1, 1], [0], [0]>} : vector<2x8x16xbf16>, vector<2x8x16xbf16>, vector<2x8x8xf32> -> vector<2x8x8xf32>
    "tpu.trace_stop"() : () -> ()
    %cst_34 = arith.constant dense<0xFF800000> : vector<2x8xf32>
    %112 = vector.multi_reduction <maximumf>, %111, %cst_34 [2] : vector<2x8x8xf32> to vector<2x8xf32>
    %113 = vector.shape_cast %112 : vector<2x8xf32> to vector<2x8x1xf32>
    %114 = vector.broadcast %113 : vector<2x8x1xf32> to vector<2x8x8xf32>
    %115 = arith.subf %111, %114 : vector<2x8x8xf32>
    %116 = math.exp %115 : vector<2x8x8xf32>
    %cst_35 = arith.constant dense<0.000000e+00> : vector<2x8xf32>
    %117 = vector.multi_reduction <add>, %116, %cst_35 [2] : vector<2x8x8xf32> to vector<2x8xf32>
    %118 = vector.shape_cast %117 : vector<2x8xf32> to vector<2x8x1xf32>
    %119 = vector.broadcast %118 : vector<2x8x1xf32> to vector<2x8x8xf32>
    %120 = arith.divf %116, %119 : vector<2x8x8xf32>
    %121 = arith.truncf %120 : vector<2x8x8xf32> to vector<2x8x8xbf16>
    %122 = vector.extract_strided_slice %13 {offsets = [0, 0, 64], sizes = [2, 8, 16], strides = [1, 1, 1]} : vector<2x8x128xf32> to vector<2x8x16xf32>
    %123 = arith.truncf %122 : vector<2x8x16xf32> to vector<2x8x16xbf16>
    "tpu.trace_start"() <{level = 10 : i32, message = "bqk,bkd->bqd"}> : () -> ()
    %cst_36 = arith.constant dense<0.000000e+00> : vector<2x8x16xf32>
    %124 = tpu.matmul %121, %123, %cst_36 {dimension_numbers = #tpu.dot_dimension_numbers<[2], [1], [1], [2], [0, 0, 0, 1, 1, 2], [0], [0]>} : vector<2x8x8xbf16>, vector<2x8x16xbf16>, vector<2x8x16xf32> -> vector<2x8x16xf32>
    "tpu.trace_stop"() : () -> ()
    %125 = vector.shape_cast %124 : vector<2x8x16xf32> to vector<16x16xf32>
    %c64 = arith.constant 64 : index
    %c0_37 = arith.constant 0 : index
    %126 = vector.load %arg5[%c64, %c0_37] : memref<128x128xbf16, #tpu.memory_space<vmem>>, vector<16x128xbf16>
    %127 = arith.truncf %125 : vector<16x16xf32> to vector<16x16xbf16>
    %cst_38 = arith.constant dense<0.000000e+00> : vector<16x128xf32>
    %128 = tpu.matmul %127, %126, %cst_38 {dimension_numbers = #tpu.dot_dimension_numbers<[1], [0], [0], [1], [0, 0, 1, 1], [], []>} : vector<16x16xbf16>, vector<16x128xbf16>, vector<16x128xf32> -> vector<16x128xf32>
    %129 = arith.addf %106, %128 : vector<16x128xf32>
    %130 = vector.extract_strided_slice %11 {offsets = [0, 0, 80], sizes = [2, 8, 16], strides = [1, 1, 1]} : vector<2x8x128xf32> to vector<2x8x16xf32>
    %131 = arith.truncf %130 : vector<2x8x16xf32> to vector<2x8x16xbf16>
    %132 = vector.extract_strided_slice %12 {offsets = [0, 0, 80], sizes = [2, 8, 16], strides = [1, 1, 1]} : vector<2x8x128xf32> to vector<2x8x16xf32>
    %133 = arith.truncf %132 : vector<2x8x16xf32> to vector<2x8x16xbf16>
    "tpu.trace_start"() <{level = 10 : i32, message = "bqd,bkd->bqk"}> : () -> ()
    %cst_39 = arith.constant dense<0.000000e+00> : vector<2x8x8xf32>
    %134 = tpu.matmul %131, %133, %cst_39 {dimension_numbers = #tpu.dot_dimension_numbers<[2], [2], [1], [1], [0, 0, 0, 1, 1, 1], [0], [0]>} : vector<2x8x16xbf16>, vector<2x8x16xbf16>, vector<2x8x8xf32> -> vector<2x8x8xf32>
    "tpu.trace_stop"() : () -> ()
    %cst_40 = arith.constant dense<0xFF800000> : vector<2x8xf32>
    %135 = vector.multi_reduction <maximumf>, %134, %cst_40 [2] : vector<2x8x8xf32> to vector<2x8xf32>
    %136 = vector.shape_cast %135 : vector<2x8xf32> to vector<2x8x1xf32>
    %137 = vector.broadcast %136 : vector<2x8x1xf32> to vector<2x8x8xf32>
    %138 = arith.subf %134, %137 : vector<2x8x8xf32>
    %139 = math.exp %138 : vector<2x8x8xf32>
    %cst_41 = arith.constant dense<0.000000e+00> : vector<2x8xf32>
    %140 = vector.multi_reduction <add>, %139, %cst_41 [2] : vector<2x8x8xf32> to vector<2x8xf32>
    %141 = vector.shape_cast %140 : vector<2x8xf32> to vector<2x8x1xf32>
    %142 = vector.broadcast %141 : vector<2x8x1xf32> to vector<2x8x8xf32>
    %143 = arith.divf %139, %142 : vector<2x8x8xf32>
    %144 = arith.truncf %143 : vector<2x8x8xf32> to vector<2x8x8xbf16>
    %145 = vector.extract_strided_slice %13 {offsets = [0, 0, 80], sizes = [2, 8, 16], strides = [1, 1, 1]} : vector<2x8x128xf32> to vector<2x8x16xf32>
    %146 = arith.truncf %145 : vector<2x8x16xf32> to vector<2x8x16xbf16>
    "tpu.trace_start"() <{level = 10 : i32, message = "bqk,bkd->bqd"}> : () -> ()
    %cst_42 = arith.constant dense<0.000000e+00> : vector<2x8x16xf32>
    %147 = tpu.matmul %144, %146, %cst_42 {dimension_numbers = #tpu.dot_dimension_numbers<[2], [1], [1], [2], [0, 0, 0, 1, 1, 2], [0], [0]>} : vector<2x8x8xbf16>, vector<2x8x16xbf16>, vector<2x8x16xf32> -> vector<2x8x16xf32>
    "tpu.trace_stop"() : () -> ()
    %148 = vector.shape_cast %147 : vector<2x8x16xf32> to vector<16x16xf32>
    %c80 = arith.constant 80 : index
    %c0_43 = arith.constant 0 : index
    %149 = vector.load %arg5[%c80, %c0_43] : memref<128x128xbf16, #tpu.memory_space<vmem>>, vector<16x128xbf16>
    %150 = arith.truncf %148 : vector<16x16xf32> to vector<16x16xbf16>
    %cst_44 = arith.constant dense<0.000000e+00> : vector<16x128xf32>
    %151 = tpu.matmul %150, %149, %cst_44 {dimension_numbers = #tpu.dot_dimension_numbers<[1], [0], [0], [1], [0, 0, 1, 1], [], []>} : vector<16x16xbf16>, vector<16x128xbf16>, vector<16x128xf32> -> vector<16x128xf32>
    %152 = arith.addf %129, %151 : vector<16x128xf32>
    %153 = vector.extract_strided_slice %11 {offsets = [0, 0, 96], sizes = [2, 8, 16], strides = [1, 1, 1]} : vector<2x8x128xf32> to vector<2x8x16xf32>
    %154 = arith.truncf %153 : vector<2x8x16xf32> to vector<2x8x16xbf16>
    %155 = vector.extract_strided_slice %12 {offsets = [0, 0, 96], sizes = [2, 8, 16], strides = [1, 1, 1]} : vector<2x8x128xf32> to vector<2x8x16xf32>
    %156 = arith.truncf %155 : vector<2x8x16xf32> to vector<2x8x16xbf16>
    "tpu.trace_start"() <{level = 10 : i32, message = "bqd,bkd->bqk"}> : () -> ()
    %cst_45 = arith.constant dense<0.000000e+00> : vector<2x8x8xf32>
    %157 = tpu.matmul %154, %156, %cst_45 {dimension_numbers = #tpu.dot_dimension_numbers<[2], [2], [1], [1], [0, 0, 0, 1, 1, 1], [0], [0]>} : vector<2x8x16xbf16>, vector<2x8x16xbf16>, vector<2x8x8xf32> -> vector<2x8x8xf32>
    "tpu.trace_stop"() : () -> ()
    %cst_46 = arith.constant dense<0xFF800000> : vector<2x8xf32>
    %158 = vector.multi_reduction <maximumf>, %157, %cst_46 [2] : vector<2x8x8xf32> to vector<2x8xf32>
    %159 = vector.shape_cast %158 : vector<2x8xf32> to vector<2x8x1xf32>
    %160 = vector.broadcast %159 : vector<2x8x1xf32> to vector<2x8x8xf32>
    %161 = arith.subf %157, %160 : vector<2x8x8xf32>
    %162 = math.exp %161 : vector<2x8x8xf32>
    %cst_47 = arith.constant dense<0.000000e+00> : vector<2x8xf32>
    %163 = vector.multi_reduction <add>, %162, %cst_47 [2] : vector<2x8x8xf32> to vector<2x8xf32>
    %164 = vector.shape_cast %163 : vector<2x8xf32> to vector<2x8x1xf32>
    %165 = vector.broadcast %164 : vector<2x8x1xf32> to vector<2x8x8xf32>
    %166 = arith.divf %162, %165 : vector<2x8x8xf32>
    %167 = arith.truncf %166 : vector<2x8x8xf32> to vector<2x8x8xbf16>
    %168 = vector.extract_strided_slice %13 {offsets = [0, 0, 96], sizes = [2, 8, 16], strides = [1, 1, 1]} : vector<2x8x128xf32> to vector<2x8x16xf32>
    %169 = arith.truncf %168 : vector<2x8x16xf32> to vector<2x8x16xbf16>
    "tpu.trace_start"() <{level = 10 : i32, message = "bqk,bkd->bqd"}> : () -> ()
    %cst_48 = arith.constant dense<0.000000e+00> : vector<2x8x16xf32>
    %170 = tpu.matmul %167, %169, %cst_48 {dimension_numbers = #tpu.dot_dimension_numbers<[2], [1], [1], [2], [0, 0, 0, 1, 1, 2], [0], [0]>} : vector<2x8x8xbf16>, vector<2x8x16xbf16>, vector<2x8x16xf32> -> vector<2x8x16xf32>
    "tpu.trace_stop"() : () -> ()
    %171 = vector.shape_cast %170 : vector<2x8x16xf32> to vector<16x16xf32>
    %c96 = arith.constant 96 : index
    %c0_49 = arith.constant 0 : index
    %172 = vector.load %arg5[%c96, %c0_49] : memref<128x128xbf16, #tpu.memory_space<vmem>>, vector<16x128xbf16>
    %173 = arith.truncf %171 : vector<16x16xf32> to vector<16x16xbf16>
    %cst_50 = arith.constant dense<0.000000e+00> : vector<16x128xf32>
    %174 = tpu.matmul %173, %172, %cst_50 {dimension_numbers = #tpu.dot_dimension_numbers<[1], [0], [0], [1], [0, 0, 1, 1], [], []>} : vector<16x16xbf16>, vector<16x128xbf16>, vector<16x128xf32> -> vector<16x128xf32>
    %175 = arith.addf %152, %174 : vector<16x128xf32>
    %176 = vector.extract_strided_slice %11 {offsets = [0, 0, 112], sizes = [2, 8, 16], strides = [1, 1, 1]} : vector<2x8x128xf32> to vector<2x8x16xf32>
    %177 = arith.truncf %176 : vector<2x8x16xf32> to vector<2x8x16xbf16>
    %178 = vector.extract_strided_slice %12 {offsets = [0, 0, 112], sizes = [2, 8, 16], strides = [1, 1, 1]} : vector<2x8x128xf32> to vector<2x8x16xf32>
    %179 = arith.truncf %178 : vector<2x8x16xf32> to vector<2x8x16xbf16>
    "tpu.trace_start"() <{level = 10 : i32, message = "bqd,bkd->bqk"}> : () -> ()
    %cst_51 = arith.constant dense<0.000000e+00> : vector<2x8x8xf32>
    %180 = tpu.matmul %177, %179, %cst_51 {dimension_numbers = #tpu.dot_dimension_numbers<[2], [2], [1], [1], [0, 0, 0, 1, 1, 1], [0], [0]>} : vector<2x8x16xbf16>, vector<2x8x16xbf16>, vector<2x8x8xf32> -> vector<2x8x8xf32>
    "tpu.trace_stop"() : () -> ()
    %cst_52 = arith.constant dense<0xFF800000> : vector<2x8xf32>
    %181 = vector.multi_reduction <maximumf>, %180, %cst_52 [2] : vector<2x8x8xf32> to vector<2x8xf32>
    %182 = vector.shape_cast %181 : vector<2x8xf32> to vector<2x8x1xf32>
    %183 = vector.broadcast %182 : vector<2x8x1xf32> to vector<2x8x8xf32>
    %184 = arith.subf %180, %183 : vector<2x8x8xf32>
    %185 = math.exp %184 : vector<2x8x8xf32>
    %cst_53 = arith.constant dense<0.000000e+00> : vector<2x8xf32>
    %186 = vector.multi_reduction <add>, %185, %cst_53 [2] : vector<2x8x8xf32> to vector<2x8xf32>
    %187 = vector.shape_cast %186 : vector<2x8xf32> to vector<2x8x1xf32>
    %188 = vector.broadcast %187 : vector<2x8x1xf32> to vector<2x8x8xf32>
    %189 = arith.divf %185, %188 : vector<2x8x8xf32>
    %190 = arith.truncf %189 : vector<2x8x8xf32> to vector<2x8x8xbf16>
    %191 = vector.extract_strided_slice %13 {offsets = [0, 0, 112], sizes = [2, 8, 16], strides = [1, 1, 1]} : vector<2x8x128xf32> to vector<2x8x16xf32>
    %192 = arith.truncf %191 : vector<2x8x16xf32> to vector<2x8x16xbf16>
    "tpu.trace_start"() <{level = 10 : i32, message = "bqk,bkd->bqd"}> : () -> ()
    %cst_54 = arith.constant dense<0.000000e+00> : vector<2x8x16xf32>
    %193 = tpu.matmul %190, %192, %cst_54 {dimension_numbers = #tpu.dot_dimension_numbers<[2], [1], [1], [2], [0, 0, 0, 1, 1, 2], [0], [0]>} : vector<2x8x8xbf16>, vector<2x8x16xbf16>, vector<2x8x16xf32> -> vector<2x8x16xf32>
    "tpu.trace_stop"() : () -> ()
    %194 = vector.shape_cast %193 : vector<2x8x16xf32> to vector<16x16xf32>
    %c112 = arith.constant 112 : index
    %c0_55 = arith.constant 0 : index
    %195 = vector.load %arg5[%c112, %c0_55] : memref<128x128xbf16, #tpu.memory_space<vmem>>, vector<16x128xbf16>
    %196 = arith.truncf %194 : vector<16x16xf32> to vector<16x16xbf16>
    %cst_56 = arith.constant dense<0.000000e+00> : vector<16x128xf32>
    %197 = tpu.matmul %196, %195, %cst_56 {dimension_numbers = #tpu.dot_dimension_numbers<[1], [0], [0], [1], [0, 0, 1, 1], [], []>} : vector<16x16xbf16>, vector<16x128xbf16>, vector<16x128xf32> -> vector<16x128xf32>
    %198 = arith.addf %175, %197 : vector<16x128xf32>
    %c0_57 = arith.constant 0 : index
    %c0_58 = arith.constant 0 : index
    %199 = vector.load %arg6[%c0_57, %c0_58] : memref<1x128xf32, #tpu.memory_space<vmem>>, vector<1x128xf32>
    %200 = vector.broadcast %199 : vector<1x128xf32> to vector<16x128xf32>
    %201 = arith.addf %198, %200 : vector<16x128xf32>
    %c0_59 = arith.constant 0 : index
    %c0_60 = arith.constant 0 : index
    %202 = vector.load %arg7[%c0_59, %c0_60] : memref<128x512xbf16, #tpu.memory_space<vmem>>, vector<128x512xbf16>
    %203 = arith.truncf %201 : vector<16x128xf32> to vector<16x128xbf16>
    %cst_61 = arith.constant dense<0.000000e+00> : vector<16x512xf32>
    %204 = tpu.matmul %203, %202, %cst_61 {dimension_numbers = #tpu.dot_dimension_numbers<[1], [0], [0], [1], [0, 0, 1, 1], [], []>} : vector<16x128xbf16>, vector<128x512xbf16>, vector<16x512xf32> -> vector<16x512xf32>
    %c0_62 = arith.constant 0 : index
    %c0_63 = arith.constant 0 : index
    %205 = vector.load %arg8[%c0_62, %c0_63] : memref<1x512xf32, #tpu.memory_space<vmem>>, vector<1x512xf32>
    %206 = vector.broadcast %205 : vector<1x512xf32> to vector<16x512xf32>
    %207 = arith.addf %204, %206 : vector<16x512xf32>
    %cst_64 = arith.constant 5.000000e-01 : f32
    %208 = vector.broadcast %cst_64 : f32 to vector<16x512xf32>
    %209 = arith.mulf %208, %207 : vector<16x512xf32>
    %cst_65 = arith.constant 4.471500e-02 : f32
    %210 = vector.broadcast %cst_65 : f32 to vector<16x512xf32>
    %211 = arith.mulf %210, %207 : vector<16x512xf32>
    %212 = arith.mulf %211, %207 : vector<16x512xf32>
    %213 = arith.mulf %212, %207 : vector<16x512xf32>
    %214 = arith.addf %207, %213 : vector<16x512xf32>
    %cst_66 = arith.constant 0.797884583 : f32
    %215 = vector.broadcast %cst_66 : f32 to vector<16x512xf32>
    %216 = arith.mulf %215, %214 : vector<16x512xf32>
    %217 = math.tanh %216 : vector<16x512xf32>
    %cst_67 = arith.constant 1.000000e+00 : f32
    %218 = vector.broadcast %cst_67 : f32 to vector<16x512xf32>
    %219 = arith.addf %218, %217 : vector<16x512xf32>
    %220 = arith.mulf %209, %219 : vector<16x512xf32>
    %c0_68 = arith.constant 0 : index
    %c0_69 = arith.constant 0 : index
    %221 = vector.load %arg9[%c0_68, %c0_69] : memref<512x256xbf16, #tpu.memory_space<vmem>>, vector<512x256xbf16>
    %222 = arith.truncf %220 : vector<16x512xf32> to vector<16x512xbf16>
    %cst_70 = arith.constant dense<0.000000e+00> : vector<16x256xf32>
    %223 = tpu.matmul %222, %221, %cst_70 {dimension_numbers = #tpu.dot_dimension_numbers<[1], [0], [0], [1], [0, 0, 1, 1], [], []>} : vector<16x512xbf16>, vector<512x256xbf16>, vector<16x256xf32> -> vector<16x256xf32>
    %c0_71 = arith.constant 0 : index
    %c0_72 = arith.constant 0 : index
    %224 = vector.load %arg10[%c0_71, %c0_72] : memref<1x256xf32, #tpu.memory_space<vmem>>, vector<1x256xf32>
    %225 = vector.broadcast %224 : vector<1x256xf32> to vector<16x256xf32>
    %226 = arith.addf %223, %225 : vector<16x256xf32>
    %cst_73 = arith.constant 5.000000e-01 : f32
    %227 = vector.broadcast %cst_73 : f32 to vector<16x256xf32>
    %228 = arith.mulf %227, %226 : vector<16x256xf32>
    %cst_74 = arith.constant 4.471500e-02 : f32
    %229 = vector.broadcast %cst_74 : f32 to vector<16x256xf32>
    %230 = arith.mulf %229, %226 : vector<16x256xf32>
    %231 = arith.mulf %230, %226 : vector<16x256xf32>
    %232 = arith.mulf %231, %226 : vector<16x256xf32>
    %233 = arith.addf %226, %232 : vector<16x256xf32>
    %cst_75 = arith.constant 0.797884583 : f32
    %234 = vector.broadcast %cst_75 : f32 to vector<16x256xf32>
    %235 = arith.mulf %234, %233 : vector<16x256xf32>
    %236 = math.tanh %235 : vector<16x256xf32>
    %cst_76 = arith.constant 1.000000e+00 : f32
    %237 = vector.broadcast %cst_76 : f32 to vector<16x256xf32>
    %238 = arith.addf %237, %236 : vector<16x256xf32>
    %239 = arith.mulf %228, %238 : vector<16x256xf32>
    %c0_77 = arith.constant 0 : index
    %c0_78 = arith.constant 0 : index
    %240 = vector.load %arg11[%c0_77, %c0_78] : memref<256x128xbf16, #tpu.memory_space<vmem>>, vector<256x128xbf16>
    %241 = arith.truncf %239 : vector<16x256xf32> to vector<16x256xbf16>
    %cst_79 = arith.constant dense<0.000000e+00> : vector<16x128xf32>
    %242 = tpu.matmul %241, %240, %cst_79 {dimension_numbers = #tpu.dot_dimension_numbers<[1], [0], [0], [1], [0, 0, 1, 1], [], []>} : vector<16x256xbf16>, vector<256x128xbf16>, vector<16x128xf32> -> vector<16x128xf32>
    %c0_80 = arith.constant 0 : index
    %c0_81 = arith.constant 0 : index
    %243 = vector.load %arg12[%c0_80, %c0_81] : memref<1x128xf32, #tpu.memory_space<vmem>>, vector<1x128xf32>
    %244 = vector.broadcast %243 : vector<1x128xf32> to vector<16x128xf32>
    %245 = arith.addf %242, %244 : vector<16x128xf32>
    %246 = arith.addf %245, %1 : vector<16x128xf32>
    %c0_82 = arith.constant 0 : index
    %c0_83 = arith.constant 0 : index
    %c0_84 = arith.constant 0 : index
    %247 = vector.load %arg2[%c0_82, %c0_83, %c0_84] : memref<2x16x128xf32, #tpu.memory_space<vmem>>, vector<2x16x128xf32>
    %248 = vector.shape_cast %247 : vector<2x16x128xf32> to vector<32x128xf32>
    %c0_85 = arith.constant 0 : index
    %c0_86 = arith.constant 0 : index
    %249 = vector.load %arg13[%c0_85, %c0_86] : memref<128x384xbf16, #tpu.memory_space<vmem>>, vector<128x384xbf16>
    %250 = arith.truncf %248 : vector<32x128xf32> to vector<32x128xbf16>
    %cst_87 = arith.constant dense<0.000000e+00> : vector<32x384xf32>
    %251 = tpu.matmul %250, %249, %cst_87 {dimension_numbers = #tpu.dot_dimension_numbers<[1], [0], [0], [1], [0, 0, 1, 1], [], []>} : vector<32x128xbf16>, vector<128x384xbf16>, vector<32x384xf32> -> vector<32x384xf32>
    %c0_88 = arith.constant 0 : index
    %c0_89 = arith.constant 0 : index
    %252 = vector.load %arg14[%c0_88, %c0_89] : memref<1x384xf32, #tpu.memory_space<vmem>>, vector<1x384xf32>
    %253 = vector.broadcast %252 : vector<1x384xf32> to vector<32x384xf32>
    %254 = arith.addf %251, %253 : vector<32x384xf32>
    %255 = vector.shape_cast %254 : vector<32x384xf32> to vector<2x16x384xf32>
    %256 = vector.extract_strided_slice %255 {offsets = [0, 0, 0], sizes = [2, 16, 128], strides = [1, 1, 1]} : vector<2x16x384xf32> to vector<2x16x128xf32>
    %cst_90 = arith.constant 2.500000e-01 : f32
    %257 = vector.broadcast %cst_90 : f32 to vector<2x16x128xf32>
    %258 = arith.mulf %256, %257 : vector<2x16x128xf32>
    %259 = vector.extract_strided_slice %255 {offsets = [0, 0, 128], sizes = [2, 16, 128], strides = [1, 1, 1]} : vector<2x16x384xf32> to vector<2x16x128xf32>
    %260 = vector.extract_strided_slice %255 {offsets = [0, 0, 256], sizes = [2, 16, 128], strides = [1, 1, 1]} : vector<2x16x384xf32> to vector<2x16x128xf32>
    %cst_91 = arith.constant 0.000000e+00 : f32
    %261 = vector.broadcast %cst_91 : f32 to vector<32x128xf32>
    %262 = vector.extract_strided_slice %258 {offsets = [0, 0, 0], sizes = [2, 16, 16], strides = [1, 1, 1]} : vector<2x16x128xf32> to vector<2x16x16xf32>
    %263 = arith.truncf %262 : vector<2x16x16xf32> to vector<2x16x16xbf16>
    %264 = vector.extract_strided_slice %259 {offsets = [0, 0, 0], sizes = [2, 16, 16], strides = [1, 1, 1]} : vector<2x16x128xf32> to vector<2x16x16xf32>
    %265 = arith.truncf %264 : vector<2x16x16xf32> to vector<2x16x16xbf16>
    "tpu.trace_start"() <{level = 10 : i32, message = "bqd,bkd->bqk"}> : () -> ()
    %cst_92 = arith.constant dense<0.000000e+00> : vector<2x16x16xf32>
    %266 = tpu.matmul %263, %265, %cst_92 {dimension_numbers = #tpu.dot_dimension_numbers<[2], [2], [1], [1], [0, 0, 0, 1, 1, 1], [0], [0]>} : vector<2x16x16xbf16>, vector<2x16x16xbf16>, vector<2x16x16xf32> -> vector<2x16x16xf32>
    "tpu.trace_stop"() : () -> ()
    %cst_93 = arith.constant dense<0xFF800000> : vector<2x16xf32>
    %267 = vector.multi_reduction <maximumf>, %266, %cst_93 [2] : vector<2x16x16xf32> to vector<2x16xf32>
    %268 = vector.shape_cast %267 : vector<2x16xf32> to vector<2x16x1xf32>
    %269 = vector.broadcast %268 : vector<2x16x1xf32> to vector<2x16x16xf32>
    %270 = arith.subf %266, %269 : vector<2x16x16xf32>
    %271 = math.exp %270 : vector<2x16x16xf32>
    %cst_94 = arith.constant dense<0.000000e+00> : vector<2x16xf32>
    %272 = vector.multi_reduction <add>, %271, %cst_94 [2] : vector<2x16x16xf32> to vector<2x16xf32>
    %273 = vector.shape_cast %272 : vector<2x16xf32> to vector<2x16x1xf32>
    %274 = vector.broadcast %273 : vector<2x16x1xf32> to vector<2x16x16xf32>
    %275 = arith.divf %271, %274 : vector<2x16x16xf32>
    %276 = arith.truncf %275 : vector<2x16x16xf32> to vector<2x16x16xbf16>
    %277 = vector.extract_strided_slice %260 {offsets = [0, 0, 0], sizes = [2, 16, 16], strides = [1, 1, 1]} : vector<2x16x128xf32> to vector<2x16x16xf32>
    %278 = arith.truncf %277 : vector<2x16x16xf32> to vector<2x16x16xbf16>
    "tpu.trace_start"() <{level = 10 : i32, message = "bqk,bkd->bqd"}> : () -> ()
    %cst_95 = arith.constant dense<0.000000e+00> : vector<2x16x16xf32>
    %279 = tpu.matmul %276, %278, %cst_95 {dimension_numbers = #tpu.dot_dimension_numbers<[2], [1], [1], [2], [0, 0, 0, 1, 1, 2], [0], [0]>} : vector<2x16x16xbf16>, vector<2x16x16xbf16>, vector<2x16x16xf32> -> vector<2x16x16xf32>
    "tpu.trace_stop"() : () -> ()
    %280 = vector.shape_cast %279 : vector<2x16x16xf32> to vector<32x16xf32>
    %c0_96 = arith.constant 0 : index
    %c0_97 = arith.constant 0 : index
    %281 = vector.load %arg15[%c0_96, %c0_97] : memref<128x128xbf16, #tpu.memory_space<vmem>>, vector<16x128xbf16>
    %282 = arith.truncf %280 : vector<32x16xf32> to vector<32x16xbf16>
    %cst_98 = arith.constant dense<0.000000e+00> : vector<32x128xf32>
    %283 = tpu.matmul %282, %281, %cst_98 {dimension_numbers = #tpu.dot_dimension_numbers<[1], [0], [0], [1], [0, 0, 1, 1], [], []>} : vector<32x16xbf16>, vector<16x128xbf16>, vector<32x128xf32> -> vector<32x128xf32>
    %284 = arith.addf %261, %283 : vector<32x128xf32>
    %285 = vector.extract_strided_slice %258 {offsets = [0, 0, 16], sizes = [2, 16, 16], strides = [1, 1, 1]} : vector<2x16x128xf32> to vector<2x16x16xf32>
    %286 = arith.truncf %285 : vector<2x16x16xf32> to vector<2x16x16xbf16>
    %287 = vector.extract_strided_slice %259 {offsets = [0, 0, 16], sizes = [2, 16, 16], strides = [1, 1, 1]} : vector<2x16x128xf32> to vector<2x16x16xf32>
    %288 = arith.truncf %287 : vector<2x16x16xf32> to vector<2x16x16xbf16>
    "tpu.trace_start"() <{level = 10 : i32, message = "bqd,bkd->bqk"}> : () -> ()
    %cst_99 = arith.constant dense<0.000000e+00> : vector<2x16x16xf32>
    %289 = tpu.matmul %286, %288, %cst_99 {dimension_numbers = #tpu.dot_dimension_numbers<[2], [2], [1], [1], [0, 0, 0, 1, 1, 1], [0], [0]>} : vector<2x16x16xbf16>, vector<2x16x16xbf16>, vector<2x16x16xf32> -> vector<2x16x16xf32>
    "tpu.trace_stop"() : () -> ()
    %cst_100 = arith.constant dense<0xFF800000> : vector<2x16xf32>
    %290 = vector.multi_reduction <maximumf>, %289, %cst_100 [2] : vector<2x16x16xf32> to vector<2x16xf32>
    %291 = vector.shape_cast %290 : vector<2x16xf32> to vector<2x16x1xf32>
    %292 = vector.broadcast %291 : vector<2x16x1xf32> to vector<2x16x16xf32>
    %293 = arith.subf %289, %292 : vector<2x16x16xf32>
    %294 = math.exp %293 : vector<2x16x16xf32>
    %cst_101 = arith.constant dense<0.000000e+00> : vector<2x16xf32>
    %295 = vector.multi_reduction <add>, %294, %cst_101 [2] : vector<2x16x16xf32> to vector<2x16xf32>
    %296 = vector.shape_cast %295 : vector<2x16xf32> to vector<2x16x1xf32>
    %297 = vector.broadcast %296 : vector<2x16x1xf32> to vector<2x16x16xf32>
    %298 = arith.divf %294, %297 : vector<2x16x16xf32>
    %299 = arith.truncf %298 : vector<2x16x16xf32> to vector<2x16x16xbf16>
    %300 = vector.extract_strided_slice %260 {offsets = [0, 0, 16], sizes = [2, 16, 16], strides = [1, 1, 1]} : vector<2x16x128xf32> to vector<2x16x16xf32>
    %301 = arith.truncf %300 : vector<2x16x16xf32> to vector<2x16x16xbf16>
    "tpu.trace_start"() <{level = 10 : i32, message = "bqk,bkd->bqd"}> : () -> ()
    %cst_102 = arith.constant dense<0.000000e+00> : vector<2x16x16xf32>
    %302 = tpu.matmul %299, %301, %cst_102 {dimension_numbers = #tpu.dot_dimension_numbers<[2], [1], [1], [2], [0, 0, 0, 1, 1, 2], [0], [0]>} : vector<2x16x16xbf16>, vector<2x16x16xbf16>, vector<2x16x16xf32> -> vector<2x16x16xf32>
    "tpu.trace_stop"() : () -> ()
    %303 = vector.shape_cast %302 : vector<2x16x16xf32> to vector<32x16xf32>
    %c16_103 = arith.constant 16 : index
    %c0_104 = arith.constant 0 : index
    %304 = vector.load %arg15[%c16_103, %c0_104] : memref<128x128xbf16, #tpu.memory_space<vmem>>, vector<16x128xbf16>
    %305 = arith.truncf %303 : vector<32x16xf32> to vector<32x16xbf16>
    %cst_105 = arith.constant dense<0.000000e+00> : vector<32x128xf32>
    %306 = tpu.matmul %305, %304, %cst_105 {dimension_numbers = #tpu.dot_dimension_numbers<[1], [0], [0], [1], [0, 0, 1, 1], [], []>} : vector<32x16xbf16>, vector<16x128xbf16>, vector<32x128xf32> -> vector<32x128xf32>
    %307 = arith.addf %284, %306 : vector<32x128xf32>
    %308 = vector.extract_strided_slice %258 {offsets = [0, 0, 32], sizes = [2, 16, 16], strides = [1, 1, 1]} : vector<2x16x128xf32> to vector<2x16x16xf32>
    %309 = arith.truncf %308 : vector<2x16x16xf32> to vector<2x16x16xbf16>
    %310 = vector.extract_strided_slice %259 {offsets = [0, 0, 32], sizes = [2, 16, 16], strides = [1, 1, 1]} : vector<2x16x128xf32> to vector<2x16x16xf32>
    %311 = arith.truncf %310 : vector<2x16x16xf32> to vector<2x16x16xbf16>
    "tpu.trace_start"() <{level = 10 : i32, message = "bqd,bkd->bqk"}> : () -> ()
    %cst_106 = arith.constant dense<0.000000e+00> : vector<2x16x16xf32>
    %312 = tpu.matmul %309, %311, %cst_106 {dimension_numbers = #tpu.dot_dimension_numbers<[2], [2], [1], [1], [0, 0, 0, 1, 1, 1], [0], [0]>} : vector<2x16x16xbf16>, vector<2x16x16xbf16>, vector<2x16x16xf32> -> vector<2x16x16xf32>
    "tpu.trace_stop"() : () -> ()
    %cst_107 = arith.constant dense<0xFF800000> : vector<2x16xf32>
    %313 = vector.multi_reduction <maximumf>, %312, %cst_107 [2] : vector<2x16x16xf32> to vector<2x16xf32>
    %314 = vector.shape_cast %313 : vector<2x16xf32> to vector<2x16x1xf32>
    %315 = vector.broadcast %314 : vector<2x16x1xf32> to vector<2x16x16xf32>
    %316 = arith.subf %312, %315 : vector<2x16x16xf32>
    %317 = math.exp %316 : vector<2x16x16xf32>
    %cst_108 = arith.constant dense<0.000000e+00> : vector<2x16xf32>
    %318 = vector.multi_reduction <add>, %317, %cst_108 [2] : vector<2x16x16xf32> to vector<2x16xf32>
    %319 = vector.shape_cast %318 : vector<2x16xf32> to vector<2x16x1xf32>
    %320 = vector.broadcast %319 : vector<2x16x1xf32> to vector<2x16x16xf32>
    %321 = arith.divf %317, %320 : vector<2x16x16xf32>
    %322 = arith.truncf %321 : vector<2x16x16xf32> to vector<2x16x16xbf16>
    %323 = vector.extract_strided_slice %260 {offsets = [0, 0, 32], sizes = [2, 16, 16], strides = [1, 1, 1]} : vector<2x16x128xf32> to vector<2x16x16xf32>
    %324 = arith.truncf %323 : vector<2x16x16xf32> to vector<2x16x16xbf16>
    "tpu.trace_start"() <{level = 10 : i32, message = "bqk,bkd->bqd"}> : () -> ()
    %cst_109 = arith.constant dense<0.000000e+00> : vector<2x16x16xf32>
    %325 = tpu.matmul %322, %324, %cst_109 {dimension_numbers = #tpu.dot_dimension_numbers<[2], [1], [1], [2], [0, 0, 0, 1, 1, 2], [0], [0]>} : vector<2x16x16xbf16>, vector<2x16x16xbf16>, vector<2x16x16xf32> -> vector<2x16x16xf32>
    "tpu.trace_stop"() : () -> ()
    %326 = vector.shape_cast %325 : vector<2x16x16xf32> to vector<32x16xf32>
    %c32_110 = arith.constant 32 : index
    %c0_111 = arith.constant 0 : index
    %327 = vector.load %arg15[%c32_110, %c0_111] : memref<128x128xbf16, #tpu.memory_space<vmem>>, vector<16x128xbf16>
    %328 = arith.truncf %326 : vector<32x16xf32> to vector<32x16xbf16>
    %cst_112 = arith.constant dense<0.000000e+00> : vector<32x128xf32>
    %329 = tpu.matmul %328, %327, %cst_112 {dimension_numbers = #tpu.dot_dimension_numbers<[1], [0], [0], [1], [0, 0, 1, 1], [], []>} : vector<32x16xbf16>, vector<16x128xbf16>, vector<32x128xf32> -> vector<32x128xf32>
    %330 = arith.addf %307, %329 : vector<32x128xf32>
    %331 = vector.extract_strided_slice %258 {offsets = [0, 0, 48], sizes = [2, 16, 16], strides = [1, 1, 1]} : vector<2x16x128xf32> to vector<2x16x16xf32>
    %332 = arith.truncf %331 : vector<2x16x16xf32> to vector<2x16x16xbf16>
    %333 = vector.extract_strided_slice %259 {offsets = [0, 0, 48], sizes = [2, 16, 16], strides = [1, 1, 1]} : vector<2x16x128xf32> to vector<2x16x16xf32>
    %334 = arith.truncf %333 : vector<2x16x16xf32> to vector<2x16x16xbf16>
    "tpu.trace_start"() <{level = 10 : i32, message = "bqd,bkd->bqk"}> : () -> ()
    %cst_113 = arith.constant dense<0.000000e+00> : vector<2x16x16xf32>
    %335 = tpu.matmul %332, %334, %cst_113 {dimension_numbers = #tpu.dot_dimension_numbers<[2], [2], [1], [1], [0, 0, 0, 1, 1, 1], [0], [0]>} : vector<2x16x16xbf16>, vector<2x16x16xbf16>, vector<2x16x16xf32> -> vector<2x16x16xf32>
    "tpu.trace_stop"() : () -> ()
    %cst_114 = arith.constant dense<0xFF800000> : vector<2x16xf32>
    %336 = vector.multi_reduction <maximumf>, %335, %cst_114 [2] : vector<2x16x16xf32> to vector<2x16xf32>
    %337 = vector.shape_cast %336 : vector<2x16xf32> to vector<2x16x1xf32>
    %338 = vector.broadcast %337 : vector<2x16x1xf32> to vector<2x16x16xf32>
    %339 = arith.subf %335, %338 : vector<2x16x16xf32>
    %340 = math.exp %339 : vector<2x16x16xf32>
    %cst_115 = arith.constant dense<0.000000e+00> : vector<2x16xf32>
    %341 = vector.multi_reduction <add>, %340, %cst_115 [2] : vector<2x16x16xf32> to vector<2x16xf32>
    %342 = vector.shape_cast %341 : vector<2x16xf32> to vector<2x16x1xf32>
    %343 = vector.broadcast %342 : vector<2x16x1xf32> to vector<2x16x16xf32>
    %344 = arith.divf %340, %343 : vector<2x16x16xf32>
    %345 = arith.truncf %344 : vector<2x16x16xf32> to vector<2x16x16xbf16>
    %346 = vector.extract_strided_slice %260 {offsets = [0, 0, 48], sizes = [2, 16, 16], strides = [1, 1, 1]} : vector<2x16x128xf32> to vector<2x16x16xf32>
    %347 = arith.truncf %346 : vector<2x16x16xf32> to vector<2x16x16xbf16>
    "tpu.trace_start"() <{level = 10 : i32, message = "bqk,bkd->bqd"}> : () -> ()
    %cst_116 = arith.constant dense<0.000000e+00> : vector<2x16x16xf32>
    %348 = tpu.matmul %345, %347, %cst_116 {dimension_numbers = #tpu.dot_dimension_numbers<[2], [1], [1], [2], [0, 0, 0, 1, 1, 2], [0], [0]>} : vector<2x16x16xbf16>, vector<2x16x16xbf16>, vector<2x16x16xf32> -> vector<2x16x16xf32>
    "tpu.trace_stop"() : () -> ()
    %349 = vector.shape_cast %348 : vector<2x16x16xf32> to vector<32x16xf32>
    %c48_117 = arith.constant 48 : index
    %c0_118 = arith.constant 0 : index
    %350 = vector.load %arg15[%c48_117, %c0_118] : memref<128x128xbf16, #tpu.memory_space<vmem>>, vector<16x128xbf16>
    %351 = arith.truncf %349 : vector<32x16xf32> to vector<32x16xbf16>
    %cst_119 = arith.constant dense<0.000000e+00> : vector<32x128xf32>
    %352 = tpu.matmul %351, %350, %cst_119 {dimension_numbers = #tpu.dot_dimension_numbers<[1], [0], [0], [1], [0, 0, 1, 1], [], []>} : vector<32x16xbf16>, vector<16x128xbf16>, vector<32x128xf32> -> vector<32x128xf32>
    %353 = arith.addf %330, %352 : vector<32x128xf32>
    %354 = vector.extract_strided_slice %258 {offsets = [0, 0, 64], sizes = [2, 16, 16], strides = [1, 1, 1]} : vector<2x16x128xf32> to vector<2x16x16xf32>
    %355 = arith.truncf %354 : vector<2x16x16xf32> to vector<2x16x16xbf16>
    %356 = vector.extract_strided_slice %259 {offsets = [0, 0, 64], sizes = [2, 16, 16], strides = [1, 1, 1]} : vector<2x16x128xf32> to vector<2x16x16xf32>
    %357 = arith.truncf %356 : vector<2x16x16xf32> to vector<2x16x16xbf16>
    "tpu.trace_start"() <{level = 10 : i32, message = "bqd,bkd->bqk"}> : () -> ()
    %cst_120 = arith.constant dense<0.000000e+00> : vector<2x16x16xf32>
    %358 = tpu.matmul %355, %357, %cst_120 {dimension_numbers = #tpu.dot_dimension_numbers<[2], [2], [1], [1], [0, 0, 0, 1, 1, 1], [0], [0]>} : vector<2x16x16xbf16>, vector<2x16x16xbf16>, vector<2x16x16xf32> -> vector<2x16x16xf32>
    "tpu.trace_stop"() : () -> ()
    %cst_121 = arith.constant dense<0xFF800000> : vector<2x16xf32>
    %359 = vector.multi_reduction <maximumf>, %358, %cst_121 [2] : vector<2x16x16xf32> to vector<2x16xf32>
    %360 = vector.shape_cast %359 : vector<2x16xf32> to vector<2x16x1xf32>
    %361 = vector.broadcast %360 : vector<2x16x1xf32> to vector<2x16x16xf32>
    %362 = arith.subf %358, %361 : vector<2x16x16xf32>
    %363 = math.exp %362 : vector<2x16x16xf32>
    %cst_122 = arith.constant dense<0.000000e+00> : vector<2x16xf32>
    %364 = vector.multi_reduction <add>, %363, %cst_122 [2] : vector<2x16x16xf32> to vector<2x16xf32>
    %365 = vector.shape_cast %364 : vector<2x16xf32> to vector<2x16x1xf32>
    %366 = vector.broadcast %365 : vector<2x16x1xf32> to vector<2x16x16xf32>
    %367 = arith.divf %363, %366 : vector<2x16x16xf32>
    %368 = arith.truncf %367 : vector<2x16x16xf32> to vector<2x16x16xbf16>
    %369 = vector.extract_strided_slice %260 {offsets = [0, 0, 64], sizes = [2, 16, 16], strides = [1, 1, 1]} : vector<2x16x128xf32> to vector<2x16x16xf32>
    %370 = arith.truncf %369 : vector<2x16x16xf32> to vector<2x16x16xbf16>
    "tpu.trace_start"() <{level = 10 : i32, message = "bqk,bkd->bqd"}> : () -> ()
    %cst_123 = arith.constant dense<0.000000e+00> : vector<2x16x16xf32>
    %371 = tpu.matmul %368, %370, %cst_123 {dimension_numbers = #tpu.dot_dimension_numbers<[2], [1], [1], [2], [0, 0, 0, 1, 1, 2], [0], [0]>} : vector<2x16x16xbf16>, vector<2x16x16xbf16>, vector<2x16x16xf32> -> vector<2x16x16xf32>
    "tpu.trace_stop"() : () -> ()
    %372 = vector.shape_cast %371 : vector<2x16x16xf32> to vector<32x16xf32>
    %c64_124 = arith.constant 64 : index
    %c0_125 = arith.constant 0 : index
    %373 = vector.load %arg15[%c64_124, %c0_125] : memref<128x128xbf16, #tpu.memory_space<vmem>>, vector<16x128xbf16>
    %374 = arith.truncf %372 : vector<32x16xf32> to vector<32x16xbf16>
    %cst_126 = arith.constant dense<0.000000e+00> : vector<32x128xf32>
    %375 = tpu.matmul %374, %373, %cst_126 {dimension_numbers = #tpu.dot_dimension_numbers<[1], [0], [0], [1], [0, 0, 1, 1], [], []>} : vector<32x16xbf16>, vector<16x128xbf16>, vector<32x128xf32> -> vector<32x128xf32>
    %376 = arith.addf %353, %375 : vector<32x128xf32>
    %377 = vector.extract_strided_slice %258 {offsets = [0, 0, 80], sizes = [2, 16, 16], strides = [1, 1, 1]} : vector<2x16x128xf32> to vector<2x16x16xf32>
    %378 = arith.truncf %377 : vector<2x16x16xf32> to vector<2x16x16xbf16>
    %379 = vector.extract_strided_slice %259 {offsets = [0, 0, 80], sizes = [2, 16, 16], strides = [1, 1, 1]} : vector<2x16x128xf32> to vector<2x16x16xf32>
    %380 = arith.truncf %379 : vector<2x16x16xf32> to vector<2x16x16xbf16>
    "tpu.trace_start"() <{level = 10 : i32, message = "bqd,bkd->bqk"}> : () -> ()
    %cst_127 = arith.constant dense<0.000000e+00> : vector<2x16x16xf32>
    %381 = tpu.matmul %378, %380, %cst_127 {dimension_numbers = #tpu.dot_dimension_numbers<[2], [2], [1], [1], [0, 0, 0, 1, 1, 1], [0], [0]>} : vector<2x16x16xbf16>, vector<2x16x16xbf16>, vector<2x16x16xf32> -> vector<2x16x16xf32>
    "tpu.trace_stop"() : () -> ()
    %cst_128 = arith.constant dense<0xFF800000> : vector<2x16xf32>
    %382 = vector.multi_reduction <maximumf>, %381, %cst_128 [2] : vector<2x16x16xf32> to vector<2x16xf32>
    %383 = vector.shape_cast %382 : vector<2x16xf32> to vector<2x16x1xf32>
    %384 = vector.broadcast %383 : vector<2x16x1xf32> to vector<2x16x16xf32>
    %385 = arith.subf %381, %384 : vector<2x16x16xf32>
    %386 = math.exp %385 : vector<2x16x16xf32>
    %cst_129 = arith.constant dense<0.000000e+00> : vector<2x16xf32>
    %387 = vector.multi_reduction <add>, %386, %cst_129 [2] : vector<2x16x16xf32> to vector<2x16xf32>
    %388 = vector.shape_cast %387 : vector<2x16xf32> to vector<2x16x1xf32>
    %389 = vector.broadcast %388 : vector<2x16x1xf32> to vector<2x16x16xf32>
    %390 = arith.divf %386, %389 : vector<2x16x16xf32>
    %391 = arith.truncf %390 : vector<2x16x16xf32> to vector<2x16x16xbf16>
    %392 = vector.extract_strided_slice %260 {offsets = [0, 0, 80], sizes = [2, 16, 16], strides = [1, 1, 1]} : vector<2x16x128xf32> to vector<2x16x16xf32>
    %393 = arith.truncf %392 : vector<2x16x16xf32> to vector<2x16x16xbf16>
    "tpu.trace_start"() <{level = 10 : i32, message = "bqk,bkd->bqd"}> : () -> ()
    %cst_130 = arith.constant dense<0.000000e+00> : vector<2x16x16xf32>
    %394 = tpu.matmul %391, %393, %cst_130 {dimension_numbers = #tpu.dot_dimension_numbers<[2], [1], [1], [2], [0, 0, 0, 1, 1, 2], [0], [0]>} : vector<2x16x16xbf16>, vector<2x16x16xbf16>, vector<2x16x16xf32> -> vector<2x16x16xf32>
    "tpu.trace_stop"() : () -> ()
    %395 = vector.shape_cast %394 : vector<2x16x16xf32> to vector<32x16xf32>
    %c80_131 = arith.constant 80 : index
    %c0_132 = arith.constant 0 : index
    %396 = vector.load %arg15[%c80_131, %c0_132] : memref<128x128xbf16, #tpu.memory_space<vmem>>, vector<16x128xbf16>
    %397 = arith.truncf %395 : vector<32x16xf32> to vector<32x16xbf16>
    %cst_133 = arith.constant dense<0.000000e+00> : vector<32x128xf32>
    %398 = tpu.matmul %397, %396, %cst_133 {dimension_numbers = #tpu.dot_dimension_numbers<[1], [0], [0], [1], [0, 0, 1, 1], [], []>} : vector<32x16xbf16>, vector<16x128xbf16>, vector<32x128xf32> -> vector<32x128xf32>
    %399 = arith.addf %376, %398 : vector<32x128xf32>
    %400 = vector.extract_strided_slice %258 {offsets = [0, 0, 96], sizes = [2, 16, 16], strides = [1, 1, 1]} : vector<2x16x128xf32> to vector<2x16x16xf32>
    %401 = arith.truncf %400 : vector<2x16x16xf32> to vector<2x16x16xbf16>
    %402 = vector.extract_strided_slice %259 {offsets = [0, 0, 96], sizes = [2, 16, 16], strides = [1, 1, 1]} : vector<2x16x128xf32> to vector<2x16x16xf32>
    %403 = arith.truncf %402 : vector<2x16x16xf32> to vector<2x16x16xbf16>
    "tpu.trace_start"() <{level = 10 : i32, message = "bqd,bkd->bqk"}> : () -> ()
    %cst_134 = arith.constant dense<0.000000e+00> : vector<2x16x16xf32>
    %404 = tpu.matmul %401, %403, %cst_134 {dimension_numbers = #tpu.dot_dimension_numbers<[2], [2], [1], [1], [0, 0, 0, 1, 1, 1], [0], [0]>} : vector<2x16x16xbf16>, vector<2x16x16xbf16>, vector<2x16x16xf32> -> vector<2x16x16xf32>
    "tpu.trace_stop"() : () -> ()
    %cst_135 = arith.constant dense<0xFF800000> : vector<2x16xf32>
    %405 = vector.multi_reduction <maximumf>, %404, %cst_135 [2] : vector<2x16x16xf32> to vector<2x16xf32>
    %406 = vector.shape_cast %405 : vector<2x16xf32> to vector<2x16x1xf32>
    %407 = vector.broadcast %406 : vector<2x16x1xf32> to vector<2x16x16xf32>
    %408 = arith.subf %404, %407 : vector<2x16x16xf32>
    %409 = math.exp %408 : vector<2x16x16xf32>
    %cst_136 = arith.constant dense<0.000000e+00> : vector<2x16xf32>
    %410 = vector.multi_reduction <add>, %409, %cst_136 [2] : vector<2x16x16xf32> to vector<2x16xf32>
    %411 = vector.shape_cast %410 : vector<2x16xf32> to vector<2x16x1xf32>
    %412 = vector.broadcast %411 : vector<2x16x1xf32> to vector<2x16x16xf32>
    %413 = arith.divf %409, %412 : vector<2x16x16xf32>
    %414 = arith.truncf %413 : vector<2x16x16xf32> to vector<2x16x16xbf16>
    %415 = vector.extract_strided_slice %260 {offsets = [0, 0, 96], sizes = [2, 16, 16], strides = [1, 1, 1]} : vector<2x16x128xf32> to vector<2x16x16xf32>
    %416 = arith.truncf %415 : vector<2x16x16xf32> to vector<2x16x16xbf16>
    "tpu.trace_start"() <{level = 10 : i32, message = "bqk,bkd->bqd"}> : () -> ()
    %cst_137 = arith.constant dense<0.000000e+00> : vector<2x16x16xf32>
    %417 = tpu.matmul %414, %416, %cst_137 {dimension_numbers = #tpu.dot_dimension_numbers<[2], [1], [1], [2], [0, 0, 0, 1, 1, 2], [0], [0]>} : vector<2x16x16xbf16>, vector<2x16x16xbf16>, vector<2x16x16xf32> -> vector<2x16x16xf32>
    "tpu.trace_stop"() : () -> ()
    %418 = vector.shape_cast %417 : vector<2x16x16xf32> to vector<32x16xf32>
    %c96_138 = arith.constant 96 : index
    %c0_139 = arith.constant 0 : index
    %419 = vector.load %arg15[%c96_138, %c0_139] : memref<128x128xbf16, #tpu.memory_space<vmem>>, vector<16x128xbf16>
    %420 = arith.truncf %418 : vector<32x16xf32> to vector<32x16xbf16>
    %cst_140 = arith.constant dense<0.000000e+00> : vector<32x128xf32>
    %421 = tpu.matmul %420, %419, %cst_140 {dimension_numbers = #tpu.dot_dimension_numbers<[1], [0], [0], [1], [0, 0, 1, 1], [], []>} : vector<32x16xbf16>, vector<16x128xbf16>, vector<32x128xf32> -> vector<32x128xf32>
    %422 = arith.addf %399, %421 : vector<32x128xf32>
    %423 = vector.extract_strided_slice %258 {offsets = [0, 0, 112], sizes = [2, 16, 16], strides = [1, 1, 1]} : vector<2x16x128xf32> to vector<2x16x16xf32>
    %424 = arith.truncf %423 : vector<2x16x16xf32> to vector<2x16x16xbf16>
    %425 = vector.extract_strided_slice %259 {offsets = [0, 0, 112], sizes = [2, 16, 16], strides = [1, 1, 1]} : vector<2x16x128xf32> to vector<2x16x16xf32>
    %426 = arith.truncf %425 : vector<2x16x16xf32> to vector<2x16x16xbf16>
    "tpu.trace_start"() <{level = 10 : i32, message = "bqd,bkd->bqk"}> : () -> ()
    %cst_141 = arith.constant dense<0.000000e+00> : vector<2x16x16xf32>
    %427 = tpu.matmul %424, %426, %cst_141 {dimension_numbers = #tpu.dot_dimension_numbers<[2], [2], [1], [1], [0, 0, 0, 1, 1, 1], [0], [0]>} : vector<2x16x16xbf16>, vector<2x16x16xbf16>, vector<2x16x16xf32> -> vector<2x16x16xf32>
    "tpu.trace_stop"() : () -> ()
    %cst_142 = arith.constant dense<0xFF800000> : vector<2x16xf32>
    %428 = vector.multi_reduction <maximumf>, %427, %cst_142 [2] : vector<2x16x16xf32> to vector<2x16xf32>
    %429 = vector.shape_cast %428 : vector<2x16xf32> to vector<2x16x1xf32>
    %430 = vector.broadcast %429 : vector<2x16x1xf32> to vector<2x16x16xf32>
    %431 = arith.subf %427, %430 : vector<2x16x16xf32>
    %432 = math.exp %431 : vector<2x16x16xf32>
    %cst_143 = arith.constant dense<0.000000e+00> : vector<2x16xf32>
    %433 = vector.multi_reduction <add>, %432, %cst_143 [2] : vector<2x16x16xf32> to vector<2x16xf32>
    %434 = vector.shape_cast %433 : vector<2x16xf32> to vector<2x16x1xf32>
    %435 = vector.broadcast %434 : vector<2x16x1xf32> to vector<2x16x16xf32>
    %436 = arith.divf %432, %435 : vector<2x16x16xf32>
    %437 = arith.truncf %436 : vector<2x16x16xf32> to vector<2x16x16xbf16>
    %438 = vector.extract_strided_slice %260 {offsets = [0, 0, 112], sizes = [2, 16, 16], strides = [1, 1, 1]} : vector<2x16x128xf32> to vector<2x16x16xf32>
    %439 = arith.truncf %438 : vector<2x16x16xf32> to vector<2x16x16xbf16>
    "tpu.trace_start"() <{level = 10 : i32, message = "bqk,bkd->bqd"}> : () -> ()
    %cst_144 = arith.constant dense<0.000000e+00> : vector<2x16x16xf32>
    %440 = tpu.matmul %437, %439, %cst_144 {dimension_numbers = #tpu.dot_dimension_numbers<[2], [1], [1], [2], [0, 0, 0, 1, 1, 2], [0], [0]>} : vector<2x16x16xbf16>, vector<2x16x16xbf16>, vector<2x16x16xf32> -> vector<2x16x16xf32>
    "tpu.trace_stop"() : () -> ()
    %441 = vector.shape_cast %440 : vector<2x16x16xf32> to vector<32x16xf32>
    %c112_145 = arith.constant 112 : index
    %c0_146 = arith.constant 0 : index
    %442 = vector.load %arg15[%c112_145, %c0_146] : memref<128x128xbf16, #tpu.memory_space<vmem>>, vector<16x128xbf16>
    %443 = arith.truncf %441 : vector<32x16xf32> to vector<32x16xbf16>
    %cst_147 = arith.constant dense<0.000000e+00> : vector<32x128xf32>
    %444 = tpu.matmul %443, %442, %cst_147 {dimension_numbers = #tpu.dot_dimension_numbers<[1], [0], [0], [1], [0, 0, 1, 1], [], []>} : vector<32x16xbf16>, vector<16x128xbf16>, vector<32x128xf32> -> vector<32x128xf32>
    %445 = arith.addf %422, %444 : vector<32x128xf32>
    %c0_148 = arith.constant 0 : index
    %c0_149 = arith.constant 0 : index
    %446 = vector.load %arg16[%c0_148, %c0_149] : memref<1x128xf32, #tpu.memory_space<vmem>>, vector<1x128xf32>
    %447 = vector.broadcast %446 : vector<1x128xf32> to vector<32x128xf32>
    %448 = arith.addf %445, %447 : vector<32x128xf32>
    %c0_150 = arith.constant 0 : index
    %c0_151 = arith.constant 0 : index
    %449 = vector.load %arg17[%c0_150, %c0_151] : memref<128x512xbf16, #tpu.memory_space<vmem>>, vector<128x512xbf16>
    %450 = arith.truncf %448 : vector<32x128xf32> to vector<32x128xbf16>
    %cst_152 = arith.constant dense<0.000000e+00> : vector<32x512xf32>
    %451 = tpu.matmul %450, %449, %cst_152 {dimension_numbers = #tpu.dot_dimension_numbers<[1], [0], [0], [1], [0, 0, 1, 1], [], []>} : vector<32x128xbf16>, vector<128x512xbf16>, vector<32x512xf32> -> vector<32x512xf32>
    %c0_153 = arith.constant 0 : index
    %c0_154 = arith.constant 0 : index
    %452 = vector.load %arg18[%c0_153, %c0_154] : memref<1x512xf32, #tpu.memory_space<vmem>>, vector<1x512xf32>
    %453 = vector.broadcast %452 : vector<1x512xf32> to vector<32x512xf32>
    %454 = arith.addf %451, %453 : vector<32x512xf32>
    %cst_155 = arith.constant 5.000000e-01 : f32
    %455 = vector.broadcast %cst_155 : f32 to vector<32x512xf32>
    %456 = arith.mulf %455, %454 : vector<32x512xf32>
    %cst_156 = arith.constant 4.471500e-02 : f32
    %457 = vector.broadcast %cst_156 : f32 to vector<32x512xf32>
    %458 = arith.mulf %457, %454 : vector<32x512xf32>
    %459 = arith.mulf %458, %454 : vector<32x512xf32>
    %460 = arith.mulf %459, %454 : vector<32x512xf32>
    %461 = arith.addf %454, %460 : vector<32x512xf32>
    %cst_157 = arith.constant 0.797884583 : f32
    %462 = vector.broadcast %cst_157 : f32 to vector<32x512xf32>
    %463 = arith.mulf %462, %461 : vector<32x512xf32>
    %464 = math.tanh %463 : vector<32x512xf32>
    %cst_158 = arith.constant 1.000000e+00 : f32
    %465 = vector.broadcast %cst_158 : f32 to vector<32x512xf32>
    %466 = arith.addf %465, %464 : vector<32x512xf32>
    %467 = arith.mulf %456, %466 : vector<32x512xf32>
    %c0_159 = arith.constant 0 : index
    %c0_160 = arith.constant 0 : index
    %468 = vector.load %arg19[%c0_159, %c0_160] : memref<512x256xbf16, #tpu.memory_space<vmem>>, vector<512x256xbf16>
    %469 = arith.truncf %467 : vector<32x512xf32> to vector<32x512xbf16>
    %cst_161 = arith.constant dense<0.000000e+00> : vector<32x256xf32>
    %470 = tpu.matmul %469, %468, %cst_161 {dimension_numbers = #tpu.dot_dimension_numbers<[1], [0], [0], [1], [0, 0, 1, 1], [], []>} : vector<32x512xbf16>, vector<512x256xbf16>, vector<32x256xf32> -> vector<32x256xf32>
    %c0_162 = arith.constant 0 : index
    %c0_163 = arith.constant 0 : index
    %471 = vector.load %arg20[%c0_162, %c0_163] : memref<1x256xf32, #tpu.memory_space<vmem>>, vector<1x256xf32>
    %472 = vector.broadcast %471 : vector<1x256xf32> to vector<32x256xf32>
    %473 = arith.addf %470, %472 : vector<32x256xf32>
    %cst_164 = arith.constant 5.000000e-01 : f32
    %474 = vector.broadcast %cst_164 : f32 to vector<32x256xf32>
    %475 = arith.mulf %474, %473 : vector<32x256xf32>
    %cst_165 = arith.constant 4.471500e-02 : f32
    %476 = vector.broadcast %cst_165 : f32 to vector<32x256xf32>
    %477 = arith.mulf %476, %473 : vector<32x256xf32>
    %478 = arith.mulf %477, %473 : vector<32x256xf32>
    %479 = arith.mulf %478, %473 : vector<32x256xf32>
    %480 = arith.addf %473, %479 : vector<32x256xf32>
    %cst_166 = arith.constant 0.797884583 : f32
    %481 = vector.broadcast %cst_166 : f32 to vector<32x256xf32>
    %482 = arith.mulf %481, %480 : vector<32x256xf32>
    %483 = math.tanh %482 : vector<32x256xf32>
    %cst_167 = arith.constant 1.000000e+00 : f32
    %484 = vector.broadcast %cst_167 : f32 to vector<32x256xf32>
    %485 = arith.addf %484, %483 : vector<32x256xf32>
    %486 = arith.mulf %475, %485 : vector<32x256xf32>
    %c0_168 = arith.constant 0 : index
    %c0_169 = arith.constant 0 : index
    %487 = vector.load %arg21[%c0_168, %c0_169] : memref<256x128xbf16, #tpu.memory_space<vmem>>, vector<256x128xbf16>
    %488 = arith.truncf %486 : vector<32x256xf32> to vector<32x256xbf16>
    %cst_170 = arith.constant dense<0.000000e+00> : vector<32x128xf32>
    %489 = tpu.matmul %488, %487, %cst_170 {dimension_numbers = #tpu.dot_dimension_numbers<[1], [0], [0], [1], [0, 0, 1, 1], [], []>} : vector<32x256xbf16>, vector<256x128xbf16>, vector<32x128xf32> -> vector<32x128xf32>
    %c0_171 = arith.constant 0 : index
    %c0_172 = arith.constant 0 : index
    %490 = vector.load %arg22[%c0_171, %c0_172] : memref<1x128xf32, #tpu.memory_space<vmem>>, vector<1x128xf32>
    %491 = vector.broadcast %490 : vector<1x128xf32> to vector<32x128xf32>
    %492 = arith.addf %489, %491 : vector<32x128xf32>
    %493 = arith.addf %492, %248 : vector<32x128xf32>
    %494 = tpu.concatenate %246, %493 in 0 : vector<16x128xf32>, vector<32x128xf32> -> vector<48x128xf32>
    %c0_173 = arith.constant 0 : index
    %c0_174 = arith.constant 0 : index
    %495 = vector.load %arg23[%c0_173, %c0_174] : memref<128x128xbf16, #tpu.memory_space<vmem>>, vector<128x128xbf16>
    %496 = arith.truncf %494 : vector<48x128xf32> to vector<48x128xbf16>
    %cst_175 = arith.constant dense<0.000000e+00> : vector<48x128xf32>
    %497 = tpu.matmul %496, %495, %cst_175 {dimension_numbers = #tpu.dot_dimension_numbers<[1], [0], [0], [1], [0, 0, 1, 1], [], []>} : vector<48x128xbf16>, vector<128x128xbf16>, vector<48x128xf32> -> vector<48x128xf32>
    %c0_176 = arith.constant 0 : index
    %c0_177 = arith.constant 0 : index
    %498 = vector.load %arg24[%c0_176, %c0_177] : memref<1x128xf32, #tpu.memory_space<vmem>>, vector<1x128xf32>
    %499 = vector.broadcast %498 : vector<1x128xf32> to vector<48x128xf32>
    %500 = arith.addf %497, %499 : vector<48x128xf32>
    %cst_178 = arith.constant 2.500000e-01 : f32
    %501 = vector.broadcast %cst_178 : f32 to vector<48x128xf32>
    %502 = arith.mulf %500, %501 : vector<48x128xf32>
    %503 = tpu.concatenate %493, %246 in 0 : vector<32x128xf32>, vector<16x128xf32> -> vector<48x128xf32>
    %c0_179 = arith.constant 0 : index
    %c0_180 = arith.constant 0 : index
    %504 = vector.load %arg25[%c0_179, %c0_180] : memref<128x256xbf16, #tpu.memory_space<vmem>>, vector<128x256xbf16>
    %505 = arith.truncf %503 : vector<48x128xf32> to vector<48x128xbf16>
    %cst_181 = arith.constant dense<0.000000e+00> : vector<48x256xf32>
    %506 = tpu.matmul %505, %504, %cst_181 {dimension_numbers = #tpu.dot_dimension_numbers<[1], [0], [0], [1], [0, 0, 1, 1], [], []>} : vector<48x128xbf16>, vector<128x256xbf16>, vector<48x256xf32> -> vector<48x256xf32>
    %c0_182 = arith.constant 0 : index
    %c0_183 = arith.constant 0 : index
    %507 = vector.load %arg26[%c0_182, %c0_183] : memref<1x256xf32, #tpu.memory_space<vmem>>, vector<1x256xf32>
    %508 = vector.broadcast %507 : vector<1x256xf32> to vector<48x256xf32>
    %509 = arith.addf %506, %508 : vector<48x256xf32>
    %510 = vector.extract_strided_slice %502 {offsets = [0, 0], sizes = [16, 128], strides = [1, 1]} : vector<48x128xf32> to vector<16x128xf32>
    %511 = vector.shape_cast %510 : vector<16x128xf32> to vector<2x8x128xf32>
    %512 = vector.extract_strided_slice %502 {offsets = [16, 0], sizes = [32, 128], strides = [1, 1]} : vector<48x128xf32> to vector<32x128xf32>
    %513 = vector.shape_cast %512 : vector<32x128xf32> to vector<2x16x128xf32>
    %514 = vector.extract_strided_slice %509 {offsets = [0, 0], sizes = [32, 256], strides = [1, 1]} : vector<48x256xf32> to vector<32x256xf32>
    %515 = vector.shape_cast %514 : vector<32x256xf32> to vector<2x16x256xf32>
    %516 = vector.extract_strided_slice %509 {offsets = [32, 0], sizes = [16, 256], strides = [1, 1]} : vector<48x256xf32> to vector<16x256xf32>
    %517 = vector.shape_cast %516 : vector<16x256xf32> to vector<2x8x256xf32>
    %518 = vector.extract_strided_slice %515 {offsets = [0, 0, 0], sizes = [2, 16, 128], strides = [1, 1, 1]} : vector<2x16x256xf32> to vector<2x16x128xf32>
    %519 = vector.extract_strided_slice %515 {offsets = [0, 0, 128], sizes = [2, 16, 128], strides = [1, 1, 1]} : vector<2x16x256xf32> to vector<2x16x128xf32>
    %cst_184 = arith.constant 0.000000e+00 : f32
    %520 = vector.broadcast %cst_184 : f32 to vector<16x128xf32>
    %521 = vector.extract_strided_slice %511 {offsets = [0, 0, 0], sizes = [2, 8, 16], strides = [1, 1, 1]} : vector<2x8x128xf32> to vector<2x8x16xf32>
    %522 = arith.truncf %521 : vector<2x8x16xf32> to vector<2x8x16xbf16>
    %523 = vector.extract_strided_slice %518 {offsets = [0, 0, 0], sizes = [2, 16, 16], strides = [1, 1, 1]} : vector<2x16x128xf32> to vector<2x16x16xf32>
    %524 = arith.truncf %523 : vector<2x16x16xf32> to vector<2x16x16xbf16>
    "tpu.trace_start"() <{level = 10 : i32, message = "bqd,bkd->bqk"}> : () -> ()
    %cst_185 = arith.constant dense<0.000000e+00> : vector<2x8x16xf32>
    %525 = tpu.matmul %522, %524, %cst_185 {dimension_numbers = #tpu.dot_dimension_numbers<[2], [2], [1], [1], [0, 0, 0, 1, 1, 1], [0], [0]>} : vector<2x8x16xbf16>, vector<2x16x16xbf16>, vector<2x8x16xf32> -> vector<2x8x16xf32>
    "tpu.trace_stop"() : () -> ()
    %cst_186 = arith.constant dense<0xFF800000> : vector<2x8xf32>
    %526 = vector.multi_reduction <maximumf>, %525, %cst_186 [2] : vector<2x8x16xf32> to vector<2x8xf32>
    %527 = vector.shape_cast %526 : vector<2x8xf32> to vector<2x8x1xf32>
    %528 = vector.broadcast %527 : vector<2x8x1xf32> to vector<2x8x16xf32>
    %529 = arith.subf %525, %528 : vector<2x8x16xf32>
    %530 = math.exp %529 : vector<2x8x16xf32>
    %cst_187 = arith.constant dense<0.000000e+00> : vector<2x8xf32>
    %531 = vector.multi_reduction <add>, %530, %cst_187 [2] : vector<2x8x16xf32> to vector<2x8xf32>
    %532 = vector.shape_cast %531 : vector<2x8xf32> to vector<2x8x1xf32>
    %533 = vector.broadcast %532 : vector<2x8x1xf32> to vector<2x8x16xf32>
    %534 = arith.divf %530, %533 : vector<2x8x16xf32>
    %535 = arith.truncf %534 : vector<2x8x16xf32> to vector<2x8x16xbf16>
    %536 = vector.extract_strided_slice %519 {offsets = [0, 0, 0], sizes = [2, 16, 16], strides = [1, 1, 1]} : vector<2x16x128xf32> to vector<2x16x16xf32>
    %537 = arith.truncf %536 : vector<2x16x16xf32> to vector<2x16x16xbf16>
    "tpu.trace_start"() <{level = 10 : i32, message = "bqk,bkd->bqd"}> : () -> ()
    %cst_188 = arith.constant dense<0.000000e+00> : vector<2x8x16xf32>
    %538 = tpu.matmul %535, %537, %cst_188 {dimension_numbers = #tpu.dot_dimension_numbers<[2], [1], [1], [2], [0, 0, 0, 1, 1, 2], [0], [0]>} : vector<2x8x16xbf16>, vector<2x16x16xbf16>, vector<2x8x16xf32> -> vector<2x8x16xf32>
    "tpu.trace_stop"() : () -> ()
    %539 = vector.shape_cast %538 : vector<2x8x16xf32> to vector<16x16xf32>
    %c0_189 = arith.constant 0 : index
    %c0_190 = arith.constant 0 : index
    %540 = vector.load %arg27[%c0_189, %c0_190] : memref<128x128xbf16, #tpu.memory_space<vmem>>, vector<16x128xbf16>
    %541 = arith.truncf %539 : vector<16x16xf32> to vector<16x16xbf16>
    %cst_191 = arith.constant dense<0.000000e+00> : vector<16x128xf32>
    %542 = tpu.matmul %541, %540, %cst_191 {dimension_numbers = #tpu.dot_dimension_numbers<[1], [0], [0], [1], [0, 0, 1, 1], [], []>} : vector<16x16xbf16>, vector<16x128xbf16>, vector<16x128xf32> -> vector<16x128xf32>
    %543 = arith.addf %520, %542 : vector<16x128xf32>
    %544 = vector.extract_strided_slice %511 {offsets = [0, 0, 16], sizes = [2, 8, 16], strides = [1, 1, 1]} : vector<2x8x128xf32> to vector<2x8x16xf32>
    %545 = arith.truncf %544 : vector<2x8x16xf32> to vector<2x8x16xbf16>
    %546 = vector.extract_strided_slice %518 {offsets = [0, 0, 16], sizes = [2, 16, 16], strides = [1, 1, 1]} : vector<2x16x128xf32> to vector<2x16x16xf32>
    %547 = arith.truncf %546 : vector<2x16x16xf32> to vector<2x16x16xbf16>
    "tpu.trace_start"() <{level = 10 : i32, message = "bqd,bkd->bqk"}> : () -> ()
    %cst_192 = arith.constant dense<0.000000e+00> : vector<2x8x16xf32>
    %548 = tpu.matmul %545, %547, %cst_192 {dimension_numbers = #tpu.dot_dimension_numbers<[2], [2], [1], [1], [0, 0, 0, 1, 1, 1], [0], [0]>} : vector<2x8x16xbf16>, vector<2x16x16xbf16>, vector<2x8x16xf32> -> vector<2x8x16xf32>
    "tpu.trace_stop"() : () -> ()
    %cst_193 = arith.constant dense<0xFF800000> : vector<2x8xf32>
    %549 = vector.multi_reduction <maximumf>, %548, %cst_193 [2] : vector<2x8x16xf32> to vector<2x8xf32>
    %550 = vector.shape_cast %549 : vector<2x8xf32> to vector<2x8x1xf32>
    %551 = vector.broadcast %550 : vector<2x8x1xf32> to vector<2x8x16xf32>
    %552 = arith.subf %548, %551 : vector<2x8x16xf32>
    %553 = math.exp %552 : vector<2x8x16xf32>
    %cst_194 = arith.constant dense<0.000000e+00> : vector<2x8xf32>
    %554 = vector.multi_reduction <add>, %553, %cst_194 [2] : vector<2x8x16xf32> to vector<2x8xf32>
    %555 = vector.shape_cast %554 : vector<2x8xf32> to vector<2x8x1xf32>
    %556 = vector.broadcast %555 : vector<2x8x1xf32> to vector<2x8x16xf32>
    %557 = arith.divf %553, %556 : vector<2x8x16xf32>
    %558 = arith.truncf %557 : vector<2x8x16xf32> to vector<2x8x16xbf16>
    %559 = vector.extract_strided_slice %519 {offsets = [0, 0, 16], sizes = [2, 16, 16], strides = [1, 1, 1]} : vector<2x16x128xf32> to vector<2x16x16xf32>
    %560 = arith.truncf %559 : vector<2x16x16xf32> to vector<2x16x16xbf16>
    "tpu.trace_start"() <{level = 10 : i32, message = "bqk,bkd->bqd"}> : () -> ()
    %cst_195 = arith.constant dense<0.000000e+00> : vector<2x8x16xf32>
    %561 = tpu.matmul %558, %560, %cst_195 {dimension_numbers = #tpu.dot_dimension_numbers<[2], [1], [1], [2], [0, 0, 0, 1, 1, 2], [0], [0]>} : vector<2x8x16xbf16>, vector<2x16x16xbf16>, vector<2x8x16xf32> -> vector<2x8x16xf32>
    "tpu.trace_stop"() : () -> ()
    %562 = vector.shape_cast %561 : vector<2x8x16xf32> to vector<16x16xf32>
    %c16_196 = arith.constant 16 : index
    %c0_197 = arith.constant 0 : index
    %563 = vector.load %arg27[%c16_196, %c0_197] : memref<128x128xbf16, #tpu.memory_space<vmem>>, vector<16x128xbf16>
    %564 = arith.truncf %562 : vector<16x16xf32> to vector<16x16xbf16>
    %cst_198 = arith.constant dense<0.000000e+00> : vector<16x128xf32>
    %565 = tpu.matmul %564, %563, %cst_198 {dimension_numbers = #tpu.dot_dimension_numbers<[1], [0], [0], [1], [0, 0, 1, 1], [], []>} : vector<16x16xbf16>, vector<16x128xbf16>, vector<16x128xf32> -> vector<16x128xf32>
    %566 = arith.addf %543, %565 : vector<16x128xf32>
    %567 = vector.extract_strided_slice %511 {offsets = [0, 0, 32], sizes = [2, 8, 16], strides = [1, 1, 1]} : vector<2x8x128xf32> to vector<2x8x16xf32>
    %568 = arith.truncf %567 : vector<2x8x16xf32> to vector<2x8x16xbf16>
    %569 = vector.extract_strided_slice %518 {offsets = [0, 0, 32], sizes = [2, 16, 16], strides = [1, 1, 1]} : vector<2x16x128xf32> to vector<2x16x16xf32>
    %570 = arith.truncf %569 : vector<2x16x16xf32> to vector<2x16x16xbf16>
    "tpu.trace_start"() <{level = 10 : i32, message = "bqd,bkd->bqk"}> : () -> ()
    %cst_199 = arith.constant dense<0.000000e+00> : vector<2x8x16xf32>
    %571 = tpu.matmul %568, %570, %cst_199 {dimension_numbers = #tpu.dot_dimension_numbers<[2], [2], [1], [1], [0, 0, 0, 1, 1, 1], [0], [0]>} : vector<2x8x16xbf16>, vector<2x16x16xbf16>, vector<2x8x16xf32> -> vector<2x8x16xf32>
    "tpu.trace_stop"() : () -> ()
    %cst_200 = arith.constant dense<0xFF800000> : vector<2x8xf32>
    %572 = vector.multi_reduction <maximumf>, %571, %cst_200 [2] : vector<2x8x16xf32> to vector<2x8xf32>
    %573 = vector.shape_cast %572 : vector<2x8xf32> to vector<2x8x1xf32>
    %574 = vector.broadcast %573 : vector<2x8x1xf32> to vector<2x8x16xf32>
    %575 = arith.subf %571, %574 : vector<2x8x16xf32>
    %576 = math.exp %575 : vector<2x8x16xf32>
    %cst_201 = arith.constant dense<0.000000e+00> : vector<2x8xf32>
    %577 = vector.multi_reduction <add>, %576, %cst_201 [2] : vector<2x8x16xf32> to vector<2x8xf32>
    %578 = vector.shape_cast %577 : vector<2x8xf32> to vector<2x8x1xf32>
    %579 = vector.broadcast %578 : vector<2x8x1xf32> to vector<2x8x16xf32>
    %580 = arith.divf %576, %579 : vector<2x8x16xf32>
    %581 = arith.truncf %580 : vector<2x8x16xf32> to vector<2x8x16xbf16>
    %582 = vector.extract_strided_slice %519 {offsets = [0, 0, 32], sizes = [2, 16, 16], strides = [1, 1, 1]} : vector<2x16x128xf32> to vector<2x16x16xf32>
    %583 = arith.truncf %582 : vector<2x16x16xf32> to vector<2x16x16xbf16>
    "tpu.trace_start"() <{level = 10 : i32, message = "bqk,bkd->bqd"}> : () -> ()
    %cst_202 = arith.constant dense<0.000000e+00> : vector<2x8x16xf32>
    %584 = tpu.matmul %581, %583, %cst_202 {dimension_numbers = #tpu.dot_dimension_numbers<[2], [1], [1], [2], [0, 0, 0, 1, 1, 2], [0], [0]>} : vector<2x8x16xbf16>, vector<2x16x16xbf16>, vector<2x8x16xf32> -> vector<2x8x16xf32>
    "tpu.trace_stop"() : () -> ()
    %585 = vector.shape_cast %584 : vector<2x8x16xf32> to vector<16x16xf32>
    %c32_203 = arith.constant 32 : index
    %c0_204 = arith.constant 0 : index
    %586 = vector.load %arg27[%c32_203, %c0_204] : memref<128x128xbf16, #tpu.memory_space<vmem>>, vector<16x128xbf16>
    %587 = arith.truncf %585 : vector<16x16xf32> to vector<16x16xbf16>
    %cst_205 = arith.constant dense<0.000000e+00> : vector<16x128xf32>
    %588 = tpu.matmul %587, %586, %cst_205 {dimension_numbers = #tpu.dot_dimension_numbers<[1], [0], [0], [1], [0, 0, 1, 1], [], []>} : vector<16x16xbf16>, vector<16x128xbf16>, vector<16x128xf32> -> vector<16x128xf32>
    %589 = arith.addf %566, %588 : vector<16x128xf32>
    %590 = vector.extract_strided_slice %511 {offsets = [0, 0, 48], sizes = [2, 8, 16], strides = [1, 1, 1]} : vector<2x8x128xf32> to vector<2x8x16xf32>
    %591 = arith.truncf %590 : vector<2x8x16xf32> to vector<2x8x16xbf16>
    %592 = vector.extract_strided_slice %518 {offsets = [0, 0, 48], sizes = [2, 16, 16], strides = [1, 1, 1]} : vector<2x16x128xf32> to vector<2x16x16xf32>
    %593 = arith.truncf %592 : vector<2x16x16xf32> to vector<2x16x16xbf16>
    "tpu.trace_start"() <{level = 10 : i32, message = "bqd,bkd->bqk"}> : () -> ()
    %cst_206 = arith.constant dense<0.000000e+00> : vector<2x8x16xf32>
    %594 = tpu.matmul %591, %593, %cst_206 {dimension_numbers = #tpu.dot_dimension_numbers<[2], [2], [1], [1], [0, 0, 0, 1, 1, 1], [0], [0]>} : vector<2x8x16xbf16>, vector<2x16x16xbf16>, vector<2x8x16xf32> -> vector<2x8x16xf32>
    "tpu.trace_stop"() : () -> ()
    %cst_207 = arith.constant dense<0xFF800000> : vector<2x8xf32>
    %595 = vector.multi_reduction <maximumf>, %594, %cst_207 [2] : vector<2x8x16xf32> to vector<2x8xf32>
    %596 = vector.shape_cast %595 : vector<2x8xf32> to vector<2x8x1xf32>
    %597 = vector.broadcast %596 : vector<2x8x1xf32> to vector<2x8x16xf32>
    %598 = arith.subf %594, %597 : vector<2x8x16xf32>
    %599 = math.exp %598 : vector<2x8x16xf32>
    %cst_208 = arith.constant dense<0.000000e+00> : vector<2x8xf32>
    %600 = vector.multi_reduction <add>, %599, %cst_208 [2] : vector<2x8x16xf32> to vector<2x8xf32>
    %601 = vector.shape_cast %600 : vector<2x8xf32> to vector<2x8x1xf32>
    %602 = vector.broadcast %601 : vector<2x8x1xf32> to vector<2x8x16xf32>
    %603 = arith.divf %599, %602 : vector<2x8x16xf32>
    %604 = arith.truncf %603 : vector<2x8x16xf32> to vector<2x8x16xbf16>
    %605 = vector.extract_strided_slice %519 {offsets = [0, 0, 48], sizes = [2, 16, 16], strides = [1, 1, 1]} : vector<2x16x128xf32> to vector<2x16x16xf32>
    %606 = arith.truncf %605 : vector<2x16x16xf32> to vector<2x16x16xbf16>
    "tpu.trace_start"() <{level = 10 : i32, message = "bqk,bkd->bqd"}> : () -> ()
    %cst_209 = arith.constant dense<0.000000e+00> : vector<2x8x16xf32>
    %607 = tpu.matmul %604, %606, %cst_209 {dimension_numbers = #tpu.dot_dimension_numbers<[2], [1], [1], [2], [0, 0, 0, 1, 1, 2], [0], [0]>} : vector<2x8x16xbf16>, vector<2x16x16xbf16>, vector<2x8x16xf32> -> vector<2x8x16xf32>
    "tpu.trace_stop"() : () -> ()
    %608 = vector.shape_cast %607 : vector<2x8x16xf32> to vector<16x16xf32>
    %c48_210 = arith.constant 48 : index
    %c0_211 = arith.constant 0 : index
    %609 = vector.load %arg27[%c48_210, %c0_211] : memref<128x128xbf16, #tpu.memory_space<vmem>>, vector<16x128xbf16>
    %610 = arith.truncf %608 : vector<16x16xf32> to vector<16x16xbf16>
    %cst_212 = arith.constant dense<0.000000e+00> : vector<16x128xf32>
    %611 = tpu.matmul %610, %609, %cst_212 {dimension_numbers = #tpu.dot_dimension_numbers<[1], [0], [0], [1], [0, 0, 1, 1], [], []>} : vector<16x16xbf16>, vector<16x128xbf16>, vector<16x128xf32> -> vector<16x128xf32>
    %612 = arith.addf %589, %611 : vector<16x128xf32>
    %613 = vector.extract_strided_slice %511 {offsets = [0, 0, 64], sizes = [2, 8, 16], strides = [1, 1, 1]} : vector<2x8x128xf32> to vector<2x8x16xf32>
    %614 = arith.truncf %613 : vector<2x8x16xf32> to vector<2x8x16xbf16>
    %615 = vector.extract_strided_slice %518 {offsets = [0, 0, 64], sizes = [2, 16, 16], strides = [1, 1, 1]} : vector<2x16x128xf32> to vector<2x16x16xf32>
    %616 = arith.truncf %615 : vector<2x16x16xf32> to vector<2x16x16xbf16>
    "tpu.trace_start"() <{level = 10 : i32, message = "bqd,bkd->bqk"}> : () -> ()
    %cst_213 = arith.constant dense<0.000000e+00> : vector<2x8x16xf32>
    %617 = tpu.matmul %614, %616, %cst_213 {dimension_numbers = #tpu.dot_dimension_numbers<[2], [2], [1], [1], [0, 0, 0, 1, 1, 1], [0], [0]>} : vector<2x8x16xbf16>, vector<2x16x16xbf16>, vector<2x8x16xf32> -> vector<2x8x16xf32>
    "tpu.trace_stop"() : () -> ()
    %cst_214 = arith.constant dense<0xFF800000> : vector<2x8xf32>
    %618 = vector.multi_reduction <maximumf>, %617, %cst_214 [2] : vector<2x8x16xf32> to vector<2x8xf32>
    %619 = vector.shape_cast %618 : vector<2x8xf32> to vector<2x8x1xf32>
    %620 = vector.broadcast %619 : vector<2x8x1xf32> to vector<2x8x16xf32>
    %621 = arith.subf %617, %620 : vector<2x8x16xf32>
    %622 = math.exp %621 : vector<2x8x16xf32>
    %cst_215 = arith.constant dense<0.000000e+00> : vector<2x8xf32>
    %623 = vector.multi_reduction <add>, %622, %cst_215 [2] : vector<2x8x16xf32> to vector<2x8xf32>
    %624 = vector.shape_cast %623 : vector<2x8xf32> to vector<2x8x1xf32>
    %625 = vector.broadcast %624 : vector<2x8x1xf32> to vector<2x8x16xf32>
    %626 = arith.divf %622, %625 : vector<2x8x16xf32>
    %627 = arith.truncf %626 : vector<2x8x16xf32> to vector<2x8x16xbf16>
    %628 = vector.extract_strided_slice %519 {offsets = [0, 0, 64], sizes = [2, 16, 16], strides = [1, 1, 1]} : vector<2x16x128xf32> to vector<2x16x16xf32>
    %629 = arith.truncf %628 : vector<2x16x16xf32> to vector<2x16x16xbf16>
    "tpu.trace_start"() <{level = 10 : i32, message = "bqk,bkd->bqd"}> : () -> ()
    %cst_216 = arith.constant dense<0.000000e+00> : vector<2x8x16xf32>
    %630 = tpu.matmul %627, %629, %cst_216 {dimension_numbers = #tpu.dot_dimension_numbers<[2], [1], [1], [2], [0, 0, 0, 1, 1, 2], [0], [0]>} : vector<2x8x16xbf16>, vector<2x16x16xbf16>, vector<2x8x16xf32> -> vector<2x8x16xf32>
    "tpu.trace_stop"() : () -> ()
    %631 = vector.shape_cast %630 : vector<2x8x16xf32> to vector<16x16xf32>
    %c64_217 = arith.constant 64 : index
    %c0_218 = arith.constant 0 : index
    %632 = vector.load %arg27[%c64_217, %c0_218] : memref<128x128xbf16, #tpu.memory_space<vmem>>, vector<16x128xbf16>
    %633 = arith.truncf %631 : vector<16x16xf32> to vector<16x16xbf16>
    %cst_219 = arith.constant dense<0.000000e+00> : vector<16x128xf32>
    %634 = tpu.matmul %633, %632, %cst_219 {dimension_numbers = #tpu.dot_dimension_numbers<[1], [0], [0], [1], [0, 0, 1, 1], [], []>} : vector<16x16xbf16>, vector<16x128xbf16>, vector<16x128xf32> -> vector<16x128xf32>
    %635 = arith.addf %612, %634 : vector<16x128xf32>
    %636 = vector.extract_strided_slice %511 {offsets = [0, 0, 80], sizes = [2, 8, 16], strides = [1, 1, 1]} : vector<2x8x128xf32> to vector<2x8x16xf32>
    %637 = arith.truncf %636 : vector<2x8x16xf32> to vector<2x8x16xbf16>
    %638 = vector.extract_strided_slice %518 {offsets = [0, 0, 80], sizes = [2, 16, 16], strides = [1, 1, 1]} : vector<2x16x128xf32> to vector<2x16x16xf32>
    %639 = arith.truncf %638 : vector<2x16x16xf32> to vector<2x16x16xbf16>
    "tpu.trace_start"() <{level = 10 : i32, message = "bqd,bkd->bqk"}> : () -> ()
    %cst_220 = arith.constant dense<0.000000e+00> : vector<2x8x16xf32>
    %640 = tpu.matmul %637, %639, %cst_220 {dimension_numbers = #tpu.dot_dimension_numbers<[2], [2], [1], [1], [0, 0, 0, 1, 1, 1], [0], [0]>} : vector<2x8x16xbf16>, vector<2x16x16xbf16>, vector<2x8x16xf32> -> vector<2x8x16xf32>
    "tpu.trace_stop"() : () -> ()
    %cst_221 = arith.constant dense<0xFF800000> : vector<2x8xf32>
    %641 = vector.multi_reduction <maximumf>, %640, %cst_221 [2] : vector<2x8x16xf32> to vector<2x8xf32>
    %642 = vector.shape_cast %641 : vector<2x8xf32> to vector<2x8x1xf32>
    %643 = vector.broadcast %642 : vector<2x8x1xf32> to vector<2x8x16xf32>
    %644 = arith.subf %640, %643 : vector<2x8x16xf32>
    %645 = math.exp %644 : vector<2x8x16xf32>
    %cst_222 = arith.constant dense<0.000000e+00> : vector<2x8xf32>
    %646 = vector.multi_reduction <add>, %645, %cst_222 [2] : vector<2x8x16xf32> to vector<2x8xf32>
    %647 = vector.shape_cast %646 : vector<2x8xf32> to vector<2x8x1xf32>
    %648 = vector.broadcast %647 : vector<2x8x1xf32> to vector<2x8x16xf32>
    %649 = arith.divf %645, %648 : vector<2x8x16xf32>
    %650 = arith.truncf %649 : vector<2x8x16xf32> to vector<2x8x16xbf16>
    %651 = vector.extract_strided_slice %519 {offsets = [0, 0, 80], sizes = [2, 16, 16], strides = [1, 1, 1]} : vector<2x16x128xf32> to vector<2x16x16xf32>
    %652 = arith.truncf %651 : vector<2x16x16xf32> to vector<2x16x16xbf16>
    "tpu.trace_start"() <{level = 10 : i32, message = "bqk,bkd->bqd"}> : () -> ()
    %cst_223 = arith.constant dense<0.000000e+00> : vector<2x8x16xf32>
    %653 = tpu.matmul %650, %652, %cst_223 {dimension_numbers = #tpu.dot_dimension_numbers<[2], [1], [1], [2], [0, 0, 0, 1, 1, 2], [0], [0]>} : vector<2x8x16xbf16>, vector<2x16x16xbf16>, vector<2x8x16xf32> -> vector<2x8x16xf32>
    "tpu.trace_stop"() : () -> ()
    %654 = vector.shape_cast %653 : vector<2x8x16xf32> to vector<16x16xf32>
    %c80_224 = arith.constant 80 : index
    %c0_225 = arith.constant 0 : index
    %655 = vector.load %arg27[%c80_224, %c0_225] : memref<128x128xbf16, #tpu.memory_space<vmem>>, vector<16x128xbf16>
    %656 = arith.truncf %654 : vector<16x16xf32> to vector<16x16xbf16>
    %cst_226 = arith.constant dense<0.000000e+00> : vector<16x128xf32>
    %657 = tpu.matmul %656, %655, %cst_226 {dimension_numbers = #tpu.dot_dimension_numbers<[1], [0], [0], [1], [0, 0, 1, 1], [], []>} : vector<16x16xbf16>, vector<16x128xbf16>, vector<16x128xf32> -> vector<16x128xf32>
    %658 = arith.addf %635, %657 : vector<16x128xf32>
    %659 = vector.extract_strided_slice %511 {offsets = [0, 0, 96], sizes = [2, 8, 16], strides = [1, 1, 1]} : vector<2x8x128xf32> to vector<2x8x16xf32>
    %660 = arith.truncf %659 : vector<2x8x16xf32> to vector<2x8x16xbf16>
    %661 = vector.extract_strided_slice %518 {offsets = [0, 0, 96], sizes = [2, 16, 16], strides = [1, 1, 1]} : vector<2x16x128xf32> to vector<2x16x16xf32>
    %662 = arith.truncf %661 : vector<2x16x16xf32> to vector<2x16x16xbf16>
    "tpu.trace_start"() <{level = 10 : i32, message = "bqd,bkd->bqk"}> : () -> ()
    %cst_227 = arith.constant dense<0.000000e+00> : vector<2x8x16xf32>
    %663 = tpu.matmul %660, %662, %cst_227 {dimension_numbers = #tpu.dot_dimension_numbers<[2], [2], [1], [1], [0, 0, 0, 1, 1, 1], [0], [0]>} : vector<2x8x16xbf16>, vector<2x16x16xbf16>, vector<2x8x16xf32> -> vector<2x8x16xf32>
    "tpu.trace_stop"() : () -> ()
    %cst_228 = arith.constant dense<0xFF800000> : vector<2x8xf32>
    %664 = vector.multi_reduction <maximumf>, %663, %cst_228 [2] : vector<2x8x16xf32> to vector<2x8xf32>
    %665 = vector.shape_cast %664 : vector<2x8xf32> to vector<2x8x1xf32>
    %666 = vector.broadcast %665 : vector<2x8x1xf32> to vector<2x8x16xf32>
    %667 = arith.subf %663, %666 : vector<2x8x16xf32>
    %668 = math.exp %667 : vector<2x8x16xf32>
    %cst_229 = arith.constant dense<0.000000e+00> : vector<2x8xf32>
    %669 = vector.multi_reduction <add>, %668, %cst_229 [2] : vector<2x8x16xf32> to vector<2x8xf32>
    %670 = vector.shape_cast %669 : vector<2x8xf32> to vector<2x8x1xf32>
    %671 = vector.broadcast %670 : vector<2x8x1xf32> to vector<2x8x16xf32>
    %672 = arith.divf %668, %671 : vector<2x8x16xf32>
    %673 = arith.truncf %672 : vector<2x8x16xf32> to vector<2x8x16xbf16>
    %674 = vector.extract_strided_slice %519 {offsets = [0, 0, 96], sizes = [2, 16, 16], strides = [1, 1, 1]} : vector<2x16x128xf32> to vector<2x16x16xf32>
    %675 = arith.truncf %674 : vector<2x16x16xf32> to vector<2x16x16xbf16>
    "tpu.trace_start"() <{level = 10 : i32, message = "bqk,bkd->bqd"}> : () -> ()
    %cst_230 = arith.constant dense<0.000000e+00> : vector<2x8x16xf32>
    %676 = tpu.matmul %673, %675, %cst_230 {dimension_numbers = #tpu.dot_dimension_numbers<[2], [1], [1], [2], [0, 0, 0, 1, 1, 2], [0], [0]>} : vector<2x8x16xbf16>, vector<2x16x16xbf16>, vector<2x8x16xf32> -> vector<2x8x16xf32>
    "tpu.trace_stop"() : () -> ()
    %677 = vector.shape_cast %676 : vector<2x8x16xf32> to vector<16x16xf32>
    %c96_231 = arith.constant 96 : index
    %c0_232 = arith.constant 0 : index
    %678 = vector.load %arg27[%c96_231, %c0_232] : memref<128x128xbf16, #tpu.memory_space<vmem>>, vector<16x128xbf16>
    %679 = arith.truncf %677 : vector<16x16xf32> to vector<16x16xbf16>
    %cst_233 = arith.constant dense<0.000000e+00> : vector<16x128xf32>
    %680 = tpu.matmul %679, %678, %cst_233 {dimension_numbers = #tpu.dot_dimension_numbers<[1], [0], [0], [1], [0, 0, 1, 1], [], []>} : vector<16x16xbf16>, vector<16x128xbf16>, vector<16x128xf32> -> vector<16x128xf32>
    %681 = arith.addf %658, %680 : vector<16x128xf32>
    %682 = vector.extract_strided_slice %511 {offsets = [0, 0, 112], sizes = [2, 8, 16], strides = [1, 1, 1]} : vector<2x8x128xf32> to vector<2x8x16xf32>
    %683 = arith.truncf %682 : vector<2x8x16xf32> to vector<2x8x16xbf16>
    %684 = vector.extract_strided_slice %518 {offsets = [0, 0, 112], sizes = [2, 16, 16], strides = [1, 1, 1]} : vector<2x16x128xf32> to vector<2x16x16xf32>
    %685 = arith.truncf %684 : vector<2x16x16xf32> to vector<2x16x16xbf16>
    "tpu.trace_start"() <{level = 10 : i32, message = "bqd,bkd->bqk"}> : () -> ()
    %cst_234 = arith.constant dense<0.000000e+00> : vector<2x8x16xf32>
    %686 = tpu.matmul %683, %685, %cst_234 {dimension_numbers = #tpu.dot_dimension_numbers<[2], [2], [1], [1], [0, 0, 0, 1, 1, 1], [0], [0]>} : vector<2x8x16xbf16>, vector<2x16x16xbf16>, vector<2x8x16xf32> -> vector<2x8x16xf32>
    "tpu.trace_stop"() : () -> ()
    %cst_235 = arith.constant dense<0xFF800000> : vector<2x8xf32>
    %687 = vector.multi_reduction <maximumf>, %686, %cst_235 [2] : vector<2x8x16xf32> to vector<2x8xf32>
    %688 = vector.shape_cast %687 : vector<2x8xf32> to vector<2x8x1xf32>
    %689 = vector.broadcast %688 : vector<2x8x1xf32> to vector<2x8x16xf32>
    %690 = arith.subf %686, %689 : vector<2x8x16xf32>
    %691 = math.exp %690 : vector<2x8x16xf32>
    %cst_236 = arith.constant dense<0.000000e+00> : vector<2x8xf32>
    %692 = vector.multi_reduction <add>, %691, %cst_236 [2] : vector<2x8x16xf32> to vector<2x8xf32>
    %693 = vector.shape_cast %692 : vector<2x8xf32> to vector<2x8x1xf32>
    %694 = vector.broadcast %693 : vector<2x8x1xf32> to vector<2x8x16xf32>
    %695 = arith.divf %691, %694 : vector<2x8x16xf32>
    %696 = arith.truncf %695 : vector<2x8x16xf32> to vector<2x8x16xbf16>
    %697 = vector.extract_strided_slice %519 {offsets = [0, 0, 112], sizes = [2, 16, 16], strides = [1, 1, 1]} : vector<2x16x128xf32> to vector<2x16x16xf32>
    %698 = arith.truncf %697 : vector<2x16x16xf32> to vector<2x16x16xbf16>
    "tpu.trace_start"() <{level = 10 : i32, message = "bqk,bkd->bqd"}> : () -> ()
    %cst_237 = arith.constant dense<0.000000e+00> : vector<2x8x16xf32>
    %699 = tpu.matmul %696, %698, %cst_237 {dimension_numbers = #tpu.dot_dimension_numbers<[2], [1], [1], [2], [0, 0, 0, 1, 1, 2], [0], [0]>} : vector<2x8x16xbf16>, vector<2x16x16xbf16>, vector<2x8x16xf32> -> vector<2x8x16xf32>
    "tpu.trace_stop"() : () -> ()
    %700 = vector.shape_cast %699 : vector<2x8x16xf32> to vector<16x16xf32>
    %c112_238 = arith.constant 112 : index
    %c0_239 = arith.constant 0 : index
    %701 = vector.load %arg27[%c112_238, %c0_239] : memref<128x128xbf16, #tpu.memory_space<vmem>>, vector<16x128xbf16>
    %702 = arith.truncf %700 : vector<16x16xf32> to vector<16x16xbf16>
    %cst_240 = arith.constant dense<0.000000e+00> : vector<16x128xf32>
    %703 = tpu.matmul %702, %701, %cst_240 {dimension_numbers = #tpu.dot_dimension_numbers<[1], [0], [0], [1], [0, 0, 1, 1], [], []>} : vector<16x16xbf16>, vector<16x128xbf16>, vector<16x128xf32> -> vector<16x128xf32>
    %704 = arith.addf %681, %703 : vector<16x128xf32>
    %705 = vector.extract_strided_slice %517 {offsets = [0, 0, 0], sizes = [2, 8, 128], strides = [1, 1, 1]} : vector<2x8x256xf32> to vector<2x8x128xf32>
    %706 = vector.extract_strided_slice %517 {offsets = [0, 0, 128], sizes = [2, 8, 128], strides = [1, 1, 1]} : vector<2x8x256xf32> to vector<2x8x128xf32>
    %cst_241 = arith.constant 0.000000e+00 : f32
    %707 = vector.broadcast %cst_241 : f32 to vector<32x128xf32>
    %708 = vector.extract_strided_slice %513 {offsets = [0, 0, 0], sizes = [2, 16, 16], strides = [1, 1, 1]} : vector<2x16x128xf32> to vector<2x16x16xf32>
    %709 = arith.truncf %708 : vector<2x16x16xf32> to vector<2x16x16xbf16>
    %710 = vector.extract_strided_slice %705 {offsets = [0, 0, 0], sizes = [2, 8, 16], strides = [1, 1, 1]} : vector<2x8x128xf32> to vector<2x8x16xf32>
    %711 = arith.truncf %710 : vector<2x8x16xf32> to vector<2x8x16xbf16>
    "tpu.trace_start"() <{level = 10 : i32, message = "bqd,bkd->bqk"}> : () -> ()
    %cst_242 = arith.constant dense<0.000000e+00> : vector<2x16x8xf32>
    %712 = tpu.matmul %709, %711, %cst_242 {dimension_numbers = #tpu.dot_dimension_numbers<[2], [2], [1], [1], [0, 0, 0, 1, 1, 1], [0], [0]>} : vector<2x16x16xbf16>, vector<2x8x16xbf16>, vector<2x16x8xf32> -> vector<2x16x8xf32>
    "tpu.trace_stop"() : () -> ()
    %cst_243 = arith.constant dense<0xFF800000> : vector<2x16xf32>
    %713 = vector.multi_reduction <maximumf>, %712, %cst_243 [2] : vector<2x16x8xf32> to vector<2x16xf32>
    %714 = vector.shape_cast %713 : vector<2x16xf32> to vector<2x16x1xf32>
    %715 = vector.broadcast %714 : vector<2x16x1xf32> to vector<2x16x8xf32>
    %716 = arith.subf %712, %715 : vector<2x16x8xf32>
    %717 = math.exp %716 : vector<2x16x8xf32>
    %cst_244 = arith.constant dense<0.000000e+00> : vector<2x16xf32>
    %718 = vector.multi_reduction <add>, %717, %cst_244 [2] : vector<2x16x8xf32> to vector<2x16xf32>
    %719 = vector.shape_cast %718 : vector<2x16xf32> to vector<2x16x1xf32>
    %720 = vector.broadcast %719 : vector<2x16x1xf32> to vector<2x16x8xf32>
    %721 = arith.divf %717, %720 : vector<2x16x8xf32>
    %722 = arith.truncf %721 : vector<2x16x8xf32> to vector<2x16x8xbf16>
    %723 = vector.extract_strided_slice %706 {offsets = [0, 0, 0], sizes = [2, 8, 16], strides = [1, 1, 1]} : vector<2x8x128xf32> to vector<2x8x16xf32>
    %724 = arith.truncf %723 : vector<2x8x16xf32> to vector<2x8x16xbf16>
    "tpu.trace_start"() <{level = 10 : i32, message = "bqk,bkd->bqd"}> : () -> ()
    %cst_245 = arith.constant dense<0.000000e+00> : vector<2x16x16xf32>
    %725 = tpu.matmul %722, %724, %cst_245 {dimension_numbers = #tpu.dot_dimension_numbers<[2], [1], [1], [2], [0, 0, 0, 1, 1, 2], [0], [0]>} : vector<2x16x8xbf16>, vector<2x8x16xbf16>, vector<2x16x16xf32> -> vector<2x16x16xf32>
    "tpu.trace_stop"() : () -> ()
    %726 = vector.shape_cast %725 : vector<2x16x16xf32> to vector<32x16xf32>
    %c0_246 = arith.constant 0 : index
    %c0_247 = arith.constant 0 : index
    %727 = vector.load %arg27[%c0_246, %c0_247] : memref<128x128xbf16, #tpu.memory_space<vmem>>, vector<16x128xbf16>
    %728 = arith.truncf %726 : vector<32x16xf32> to vector<32x16xbf16>
    %cst_248 = arith.constant dense<0.000000e+00> : vector<32x128xf32>
    %729 = tpu.matmul %728, %727, %cst_248 {dimension_numbers = #tpu.dot_dimension_numbers<[1], [0], [0], [1], [0, 0, 1, 1], [], []>} : vector<32x16xbf16>, vector<16x128xbf16>, vector<32x128xf32> -> vector<32x128xf32>
    %730 = arith.addf %707, %729 : vector<32x128xf32>
    %731 = vector.extract_strided_slice %513 {offsets = [0, 0, 16], sizes = [2, 16, 16], strides = [1, 1, 1]} : vector<2x16x128xf32> to vector<2x16x16xf32>
    %732 = arith.truncf %731 : vector<2x16x16xf32> to vector<2x16x16xbf16>
    %733 = vector.extract_strided_slice %705 {offsets = [0, 0, 16], sizes = [2, 8, 16], strides = [1, 1, 1]} : vector<2x8x128xf32> to vector<2x8x16xf32>
    %734 = arith.truncf %733 : vector<2x8x16xf32> to vector<2x8x16xbf16>
    "tpu.trace_start"() <{level = 10 : i32, message = "bqd,bkd->bqk"}> : () -> ()
    %cst_249 = arith.constant dense<0.000000e+00> : vector<2x16x8xf32>
    %735 = tpu.matmul %732, %734, %cst_249 {dimension_numbers = #tpu.dot_dimension_numbers<[2], [2], [1], [1], [0, 0, 0, 1, 1, 1], [0], [0]>} : vector<2x16x16xbf16>, vector<2x8x16xbf16>, vector<2x16x8xf32> -> vector<2x16x8xf32>
    "tpu.trace_stop"() : () -> ()
    %cst_250 = arith.constant dense<0xFF800000> : vector<2x16xf32>
    %736 = vector.multi_reduction <maximumf>, %735, %cst_250 [2] : vector<2x16x8xf32> to vector<2x16xf32>
    %737 = vector.shape_cast %736 : vector<2x16xf32> to vector<2x16x1xf32>
    %738 = vector.broadcast %737 : vector<2x16x1xf32> to vector<2x16x8xf32>
    %739 = arith.subf %735, %738 : vector<2x16x8xf32>
    %740 = math.exp %739 : vector<2x16x8xf32>
    %cst_251 = arith.constant dense<0.000000e+00> : vector<2x16xf32>
    %741 = vector.multi_reduction <add>, %740, %cst_251 [2] : vector<2x16x8xf32> to vector<2x16xf32>
    %742 = vector.shape_cast %741 : vector<2x16xf32> to vector<2x16x1xf32>
    %743 = vector.broadcast %742 : vector<2x16x1xf32> to vector<2x16x8xf32>
    %744 = arith.divf %740, %743 : vector<2x16x8xf32>
    %745 = arith.truncf %744 : vector<2x16x8xf32> to vector<2x16x8xbf16>
    %746 = vector.extract_strided_slice %706 {offsets = [0, 0, 16], sizes = [2, 8, 16], strides = [1, 1, 1]} : vector<2x8x128xf32> to vector<2x8x16xf32>
    %747 = arith.truncf %746 : vector<2x8x16xf32> to vector<2x8x16xbf16>
    "tpu.trace_start"() <{level = 10 : i32, message = "bqk,bkd->bqd"}> : () -> ()
    %cst_252 = arith.constant dense<0.000000e+00> : vector<2x16x16xf32>
    %748 = tpu.matmul %745, %747, %cst_252 {dimension_numbers = #tpu.dot_dimension_numbers<[2], [1], [1], [2], [0, 0, 0, 1, 1, 2], [0], [0]>} : vector<2x16x8xbf16>, vector<2x8x16xbf16>, vector<2x16x16xf32> -> vector<2x16x16xf32>
    "tpu.trace_stop"() : () -> ()
    %749 = vector.shape_cast %748 : vector<2x16x16xf32> to vector<32x16xf32>
    %c16_253 = arith.constant 16 : index
    %c0_254 = arith.constant 0 : index
    %750 = vector.load %arg27[%c16_253, %c0_254] : memref<128x128xbf16, #tpu.memory_space<vmem>>, vector<16x128xbf16>
    %751 = arith.truncf %749 : vector<32x16xf32> to vector<32x16xbf16>
    %cst_255 = arith.constant dense<0.000000e+00> : vector<32x128xf32>
    %752 = tpu.matmul %751, %750, %cst_255 {dimension_numbers = #tpu.dot_dimension_numbers<[1], [0], [0], [1], [0, 0, 1, 1], [], []>} : vector<32x16xbf16>, vector<16x128xbf16>, vector<32x128xf32> -> vector<32x128xf32>
    %753 = arith.addf %730, %752 : vector<32x128xf32>
    %754 = vector.extract_strided_slice %513 {offsets = [0, 0, 32], sizes = [2, 16, 16], strides = [1, 1, 1]} : vector<2x16x128xf32> to vector<2x16x16xf32>
    %755 = arith.truncf %754 : vector<2x16x16xf32> to vector<2x16x16xbf16>
    %756 = vector.extract_strided_slice %705 {offsets = [0, 0, 32], sizes = [2, 8, 16], strides = [1, 1, 1]} : vector<2x8x128xf32> to vector<2x8x16xf32>
    %757 = arith.truncf %756 : vector<2x8x16xf32> to vector<2x8x16xbf16>
    "tpu.trace_start"() <{level = 10 : i32, message = "bqd,bkd->bqk"}> : () -> ()
    %cst_256 = arith.constant dense<0.000000e+00> : vector<2x16x8xf32>
    %758 = tpu.matmul %755, %757, %cst_256 {dimension_numbers = #tpu.dot_dimension_numbers<[2], [2], [1], [1], [0, 0, 0, 1, 1, 1], [0], [0]>} : vector<2x16x16xbf16>, vector<2x8x16xbf16>, vector<2x16x8xf32> -> vector<2x16x8xf32>
    "tpu.trace_stop"() : () -> ()
    %cst_257 = arith.constant dense<0xFF800000> : vector<2x16xf32>
    %759 = vector.multi_reduction <maximumf>, %758, %cst_257 [2] : vector<2x16x8xf32> to vector<2x16xf32>
    %760 = vector.shape_cast %759 : vector<2x16xf32> to vector<2x16x1xf32>
    %761 = vector.broadcast %760 : vector<2x16x1xf32> to vector<2x16x8xf32>
    %762 = arith.subf %758, %761 : vector<2x16x8xf32>
    %763 = math.exp %762 : vector<2x16x8xf32>
    %cst_258 = arith.constant dense<0.000000e+00> : vector<2x16xf32>
    %764 = vector.multi_reduction <add>, %763, %cst_258 [2] : vector<2x16x8xf32> to vector<2x16xf32>
    %765 = vector.shape_cast %764 : vector<2x16xf32> to vector<2x16x1xf32>
    %766 = vector.broadcast %765 : vector<2x16x1xf32> to vector<2x16x8xf32>
    %767 = arith.divf %763, %766 : vector<2x16x8xf32>
    %768 = arith.truncf %767 : vector<2x16x8xf32> to vector<2x16x8xbf16>
    %769 = vector.extract_strided_slice %706 {offsets = [0, 0, 32], sizes = [2, 8, 16], strides = [1, 1, 1]} : vector<2x8x128xf32> to vector<2x8x16xf32>
    %770 = arith.truncf %769 : vector<2x8x16xf32> to vector<2x8x16xbf16>
    "tpu.trace_start"() <{level = 10 : i32, message = "bqk,bkd->bqd"}> : () -> ()
    %cst_259 = arith.constant dense<0.000000e+00> : vector<2x16x16xf32>
    %771 = tpu.matmul %768, %770, %cst_259 {dimension_numbers = #tpu.dot_dimension_numbers<[2], [1], [1], [2], [0, 0, 0, 1, 1, 2], [0], [0]>} : vector<2x16x8xbf16>, vector<2x8x16xbf16>, vector<2x16x16xf32> -> vector<2x16x16xf32>
    "tpu.trace_stop"() : () -> ()
    %772 = vector.shape_cast %771 : vector<2x16x16xf32> to vector<32x16xf32>
    %c32_260 = arith.constant 32 : index
    %c0_261 = arith.constant 0 : index
    %773 = vector.load %arg27[%c32_260, %c0_261] : memref<128x128xbf16, #tpu.memory_space<vmem>>, vector<16x128xbf16>
    %774 = arith.truncf %772 : vector<32x16xf32> to vector<32x16xbf16>
    %cst_262 = arith.constant dense<0.000000e+00> : vector<32x128xf32>
    %775 = tpu.matmul %774, %773, %cst_262 {dimension_numbers = #tpu.dot_dimension_numbers<[1], [0], [0], [1], [0, 0, 1, 1], [], []>} : vector<32x16xbf16>, vector<16x128xbf16>, vector<32x128xf32> -> vector<32x128xf32>
    %776 = arith.addf %753, %775 : vector<32x128xf32>
    %777 = vector.extract_strided_slice %513 {offsets = [0, 0, 48], sizes = [2, 16, 16], strides = [1, 1, 1]} : vector<2x16x128xf32> to vector<2x16x16xf32>
    %778 = arith.truncf %777 : vector<2x16x16xf32> to vector<2x16x16xbf16>
    %779 = vector.extract_strided_slice %705 {offsets = [0, 0, 48], sizes = [2, 8, 16], strides = [1, 1, 1]} : vector<2x8x128xf32> to vector<2x8x16xf32>
    %780 = arith.truncf %779 : vector<2x8x16xf32> to vector<2x8x16xbf16>
    "tpu.trace_start"() <{level = 10 : i32, message = "bqd,bkd->bqk"}> : () -> ()
    %cst_263 = arith.constant dense<0.000000e+00> : vector<2x16x8xf32>
    %781 = tpu.matmul %778, %780, %cst_263 {dimension_numbers = #tpu.dot_dimension_numbers<[2], [2], [1], [1], [0, 0, 0, 1, 1, 1], [0], [0]>} : vector<2x16x16xbf16>, vector<2x8x16xbf16>, vector<2x16x8xf32> -> vector<2x16x8xf32>
    "tpu.trace_stop"() : () -> ()
    %cst_264 = arith.constant dense<0xFF800000> : vector<2x16xf32>
    %782 = vector.multi_reduction <maximumf>, %781, %cst_264 [2] : vector<2x16x8xf32> to vector<2x16xf32>
    %783 = vector.shape_cast %782 : vector<2x16xf32> to vector<2x16x1xf32>
    %784 = vector.broadcast %783 : vector<2x16x1xf32> to vector<2x16x8xf32>
    %785 = arith.subf %781, %784 : vector<2x16x8xf32>
    %786 = math.exp %785 : vector<2x16x8xf32>
    %cst_265 = arith.constant dense<0.000000e+00> : vector<2x16xf32>
    %787 = vector.multi_reduction <add>, %786, %cst_265 [2] : vector<2x16x8xf32> to vector<2x16xf32>
    %788 = vector.shape_cast %787 : vector<2x16xf32> to vector<2x16x1xf32>
    %789 = vector.broadcast %788 : vector<2x16x1xf32> to vector<2x16x8xf32>
    %790 = arith.divf %786, %789 : vector<2x16x8xf32>
    %791 = arith.truncf %790 : vector<2x16x8xf32> to vector<2x16x8xbf16>
    %792 = vector.extract_strided_slice %706 {offsets = [0, 0, 48], sizes = [2, 8, 16], strides = [1, 1, 1]} : vector<2x8x128xf32> to vector<2x8x16xf32>
    %793 = arith.truncf %792 : vector<2x8x16xf32> to vector<2x8x16xbf16>
    "tpu.trace_start"() <{level = 10 : i32, message = "bqk,bkd->bqd"}> : () -> ()
    %cst_266 = arith.constant dense<0.000000e+00> : vector<2x16x16xf32>
    %794 = tpu.matmul %791, %793, %cst_266 {dimension_numbers = #tpu.dot_dimension_numbers<[2], [1], [1], [2], [0, 0, 0, 1, 1, 2], [0], [0]>} : vector<2x16x8xbf16>, vector<2x8x16xbf16>, vector<2x16x16xf32> -> vector<2x16x16xf32>
    "tpu.trace_stop"() : () -> ()
    %795 = vector.shape_cast %794 : vector<2x16x16xf32> to vector<32x16xf32>
    %c48_267 = arith.constant 48 : index
    %c0_268 = arith.constant 0 : index
    %796 = vector.load %arg27[%c48_267, %c0_268] : memref<128x128xbf16, #tpu.memory_space<vmem>>, vector<16x128xbf16>
    %797 = arith.truncf %795 : vector<32x16xf32> to vector<32x16xbf16>
    %cst_269 = arith.constant dense<0.000000e+00> : vector<32x128xf32>
    %798 = tpu.matmul %797, %796, %cst_269 {dimension_numbers = #tpu.dot_dimension_numbers<[1], [0], [0], [1], [0, 0, 1, 1], [], []>} : vector<32x16xbf16>, vector<16x128xbf16>, vector<32x128xf32> -> vector<32x128xf32>
    %799 = arith.addf %776, %798 : vector<32x128xf32>
    %800 = vector.extract_strided_slice %513 {offsets = [0, 0, 64], sizes = [2, 16, 16], strides = [1, 1, 1]} : vector<2x16x128xf32> to vector<2x16x16xf32>
    %801 = arith.truncf %800 : vector<2x16x16xf32> to vector<2x16x16xbf16>
    %802 = vector.extract_strided_slice %705 {offsets = [0, 0, 64], sizes = [2, 8, 16], strides = [1, 1, 1]} : vector<2x8x128xf32> to vector<2x8x16xf32>
    %803 = arith.truncf %802 : vector<2x8x16xf32> to vector<2x8x16xbf16>
    "tpu.trace_start"() <{level = 10 : i32, message = "bqd,bkd->bqk"}> : () -> ()
    %cst_270 = arith.constant dense<0.000000e+00> : vector<2x16x8xf32>
    %804 = tpu.matmul %801, %803, %cst_270 {dimension_numbers = #tpu.dot_dimension_numbers<[2], [2], [1], [1], [0, 0, 0, 1, 1, 1], [0], [0]>} : vector<2x16x16xbf16>, vector<2x8x16xbf16>, vector<2x16x8xf32> -> vector<2x16x8xf32>
    "tpu.trace_stop"() : () -> ()
    %cst_271 = arith.constant dense<0xFF800000> : vector<2x16xf32>
    %805 = vector.multi_reduction <maximumf>, %804, %cst_271 [2] : vector<2x16x8xf32> to vector<2x16xf32>
    %806 = vector.shape_cast %805 : vector<2x16xf32> to vector<2x16x1xf32>
    %807 = vector.broadcast %806 : vector<2x16x1xf32> to vector<2x16x8xf32>
    %808 = arith.subf %804, %807 : vector<2x16x8xf32>
    %809 = math.exp %808 : vector<2x16x8xf32>
    %cst_272 = arith.constant dense<0.000000e+00> : vector<2x16xf32>
    %810 = vector.multi_reduction <add>, %809, %cst_272 [2] : vector<2x16x8xf32> to vector<2x16xf32>
    %811 = vector.shape_cast %810 : vector<2x16xf32> to vector<2x16x1xf32>
    %812 = vector.broadcast %811 : vector<2x16x1xf32> to vector<2x16x8xf32>
    %813 = arith.divf %809, %812 : vector<2x16x8xf32>
    %814 = arith.truncf %813 : vector<2x16x8xf32> to vector<2x16x8xbf16>
    %815 = vector.extract_strided_slice %706 {offsets = [0, 0, 64], sizes = [2, 8, 16], strides = [1, 1, 1]} : vector<2x8x128xf32> to vector<2x8x16xf32>
    %816 = arith.truncf %815 : vector<2x8x16xf32> to vector<2x8x16xbf16>
    "tpu.trace_start"() <{level = 10 : i32, message = "bqk,bkd->bqd"}> : () -> ()
    %cst_273 = arith.constant dense<0.000000e+00> : vector<2x16x16xf32>
    %817 = tpu.matmul %814, %816, %cst_273 {dimension_numbers = #tpu.dot_dimension_numbers<[2], [1], [1], [2], [0, 0, 0, 1, 1, 2], [0], [0]>} : vector<2x16x8xbf16>, vector<2x8x16xbf16>, vector<2x16x16xf32> -> vector<2x16x16xf32>
    "tpu.trace_stop"() : () -> ()
    %818 = vector.shape_cast %817 : vector<2x16x16xf32> to vector<32x16xf32>
    %c64_274 = arith.constant 64 : index
    %c0_275 = arith.constant 0 : index
    %819 = vector.load %arg27[%c64_274, %c0_275] : memref<128x128xbf16, #tpu.memory_space<vmem>>, vector<16x128xbf16>
    %820 = arith.truncf %818 : vector<32x16xf32> to vector<32x16xbf16>
    %cst_276 = arith.constant dense<0.000000e+00> : vector<32x128xf32>
    %821 = tpu.matmul %820, %819, %cst_276 {dimension_numbers = #tpu.dot_dimension_numbers<[1], [0], [0], [1], [0, 0, 1, 1], [], []>} : vector<32x16xbf16>, vector<16x128xbf16>, vector<32x128xf32> -> vector<32x128xf32>
    %822 = arith.addf %799, %821 : vector<32x128xf32>
    %823 = vector.extract_strided_slice %513 {offsets = [0, 0, 80], sizes = [2, 16, 16], strides = [1, 1, 1]} : vector<2x16x128xf32> to vector<2x16x16xf32>
    %824 = arith.truncf %823 : vector<2x16x16xf32> to vector<2x16x16xbf16>
    %825 = vector.extract_strided_slice %705 {offsets = [0, 0, 80], sizes = [2, 8, 16], strides = [1, 1, 1]} : vector<2x8x128xf32> to vector<2x8x16xf32>
    %826 = arith.truncf %825 : vector<2x8x16xf32> to vector<2x8x16xbf16>
    "tpu.trace_start"() <{level = 10 : i32, message = "bqd,bkd->bqk"}> : () -> ()
    %cst_277 = arith.constant dense<0.000000e+00> : vector<2x16x8xf32>
    %827 = tpu.matmul %824, %826, %cst_277 {dimension_numbers = #tpu.dot_dimension_numbers<[2], [2], [1], [1], [0, 0, 0, 1, 1, 1], [0], [0]>} : vector<2x16x16xbf16>, vector<2x8x16xbf16>, vector<2x16x8xf32> -> vector<2x16x8xf32>
    "tpu.trace_stop"() : () -> ()
    %cst_278 = arith.constant dense<0xFF800000> : vector<2x16xf32>
    %828 = vector.multi_reduction <maximumf>, %827, %cst_278 [2] : vector<2x16x8xf32> to vector<2x16xf32>
    %829 = vector.shape_cast %828 : vector<2x16xf32> to vector<2x16x1xf32>
    %830 = vector.broadcast %829 : vector<2x16x1xf32> to vector<2x16x8xf32>
    %831 = arith.subf %827, %830 : vector<2x16x8xf32>
    %832 = math.exp %831 : vector<2x16x8xf32>
    %cst_279 = arith.constant dense<0.000000e+00> : vector<2x16xf32>
    %833 = vector.multi_reduction <add>, %832, %cst_279 [2] : vector<2x16x8xf32> to vector<2x16xf32>
    %834 = vector.shape_cast %833 : vector<2x16xf32> to vector<2x16x1xf32>
    %835 = vector.broadcast %834 : vector<2x16x1xf32> to vector<2x16x8xf32>
    %836 = arith.divf %832, %835 : vector<2x16x8xf32>
    %837 = arith.truncf %836 : vector<2x16x8xf32> to vector<2x16x8xbf16>
    %838 = vector.extract_strided_slice %706 {offsets = [0, 0, 80], sizes = [2, 8, 16], strides = [1, 1, 1]} : vector<2x8x128xf32> to vector<2x8x16xf32>
    %839 = arith.truncf %838 : vector<2x8x16xf32> to vector<2x8x16xbf16>
    "tpu.trace_start"() <{level = 10 : i32, message = "bqk,bkd->bqd"}> : () -> ()
    %cst_280 = arith.constant dense<0.000000e+00> : vector<2x16x16xf32>
    %840 = tpu.matmul %837, %839, %cst_280 {dimension_numbers = #tpu.dot_dimension_numbers<[2], [1], [1], [2], [0, 0, 0, 1, 1, 2], [0], [0]>} : vector<2x16x8xbf16>, vector<2x8x16xbf16>, vector<2x16x16xf32> -> vector<2x16x16xf32>
    "tpu.trace_stop"() : () -> ()
    %841 = vector.shape_cast %840 : vector<2x16x16xf32> to vector<32x16xf32>
    %c80_281 = arith.constant 80 : index
    %c0_282 = arith.constant 0 : index
    %842 = vector.load %arg27[%c80_281, %c0_282] : memref<128x128xbf16, #tpu.memory_space<vmem>>, vector<16x128xbf16>
    %843 = arith.truncf %841 : vector<32x16xf32> to vector<32x16xbf16>
    %cst_283 = arith.constant dense<0.000000e+00> : vector<32x128xf32>
    %844 = tpu.matmul %843, %842, %cst_283 {dimension_numbers = #tpu.dot_dimension_numbers<[1], [0], [0], [1], [0, 0, 1, 1], [], []>} : vector<32x16xbf16>, vector<16x128xbf16>, vector<32x128xf32> -> vector<32x128xf32>
    %845 = arith.addf %822, %844 : vector<32x128xf32>
    %846 = vector.extract_strided_slice %513 {offsets = [0, 0, 96], sizes = [2, 16, 16], strides = [1, 1, 1]} : vector<2x16x128xf32> to vector<2x16x16xf32>
    %847 = arith.truncf %846 : vector<2x16x16xf32> to vector<2x16x16xbf16>
    %848 = vector.extract_strided_slice %705 {offsets = [0, 0, 96], sizes = [2, 8, 16], strides = [1, 1, 1]} : vector<2x8x128xf32> to vector<2x8x16xf32>
    %849 = arith.truncf %848 : vector<2x8x16xf32> to vector<2x8x16xbf16>
    "tpu.trace_start"() <{level = 10 : i32, message = "bqd,bkd->bqk"}> : () -> ()
    %cst_284 = arith.constant dense<0.000000e+00> : vector<2x16x8xf32>
    %850 = tpu.matmul %847, %849, %cst_284 {dimension_numbers = #tpu.dot_dimension_numbers<[2], [2], [1], [1], [0, 0, 0, 1, 1, 1], [0], [0]>} : vector<2x16x16xbf16>, vector<2x8x16xbf16>, vector<2x16x8xf32> -> vector<2x16x8xf32>
    "tpu.trace_stop"() : () -> ()
    %cst_285 = arith.constant dense<0xFF800000> : vector<2x16xf32>
    %851 = vector.multi_reduction <maximumf>, %850, %cst_285 [2] : vector<2x16x8xf32> to vector<2x16xf32>
    %852 = vector.shape_cast %851 : vector<2x16xf32> to vector<2x16x1xf32>
    %853 = vector.broadcast %852 : vector<2x16x1xf32> to vector<2x16x8xf32>
    %854 = arith.subf %850, %853 : vector<2x16x8xf32>
    %855 = math.exp %854 : vector<2x16x8xf32>
    %cst_286 = arith.constant dense<0.000000e+00> : vector<2x16xf32>
    %856 = vector.multi_reduction <add>, %855, %cst_286 [2] : vector<2x16x8xf32> to vector<2x16xf32>
    %857 = vector.shape_cast %856 : vector<2x16xf32> to vector<2x16x1xf32>
    %858 = vector.broadcast %857 : vector<2x16x1xf32> to vector<2x16x8xf32>
    %859 = arith.divf %855, %858 : vector<2x16x8xf32>
    %860 = arith.truncf %859 : vector<2x16x8xf32> to vector<2x16x8xbf16>
    %861 = vector.extract_strided_slice %706 {offsets = [0, 0, 96], sizes = [2, 8, 16], strides = [1, 1, 1]} : vector<2x8x128xf32> to vector<2x8x16xf32>
    %862 = arith.truncf %861 : vector<2x8x16xf32> to vector<2x8x16xbf16>
    "tpu.trace_start"() <{level = 10 : i32, message = "bqk,bkd->bqd"}> : () -> ()
    %cst_287 = arith.constant dense<0.000000e+00> : vector<2x16x16xf32>
    %863 = tpu.matmul %860, %862, %cst_287 {dimension_numbers = #tpu.dot_dimension_numbers<[2], [1], [1], [2], [0, 0, 0, 1, 1, 2], [0], [0]>} : vector<2x16x8xbf16>, vector<2x8x16xbf16>, vector<2x16x16xf32> -> vector<2x16x16xf32>
    "tpu.trace_stop"() : () -> ()
    %864 = vector.shape_cast %863 : vector<2x16x16xf32> to vector<32x16xf32>
    %c96_288 = arith.constant 96 : index
    %c0_289 = arith.constant 0 : index
    %865 = vector.load %arg27[%c96_288, %c0_289] : memref<128x128xbf16, #tpu.memory_space<vmem>>, vector<16x128xbf16>
    %866 = arith.truncf %864 : vector<32x16xf32> to vector<32x16xbf16>
    %cst_290 = arith.constant dense<0.000000e+00> : vector<32x128xf32>
    %867 = tpu.matmul %866, %865, %cst_290 {dimension_numbers = #tpu.dot_dimension_numbers<[1], [0], [0], [1], [0, 0, 1, 1], [], []>} : vector<32x16xbf16>, vector<16x128xbf16>, vector<32x128xf32> -> vector<32x128xf32>
    %868 = arith.addf %845, %867 : vector<32x128xf32>
    %869 = vector.extract_strided_slice %513 {offsets = [0, 0, 112], sizes = [2, 16, 16], strides = [1, 1, 1]} : vector<2x16x128xf32> to vector<2x16x16xf32>
    %870 = arith.truncf %869 : vector<2x16x16xf32> to vector<2x16x16xbf16>
    %871 = vector.extract_strided_slice %705 {offsets = [0, 0, 112], sizes = [2, 8, 16], strides = [1, 1, 1]} : vector<2x8x128xf32> to vector<2x8x16xf32>
    %872 = arith.truncf %871 : vector<2x8x16xf32> to vector<2x8x16xbf16>
    "tpu.trace_start"() <{level = 10 : i32, message = "bqd,bkd->bqk"}> : () -> ()
    %cst_291 = arith.constant dense<0.000000e+00> : vector<2x16x8xf32>
    %873 = tpu.matmul %870, %872, %cst_291 {dimension_numbers = #tpu.dot_dimension_numbers<[2], [2], [1], [1], [0, 0, 0, 1, 1, 1], [0], [0]>} : vector<2x16x16xbf16>, vector<2x8x16xbf16>, vector<2x16x8xf32> -> vector<2x16x8xf32>
    "tpu.trace_stop"() : () -> ()
    %cst_292 = arith.constant dense<0xFF800000> : vector<2x16xf32>
    %874 = vector.multi_reduction <maximumf>, %873, %cst_292 [2] : vector<2x16x8xf32> to vector<2x16xf32>
    %875 = vector.shape_cast %874 : vector<2x16xf32> to vector<2x16x1xf32>
    %876 = vector.broadcast %875 : vector<2x16x1xf32> to vector<2x16x8xf32>
    %877 = arith.subf %873, %876 : vector<2x16x8xf32>
    %878 = math.exp %877 : vector<2x16x8xf32>
    %cst_293 = arith.constant dense<0.000000e+00> : vector<2x16xf32>
    %879 = vector.multi_reduction <add>, %878, %cst_293 [2] : vector<2x16x8xf32> to vector<2x16xf32>
    %880 = vector.shape_cast %879 : vector<2x16xf32> to vector<2x16x1xf32>
    %881 = vector.broadcast %880 : vector<2x16x1xf32> to vector<2x16x8xf32>
    %882 = arith.divf %878, %881 : vector<2x16x8xf32>
    %883 = arith.truncf %882 : vector<2x16x8xf32> to vector<2x16x8xbf16>
    %884 = vector.extract_strided_slice %706 {offsets = [0, 0, 112], sizes = [2, 8, 16], strides = [1, 1, 1]} : vector<2x8x128xf32> to vector<2x8x16xf32>
    %885 = arith.truncf %884 : vector<2x8x16xf32> to vector<2x8x16xbf16>
    "tpu.trace_start"() <{level = 10 : i32, message = "bqk,bkd->bqd"}> : () -> ()
    %cst_294 = arith.constant dense<0.000000e+00> : vector<2x16x16xf32>
    %886 = tpu.matmul %883, %885, %cst_294 {dimension_numbers = #tpu.dot_dimension_numbers<[2], [1], [1], [2], [0, 0, 0, 1, 1, 2], [0], [0]>} : vector<2x16x8xbf16>, vector<2x8x16xbf16>, vector<2x16x16xf32> -> vector<2x16x16xf32>
    "tpu.trace_stop"() : () -> ()
    %887 = vector.shape_cast %886 : vector<2x16x16xf32> to vector<32x16xf32>
    %c112_295 = arith.constant 112 : index
    %c0_296 = arith.constant 0 : index
    %888 = vector.load %arg27[%c112_295, %c0_296] : memref<128x128xbf16, #tpu.memory_space<vmem>>, vector<16x128xbf16>
    %889 = arith.truncf %887 : vector<32x16xf32> to vector<32x16xbf16>
    %cst_297 = arith.constant dense<0.000000e+00> : vector<32x128xf32>
    %890 = tpu.matmul %889, %888, %cst_297 {dimension_numbers = #tpu.dot_dimension_numbers<[1], [0], [0], [1], [0, 0, 1, 1], [], []>} : vector<32x16xbf16>, vector<16x128xbf16>, vector<32x128xf32> -> vector<32x128xf32>
    %891 = arith.addf %868, %890 : vector<32x128xf32>
    %c0_298 = arith.constant 0 : index
    %c0_299 = arith.constant 0 : index
    %892 = vector.load %arg28[%c0_298, %c0_299] : memref<1x128xf32, #tpu.memory_space<vmem>>, vector<1x128xf32>
    %893 = vector.broadcast %892 : vector<1x128xf32> to vector<16x128xf32>
    %894 = arith.addf %704, %893 : vector<16x128xf32>
    %895 = arith.addf %894, %246 : vector<16x128xf32>
    %c0_300 = arith.constant 0 : index
    %c0_301 = arith.constant 0 : index
    %896 = vector.load %arg28[%c0_300, %c0_301] : memref<1x128xf32, #tpu.memory_space<vmem>>, vector<1x128xf32>
    %897 = vector.broadcast %896 : vector<1x128xf32> to vector<32x128xf32>
    %898 = arith.addf %891, %897 : vector<32x128xf32>
    %899 = arith.addf %898, %493 : vector<32x128xf32>
    %900 = tpu.concatenate %246, %493 in 0 : vector<16x128xf32>, vector<32x128xf32> -> vector<48x128xf32>
    %901 = tpu.concatenate %895, %899 in 0 : vector<16x128xf32>, vector<32x128xf32> -> vector<48x128xf32>
    %c0_302 = arith.constant 0 : index
    %c0_303 = arith.constant 0 : index
    %902 = vector.load %arg29[%c0_302, %c0_303] : memref<128x256xbf16, #tpu.memory_space<vmem>>, vector<128x256xbf16>
    %903 = arith.truncf %900 : vector<48x128xf32> to vector<48x128xbf16>
    %cst_304 = arith.constant dense<0.000000e+00> : vector<48x256xf32>
    %904 = tpu.matmul %903, %902, %cst_304 {dimension_numbers = #tpu.dot_dimension_numbers<[1], [0], [0], [1], [0, 0, 1, 1], [], []>} : vector<48x128xbf16>, vector<128x256xbf16>, vector<48x256xf32> -> vector<48x256xf32>
    %c0_305 = arith.constant 0 : index
    %c0_306 = arith.constant 0 : index
    %905 = vector.load %arg30[%c0_305, %c0_306] : memref<128x256xbf16, #tpu.memory_space<vmem>>, vector<128x256xbf16>
    %906 = arith.truncf %901 : vector<48x128xf32> to vector<48x128xbf16>
    %cst_307 = arith.constant dense<0.000000e+00> : vector<48x256xf32>
    %907 = tpu.matmul %906, %905, %cst_307 {dimension_numbers = #tpu.dot_dimension_numbers<[1], [0], [0], [1], [0, 0, 1, 1], [], []>} : vector<48x128xbf16>, vector<128x256xbf16>, vector<48x256xf32> -> vector<48x256xf32>
    %908 = arith.addf %904, %907 : vector<48x256xf32>
    %c0_308 = arith.constant 0 : index
    %c0_309 = arith.constant 0 : index
    %909 = vector.load %arg31[%c0_308, %c0_309] : memref<1x256xf32, #tpu.memory_space<vmem>>, vector<1x256xf32>
    %910 = vector.broadcast %909 : vector<1x256xf32> to vector<48x256xf32>
    %911 = arith.addf %908, %910 : vector<48x256xf32>
    %cst_310 = arith.constant 5.000000e-01 : f32
    %912 = vector.broadcast %cst_310 : f32 to vector<48x256xf32>
    %913 = arith.mulf %912, %911 : vector<48x256xf32>
    %cst_311 = arith.constant 4.471500e-02 : f32
    %914 = vector.broadcast %cst_311 : f32 to vector<48x256xf32>
    %915 = arith.mulf %914, %911 : vector<48x256xf32>
    %916 = arith.mulf %915, %911 : vector<48x256xf32>
    %917 = arith.mulf %916, %911 : vector<48x256xf32>
    %918 = arith.addf %911, %917 : vector<48x256xf32>
    %cst_312 = arith.constant 0.797884583 : f32
    %919 = vector.broadcast %cst_312 : f32 to vector<48x256xf32>
    %920 = arith.mulf %919, %918 : vector<48x256xf32>
    %921 = math.tanh %920 : vector<48x256xf32>
    %cst_313 = arith.constant 1.000000e+00 : f32
    %922 = vector.broadcast %cst_313 : f32 to vector<48x256xf32>
    %923 = arith.addf %922, %921 : vector<48x256xf32>
    %924 = arith.mulf %913, %923 : vector<48x256xf32>
    %c0_314 = arith.constant 0 : index
    %c0_315 = arith.constant 0 : index
    %925 = vector.load %arg32[%c0_314, %c0_315] : memref<256x128xbf16, #tpu.memory_space<vmem>>, vector<256x128xbf16>
    %926 = arith.truncf %924 : vector<48x256xf32> to vector<48x256xbf16>
    %cst_316 = arith.constant dense<0.000000e+00> : vector<48x128xf32>
    %927 = tpu.matmul %926, %925, %cst_316 {dimension_numbers = #tpu.dot_dimension_numbers<[1], [0], [0], [1], [0, 0, 1, 1], [], []>} : vector<48x256xbf16>, vector<256x128xbf16>, vector<48x128xf32> -> vector<48x128xf32>
    %c0_317 = arith.constant 0 : index
    %c0_318 = arith.constant 0 : index
    %928 = vector.load %arg33[%c0_317, %c0_318] : memref<1x128xf32, #tpu.memory_space<vmem>>, vector<1x128xf32>
    %929 = vector.broadcast %928 : vector<1x128xf32> to vector<48x128xf32>
    %930 = arith.addf %927, %929 : vector<48x128xf32>
    %931 = vector.extract_strided_slice %930 {offsets = [0, 0], sizes = [16, 128], strides = [1, 1]} : vector<48x128xf32> to vector<16x128xf32>
    %932 = vector.shape_cast %931 : vector<16x128xf32> to vector<2x8x128xf32>
    %c0_319 = arith.constant 0 : index
    %c0_320 = arith.constant 0 : index
    %c0_321 = arith.constant 0 : index
    %933 = vector.load %arg34[%c0_319, %c0_320, %c0_321] : memref<2x8x128xf32, #tpu.memory_space<vmem>>, vector<2x8x128xf32>
    tpu.vector_store %arg34[%c0_319, %c0_320, %c0_321], %932 {strides = array<i32>} : memref<2x8x128xf32, #tpu.memory_space<vmem>>, vector<2x8x128xf32>,
    %934 = vector.extract_strided_slice %930 {offsets = [16, 0], sizes = [32, 128], strides = [1, 1]} : vector<48x128xf32> to vector<32x128xf32>
    %935 = vector.shape_cast %934 : vector<32x128xf32> to vector<2x16x128xf32>
    %c0_322 = arith.constant 0 : index
    %c0_323 = arith.constant 0 : index
    %c0_324 = arith.constant 0 : index
    %936 = vector.load %arg35[%c0_322, %c0_323, %c0_324] : memref<2x16x128xf32, #tpu.memory_space<vmem>>, vector<2x16x128xf32>
    tpu.vector_store %arg35[%c0_322, %c0_323, %c0_324], %935 {strides = array<i32>} : memref<2x16x128xf32, #tpu.memory_space<vmem>>, vector<2x16x128xf32>,
    return
  }
  func.func @transform_0(%arg0: i32) -> (i32, i32, i32) {
    %c0_i32 = arith.constant 0 : i32
    %c0_i32_0 = arith.constant 0 : i32
    %c0_i32_1 = arith.constant 0 : i32
    return %arg0, %c0_i32, %c0_i32_0 : i32, i32, i32
  }
  func.func @transform_1(%arg0: i32) -> (i32, i32, i32) {
    %c0_i32 = arith.constant 0 : i32
    %c0_i32_0 = arith.constant 0 : i32
    %c0_i32_1 = arith.constant 0 : i32
    return %arg0, %c0_i32, %c0_i32_0 : i32, i32, i32
  }
  func.func @transform_2(%arg0: i32) -> (i32, i32) {
    %c0_i32 = arith.constant 0 : i32
    %c0_i32_0 = arith.constant 0 : i32
    %c0_i32_1 = arith.constant 0 : i32
    return %c0_i32, %c0_i32_0 : i32, i32
  }
  func.func @transform_3(%arg0: i32) -> (i32, i32) {
    %c0_i32 = arith.constant 0 : i32
    %c0_i32_0 = arith.constant 0 : i32
    %c0_i32_1 = arith.constant 0 : i32
    return %c0_i32, %c0_i32_0 : i32, i32
  }
  func.func @transform_4(%arg0: i32) -> (i32, i32) {
    %c0_i32 = arith.constant 0 : i32
    %c0_i32_0 = arith.constant 0 : i32
    %c0_i32_1 = arith.constant 0 : i32
    return %c0_i32, %c0_i32_0 : i32, i32
  }
  func.func @transform_5(%arg0: i32) -> (i32, i32) {
    %c0_i32 = arith.constant 0 : i32
    %c0_i32_0 = arith.constant 0 : i32
    %c0_i32_1 = arith.constant 0 : i32
    return %c0_i32, %c0_i32_0 : i32, i32
  }
  func.func @transform_6(%arg0: i32) -> (i32, i32) {
    %c0_i32 = arith.constant 0 : i32
    %c0_i32_0 = arith.constant 0 : i32
    %c0_i32_1 = arith.constant 0 : i32
    return %c0_i32, %c0_i32_0 : i32, i32
  }
  func.func @transform_7(%arg0: i32) -> (i32, i32) {
    %c0_i32 = arith.constant 0 : i32
    %c0_i32_0 = arith.constant 0 : i32
    %c0_i32_1 = arith.constant 0 : i32
    return %c0_i32, %c0_i32_0 : i32, i32
  }
  func.func @transform_8(%arg0: i32) -> (i32, i32) {
    %c0_i32 = arith.constant 0 : i32
    %c0_i32_0 = arith.constant 0 : i32
    %c0_i32_1 = arith.constant 0 : i32
    return %c0_i32, %c0_i32_0 : i32, i32
  }
  func.func @transform_9(%arg0: i32) -> (i32, i32) {
    %c0_i32 = arith.constant 0 : i32
    %c0_i32_0 = arith.constant 0 : i32
    %c0_i32_1 = arith.constant 0 : i32
    return %c0_i32, %c0_i32_0 : i32, i32
  }
  func.func @transform_10(%arg0: i32) -> (i32, i32) {
    %c0_i32 = arith.constant 0 : i32
    %c0_i32_0 = arith.constant 0 : i32
    %c0_i32_1 = arith.constant 0 : i32
    return %c0_i32, %c0_i32_0 : i32, i32
  }
  func.func @transform_11(%arg0: i32) -> (i32, i32) {
    %c0_i32 = arith.constant 0 : i32
    %c0_i32_0 = arith.constant 0 : i32
    %c0_i32_1 = arith.constant 0 : i32
    return %c0_i32, %c0_i32_0 : i32, i32
  }
  func.func @transform_12(%arg0: i32) -> (i32, i32) {
    %c0_i32 = arith.constant 0 : i32
    %c0_i32_0 = arith.constant 0 : i32
    %c0_i32_1 = arith.constant 0 : i32
    return %c0_i32, %c0_i32_0 : i32, i32
  }
  func.func @transform_13(%arg0: i32) -> (i32, i32) {
    %c0_i32 = arith.constant 0 : i32
    %c0_i32_0 = arith.constant 0 : i32
    %c0_i32_1 = arith.constant 0 : i32
    return %c0_i32, %c0_i32_0 : i32, i32
  }
  func.func @transform_14(%arg0: i32) -> (i32, i32) {
    %c0_i32 = arith.constant 0 : i32
    %c0_i32_0 = arith.constant 0 : i32
    %c0_i32_1 = arith.constant 0 : i32
    return %c0_i32, %c0_i32_0 : i32, i32
  }
  func.func @transform_15(%arg0: i32) -> (i32, i32) {
    %c0_i32 = arith.constant 0 : i32
    %c0_i32_0 = arith.constant 0 : i32
    %c0_i32_1 = arith.constant 0 : i32
    return %c0_i32, %c0_i32_0 : i32, i32
  }
  func.func @transform_16(%arg0: i32) -> (i32, i32) {
    %c0_i32 = arith.constant 0 : i32
    %c0_i32_0 = arith.constant 0 : i32
    %c0_i32_1 = arith.constant 0 : i32
    return %c0_i32, %c0_i32_0 : i32, i32
  }
  func.func @transform_17(%arg0: i32) -> (i32, i32) {
    %c0_i32 = arith.constant 0 : i32
    %c0_i32_0 = arith.constant 0 : i32
    %c0_i32_1 = arith.constant 0 : i32
    return %c0_i32, %c0_i32_0 : i32, i32
  }
  func.func @transform_18(%arg0: i32) -> (i32, i32) {
    %c0_i32 = arith.constant 0 : i32
    %c0_i32_0 = arith.constant 0 : i32
    %c0_i32_1 = arith.constant 0 : i32
    return %c0_i32, %c0_i32_0 : i32, i32
  }
  func.func @transform_19(%arg0: i32) -> (i32, i32) {
    %c0_i32 = arith.constant 0 : i32
    %c0_i32_0 = arith.constant 0 : i32
    %c0_i32_1 = arith.constant 0 : i32
    return %c0_i32, %c0_i32_0 : i32, i32
  }
  func.func @transform_20(%arg0: i32) -> (i32, i32) {
    %c0_i32 = arith.constant 0 : i32
    %c0_i32_0 = arith.constant 0 : i32
    %c0_i32_1 = arith.constant 0 : i32
    return %c0_i32, %c0_i32_0 : i32, i32
  }
  func.func @transform_21(%arg0: i32) -> (i32, i32) {
    %c0_i32 = arith.constant 0 : i32
    %c0_i32_0 = arith.constant 0 : i32
    %c0_i32_1 = arith.constant 0 : i32
    return %c0_i32, %c0_i32_0 : i32, i32
  }
  func.func @transform_22(%arg0: i32) -> (i32, i32) {
    %c0_i32 = arith.constant 0 : i32
    %c0_i32_0 = arith.constant 0 : i32
    %c0_i32_1 = arith.constant 0 : i32
    return %c0_i32, %c0_i32_0 : i32, i32
  }
  func.func @transform_23(%arg0: i32) -> (i32, i32) {
    %c0_i32 = arith.constant 0 : i32
    %c0_i32_0 = arith.constant 0 : i32
    %c0_i32_1 = arith.constant 0 : i32
    return %c0_i32, %c0_i32_0 : i32, i32
  }
  func.func @transform_24(%arg0: i32) -> (i32, i32) {
    %c0_i32 = arith.constant 0 : i32
    %c0_i32_0 = arith.constant 0 : i32
    %c0_i32_1 = arith.constant 0 : i32
    return %c0_i32, %c0_i32_0 : i32, i32
  }
  func.func @transform_25(%arg0: i32) -> (i32, i32) {
    %c0_i32 = arith.constant 0 : i32
    %c0_i32_0 = arith.constant 0 : i32
    %c0_i32_1 = arith.constant 0 : i32
    return %c0_i32, %c0_i32_0 : i32, i32
  }
  func.func @transform_26(%arg0: i32) -> (i32, i32) {
    %c0_i32 = arith.constant 0 : i32
    %c0_i32_0 = arith.constant 0 : i32
    %c0_i32_1 = arith.constant 0 : i32
    return %c0_i32, %c0_i32_0 : i32, i32
  }
  func.func @transform_27(%arg0: i32) -> (i32, i32) {
    %c0_i32 = arith.constant 0 : i32
    %c0_i32_0 = arith.constant 0 : i32
    %c0_i32_1 = arith.constant 0 : i32
    return %c0_i32, %c0_i32_0 : i32, i32
  }
  func.func @transform_28(%arg0: i32) -> (i32, i32) {
    %c0_i32 = arith.constant 0 : i32
    %c0_i32_0 = arith.constant 0 : i32
    %c0_i32_1 = arith.constant 0 : i32
    return %c0_i32, %c0_i32_0 : i32, i32
  }
  func.func @transform_29(%arg0: i32) -> (i32, i32) {
    %c0_i32 = arith.constant 0 : i32
    %c0_i32_0 = arith.constant 0 : i32
    %c0_i32_1 = arith.constant 0 : i32
    return %c0_i32, %c0_i32_0 : i32, i32
  }
  func.func @transform_30(%arg0: i32) -> (i32, i32) {
    %c0_i32 = arith.constant 0 : i32
    %c0_i32_0 = arith.constant 0 : i32
    %c0_i32_1 = arith.constant 0 : i32
    return %c0_i32, %c0_i32_0 : i32, i32
  }
  func.func @transform_31(%arg0: i32) -> (i32, i32) {
    %c0_i32 = arith.constant 0 : i32
    %c0_i32_0 = arith.constant 0 : i32
    %c0_i32_1 = arith.constant 0 : i32
    return %c0_i32, %c0_i32_0 : i32, i32
  }
  func.func @transform_32(%arg0: i32) -> (i32, i32) {
    %c0_i32 = arith.constant 0 : i32
    %c0_i32_0 = arith.constant 0 : i32
    %c0_i32_1 = arith.constant 0 : i32
    return %c0_i32, %c0_i32_0 : i32, i32
  }
  func.func @transform_33(%arg0: i32) -> (i32, i32, i32) {
    %c0_i32 = arith.constant 0 : i32
    %c0_i32_0 = arith.constant 0 : i32
    %c0_i32_1 = arith.constant 0 : i32
    return %arg0, %c0_i32, %c0_i32_0 : i32, i32, i32
  }
  func.func @transform_34(%arg0: i32) -> (i32, i32, i32) {
    %c0_i32 = arith.constant 0 : i32
    %c0_i32_0 = arith.constant 0 : i32
    %c0_i32_1 = arith.constant 0 : i32
    return %arg0, %c0_i32, %c0_i32_0 : i32, i32, i32
  }
}

</mosaic_0001>

<bundles_post_ra>
// kernel: bidirectional_emergence_core.1
= control target key start
LH: loop header
LB: loop body
LE: loop exit
PB: predicated region body
PF: predicated region fallthrough
CT: control target
= control target key end

     0   :  { %s17421_s6 = smov 1   ;;  %s17422_s10 = smov 2   ;;  %s19777_s0 = inlined_call_operand.smem [shape: u32[35], index: -1, kind: input, shape index: {}] }
   0x1   :  { %s17501_s5 = sld [smem:[%s19777_s0]]   ;;  %s17423_s14 = smov 3  }
   0x2   :  { %s17506_s9 = sld [smem:[%s19777_s0 + %s17421_s6]]   ;;  %s17424_s18 = smov 4  }
   0x3   :  { %s17511_s13 = sld [smem:[%s19777_s0 + %s17422_s10]]   ;;  %s17425_s22 = smov 5  }
   0x4   :  { %s17516_s17 = sld [smem:[%s19777_s0 + %s17423_s14]]   ;;  %s17426_s26 = smov 6  }
   0x5   :  { %s17521_s21 = sld [smem:[%s19777_s0 + %s17424_s18]]   ;;  %s17427_s30 = smov 7  }
   0x6   :  { %s17526_s25 = sld [smem:[%s19777_s0 + %s17425_s22]]   ;;  %s17428_s4 = smov 8  }
   0x7   :  { %s17531_s29 = sld [smem:[%s19777_s0 + %s17426_s26]]   ;;  %s17429_s10 = smov 9  }
   0x8   :  { %s17536_s3 = sld [smem:[%s19777_s0 + %s17427_s30]]   ;;  %s17430_s15 = smov 10  }
   0x9   :  { %s17541_s8 = sld [smem:[%s19777_s0 + %s17428_s4]]   ;;  %s17431_s20 = smov 11  }
   0xa   :  { %19784 = sst [smem:[#allocation50_spill]] %s17516_s17  ;;  %s17432_s26 = smov 12  }
   0xb   :  { %19785 = sst [smem:[#allocation51_spill]] %s17521_s21  ;;  %s17433_s1 = smov 13  }
   0xc   :  { %19786 = sst [smem:[#allocation52_spill]] %s17526_s25  ;;  %s17434_s7 = smov 14  }
   0xd   :  { %s17546_s14 = sld [smem:[%s19777_s0 + %s17429_s10]]   ;;  %s17436_s22 = smov 16  }
   0xe   :  { %19787 = sst [smem:[#allocation53_spill]] %s17536_s3  ;;  %s17437_s28 = smov 17  }
   0xf   :  { %s17551_s19 = sld [smem:[%s19777_s0 + %s17430_s15]]   ;;  %s17435_s15 = smov 15  }
  0x10   :  { %s17556_s24 = sld [smem:[%s19777_s0 + %s17431_s20]]  }
  0x11   :  { %s17561_s30 = sld [smem:[%s19777_s0 + %s17432_s26]]  }
  0x12   :  { %s17566_s6 = sld [smem:[%s19777_s0 + %s17433_s1]]  }
  0x13   :  { %19788 = sst [smem:[#allocation54_spill]] %s17546_s14 }
  0x14   :  { %s17571_s12 = sld [smem:[%s19777_s0 + %s17434_s7]]   ;;  %s17438_s7 = smov 18  }
  0x15   :  { %s17576_s20 = sld [smem:[%s19777_s0 + %s17435_s15]]   ;;  %s17439_s15 = smov 19  }
  0x16   :  { %19789 = sst [smem:[#allocation55_spill]] %s17556_s24 }
  0x17   :  { %s17581_s27 = sld [smem:[%s19777_s0 + %s17436_s22]]   ;;  %s17440_s22 = smov 20  }
  0x18   :  { %19790 = sst [smem:[#allocation56_spill]] %s17566_s6 }
  0x19   :  { %s17586_s4 = sld [smem:[%s19777_s0 + %s17437_s28]]   ;;  %s17441_s28 = smov 21  }
  0x1a   :  { %s17591_s24 = sld [smem:[%s19777_s0 + %s17438_s7]]   ;;  %s17442_s7 = smov 22  }
  0x1b   :  { %19791 = sst [smem:[#allocation57_spill]] %s17576_s20 }
  0x1c   :  { %s17596_s20 = sld [smem:[%s19777_s0 + %s17439_s15]]   ;;  %s17443_s15 = smov 23  }
  0x1d   :  { %s17601_s6 = sld [smem:[%s19777_s0 + %s17440_s22]]   ;;  %s17444_s22 = smov 24  }
  0x1e   :  { %s17611_s14 = sld [smem:[%s19777_s0 + %s17442_s7]]   ;;  %s17446_s7 = smov 26  }
  0x1f   :  { %19792 = sst [smem:[#allocation58_spill]] %s17586_s4 }
  0x20   :  { %s17606_s4 = sld [smem:[%s19777_s0 + %s17441_s28]]   ;;  %s17445_s28 = smov 25  }
  0x21   :  { %s17621_s3 = sld [smem:[%s19777_s0 + %s17444_s22]]   ;;  %s17448_s22 = smov 28  }
  0x22   :  { %19793 = sst [smem:[#allocation59_spill]] %s17596_s20 }
  0x23   :  { %19794 = sst [smem:[#allocation60_spill]] %s17601_s6 }
  0x24   :  { %s17616_s20 = sld [smem:[%s19777_s0 + %s17443_s15]]   ;;  %s17447_s15 = smov 27  }
  0x25   :  { %s17631_s25 = sld [smem:[%s19777_s0 + %s17446_s7]]   ;;  %s17450_s7 = smov 30  }
  0x26   :  { %19795 = sst [smem:[#allocation61_spill]] %s17606_s4 }
  0x27   :  { %s17626_s4 = sld [smem:[%s19777_s0 + %s17445_s28]]   ;;  %s17449_s28 = smov 29  }
  0x28   :  { %s17636_s21 = sld [smem:[%s19777_s0 + %s17447_s15]]   ;;  %s17451_s15 = smov 31  }
  0x29   :  { %s17641_s17 = sld [smem:[%s19777_s0 + %s17448_s22]]   ;;  %s17452_s22 = smov 32  }
  0x2a   :  { %19796 = sst [smem:[#allocation62_spill]] %s17616_s20 }
  0x2b   :  { %s17651_s20 = sld [smem:[%s19777_s0 + %s17450_s7]]   ;;  %s17454_s7 = smov 34  }
  0x2c   :  { %s17661_s6 = sld [smem:[%s19777_s0 + %s17452_s22]]  }
  0x2d   :  { %19797 = sst [smem:[#allocation63_spill]] %s17626_s4 }
  0x2e   :  { %19798 = sst [smem:[#allocation64_spill]] %s17636_s21 }
  0x2f   :  { %s17646_s4 = sld [smem:[%s19777_s0 + %s17449_s28]]   ;;  %s17453_s28 = smov 33  }
  0x30   :  { %s17656_s21 = sld [smem:[%s19777_s0 + %s17451_s15]]  }
  0x31   :  { %19800 = sst [smem:[#allocation66_spill]] %s17651_s20 }
  0x32   :  { %s17671_s20 = sld [smem:[%s19777_s0 + %s17454_s7]]  }
  0x35   :  { %19799 = sst [smem:[#allocation65_spill]] %s17646_s4 }
  0x36   :  { %s17666_s4 = sld [smem:[%s19777_s0 + %s17453_s28]]  }
  0x37   :  { %75 = vsyncpa [#allocation3], 0 }
  0x38   :  { %76 = vsyncpa [#allocation6], 0 }
  0x39   :  { %77 = vsyncpa [#allocation9], 0 }
  0x3a   :  { %78 = vsyncpa [#allocation12], 0 }
  0x3b   :  { %79 = vsyncpa [#allocation15], 0 }
  0x3c   :  { %80 = vsyncpa [#allocation18], 0 }
  0x3d   :  { %81 = vsyncpa [#allocation21], 0 }
  0x3e   :  { %82 = vsyncpa [#allocation24], 0 }
  0x3f   :  { %83 = vsyncpa [#allocation27], 0 }
  0x40   :  { %84 = vsyncpa [#allocation30], 0 }
  0x41   :  { %85 = vsyncpa [#allocation33], 0 }
  0x42   :  { %86 = vsyncpa [#allocation4], 0 }
  0x43   :  { %87 = vsyncpa [#allocation36], 0  ;;  %s17455_s15 = smov [#allocation5]   ;;  %s17456_s0 = smov [#allocation8]  }
  0x44   :  { %s105_s16 = sshll.u32 %s17455_s15, 4  ;;  %s135_s18 = sshll.u32 %s17456_s0, 4  ;;  %s106_s16 = int_to_ptr.vmem [resolvable:$true] %s105_s16  ;;  %s17673_s18 = int_to_ptr.vmem [resolvable:$true] %s135_s18 }
  0x45   :  { %s16911_s22 = scalar_lea.hbm %s17506_s9, 512 }
  0x46   :  { %p16912_p0 = scmp.ne.s32.totalorder %s17506_s9, %s16911_s22  ;;  %p16915_p1 = scmp.lt.u32.totalorder %s16911_s22, %s17506_s9 }
  0x48   :  { %p16917_p2 = pnand %p16915_p1, %p16912_p0 }
  0x4a   :  { %16920 = shalt.err (!%p16917_p2)
}
  0x4b   :  { %s16921_s23 = scalar_lea.vmem %s106_s16, 512  ;;  %p16926_p4 = scmp.lt.s32.totalorder %s106_s16, %s106_s16 }
  0x4c   :  { %p16922_p3 = scmp.ne.s32.totalorder %s106_s16, %s16921_s23  ;;  %p16927_p5 = scmp.lt.s32.totalorder %s16921_s23, %s16921_s23 }
  0x4e   :  { %p16928_p6 = por %p16927_p5, %p16926_p4 }
  0x50   :  { %p16929_p7 = pnand %p16928_p6, %p16922_p3 }
  0x52   :  { %16932 = shalt.err (!%p16929_p7)
}
  0x53   :  { %s17457_s26 = smov 128   ;;  %s17458_s28 = smov 8  }
  0x54   :  { %111 = dma.hbm_to_vmem [thread:$0]  %s17506_s9, 512, %s106_s16, [#allocation6], %s17457_s26, %s17457_s26, %s17458_s28  }
  0x55   :  { %s16933_s1 = scalar_lea.hbm %s17531_s29, 4096 }
  0x56   :  { %p16934_p8 = scmp.ne.s32.totalorder %s17531_s29, %s16933_s1  ;;  %p16937_p9 = scmp.lt.u32.totalorder %s16933_s1, %s17531_s29 }
  0x58   :  { %p16939_p10 = pnand %p16937_p9, %p16934_p8 }
  0x5a   :  { %16942 = shalt.err (!%p16939_p10)
}
  0x5b   :  { %s16943_s2 = scalar_lea.vmem %s17673_s18, 4096  ;;  %p16948_p12 = scmp.lt.s32.totalorder %s17673_s18, %s17673_s18 }
  0x5c   :  { %p16944_p11 = scmp.ne.s32.totalorder %s17673_s18, %s16943_s2  ;;  %p16949_p13 = scmp.lt.s32.totalorder %s16943_s2, %s16943_s2 }
  0x5e   :  { %p16950_p0 = por %p16949_p13, %p16948_p12 }
  0x60   :  { %p16951_p1 = pnand %p16950_p0, %p16944_p11 }
  0x62   :  { %16954 = shalt.err (!%p16951_p1)
}
  0x63   :  { %s17459_s7 = smov 256   ;;  %s17460_s9 = smov 16  }
  0x64   :  { %141 = dma.hbm_to_vmem [thread:$0]  %s17531_s29, 4096, %s17673_s18, [#allocation9], %s17459_s7, %s17459_s7, %s17460_s9  }
  0x65   :  { %s17461_s10 = smov [#allocation11]   ;;  %s16955_s15 = scalar_lea.hbm %s17551_s19, 2048 }
  0x66   :  { %s163_s11 = sshll.u32 %s17461_s10, 4  ;;  %p16956_p2 = scmp.ne.s32.totalorder %s17551_s19, %s16955_s15  ;;  %s164_s11 = int_to_ptr.vmem [resolvable:$true] %s163_s11 }
  0x67   :  { %p16959_p3 = scmp.lt.u32.totalorder %s16955_s15, %s17551_s19 }
  0x69   :  { %p16961_p4 = pnand %p16959_p3, %p16956_p2 }
  0x6b   :  { %16964 = shalt.err (!%p16961_p4)
}
  0x6c   :  { %s16965_s16 = scalar_lea.vmem %s164_s11, 2048  ;;  %p16970_p6 = scmp.lt.s32.totalorder %s164_s11, %s164_s11 }
  0x6d   :  { %p16966_p5 = scmp.ne.s32.totalorder %s164_s11, %s16965_s16  ;;  %p16971_p7 = scmp.lt.s32.totalorder %s16965_s16, %s16965_s16 }
  0x6f   :  { %p16972_p8 = por %p16971_p7, %p16970_p6 }
  0x71   :  { %p16973_p9 = pnand %p16972_p8, %p16966_p5 }
  0x73   :  { %16976 = shalt.err (!%p16973_p9)
}
  0x74   :  { %s17462_s0 = smov 64   ;;  %s17463_s29 = smov 4  }
  0x75   :  { %169 = dma.hbm_to_vmem [thread:$0]  %s17551_s19, 2048, %s164_s11, [#allocation12], %s17462_s0, %s17462_s0, %s17463_s29  }
  0x76   :  { %s17464_s18 = smov [#allocation14]   ;;  %s17465_s23 = smov [#allocation17]  }
  0x77   :  { %s191_s22 = sshll.u32 %s17464_s18, 4  ;;  %s219_s1 = sshll.u32 %s17465_s23, 4  ;;  %s192_s22 = int_to_ptr.vmem [resolvable:$true] %s191_s22  ;;  %s220_s1 = int_to_ptr.vmem [resolvable:$true] %s219_s1 }
  0x78   :  { %s16977_s2 = scalar_lea.hbm %s17571_s12, 1024 }
  0x79   :  { %p16978_p10 = scmp.ne.s32.totalorder %s17571_s12, %s16977_s2  ;;  %p16981_p11 = scmp.lt.u32.totalorder %s16977_s2, %s17571_s12 }
  0x7b   :  { %p16983_p12 = pnand %p16981_p11, %p16978_p10 }
  0x7d   :  { %16986 = shalt.err (!%p16983_p12)
}
  0x7e   :  { %s16987_s10 = scalar_lea.vmem %s192_s22, 1024  ;;  %p16992_p0 = scmp.lt.s32.totalorder %s192_s22, %s192_s22 }
  0x7f   :  { %p16988_p13 = scmp.ne.s32.totalorder %s192_s22, %s16987_s10  ;;  %p16993_p1 = scmp.lt.s32.totalorder %s16987_s10, %s16987_s10 }
  0x81   :  { %p16994_p2 = por %p16993_p1, %p16992_p0 }
  0x83   :  { %p16995_p3 = pnand %p16994_p2, %p16988_p13 }
  0x85   :  { %16998 = shalt.err (!%p16995_p3)
}
  0x86   :  { %197 = dma.hbm_to_vmem [thread:$0]  %s17571_s12, 1024, %s192_s22, [#allocation15], %s17462_s0, %s17462_s0, %s17463_s29  }
  0x87   :  { %s16999_s19 = scalar_lea.hbm %s17591_s24, 8192 }
  0x88   :  { %p17000_p4 = scmp.ne.s32.totalorder %s17591_s24, %s16999_s19  ;;  %p17003_p5 = scmp.lt.u32.totalorder %s16999_s19, %s17591_s24 }
  0x8a   :  { %p17005_p6 = pnand %p17003_p5, %p17000_p4 }
  0x8c   :  { %17008 = shalt.err (!%p17005_p6)
}
  0x8d   :  { %s17009_s11 = scalar_lea.vmem %s220_s1, 8192  ;;  %p17014_p8 = scmp.lt.s32.totalorder %s220_s1, %s220_s1 }
  0x8e   :  { %p17010_p7 = scmp.ne.s32.totalorder %s220_s1, %s17009_s11  ;;  %p17015_p9 = scmp.lt.s32.totalorder %s17009_s11, %s17009_s11 }
  0x90   :  { %p17016_p10 = por %p17015_p9, %p17014_p8 }
  0x92   :  { %p17017_p11 = pnand %p17016_p10, %p17010_p7 }
  0x94   :  { %17020 = shalt.err (!%p17017_p11)
}
  0x95   :  { %225 = dma.hbm_to_vmem [thread:$0]  %s17591_s24, 8192, %s220_s1, [#allocation18], %s17457_s26, %s17457_s26, %s17458_s28  }
  0x96   :  { %s17466_s12 = smov [#allocation20]   ;;  %s17467_s16 = smov [#allocation23]  }
  0x97   :  { %s247_s15 = sshll.u32 %s17466_s12, 4  ;;  %s269_s18 = sshll.u32 %s17467_s16, 4  ;;  %s248_s15 = int_to_ptr.vmem [resolvable:$true] %s247_s15  ;;  %s270_s18 = int_to_ptr.vmem [resolvable:$true] %s269_s18 }
  0x98   :  { %s17021_s22 = scalar_lea.hbm %s17611_s14, 1024 }
  0x99   :  { %p17022_p12 = scmp.ne.s32.totalorder %s17611_s14, %s17021_s22  ;;  %p17025_p13 = scmp.lt.u32.totalorder %s17021_s22, %s17611_s14 }
  0x9b   :  { %p17027_p0 = pnand %p17025_p13, %p17022_p12 }
  0x9d   :  { %17030 = shalt.err (!%p17027_p0)
}
  0x9e   :  { %s17031_s23 = scalar_lea.vmem %s248_s15, 1024  ;;  %p17036_p2 = scmp.lt.s32.totalorder %s248_s15, %s248_s15 }
  0x9f   :  { %p17032_p1 = scmp.ne.s32.totalorder %s248_s15, %s17031_s23  ;;  %p17037_p3 = scmp.lt.s32.totalorder %s17031_s23, %s17031_s23 }
  0xa1   :  { %p17038_p4 = por %p17037_p3, %p17036_p2 }
  0xa3   :  { %p17039_p5 = pnand %p17038_p4, %p17032_p1 }
  0xa5   :  { %17042 = shalt.err (!%p17039_p5)
}
  0xa6   :  { %253 = dma.hbm_to_vmem [thread:$0]  %s17611_s14, 1024, %s248_s15, [#allocation21], %s17462_s0, %s17462_s0, %s17463_s29  }
  0xa7   :  { %s17043_s24 = scalar_lea.hbm %s17621_s3, 2048 }
  0xa8   :  { %p17044_p6 = scmp.ne.s32.totalorder %s17621_s3, %s17043_s24  ;;  %p17047_p7 = scmp.lt.u32.totalorder %s17043_s24, %s17621_s3 }
  0xaa   :  { %p17049_p8 = pnand %p17047_p7, %p17044_p6 }
  0xac   :  { %17052 = shalt.err (!%p17049_p8)
}
  0xad   :  { %s17053_s1 = scalar_lea.vmem %s270_s18, 2048  ;;  %p17058_p10 = scmp.lt.s32.totalorder %s270_s18, %s270_s18 }
  0xae   :  { %p17054_p9 = scmp.ne.s32.totalorder %s270_s18, %s17053_s1  ;;  %p17059_p11 = scmp.lt.s32.totalorder %s17053_s1, %s17053_s1 }
  0xb0   :  { %p17060_p12 = por %p17059_p11, %p17058_p10 }
  0xb2   :  { %p17061_p13 = pnand %p17060_p12, %p17054_p9 }
  0xb4   :  { %17064 = shalt.err (!%p17061_p13)
}
  0xb5   :  { %275 = dma.hbm_to_vmem [thread:$0]  %s17621_s3, 2048, %s270_s18, [#allocation24], %s17457_s26, %s17457_s26, %s17458_s28  }
  0xb6   :  { %s17468_s14 = smov [#allocation26]   ;;  %s17469_s10 = smov [#allocation29]  }
  0xb7   :  { %s291_s2 = sshll.u32 %s17468_s14, 4  ;;  %s313_s19 = sshll.u32 %s17469_s10, 4  ;;  %s292_s2 = int_to_ptr.vmem [resolvable:$true] %s291_s2  ;;  %s314_s19 = int_to_ptr.vmem [resolvable:$true] %s313_s19 }
  0xb8   :  { %s17065_s11 = scalar_lea.hbm %s17631_s25, 1024 }
  0xb9   :  { %p17066_p0 = scmp.ne.s32.totalorder %s17631_s25, %s17065_s11  ;;  %p17069_p1 = scmp.lt.u32.totalorder %s17065_s11, %s17631_s25 }
  0xbb   :  { %p17071_p2 = pnand %p17069_p1, %p17066_p0 }
  0xbd   :  { %17074 = shalt.err (!%p17071_p2)
}
  0xbe   :  { %s17075_s12 = scalar_lea.vmem %s292_s2, 1024  ;;  %p17080_p4 = scmp.lt.s32.totalorder %s292_s2, %s292_s2 }
  0xbf   :  { %p17076_p3 = scmp.ne.s32.totalorder %s292_s2, %s17075_s12  ;;  %p17081_p5 = scmp.lt.s32.totalorder %s17075_s12, %s17075_s12 }
  0xc1   :  { %p17082_p6 = por %p17081_p5, %p17080_p4 }
  0xc3   :  { %p17083_p7 = pnand %p17082_p6, %p17076_p3 }
  0xc5   :  { %17086 = shalt.err (!%p17083_p7)
}
  0xc6   :  { %297 = dma.hbm_to_vmem [thread:$0]  %s17631_s25, 1024, %s292_s2, [#allocation27], %s17462_s0, %s17462_s0, %s17463_s29  }
  0xc7   :  { %s17087_s3 = scalar_lea.hbm %s17641_s17, 2048 }
  0xc8   :  { %p17088_p8 = scmp.ne.s32.totalorder %s17641_s17, %s17087_s3  ;;  %p17091_p9 = scmp.lt.u32.totalorder %s17087_s3, %s17641_s17 }
  0xca   :  { %p17093_p10 = pnand %p17091_p9, %p17088_p8 }
  0xcc   :  { %17096 = shalt.err (!%p17093_p10)
}
  0xcd   :  { %s17097_s15 = scalar_lea.vmem %s314_s19, 2048  ;;  %p17102_p12 = scmp.lt.s32.totalorder %s314_s19, %s314_s19 }
  0xce   :  { %p17098_p11 = scmp.ne.s32.totalorder %s314_s19, %s17097_s15  ;;  %p17103_p13 = scmp.lt.s32.totalorder %s17097_s15, %s17097_s15 }
  0xd0   :  { %p17104_p0 = por %p17103_p13, %p17102_p12 }
  0xd2   :  { %p17105_p1 = pnand %p17104_p0, %p17098_p11 }
  0xd4   :  { %17108 = shalt.err (!%p17105_p1)
}
  0xd5   :  { %319 = dma.hbm_to_vmem [thread:$0]  %s17641_s17, 2048, %s314_s19, [#allocation30], %s17457_s26, %s17457_s26, %s17458_s28  }
  0xd6   :  { %s17470_s25 = smov [#allocation2]   ;;  %s17471_s18 = smov [#allocation7]  }
  0xd7   :  { %s93_s16 = sshll.u32 %s17470_s25, 4  ;;  %s117_s22 = sshll.u32 %s17471_s18, 4  ;;  %s94_s16 = int_to_ptr.vmem [resolvable:$true] %s93_s16  ;;  %s118_s22 = int_to_ptr.vmem [resolvable:$true] %s117_s22 }
  0xd8   :  { %s17109_s23 = scalar_lea.hbm %s17501_s5, 256 }
  0xd9   :  { %p17110_p2 = scmp.ne.s32.totalorder %s17501_s5, %s17109_s23  ;;  %p17113_p3 = scmp.lt.u32.totalorder %s17109_s23, %s17501_s5 }
  0xdb   :  { %p17115_p4 = pnand %p17113_p3, %p17110_p2 }
  0xdd   :  { %17118 = shalt.err (!%p17115_p4)
}
  0xde   :  { %s17119_s24 = scalar_lea.vmem %s94_s16, 256  ;;  %p17124_p6 = scmp.lt.s32.totalorder %s94_s16, %s94_s16 }
  0xdf   :  { %p17120_p5 = scmp.ne.s32.totalorder %s94_s16, %s17119_s24  ;;  %p17125_p7 = scmp.lt.s32.totalorder %s17119_s24, %s17119_s24 }
  0xe1   :  { %p17126_p8 = por %p17125_p7, %p17124_p6 }
  0xe3   :  { %p17127_p9 = pnand %p17126_p8, %p17120_p5 }
  0xe5   :  { %17130 = shalt.err (!%p17127_p9)
}
  0xe6   :  { %99 = dma.hbm_to_vmem [thread:$0]  %s17501_s5, 256, %s94_s16, [#allocation3], %s17457_s26, %s17457_s26, %s17458_s28  }
  0xe7   :  { %s17131_s17 = scalar_lea.hbm %s17511_s13, 3072 }
  0xe8   :  { %p17132_p10 = scmp.ne.s32.totalorder %s17511_s13, %s17131_s17  ;;  %p17135_p11 = scmp.lt.u32.totalorder %s17131_s17, %s17511_s13 }
  0xea   :  { %p17137_p12 = pnand %p17135_p11, %p17132_p10 }
  0xec   :  { %17140 = shalt.err (!%p17137_p12)
}
  0xed   :  { %s17141_s1 = scalar_lea.vmem %s118_s22, 3072  ;;  %p17146_p0 = scmp.lt.s32.totalorder %s118_s22, %s118_s22 }
  0xee   :  { %p17142_p13 = scmp.ne.s32.totalorder %s118_s22, %s17141_s1  ;;  %p17147_p1 = scmp.lt.s32.totalorder %s17141_s1, %s17141_s1 }
  0xf0   :  { %p17148_p2 = por %p17147_p1, %p17146_p0 }
  0xf2   :  { %p17149_p3 = pnand %p17148_p2, %p17142_p13 }
  0xf4   :  { %17152 = shalt.err (!%p17149_p3)
}
  0xf5   :  { %s17472_s14 = smov 192   ;;  %s17473_s2 = smov 12  }
  0xf6   :  { %123 = dma.hbm_to_vmem [thread:$0]  %s17511_s13, 3072, %s118_s22, [#allocation6], %s17472_s14, %s17472_s14, %s17473_s2  }
  0xf7   :  { %s17474_s5 = smov [#allocation10]   ;;  %s17475_s19 = smov [#allocation13]  }
  0xf8   :  { %s149_s10 = sshll.u32 %s17474_s5, 4  ;;  %s177_s11 = sshll.u32 %s17475_s19, 4  ;;  %s150_s10 = int_to_ptr.vmem [resolvable:$true] %s149_s10  ;;  %s178_s11 = int_to_ptr.vmem [resolvable:$true] %s177_s11 }
  0xf9   :  { %s17153_s12 = scalar_lea.hbm %s17541_s8, 8192 }
  0xfa   :  { %p17154_p4 = scmp.ne.s32.totalorder %s17541_s8, %s17153_s12  ;;  %p17157_p5 = scmp.lt.u32.totalorder %s17153_s12, %s17541_s8 }
  0xfc   :  { %p17159_p6 = pnand %p17157_p5, %p17154_p4 }
  0xfe   :  { %17162 = shalt.err (!%p17159_p6)
}
  0xff   :  { %s17163_s3 = scalar_lea.vmem %s150_s10, 8192  ;;  %p17168_p8 = scmp.lt.s32.totalorder %s150_s10, %s150_s10 }
 0x100   :  { %p17164_p7 = scmp.ne.s32.totalorder %s150_s10, %s17163_s3  ;;  %p17169_p9 = scmp.lt.s32.totalorder %s17163_s3, %s17163_s3 }
 0x102   :  { %p17170_p10 = por %p17169_p9, %p17168_p8 }
 0x104   :  { %p17171_p11 = pnand %p17170_p10, %p17164_p7 }
 0x106   :  { %17174 = shalt.err (!%p17171_p11)
}
 0x107   :  { %155 = dma.hbm_to_vmem [thread:$0]  %s17541_s8, 8192, %s150_s10, [#allocation9], %s17457_s26, %s17457_s26, %s17458_s28  }
 0x108   :  { %s17175_s13 = scalar_lea.hbm %s17561_s30, 3072 }
 0x109   :  { %p17176_p12 = scmp.ne.s32.totalorder %s17561_s30, %s17175_s13  ;;  %p17179_p13 = scmp.lt.u32.totalorder %s17175_s13, %s17561_s30 }
 0x10b   :  { %p17181_p0 = pnand %p17179_p13, %p17176_p12 }
 0x10d   :  { %17184 = shalt.err (!%p17181_p0)
}
 0x10e   :  { %s17185_s15 = scalar_lea.vmem %s178_s11, 3072  ;;  %p17190_p2 = scmp.lt.s32.totalorder %s178_s11, %s178_s11 }
 0x10f   :  { %p17186_p1 = scmp.ne.s32.totalorder %s178_s11, %s17185_s15  ;;  %p17191_p3 = scmp.lt.s32.totalorder %s17185_s15, %s17185_s15 }
 0x111   :  { %p17192_p4 = por %p17191_p3, %p17190_p2 }
 0x113   :  { %p17193_p5 = pnand %p17192_p4, %p17186_p1 }
 0x115   :  { %17196 = shalt.err (!%p17193_p5)
}
 0x116   :  { %183 = dma.hbm_to_vmem [thread:$0]  %s17561_s30, 3072, %s178_s11, [#allocation12], %s17472_s14, %s17472_s14, %s17473_s2  }
 0x117   :  { %s17476_s8 = smov [#allocation16]   ;;  %s17477_s16 = smov [#allocation19]  }
 0x118   :  { %s205_s25 = sshll.u32 %s17476_s8, 4  ;;  %s233_s18 = sshll.u32 %s17477_s16, 4  ;;  %s206_s25 = int_to_ptr.vmem [resolvable:$true] %s205_s25  ;;  %s234_s18 = int_to_ptr.vmem [resolvable:$true] %s233_s18 }
 0x119   :  { %s17197_s22 = scalar_lea.hbm %s17581_s27, 4096 }
 0x11a   :  { %p17198_p6 = scmp.ne.s32.totalorder %s17581_s27, %s17197_s22  ;;  %p17201_p7 = scmp.lt.u32.totalorder %s17197_s22, %s17581_s27 }
 0x11c   :  { %p17203_p8 = pnand %p17201_p7, %p17198_p6 }
 0x11e   :  { %17206 = shalt.err (!%p17203_p8)
}
 0x11f   :  { %s17207_s23 = scalar_lea.vmem %s206_s25, 4096  ;;  %p17212_p10 = scmp.lt.s32.totalorder %s206_s25, %s206_s25 }
 0x120   :  { %p17208_p9 = scmp.ne.s32.totalorder %s206_s25, %s17207_s23  ;;  %p17213_p11 = scmp.lt.s32.totalorder %s17207_s23, %s17207_s23 }
 0x122   :  { %p17214_p12 = por %p17213_p11, %p17212_p10 }
 0x124   :  { %p17215_p13 = pnand %p17214_p12, %p17208_p9 }
 0x126   :  { %17218 = shalt.err (!%p17215_p13)
}
 0x127   :  { %s19801_s30 = sld [smem:[#allocation60_spill]] }
 0x128   :  { %211 = dma.hbm_to_vmem [thread:$0]  %s17581_s27, 4096, %s206_s25, [#allocation15], %s17459_s7, %s17459_s7, %s17460_s9  }
 0x12d   :  { %s17219_s24 = scalar_lea.hbm %s19801_s30, 2048 }
 0x12e   :  { %p17220_p0 = scmp.ne.s32.totalorder %s19801_s30, %s17219_s24  ;;  %p17223_p1 = scmp.lt.u32.totalorder %s17219_s24, %s19801_s30 }
 0x130   :  { %p17225_p2 = pnand %p17223_p1, %p17220_p0 }
 0x132   :  { %17228 = shalt.err (!%p17225_p2)
}
 0x133   :  { %s17229_s17 = scalar_lea.vmem %s234_s18, 2048  ;;  %p17234_p4 = scmp.lt.s32.totalorder %s234_s18, %s234_s18 }
 0x134   :  { %p17230_p3 = scmp.ne.s32.totalorder %s234_s18, %s17229_s17  ;;  %p17235_p5 = scmp.lt.s32.totalorder %s17229_s17, %s17229_s17 }
 0x136   :  { %p17236_p6 = por %p17235_p5, %p17234_p4 }
 0x138   :  { %p17237_p7 = pnand %p17236_p6, %p17230_p3 }
 0x13a   :  { %17240 = shalt.err (!%p17237_p7)
}
 0x13b   :  { %s19802_s1 = sld [smem:[#allocation62_spill]]  ;;  %s17478_s27 = smov [#allocation22]  }
 0x13c   :  { %239 = dma.hbm_to_vmem [thread:$0]  %s19801_s30, 2048, %s234_s18, [#allocation18], %s17462_s0, %s17462_s0, %s17463_s29  }
 0x13d   :  { %s260_s7 = sshll.u32 %s17478_s27, 4  ;;  %s17479_s14 = smov [#allocation25]   ;;  %s261_s7 = int_to_ptr.vmem [resolvable:$true] %s260_s7 }
 0x13e   :  { %s282_s2 = sshll.u32 %s17479_s14, 4  ;;  %s283_s2 = int_to_ptr.vmem [resolvable:$true] %s282_s2 }
 0x141   :  { %s17241_s5 = scalar_lea.hbm %s19802_s1, 16 }
 0x142   :  { %p17242_p8 = scmp.ne.s32.totalorder %s19802_s1, %s17241_s5  ;;  %p17245_p9 = scmp.lt.u32.totalorder %s17241_s5, %s19802_s1 }
 0x144   :  { %p17247_p10 = pnand %p17245_p9, %p17242_p8 }
 0x146   :  { %17250 = shalt.err (!%p17247_p10)
}
 0x147   :  { %s17251_s10 = scalar_lea.vmem %s261_s7, 16  ;;  %s17255_s19 = scalar_lea.vmem %s261_s7, 32 }
 0x148   :  { %p17252_p11 = scmp.ne.s32.totalorder %s261_s7, %s17251_s10  ;;  %p17256_p12 = scmp.lt.s32.totalorder %s261_s7, %s261_s7 }
 0x149   :  { %p17257_p13 = scmp.lt.s32.totalorder %s17255_s19, %s17251_s10 }
 0x14b   :  { %p17258_p0 = por %p17257_p13, %p17256_p12 }
 0x14d   :  { %p17259_p1 = pnand %p17258_p0, %p17252_p11 }
 0x14f   :  { %17262 = shalt.err (!%p17259_p1)
}
 0x150   :  { %s19803_s11 = sld [smem:[#allocation63_spill]] }
 0x151   :  { %263 = dma.hbm_to_vmem [thread:$0]  %s19802_s1, 16, %s261_s7, [#allocation21]  }
 0x156   :  { %s17263_s12 = scalar_lea.hbm %s19803_s11, 32 }
 0x157   :  { %p17264_p2 = scmp.ne.s32.totalorder %s19803_s11, %s17263_s12  ;;  %p17267_p3 = scmp.lt.u32.totalorder %s17263_s12, %s19803_s11 }
 0x159   :  { %p17269_p4 = pnand %p17267_p3, %p17264_p2 }
 0x15b   :  { %17272 = shalt.err (!%p17269_p4)
}
 0x15c   :  { %s17273_s3 = scalar_lea.vmem %s283_s2, 32  ;;  %p17278_p6 = scmp.lt.s32.totalorder %s283_s2, %s283_s2 }
 0x15d   :  { %p17274_p5 = scmp.ne.s32.totalorder %s283_s2, %s17273_s3  ;;  %p17279_p7 = scmp.lt.s32.totalorder %s17273_s3, %s17273_s3 }
 0x15f   :  { %p17280_p8 = por %p17279_p7, %p17278_p6 }
 0x161   :  { %p17281_p9 = pnand %p17280_p8, %p17274_p5 }
 0x163   :  { %17284 = shalt.err (!%p17281_p9)
}
 0x164   :  { %s19804_s13 = sld [smem:[#allocation64_spill]]  ;;  %s17480_s15 = smov [#allocation28]  }
 0x165   :  { %285 = dma.hbm_to_vmem [thread:$0]  %s19803_s11, 32, %s283_s2, [#allocation24]  }
 0x166   :  { %s304_s8 = sshll.u32 %s17480_s15, 4  ;;  %s17481_s25 = smov [#allocation31]   ;;  %s305_s8 = int_to_ptr.vmem [resolvable:$true] %s304_s8 }
 0x167   :  { %s325_s16 = sshll.u32 %s17481_s25, 4  ;;  %s326_s16 = int_to_ptr.vmem [resolvable:$true] %s325_s16 }
 0x16a   :  { %s17285_s18 = scalar_lea.hbm %s19804_s13, 16 }
 0x16b   :  { %p17286_p10 = scmp.ne.s32.totalorder %s19804_s13, %s17285_s18  ;;  %p17289_p11 = scmp.lt.u32.totalorder %s17285_s18, %s19804_s13 }
 0x16d   :  { %p17291_p12 = pnand %p17289_p11, %p17286_p10 }
 0x16f   :  { %17294 = shalt.err (!%p17291_p12)
}
 0x170   :  { %s17295_s22 = scalar_lea.vmem %s305_s8, 16  ;;  %s17299_s23 = scalar_lea.vmem %s305_s8, 32 }
 0x171   :  { %p17296_p13 = scmp.ne.s32.totalorder %s305_s8, %s17295_s22  ;;  %p17300_p0 = scmp.lt.s32.totalorder %s305_s8, %s305_s8 }
 0x172   :  { %p17301_p1 = scmp.lt.s32.totalorder %s17299_s23, %s17295_s22 }
 0x174   :  { %p17302_p2 = por %p17301_p1, %p17300_p0 }
 0x176   :  { %p17303_p3 = pnand %p17302_p2, %p17296_p13 }
 0x178   :  { %17306 = shalt.err (!%p17303_p3)
}
 0x179   :  { %s19805_s30 = sld [smem:[#allocation65_spill]] }
 0x17a   :  { %307 = dma.hbm_to_vmem [thread:$0]  %s19804_s13, 16, %s305_s8, [#allocation27]  }
 0x17f   :  { %s17307_s24 = scalar_lea.hbm %s19805_s30, 2048 }
 0x180   :  { %p17308_p4 = scmp.ne.s32.totalorder %s19805_s30, %s17307_s24  ;;  %p17311_p5 = scmp.lt.u32.totalorder %s17307_s24, %s19805_s30 }
 0x182   :  { %p17313_p6 = pnand %p17311_p5, %p17308_p4 }
 0x184   :  { %17316 = shalt.err (!%p17313_p6)
}
 0x185   :  { %s17317_s17 = scalar_lea.vmem %s326_s16, 2048  ;;  %p17322_p8 = scmp.lt.s32.totalorder %s326_s16, %s326_s16 }
 0x186   :  { %p17318_p7 = scmp.ne.s32.totalorder %s326_s16, %s17317_s17  ;;  %p17323_p9 = scmp.lt.s32.totalorder %s17317_s17, %s17317_s17 }
 0x188   :  { %p17324_p10 = por %p17323_p9, %p17322_p8 }
 0x18a   :  { %p17325_p11 = pnand %p17324_p10, %p17318_p7 }
 0x18c   :  { %17328 = shalt.err (!%p17325_p11)
}
 0x18d   :  { %331 = dma.hbm_to_vmem [thread:$0]  %s19805_s30, 2048, %s326_s16, [#allocation30], %s17457_s26, %s17457_s26, %s17458_s28  }
 0x18e   :  { %s17482_s1 = smov [#allocation32]   ;;  %s17329_s7 = scalar_lea.hbm %s17656_s21, 2048 }
 0x18f   :  { %s339_s27 = sshll.u32 %s17482_s1, 4  ;;  %p17330_p12 = scmp.ne.s32.totalorder %s17656_s21, %s17329_s7  ;;  %s340_s27 = int_to_ptr.vmem [resolvable:$true] %s339_s27 }
 0x190   :  { %p17333_p13 = scmp.lt.u32.totalorder %s17329_s7, %s17656_s21 }
 0x192   :  { %p17335_p0 = pnand %p17333_p13, %p17330_p12 }
 0x194   :  { %17338 = shalt.err (!%p17335_p0)
}
 0x195   :  { %s17339_s14 = scalar_lea.vmem %s340_s27, 2048  ;;  %p17344_p2 = scmp.lt.s32.totalorder %s340_s27, %s340_s27 }
 0x196   :  { %p17340_p1 = scmp.ne.s32.totalorder %s340_s27, %s17339_s14  ;;  %p17345_p3 = scmp.lt.s32.totalorder %s17339_s14, %s17339_s14 }
 0x198   :  { %p17346_p4 = por %p17345_p3, %p17344_p2 }
 0x19a   :  { %p17347_p5 = pnand %p17346_p4, %p17340_p1 }
 0x19c   :  { %17350 = shalt.err (!%p17347_p5)
}
 0x19d   :  { %345 = dma.hbm_to_vmem [thread:$0]  %s17656_s21, 2048, %s340_s27, [#allocation33], %s17462_s0, %s17462_s0, %s17463_s29  }
 0x19e   :  { %17395 = dma.done.wait [#allocation3], 256  }
 0x19f   :  { %17396 = vsyncadd [#allocation3], 4294967040 }
 0x1a0   :  { %17397 = dma.done.wait [#allocation6], 3584  }
 0x1a1   :  { %17398 = vsyncadd [#allocation6], 4294963712 }
 0x1a2   :  { %17399 = dma.done.wait [#allocation9], 12288  }
 0x1a3   :  { %17400 = vsyncadd [#allocation9], 4294955008 }
 0x1a4   :  { %17401 = dma.done.wait [#allocation12], 5120  }
 0x1a5   :  { %17402 = vsyncadd [#allocation12], 4294962176 }
 0x1a6   :  { %17403 = dma.done.wait [#allocation15], 5120  }
 0x1a7   :  { %17404 = vsyncadd [#allocation15], 4294962176 }
 0x1a8   :  { %17405 = dma.done.wait [#allocation18], 10240  }
 0x1a9   :  { %17406 = vsyncadd [#allocation18], 4294957056 }
 0x1aa   :  { %17407 = dma.done.wait [#allocation21], 1040  }
 0x1ab   :  { %17408 = vsyncadd [#allocation21], 4294966256 }
 0x1ac   :  { %17409 = dma.done.wait [#allocation24], 2080  }
 0x1ad   :  { %17410 = vsyncadd [#allocation24], 4294965216 }
 0x1ae   :  { %17411 = dma.done.wait [#allocation27], 1040  }
 0x1af   :  { %17412 = vsyncadd [#allocation27], 4294966256 }
 0x1b0   :  { %17413 = dma.done.wait [#allocation30], 4096  }
 0x1b1   :  { %17414 = vsyncadd [#allocation30], 4294963200 }
 0x1b2   :  { %17415 = dma.done.wait [#allocation33], 2048  }
 0x1b3   :  { %17416 = vsyncadd [#allocation33], 4294965248  ;;  %v17483_v0 = vmov 0   ;;  %v17484_v1 = vmov 0.0   ;;  %v15912_v2 = vld [vmem:[#allocation7 + $0x4] ss:$12 sps:$4 sm:$0xff]   ;;  %v446_v29 = vlaneseq }
 0x1b4   :  { %621 = vmatprep.mubr.bf16.mxu0 %v17483_v0  ;;  %14720 = vmatprep.subr.bf16.mxu1 %v17484_v1  ;;  %v15914_v3 = vld [vmem:[#allocation7] ss:$12 sps:$4 sm:$0xff]   ;;  %v15915_v4 = vld [vmem:[#allocation7 + $0x1c] ss:$12 sps:$4 sm:$0xff]   ;;  %v15917_v5 = vld [vmem:[#allocation7 + $0x18] ss:$12 sps:$4 sm:$0xff]  }
 0x1b5   :  { %589 = vmatprep.subr.bf16.mxu0 %v15912_v2  ;;  %v15918_v6 = vld [vmem:[#allocation7 + $0x34] ss:$12 sps:$4 sm:$0xff]   ;;  %v15920_v7 = vld [vmem:[#allocation7 + $0x30] ss:$12 sps:$4 sm:$0xff]   ;;  %v15921_v8 = vld [vmem:[#allocation7 + $0x4c] ss:$12 sps:$4 sm:$0xff]  }
 0x1b6   :  { %590 = vmatpush1.bf16.msra.mxu0 %v15914_v3  ;;  %v15923_v9 = vld [vmem:[#allocation7 + $0x48] ss:$12 sps:$4 sm:$0xff]   ;;  %v15924_v10 = vld [vmem:[#allocation7 + $0x64] ss:$12 sps:$4 sm:$0xff]   ;;  %v15937_v12 = vld [vmem:[#allocation7 + $0x20] ss:$12 sps:$4 sm:$0xff]  }
 0x1b7   :  { %591 = vmatprep.subr.bf16.mxu0 %v15915_v4  ;;  %v15936_v11 = vld [vmem:[#allocation7 + $0x8] ss:$12 sps:$4 sm:$0xff]   ;;  %v15926_v13 = vld [vmem:[#allocation7 + $0x60] ss:$12 sps:$4 sm:$0xff]   ;;  %v15938_v15 = vld [vmem:[#allocation7 + $0x38] ss:$12 sps:$4 sm:$0xff]  }
 0x1b8   :  { %14721 = vmatpush3.bf16.msra.mxu1 %v15936_v11  ;;  %v15927_v14 = vld [vmem:[#allocation7 + $0x7c] ss:$12 sps:$4 sm:$0xff]   ;;  %v15929_v16 = vld [vmem:[#allocation7 + $0x78] ss:$12 sps:$4 sm:$0xff]   ;;  %v15930_v17 = vld [vmem:[#allocation7 + $0x94] ss:$12 sps:$4 sm:$0xff]  }
 0x1b9   :  { %14722 = vmatprep.subr.bf16.mxu1 %v17484_v1  ;;  %v15939_v18 = vld [vmem:[#allocation7 + $0x50] ss:$12 sps:$4 sm:$0xff]   ;;  %v15933_v20 = vld [vmem:[#allocation7 + $0xac] ss:$12 sps:$4 sm:$0xff]   ;;  %v15940_v21 = vld [vmem:[#allocation7 + $0x68] ss:$12 sps:$4 sm:$0xff]  }
 0x1ba   :  { %592 = vmatpush1.bf16.msra.mxu0 %v15917_v5  ;;  %v15932_v19 = vld [vmem:[#allocation7 + $0x90] ss:$12 sps:$4 sm:$0xff]   ;;  %v15935_v22 = vld [vmem:[#allocation7 + $0xa8] ss:$12 sps:$4 sm:$0xff]   ;;  %v15941_v25 = vld [vmem:[#allocation7 + $0x80] ss:$12 sps:$4 sm:$0xff]  }
 0x1bb   :  { %593 = vmatprep.subr.bf16.mxu0 %v15918_v6  ;;  %v409_v23 = vld [vmem:[#allocation2] sm:$0xff]  ;;  %v410_v24 = vld [vmem:[#allocation2 + $0x8] sm:$0xff]  ;;  %s19806_s21 = sld [smem:[#allocation50_spill]]  ;;  %vm17485_vm0 = vmmov 0   ;;  %v17828_v30 = vshrl.u32 %v446_v29, 7  ;;  %vm679_vm1 = vcmask 130048  }
 0x1bc   :  { %14723 = vmatpush3.bf16.msra.mxu1 %v15937_v12  ;;  %v443_v26 = vpack.c.bf16 %v410_v24, %v409_v23  ;;  %v15942_v27 = vld [vmem:[#allocation7 + $0x98] ss:$12 sps:$4 sm:$0xff]   ;;  %v15943_v28 = vld [vmem:[#allocation7 + $0xb0] ss:$12 sps:$4 sm:$0xff]   ;;  %14736 = vmatprep.mubr.msk.bf16.mxu1 %vm17485_vm0, %v17484_v1  ;;  %s17486_s29 = smov 112   ;;  %vm802_vm2 = vcmask 1043456  }
 0x1bd   :  { %14724 = vmatprep.subr.bf16.mxu1 %v17484_v1  ;;  %v17831_v31 = vsub.s32 1, %v17828_v30  ;;  %v17835_v33 = vsub.s32 0, %v17828_v30  ;;  %v17864_v52 = vsub.s32 2, %v17828_v30  ;;  %vm772_vm3 = vcmask 64512   ;;  %s17487_s2 = smov 96   ;;  %s19807_s5 = sld [smem:[#allocation51_spill]] }
 0x1be   :  { %594 = vmatpush1.bf16.msra.mxu0 %v15920_v7  ;;  %s17488_s10 = smov 80   ;;  %s17489_s19 = smov 48  }
 0x1bf   :  { %595 = vmatprep.subr.bf16.mxu0 %v15921_v8  ;;  %s17490_s11 = smov 32   ;;  %s19808_s12 = sld [smem:[#allocation52_spill]] }
 0x1c0   :  { %14725 = vmatpush3.bf16.msra.mxu1 %v15938_v15  ;;  %s19809_s3 = sld [smem:[#allocation53_spill]]  ;;  %s19810_s13 = sld [smem:[#allocation54_spill]] }
 0x1c1   :  { %14726 = vmatprep.subr.bf16.mxu1 %v17484_v1  ;;  %v444_v32 = vld [vmem:[%s19806_s21] sm:$0x7]  ;;  %s19811_s15 = sld [smem:[#allocation56_spill]]  ;;  %s19812_s8 = sld [smem:[#allocation57_spill]] }
 0x1c2   :  { %596 = vmatpush1.bf16.msra.mxu0 %v15923_v9  ;;  %v453_v34 = vrot.slane %v444_v32, %v17831_v31  ;;  %v449_v35 = vrot.slane %v444_v32, %v17835_v33  ;;  %v457_v53 = vrot.slane %v444_v32, %v17864_v52  ;;  %s19813_s25 = sld [smem:[#allocation58_spill]]  ;;  %s19814_s16 = sld [smem:[#allocation59_spill]] }
 0x1c3   :  { %597 = vmatprep.subr.bf16.mxu0 %v15924_v10  ;;  %s19815_s18 = sld [smem:[#allocation55_spill]]  ;;  %s19816_s22 = sld [smem:[#allocation61_spill]] }
 0x1c4   :  { %14727 = vmatpush3.bf16.msra.mxu1 %v15939_v18 }
 0x1c5   :  { %14728 = vmatprep.subr.bf16.mxu1 %v17484_v1 }
 0x1c6   :  { %598 = vmatpush1.bf16.msra.mxu0 %v15926_v13 }
 0x1c7   :  { %599 = vmatprep.subr.bf16.mxu0 %v15927_v14 }
 0x1c8   :  { %14729 = vmatpush3.bf16.msra.mxu1 %v15940_v21 }
 0x1c9   :  { %14730 = vmatprep.subr.bf16.mxu1 %v17484_v1 }
 0x1ca   :  { %600 = vmatpush1.bf16.msra.mxu0 %v15929_v16 }
 0x1cb   :  { %601 = vmatprep.subr.bf16.mxu0 %v15930_v17 }
 0x1cc   :  { %14731 = vmatpush3.bf16.msra.mxu1 %v15941_v25 }
 0x1cd   :  { %14732 = vmatprep.subr.bf16.mxu1 %v17484_v1 }
 0x1ce   :  { %602 = vmatpush1.bf16.msra.mxu0 %v15932_v19 }
 0x1cf   :  { %603 = vmatprep.subr.bf16.mxu0 %v15933_v20 }
 0x1d0   :  { %14733 = vmatpush3.bf16.msra.mxu1 %v15942_v27 }
 0x1d1   :  { %14734 = vmatprep.subr.bf16.mxu1 %v17484_v1 }
 0x1d2   :  { %604 = vmatpush1.bf16.msra.mxu0 %v15935_v22 }
 0x1d3   :  { %14752 = vmatprep.subr.bf16.mxu0 %v17484_v1 }
 0x1d4   :  { %14735 = vmatpush3.bf16.msra.mxu1 %v15943_v28 }
 0x1d5   :  { %622 = vmatmul.mubr.bf16.vlgmr.msra.gmra.mrb[0].mxu0 %v443_v26  ;;  %14740 = vmatprep.subr.bf16.mxu1 %v17484_v1 }
 0x1d6   :  { %14754 = vmatprep.mubr.msk.bf16.mxu0 %vm17485_vm0, %v17484_v1 }
 0x1d7   :  { %14737 = vmatmul.mubr.bf16.vlgmr.msra.gmra.mrb[0].mxu1 %v443_v26 }
 0x1d8   :  { %14742 = vmatprep.mubr.msk.bf16.mxu1 %vm17485_vm0, %v17484_v1 }
 0x2a8   :  { %v623_v36 = vpop.f32.mrb[0].mxu0 }
 0x2a9   :  { %v625_v37 = vpop.f32.mrb[1].mxu0  ;;  %v624_v41 = vadd.f32 %v623_v36, %v449_v35 }
 0x2aa   :  { %v626_v38 = vadd.f32 %v625_v37, %v453_v34  ;;  %v627_v39 = vpop.f32.mrb[2].mxu0  ;;  %v666_v54 = vpop.f32.mrb[0].mxu1 }
 0x2ab   :  { %v629_v40 = vpop.f32.mrb[3].mxu0  ;;  %v673_v46 = vmul.f32 0.25, %v624_v41  ;;  %v628_v48 = vadd.f32 %v627_v39, %v449_v35  ;;  %v667_v55 = vadd.f32 %v666_v54, %v457_v53  ;;  %v14738_v56 = vpop.f32.mrb[1].mxu1 }
 0x2ac   :  { %v17839_v42 = vpack.c.bf16 %v626_v38, %v626_v38  ;;  %v630_v43 = vadd.f32 %v629_v40, %v453_v34  ;;  %v669_v57 = vpop.f32.mrb[2].mxu1 }
 0x2ad   :  { %v17848_v47 = vpack.c.bf16 %v673_v46, %v673_v46  ;;  %v674_v50 = vmul.f32 0.25, %v628_v48  ;;  %v17867_v58 = vpack.c.bf16 %v667_v55, %v667_v55  ;;  %v670_v59 = vadd.f32 %v669_v57, %v457_v53  ;;  %v14739_v60 = vpop.f32.mrb[3].mxu1 }
 0x2ae   :  { %v17841_v44 = vpack.c.bf16 %v630_v43, %v630_v43  ;;  %v684_v45 = vsel %vm679_vm1, %v17839_v42, 0 }
 0x2af   :  { %14741 = vmatpush3.bf16.xpose.msra.mxu1 %v684_v45  ;;  %v17857_v51 = vpack.c.bf16 %v674_v50, %v674_v50  ;;  %v17869_v61 = vpack.c.bf16 %v670_v59, %v670_v59  ;;  %v804_v62 = vsel %vm802_vm2, %v17867_v58, 0 }
 0x2b0   :  { %951 = vrot.lane.b32.xlu1 %v17841_v44, %s17486_s29  ;;  %14746 = vmatprep.subr.bf16.mxu1 %v17484_v1  ;;  %v730_v49 = vsel %vm679_vm1, %v17841_v44, 0 }
 0x2b1   :  { %14753 = vmatpush3.bf16.msra.mxu0 %v804_v62  ;;  %v850_v63 = vsel %vm802_vm2, %v17869_v61, 0 }
 0x2b2   :  { %14764 = vmatprep.subr.bf16.mxu0 %v17484_v1 }
 0x2b6   :  { %14743 = vmatmul.mubr.msk.bf16.vlgmr.msra.gmra.mrb[4].mxu1 %vm679_vm1, %v17848_v47 }
 0x2b7   :  { %14747 = vmatpush3.bf16.xpose.msra.mxu1 %v730_v49  ;;  %14748 = vmatprep.mubr.msk.bf16.mxu1 %vm17485_vm0, %v17484_v1 }
 0x2b8   :  { %14758 = vmatprep.subr.bf16.mxu1 %v17484_v1 }
 0x2be   :  { %14749 = vmatmul.mubr.msk.bf16.vlgmr.msra.gmra.mrb[8].mxu1 %vm679_vm1, %v17857_v51 }
 0x2bf   :  { %14760 = vmatprep.mubr.msk.bf16.mxu1 %vm17485_vm0, %v17484_v1  ;;  %14759 = vmatpush3.bf16.msra.mxu1 %v850_v63 }
 0x2c0   :  { %14770 = vmatprep.subr.bf16.mxu1 %v17484_v1 }
 0x322   :  { %v952_v22 = vpop.permute.xlu1 %951 }
 0x323   :  { %v957_v37 = vsel %vm679_vm1, %v952_v22, 0 }
 0x389   :  { %v720_v2 = vpop.f32.mrb[4].mxu1 }
 0x38a   :  { %v14744_v3 = vpop.f32.mrb[5].mxu1  ;;  %v773_v4 = vsel %vm772_vm3, %v720_v2, -inf }
 0x38b   :  { %774 = vmax.xlane.f32.xlu0 %v773_v4  ;;  %v723_v5 = vpop.f32.mrb[6].mxu1 }
 0x38c   :  { %v14745_v6 = vpop.f32.mrb[7].mxu1 }
 0x391   :  { %v766_v7 = vpop.f32.mrb[8].mxu1 }
 0x392   :  { %v14750_v8 = vpop.f32.mrb[9].mxu1  ;;  %v776_v9 = vsel %vm772_vm3, %v766_v7, -inf }
 0x393   :  { %777 = vmax.xlane.f32.xlu0 %v776_v9  ;;  %v769_v10 = vpop.f32.mrb[10].mxu1 }
 0x394   :  { %v14751_v11 = vpop.f32.mrb[11].mxu1 }
 0x3a9   :  { %899 = vrot.lane.b32.xlu0 %v17839_v42, %s17486_s29 }
 0x418   :  { %v775_v12 = vpop.xlane.xlu0 %774 }
 0x419   :  { %v779_v13 = vsub.f32 %v720_v2, %v775_v12 }
 0x41b   :  { %v781_v14 = vmul.f32 1.442695, %v779_v13 }
 0x41d   :  { %16424 = vpow2.f32 %v781_v14 }
 0x420   :  { %v778_v15 = vpop.xlane.xlu0 %777 }
 0x421   :  { %v780_v16 = vsub.f32 %v766_v7, %v778_v15 }
 0x423   :  { %v783_v17 = vmul.f32 1.442695, %v780_v16 }
 0x424   :  { %v900_v27 = vpop.permute.xlu0 %899 }
 0x425   :  { %16426 = vpow2.f32 %v783_v17  ;;  %v905_v29 = vsel %vm679_vm1, %v900_v27, 0 }
 0x427   :  { %v16425_v18 = vpop.eup %16424 }
 0x428   :  { %v785_v19 = vsel %vm772_vm3, %v16425_v18, 0.0 }
 0x429   :  { %786 = vadd.xlane.f32.xlu1 %v785_v19 }
 0x42f   :  { %v16427_v20 = vpop.eup %16426 }
 0x430   :  { %v788_v21 = vsel %vm772_vm3, %v16427_v20, 0.0 }
 0x431   :  { %789 = vadd.xlane.f32.xlu1 %v788_v21 }
 0x442   :  { %896 = vrot.lane.b32.xlu1 %v17848_v47, %s17486_s29 }
 0x446   :  { %948 = vrot.lane.b32.xlu1 %v17857_v51, %s17486_s29 }
 0x4b6   :  { %v787_v23 = vpop.xlane.xlu1 %786 }
 0x4b7   :  { %16428 = vrcp.f32 %v787_v23 }
 0x4be   :  { %v790_v24 = vpop.xlane.xlu1 %789 }
 0x4bf   :  { %16430 = vrcp.f32 %v790_v24  ;;  %v15944_v24 = vld [vmem:[%s19807_s5] sm:$0xff]  }
 0x4c1   :  { %v16429_v25 = vpop.eup %16428 }
 0x4c2   :  { %v792_v26 = vmul.f32 %v16429_v25, %v16425_v18  ;;  %v897_v36 = vpop.permute.xlu1 %896 }
 0x4c4   :  { %v795_v28 = vpack.c.bf16 %v792_v26, %v792_v26 }
 0x4c6   :  { %14755 = vmatmul.mubr.msk.bf16.vlgmr.msra.gmra.mrb[4].mxu0 %vm772_vm3, %v795_v28  ;;  %v949_v38 = vpop.permute.xlu1 %948 }
 0x4c7   :  { %14765 = vmatpush3.bf16.xpose.msra.mxu0 %v905_v29  ;;  %14766 = vmatprep.mubr.msk.bf16.mxu0 %vm17485_vm0, %v17484_v1 }
 0x4c8   :  { %14776 = vmatprep.subr.bf16.mxu0 %v17484_v1 }
 0x4c9   :  { %v16431_v32 = vpop.eup %16430 }
 0x4ca   :  { %v794_v34 = vmul.f32 %v16431_v32, %v16427_v20  ;;  %v15945_v32 = vld [vmem:[%s19807_s5 + $0x8] sm:$0xff]  }
 0x4cc   :  { %v796_v35 = vpack.c.bf16 %v794_v34, %v794_v34 }
 0x4ce   :  { %14761 = vmatmul.mubr.msk.bf16.vlgmr.msra.gmra.mrb[12].mxu1 %vm772_vm3, %v796_v35  ;;  %14767 = vmatmul.mubr.msk.bf16.vlgmr.msra.gmra.mrb[8].mxu0 %vm679_vm1, %v897_v36 }
 0x4cf   :  { %14771 = vmatpush3.bf16.xpose.msra.mxu1 %v957_v37  ;;  %14772 = vmatprep.mubr.msk.bf16.mxu1 %vm17485_vm0, %v17484_v1 }
 0x4d0   :  { %14782 = vmatprep.subr.bf16.mxu1 %v17484_v1  ;;  %14778 = vmatprep.mubr.msk.bf16.mxu0 %vm17485_vm0, %v17484_v1 }
 0x4d6   :  { %14773 = vmatmul.mubr.msk.bf16.vlgmr.msra.gmra.mrb[16].mxu1 %vm679_vm1, %v949_v38 }
 0x4d7   :  { %14784 = vmatprep.mubr.msk.bf16.mxu1 %vm17485_vm0, %v17484_v1 }
 0x599   :  { %v17903_v39 = vpop.f32.mrb[4].mxu0 }
 0x59a   :  { %v14756_v40 = vpop.f32.mrb[5].mxu0 }
 0x59b   :  { %v843_v41 = vpop.f32.mrb[6].mxu0 }
 0x59c   :  { %v14757_v43 = vpop.f32.mrb[7].mxu0 }
 0x5a1   :  { %v17905_v45 = vpop.f32.mrb[12].mxu1  ;;  %v941_v46 = vpop.f32.mrb[8].mxu0 }
 0x5a2   :  { %v894_v48 = vpack.c.bf16 %v17905_v45, %v17903_v39  ;;  %v14762_v49 = vpop.f32.mrb[13].mxu1  ;;  %v14768_v50 = vpop.f32.mrb[9].mxu0  ;;  %v999_v53 = vsel %vm772_vm3, %v941_v46, -inf }
 0x5a3   :  { %1000 = vmax.xlane.f32.xlu0 %v999_v53  ;;  %v889_v54 = vpop.f32.mrb[14].mxu1  ;;  %v944_v55 = vpop.f32.mrb[10].mxu0 }
 0x5a4   :  { %v14763_v56 = vpop.f32.mrb[15].mxu1  ;;  %v14769_v57 = vpop.f32.mrb[11].mxu0 }
 0x5a9   :  { %v993_v59 = vpop.f32.mrb[16].mxu1 }
 0x5aa   :  { %v14774_v60 = vpop.f32.mrb[17].mxu1  ;;  %v1002_v62 = vsel %vm772_vm3, %v993_v59, -inf }
 0x5ab   :  { %1003 = vmax.xlane.f32.xlu1 %v1002_v62  ;;  %v996_v63 = vpop.f32.mrb[18].mxu1 }
 0x5ac   :  { %v14775_v2 = vpop.f32.mrb[19].mxu1 }
 0x5bc   :  { %1073 = vrot.lane.b32.xlu1 %v17869_v61, %s17486_s29 }
 0x5c0   :  { %1226 = vrot.lane.b32.xlu1 %v17839_v42, %s17487_s2 }
 0x5c4   :  { %1276 = vrot.lane.b32.xlu1 %v17841_v44, %s17487_s2 }
 0x5c8   :  { %1274 = vrot.lane.b32.xlu1 %v17857_v51, %s17487_s2 }
 0x630   :  { %v1001_v3 = vpop.xlane.xlu0 %1000 }
 0x631   :  { %v1005_v4 = vsub.f32 %v941_v46, %v1001_v3 }
 0x633   :  { %v1007_v5 = vmul.f32 1.442695, %v1005_v4 }
 0x635   :  { %16432 = vpow2.f32 %v1007_v5 }
 0x638   :  { %v1004_v6 = vpop.xlane.xlu1 %1003 }
 0x639   :  { %v1006_v7 = vsub.f32 %v993_v59, %v1004_v6 }
 0x63b   :  { %v1009_v8 = vmul.f32 1.442695, %v1006_v7 }
 0x63c   :  { %v1074_v9 = vpop.permute.xlu1 %1073 }
 0x63d   :  { %16434 = vpow2.f32 %v1009_v8  ;;  %v1079_v10 = vsel %vm802_vm2, %v1074_v9, 0 }
 0x63e   :  { %14783 = vmatpush3.bf16.msra.mxu1 %v1079_v10 }
 0x63f   :  { %v16433_v11 = vpop.eup %16432  ;;  %14794 = vmatprep.subr.bf16.mxu1 %v17484_v1 }
 0x640   :  { %v1011_v12 = vsel %vm772_vm3, %v16433_v11, 0.0  ;;  %v1227_v26 = vpop.permute.xlu1 %1226 }
 0x641   :  { %1012 = vadd.xlane.f32.xlu0 %v1011_v12  ;;  %v1232_v43 = vsel %vm679_vm1, %v1227_v26, 0 }
 0x644   :  { %v1277_v27 = vpop.permute.xlu1 %1276 }
 0x645   :  { %v1282_v28 = vsel %vm679_vm1, %v1277_v27, 0 }
 0x647   :  { %v16435_v13 = vpop.eup %16434 }
 0x648   :  { %v1014_v14 = vsel %vm772_vm3, %v16435_v13, 0.0  ;;  %v1275_v29 = vpop.permute.xlu1 %1274 }
 0x649   :  { %1015 = vadd.xlane.f32.xlu0 %v1014_v14 }
 0x65f   :  { %1024 = vrot.lane.b32.xlu0 %v17867_v58, %s17486_s29 }
 0x663   :  { %1224 = vrot.lane.b32.xlu0 %v17848_v47, %s17487_s2 }
 0x6ce   :  { %v1013_v15 = vpop.xlane.xlu0 %1012 }
 0x6cf   :  { %16436 = vrcp.f32 %v1013_v15 }
 0x6d6   :  { %v1016_v16 = vpop.xlane.xlu0 %1015 }
 0x6d7   :  { %16438 = vrcp.f32 %v1016_v16 }
 0x6d9   :  { %v16437_v17 = vpop.eup %16436 }
 0x6da   :  { %v1025_v18 = vpop.permute.xlu0 %1024  ;;  %v1018_v19 = vmul.f32 %v16437_v17, %v16433_v11 }
 0x6db   :  { %v1030_v20 = vsel %vm802_vm2, %v1025_v18, 0 }
 0x6dc   :  { %14777 = vmatpush3.bf16.msra.mxu0 %v1030_v20  ;;  %v1021_v21 = vpack.c.bf16 %v1018_v19, %v1018_v19 }
 0x6dd   :  { %14788 = vmatprep.subr.bf16.mxu0 %v17484_v1 }
 0x6de   :  { %v1225_v49 = vpop.permute.xlu0 %1224 }
 0x6df   :  { %14779 = vmatmul.mubr.msk.bf16.vlgmr.msra.gmra.mrb[12].mxu0 %vm772_vm3, %v1021_v21 }
 0x6e0   :  { %14790 = vmatprep.mubr.msk.bf16.mxu0 %vm17485_vm0, %v17484_v1  ;;  %14789 = vmatpush3.bf16.msra.mxu0 %v15945_v32 }
 0x6e1   :  { %v16439_v22 = vpop.eup %16438  ;;  %14800 = vmatprep.subr.bf16.mxu0 %v17484_v1 }
 0x6e2   :  { %v1020_v23 = vmul.f32 %v16439_v22, %v16435_v13 }
 0x6e4   :  { %v1022_v25 = vpack.c.bf16 %v1020_v23, %v1020_v23 }
 0x6e6   :  { %14785 = vmatmul.mubr.msk.bf16.vlgmr.msra.gmra.mrb[20].mxu1 %vm772_vm3, %v1022_v25 }
 0x6e7   :  { %14795 = vmatpush3.bf16.msra.mxu1 %v15944_v24  ;;  %14796 = vmatprep.mubr.msk.bf16.mxu1 %vm17485_vm0, %v17484_v1 }
 0x6e8   :  { %14806 = vmatprep.subr.bf16.mxu1 %v17484_v1 }
 0x6ee   :  { %14797 = vmatmul.mubr.msk.bf16.vlgmr.msra.gmra.mrb[24].mxu1 %vm679_vm1, %v894_v48 }
 0x6ef   :  { %14808 = vmatprep.mubr.msk.bf16.mxu1 %vm17485_vm0, %v17484_v1 }
 0x6f0   :  { %14807 = vmatpush3.bf16.xpose.msra.mxu1 %v1282_v28 }
 0x6f1   :  { %14818 = vmatprep.subr.bf16.mxu1 %v17484_v1 }
 0x6f7   :  { %14809 = vmatmul.mubr.msk.bf16.vlgmr.msra.gmra.mrb[28].mxu1 %vm679_vm1, %v1275_v29 }
 0x6f8   :  { %14820 = vmatprep.mubr.msk.bf16.mxu1 %vm17485_vm0, %v17484_v1 }
 0x7b2   :  { %v1066_v34 = vpop.f32.mrb[12].mxu0 }
 0x7b3   :  { %v14780_v35 = vpop.f32.mrb[13].mxu0 }
 0x7b4   :  { %v1069_v36 = vpop.f32.mrb[14].mxu0 }
 0x7b5   :  { %v14781_v37 = vpop.f32.mrb[15].mxu0 }
 0x7b9   :  { %v1115_v38 = vpop.f32.mrb[20].mxu1 }
 0x7ba   :  { %v1123_v39 = vpack.c.bf16 %v1115_v38, %v1066_v34  ;;  %v14786_v40 = vpop.f32.mrb[21].mxu1 }
 0x7bb   :  { %v1118_v41 = vpop.f32.mrb[22].mxu1 }
 0x7bc   :  { %v14787_v45 = vpop.f32.mrb[23].mxu1  ;;  %14791 = vmatmul.mubr.msk.bf16.vlgmr.msra.gmra.mrb[16].mxu0 %vm679_vm1, %v1123_v39 }
 0x7bd   :  { %14801 = vmatpush3.bf16.xpose.msra.mxu0 %v1232_v43  ;;  %14802 = vmatprep.mubr.msk.bf16.mxu0 %vm17485_vm0, %v17484_v1  ;;  %v15946_v43 = vld [vmem:[%s19807_s5 + $0x10] sm:$0xff]  }
 0x7be   :  { %14812 = vmatprep.subr.bf16.mxu0 %v17484_v1 }
 0x7c1   :  { %v1217_v46 = vpop.f32.mrb[24].mxu1 }
 0x7c2   :  { %v14798_v48 = vpop.f32.mrb[25].mxu1 }
 0x7c3   :  { %v1220_v50 = vpop.f32.mrb[26].mxu1 }
 0x7c4   :  { %v14799_v53 = vpop.f32.mrb[27].mxu1  ;;  %14803 = vmatmul.mubr.msk.bf16.vlgmr.msra.gmra.mrb[20].mxu0 %vm679_vm1, %v1225_v49 }
 0x7c5   :  { %14814 = vmatprep.mubr.msk.bf16.mxu0 %vm17485_vm0, %v17484_v1 }
 0x7ca   :  { %v1318_v54 = vpop.f32.mrb[28].mxu1 }
 0x7cb   :  { %v14810_v55 = vpop.f32.mrb[29].mxu1  ;;  %v1327_v56 = vsel %vm772_vm3, %v1318_v54, -inf }
 0x7cc   :  { %1328 = vmax.xlane.f32.xlu1 %v1327_v56  ;;  %v1321_v57 = vpop.f32.mrb[30].mxu1 }
 0x7cd   :  { %v14811_v59 = vpop.f32.mrb[31].mxu1 }
 0x7dd   :  { %1396 = vrot.lane.b32.xlu1 %v17869_v61, %s17487_s2 }
 0x7e1   :  { %1501 = vrot.lane.b32.xlu1 %v17839_v42, %s17488_s10 }
 0x7e5   :  { %1551 = vrot.lane.b32.xlu1 %v17841_v44, %s17488_s10 }
 0x7e9   :  { %1549 = vrot.lane.b32.xlu1 %v17857_v51, %s17488_s10 }
 0x859   :  { %v1329_v60 = vpop.xlane.xlu1 %1328 }
 0x85a   :  { %v1331_v2 = vsub.f32 %v1318_v54, %v1329_v60 }
 0x85c   :  { %v1334_v3 = vmul.f32 1.442695, %v1331_v2 }
 0x85d   :  { %v1397_v62 = vpop.permute.xlu1 %1396 }
 0x85e   :  { %v1402_v63 = vsel %vm802_vm2, %v1397_v62, 0  ;;  %16440 = vpow2.f32 %v1334_v3 }
 0x85f   :  { %14819 = vmatpush3.bf16.msra.mxu1 %v1402_v63 }
 0x860   :  { %14830 = vmatprep.subr.bf16.mxu1 %v17484_v1 }
 0x861   :  { %v1502_v25 = vpop.permute.xlu1 %1501 }
 0x862   :  { %v1507_v27 = vsel %vm679_vm1, %v1502_v25, 0 }
 0x865   :  { %v1552_v53 = vpop.permute.xlu1 %1551 }
 0x866   :  { %v1557_v59 = vsel %vm679_vm1, %v1552_v53, 0 }
 0x868   :  { %v16441_v13 = vpop.eup %16440 }
 0x869   :  { %v1339_v16 = vsel %vm772_vm3, %v16441_v13, 0.0  ;;  %v1550_v62 = vpop.permute.xlu1 %1549 }
 0x88f   :  { %v1167_v4 = vpop.f32.mrb[16].mxu0 }
 0x890   :  { %v17969_v5 = vadd.f32 %v1217_v46, %v1167_v4  ;;  %v14792_v6 = vpop.f32.mrb[17].mxu0 }
 0x891   :  { %v1170_v7 = vpop.f32.mrb[18].mxu0 }
 0x892   :  { %v17971_v8 = vadd.f32 %v1220_v50, %v1170_v7  ;;  %v14793_v9 = vpop.f32.mrb[19].mxu0 }
 0x897   :  { %v1268_v10 = vpop.f32.mrb[20].mxu0 }
 0x898   :  { %v14804_v11 = vpop.f32.mrb[21].mxu0  ;;  %v1324_v12 = vsel %vm772_vm3, %v1268_v10, -inf }
 0x899   :  { %1325 = vmax.xlane.f32.xlu0 %v1324_v12  ;;  %v1271_v14 = vpop.f32.mrb[22].mxu0 }
 0x89a   :  { %v14805_v15 = vpop.f32.mrb[23].mxu0 }
 0x89d   :  { %1340 = vadd.xlane.f32.xlu0 %v1339_v16 }
 0x926   :  { %v1326_v17 = vpop.xlane.xlu0 %1325 }
 0x927   :  { %v1330_v18 = vsub.f32 %v1268_v10, %v1326_v17 }
 0x929   :  { %v1332_v19 = vmul.f32 1.442695, %v1330_v18 }
 0x92a   :  { %v1341_v20 = vpop.xlane.xlu0 %1340 }
 0x92b   :  { %16442 = vpow2.f32 %v1332_v19 }
 0x92c   :  { %16444 = vrcp.f32 %v1341_v20 }
 0x935   :  { %v16443_v21 = vpop.eup %16442 }
 0x936   :  { %v16445_v22 = vpop.eup %16444  ;;  %v1336_v23 = vsel %vm772_vm3, %v16443_v21, 0.0 }
 0x937   :  { %1337 = vadd.xlane.f32.xlu0 %v1336_v23  ;;  %v1345_v24 = vmul.f32 %v16445_v22, %v16441_v13 }
 0x939   :  { %v1347_v26 = vpack.c.bf16 %v1345_v24, %v1345_v24 }
 0x93b   :  { %14821 = vmatmul.mubr.msk.bf16.vlgmr.msra.gmra.mrb[32].mxu1 %vm772_vm3, %v1347_v26 }
 0x93c   :  { %14831 = vmatpush3.bf16.xpose.msra.mxu1 %v1507_v27  ;;  %14832 = vmatprep.mubr.msk.bf16.mxu1 %vm17485_vm0, %v17484_v1 }
 0x93d   :  { %14842 = vmatprep.subr.bf16.mxu1 %v17484_v1 }
 0x94d   :  { %1348 = vrot.lane.b32.xlu0 %v17867_v58, %s17487_s2 }
 0x951   :  { %1499 = vrot.lane.b32.xlu0 %v17848_v47, %s17488_s10 }
 0x9c4   :  { %v1338_v28 = vpop.xlane.xlu0 %1337 }
 0x9c5   :  { %16446 = vrcp.f32 %v1338_v28 }
 0x9c8   :  { %v1349_v29 = vpop.permute.xlu0 %1348 }
 0x9c9   :  { %v1354_v32 = vsel %vm802_vm2, %v1349_v29, 0 }
 0x9ca   :  { %14813 = vmatpush3.bf16.msra.mxu0 %v1354_v32 }
 0x9cb   :  { %14824 = vmatprep.subr.bf16.mxu0 %v17484_v1 }
 0x9cc   :  { %v1500_v34 = vpop.permute.xlu0 %1499 }
 0x9cd   :  { %14833 = vmatmul.mubr.msk.bf16.vlgmr.msra.gmra.mrb[36].mxu1 %vm679_vm1, %v1500_v34 }
 0x9ce   :  { %14844 = vmatprep.mubr.msk.bf16.mxu1 %vm17485_vm0, %v17484_v1 }
 0x9cf   :  { %v16447_v35 = vpop.eup %16446 }
 0x9d0   :  { %v1343_v36 = vmul.f32 %v16447_v35, %v16443_v21 }
 0x9d2   :  { %v1346_v37 = vpack.c.bf16 %v1343_v36, %v1343_v36 }
 0x9d4   :  { %14815 = vmatmul.mubr.msk.bf16.vlgmr.msra.gmra.mrb[24].mxu0 %vm772_vm3, %v1346_v37 }
 0x9d5   :  { %14826 = vmatprep.mubr.msk.bf16.mxu0 %vm17485_vm0, %v17484_v1  ;;  %14825 = vmatpush3.bf16.msra.mxu0 %v15946_v43 }
 0x9d6   :  { %14836 = vmatprep.subr.bf16.mxu0 %v17484_v1 }
 0xa0e   :  { %v1438_v38 = vpop.f32.mrb[32].mxu1 }
 0xa0f   :  { %v14822_v39 = vpop.f32.mrb[33].mxu1 }
 0xa10   :  { %v1441_v40 = vpop.f32.mrb[34].mxu1 }
 0xa11   :  { %v14823_v41 = vpop.f32.mrb[35].mxu1  ;;  %v15947_v40 = vld [vmem:[%s19807_s5 + $0x18] sm:$0xff]  }
 0xaa0   :  { %v1543_v45 = vpop.f32.mrb[36].mxu1 }
 0xaa1   :  { %v14834_v46 = vpop.f32.mrb[37].mxu1  ;;  %v1599_v48 = vsel %vm772_vm3, %v1543_v45, -inf }
 0xaa2   :  { %1600 = vmax.xlane.f32.xlu0 %v1599_v48  ;;  %v1546_v49 = vpop.f32.mrb[38].mxu1 }
 0xaa3   :  { %v14835_v50 = vpop.f32.mrb[39].mxu1 }
 0xaa7   :  { %v1390_v54 = vpop.f32.mrb[24].mxu0 }
 0xaa8   :  { %v1446_v55 = vpack.c.bf16 %v1438_v38, %v1390_v54  ;;  %v14816_v56 = vpop.f32.mrb[25].mxu0 }
 0xaa9   :  { %v1393_v57 = vpop.f32.mrb[26].mxu0 }
 0xaaa   :  { %v14817_v60 = vpop.f32.mrb[27].mxu0  ;;  %14827 = vmatmul.mubr.msk.bf16.vlgmr.msra.gmra.mrb[28].mxu0 %vm679_vm1, %v1446_v55 }
 0xaab   :  { %14837 = vmatpush3.bf16.xpose.msra.mxu0 %v1557_v59  ;;  %14838 = vmatprep.mubr.msk.bf16.mxu0 %vm17485_vm0, %v17484_v1 }
 0xaac   :  { %14848 = vmatprep.subr.bf16.mxu0 %v17484_v1 }
 0xab2   :  { %14839 = vmatmul.mubr.msk.bf16.vlgmr.msra.gmra.mrb[32].mxu0 %vm679_vm1, %v1550_v62 }
 0xab3   :  { %14850 = vmatprep.mubr.msk.bf16.mxu0 %vm17485_vm0, %v17484_v1 }
 0xb2f   :  { %v1601_v63 = vpop.xlane.xlu0 %1600 }
 0xb30   :  { %v1605_v2 = vsub.f32 %v1543_v45, %v1601_v63 }
 0xb32   :  { %v1607_v3 = vmul.f32 1.442695, %v1605_v2 }
 0xb34   :  { %16448 = vpow2.f32 %v1607_v3 }
 0xb3e   :  { %v16449_v4 = vpop.eup %16448 }
 0xb3f   :  { %v1611_v6 = vsel %vm772_vm3, %v16449_v4, 0.0 }
 0xb40   :  { %1612 = vadd.xlane.f32.xlu0 %v1611_v6 }
 0xb7d   :  { %v1490_v7 = vpop.f32.mrb[28].mxu0 }
 0xb7e   :  { %v18006_v9 = vadd.f32 %v1490_v7, %v17969_v5  ;;  %v14828_v10 = vpop.f32.mrb[29].mxu0 }
 0xb7f   :  { %v1493_v11 = vpop.f32.mrb[30].mxu0 }
 0xb80   :  { %v18009_v12 = vadd.f32 %v1493_v11, %v17971_v8  ;;  %v14829_v13 = vpop.f32.mrb[31].mxu0 }
 0xb85   :  { %v1593_v14 = vpop.f32.mrb[32].mxu0 }
 0xb86   :  { %v14840_v15 = vpop.f32.mrb[33].mxu0  ;;  %v1602_v16 = vsel %vm772_vm3, %v1593_v14, -inf }
 0xb87   :  { %1603 = vmax.xlane.f32.xlu1 %v1602_v16  ;;  %v1596_v17 = vpop.f32.mrb[34].mxu0 }
 0xb88   :  { %v14841_v18 = vpop.f32.mrb[35].mxu0 }
 0xb98   :  { %1671 = vrot.lane.b32.xlu1 %v17869_v61, %s17488_s10 }
 0xb9c   :  { %1776 = vrot.lane.b32.xlu1 %v17839_v42, %s17462_s0 }
 0xba0   :  { %1826 = vrot.lane.b32.xlu1 %v17841_v44, %s17462_s0 }
 0xba4   :  { %1824 = vrot.lane.b32.xlu1 %v17857_v51, %s17462_s0 }
 0xbcd   :  { %v1613_v24 = vpop.xlane.xlu0 %1612 }
 0xc14   :  { %v1604_v5 = vpop.xlane.xlu1 %1603 }
 0xc15   :  { %v1606_v8 = vsub.f32 %v1593_v14, %v1604_v5 }
 0xc17   :  { %v1609_v19 = vmul.f32 1.442695, %v1606_v8 }
 0xc18   :  { %v1672_v20 = vpop.permute.xlu1 %1671 }
 0xc19   :  { %16450 = vpow2.f32 %v1609_v19  ;;  %v1677_v21 = vsel %vm802_vm2, %v1672_v20, 0 }
 0xc1a   :  { %14849 = vmatpush3.bf16.msra.mxu0 %v1677_v21  ;;  %16452 = vrcp.f32 %v1613_v24 }
 0xc1b   :  { %14860 = vmatprep.subr.bf16.mxu0 %v17484_v1 }
 0xc1c   :  { %v1777_v36 = vpop.permute.xlu1 %1776 }
 0xc1d   :  { %v1782_v38 = vsel %vm679_vm1, %v1777_v36, 0 }
 0xc20   :  { %v1827_v48 = vpop.permute.xlu1 %1826 }
 0xc21   :  { %v1832_v55 = vsel %vm679_vm1, %v1827_v48, 0 }
 0xc23   :  { %v16451_v22 = vpop.eup %16450 }
 0xc24   :  { %v1614_v23 = vsel %vm772_vm3, %v16451_v22, 0.0  ;;  %v16453_v25 = vpop.eup %16452  ;;  %v1825_v62 = vpop.permute.xlu1 %1824 }
 0xc25   :  { %1615 = vadd.xlane.f32.xlu0 %v1614_v23  ;;  %v1618_v27 = vmul.f32 %v16453_v25, %v16449_v4 }
 0xc27   :  { %v1621_v32 = vpack.c.bf16 %v1618_v27, %v1618_v27 }
 0xc3b   :  { %1623 = vrot.lane.b32.xlu0 %v17867_v58, %s17488_s10 }
 0xc3f   :  { %1774 = vrot.lane.b32.xlu0 %v17848_v47, %s17462_s0 }
 0xcb2   :  { %v1616_v26 = vpop.xlane.xlu0 %1615 }
 0xcb3   :  { %16454 = vrcp.f32 %v1616_v26 }
 0xcb6   :  { %v1624_v28 = vpop.permute.xlu0 %1623 }
 0xcb7   :  { %v1629_v29 = vsel %vm802_vm2, %v1624_v28, 0 }
 0xcb8   :  { %14843 = vmatpush3.bf16.msra.mxu1 %v1629_v29 }
 0xcb9   :  { %14854 = vmatprep.subr.bf16.mxu1 %v17484_v1 }
 0xcba   :  { %v1775_v39 = vpop.permute.xlu0 %1774 }
 0xcbb   :  { %14845 = vmatmul.mubr.msk.bf16.vlgmr.msra.gmra.mrb[40].mxu1 %vm772_vm3, %v1621_v32 }
 0xcbc   :  { %14856 = vmatprep.mubr.msk.bf16.mxu1 %vm17485_vm0, %v17484_v1  ;;  %14855 = vmatpush3.bf16.msra.mxu1 %v15947_v40 }
 0xcbd   :  { %v16455_v34 = vpop.eup %16454  ;;  %14866 = vmatprep.subr.bf16.mxu1 %v17484_v1 }
 0xcbe   :  { %v1620_v35 = vmul.f32 %v16455_v34, %v16451_v22 }
 0xcc0   :  { %v1622_v37 = vpack.c.bf16 %v1620_v35, %v1620_v35 }
 0xcc2   :  { %14851 = vmatmul.mubr.msk.bf16.vlgmr.msra.gmra.mrb[36].mxu0 %vm772_vm3, %v1622_v37 }
 0xcc3   :  { %14861 = vmatpush3.bf16.xpose.msra.mxu0 %v1782_v38  ;;  %14862 = vmatprep.mubr.msk.bf16.mxu0 %vm17485_vm0, %v17484_v1 }
 0xcc4   :  { %14872 = vmatprep.subr.bf16.mxu0 %v17484_v1 }
 0xcca   :  { %14863 = vmatmul.mubr.msk.bf16.vlgmr.msra.gmra.mrb[40].mxu0 %vm679_vm1, %v1775_v39 }
 0xccb   :  { %14874 = vmatprep.mubr.msk.bf16.mxu0 %vm17485_vm0, %v17484_v1 }
 0xd8e   :  { %v1665_v41 = vpop.f32.mrb[40].mxu1 }
 0xd8f   :  { %v14846_v43 = vpop.f32.mrb[41].mxu1 }
 0xd90   :  { %v1668_v45 = vpop.f32.mrb[42].mxu1  ;;  %v15948_v43 = vld [vmem:[%s19807_s5 + $0x20] sm:$0xff]  }
 0xd91   :  { %v14847_v46 = vpop.f32.mrb[43].mxu1 }
 0xd95   :  { %v1713_v49 = vpop.f32.mrb[36].mxu0 }
 0xd96   :  { %v1721_v50 = vpack.c.bf16 %v1713_v49, %v1665_v41  ;;  %v14852_v53 = vpop.f32.mrb[37].mxu0 }
 0xd97   :  { %v1716_v54 = vpop.f32.mrb[38].mxu0 }
 0xd98   :  { %v14853_v56 = vpop.f32.mrb[39].mxu0  ;;  %14857 = vmatmul.mubr.msk.bf16.vlgmr.msra.gmra.mrb[44].mxu1 %vm679_vm1, %v1721_v50 }
 0xd99   :  { %14867 = vmatpush3.bf16.xpose.msra.mxu1 %v1832_v55  ;;  %14868 = vmatprep.mubr.msk.bf16.mxu1 %vm17485_vm0, %v17484_v1 }
 0xd9a   :  { %14878 = vmatprep.subr.bf16.mxu1 %v17484_v1 }
 0xd9d   :  { %v1818_v57 = vpop.f32.mrb[40].mxu0 }
 0xd9e   :  { %v14864_v59 = vpop.f32.mrb[41].mxu0  ;;  %v1874_v60 = vsel %vm772_vm3, %v1818_v57, -inf }
 0xd9f   :  { %1875 = vmax.xlane.f32.xlu0 %v1874_v60  ;;  %v1821_v63 = vpop.f32.mrb[42].mxu0 }
 0xda0   :  { %v14865_v2 = vpop.f32.mrb[43].mxu0  ;;  %14869 = vmatmul.mubr.msk.bf16.vlgmr.msra.gmra.mrb[48].mxu1 %vm679_vm1, %v1825_v62 }
 0xda1   :  { %14880 = vmatprep.mubr.msk.bf16.mxu1 %vm17485_vm0, %v17484_v1 }
 0xe2c   :  { %v1876_v3 = vpop.xlane.xlu0 %1875 }
 0xe2d   :  { %v1880_v4 = vsub.f32 %v1818_v57, %v1876_v3 }
 0xe2f   :  { %v1882_v6 = vmul.f32 1.442695, %v1880_v4 }
 0xe31   :  { %16456 = vpow2.f32 %v1882_v6 }
 0xe3b   :  { %v16457_v7 = vpop.eup %16456 }
 0xe3c   :  { %v1886_v10 = vsel %vm772_vm3, %v16457_v7, 0.0 }
 0xe3d   :  { %1887 = vadd.xlane.f32.xlu0 %v1886_v10 }
 0xe6b   :  { %v1765_v11 = vpop.f32.mrb[44].mxu1 }
 0xe6c   :  { %v14858_v13 = vpop.f32.mrb[45].mxu1  ;;  %v18053_v14 = vadd.f32 %v1765_v11, %v18006_v9 }
 0xe6d   :  { %v1768_v15 = vpop.f32.mrb[46].mxu1 }
 0xe6e   :  { %v14859_v16 = vpop.f32.mrb[47].mxu1  ;;  %v18056_v17 = vadd.f32 %v1768_v15, %v18009_v12 }
 0xe73   :  { %v1868_v18 = vpop.f32.mrb[48].mxu1 }
 0xe74   :  { %v14870_v5 = vpop.f32.mrb[49].mxu1  ;;  %v1877_v8 = vsel %vm772_vm3, %v1868_v18, -inf }
 0xe75   :  { %1878 = vmax.xlane.f32.xlu1 %v1877_v8  ;;  %v1871_v19 = vpop.f32.mrb[50].mxu1 }
 0xe76   :  { %v14871_v20 = vpop.f32.mrb[51].mxu1 }
 0xe86   :  { %1946 = vrot.lane.b32.xlu1 %v17869_v61, %s17462_s0 }
 0xe8a   :  { %2051 = vrot.lane.b32.xlu1 %v17839_v42, %s17489_s19 }
 0xe8e   :  { %2101 = vrot.lane.b32.xlu1 %v17841_v44, %s17489_s19 }
 0xe92   :  { %2099 = vrot.lane.b32.xlu1 %v17857_v51, %s17489_s19 }
 0xeca   :  { %v1888_v26 = vpop.xlane.xlu0 %1887 }
 0xf02   :  { %v1879_v9 = vpop.xlane.xlu1 %1878 }
 0xf03   :  { %v1881_v12 = vsub.f32 %v1868_v18, %v1879_v9 }
 0xf05   :  { %v1884_v21 = vmul.f32 1.442695, %v1881_v12 }
 0xf06   :  { %v1947_v22 = vpop.permute.xlu1 %1946 }
 0xf07   :  { %16458 = vpow2.f32 %v1884_v21  ;;  %v1952_v23 = vsel %vm802_vm2, %v1947_v22, 0 }
 0xf08   :  { %14879 = vmatpush3.bf16.msra.mxu1 %v1952_v23  ;;  %16460 = vrcp.f32 %v1888_v26 }
 0xf09   :  { %14890 = vmatprep.subr.bf16.mxu1 %v17484_v1 }
 0xf0a   :  { %v2052_v38 = vpop.permute.xlu1 %2051 }
 0xf0b   :  { %v2057_v40 = vsel %vm679_vm1, %v2052_v38, 0 }
 0xf0e   :  { %v2102_v50 = vpop.permute.xlu1 %2101 }
 0xf0f   :  { %v2107_v57 = vsel %vm679_vm1, %v2102_v50, 0 }
 0xf11   :  { %v16459_v24 = vpop.eup %16458 }
 0xf12   :  { %v1889_v25 = vsel %vm772_vm3, %v16459_v24, 0.0  ;;  %v16461_v27 = vpop.eup %16460  ;;  %v2100_v2 = vpop.permute.xlu1 %2099 }
 0xf13   :  { %1890 = vadd.xlane.f32.xlu0 %v1889_v25  ;;  %v1893_v29 = vmul.f32 %v16461_v27, %v16457_v7 }
 0xf15   :  { %v1896_v35 = vpack.c.bf16 %v1893_v29, %v1893_v29 }
 0xf29   :  { %1898 = vrot.lane.b32.xlu0 %v17867_v58, %s17462_s0 }
 0xf2d   :  { %2049 = vrot.lane.b32.xlu0 %v17848_v47, %s17489_s19 }
 0xfa0   :  { %v1891_v28 = vpop.xlane.xlu0 %1890 }
 0xfa1   :  { %16462 = vrcp.f32 %v1891_v28 }
 0xfa4   :  { %v1899_v32 = vpop.permute.xlu0 %1898 }
 0xfa5   :  { %v1904_v34 = vsel %vm802_vm2, %v1899_v32, 0 }
 0xfa6   :  { %14873 = vmatpush3.bf16.msra.mxu0 %v1904_v34 }
 0xfa7   :  { %14884 = vmatprep.subr.bf16.mxu0 %v17484_v1 }
 0xfa8   :  { %v2050_v41 = vpop.permute.xlu0 %2049 }
 0xfa9   :  { %14875 = vmatmul.mubr.msk.bf16.vlgmr.msra.gmra.mrb[44].mxu0 %vm772_vm3, %v1896_v35 }
 0xfaa   :  { %14886 = vmatprep.mubr.msk.bf16.mxu0 %vm17485_vm0, %v17484_v1  ;;  %14885 = vmatpush3.bf16.msra.mxu0 %v15948_v43 }
 0xfab   :  { %v16463_v36 = vpop.eup %16462  ;;  %14896 = vmatprep.subr.bf16.mxu0 %v17484_v1 }
 0xfac   :  { %v1895_v37 = vmul.f32 %v16463_v36, %v16459_v24 }
 0xfae   :  { %v1897_v39 = vpack.c.bf16 %v1895_v37, %v1895_v37 }
 0xfb0   :  { %14881 = vmatmul.mubr.msk.bf16.vlgmr.msra.gmra.mrb[52].mxu1 %vm772_vm3, %v1897_v39 }
 0xfb1   :  { %14891 = vmatpush3.bf16.xpose.msra.mxu1 %v2057_v40  ;;  %14892 = vmatprep.mubr.msk.bf16.mxu1 %vm17485_vm0, %v17484_v1 }
 0xfb2   :  { %14902 = vmatprep.subr.bf16.mxu1 %v17484_v1 }
 0xfb8   :  { %14893 = vmatmul.mubr.msk.bf16.vlgmr.msra.gmra.mrb[56].mxu1 %vm679_vm1, %v2050_v41 }
 0xfb9   :  { %14904 = vmatprep.mubr.msk.bf16.mxu1 %vm17485_vm0, %v17484_v1 }
0x107c   :  { %v1940_v45 = vpop.f32.mrb[44].mxu0 }
0x107d   :  { %v14876_v46 = vpop.f32.mrb[45].mxu0 }
0x107e   :  { %v1943_v48 = vpop.f32.mrb[46].mxu0  ;;  %v15949_v46 = vld [vmem:[%s19807_s5 + $0x28] sm:$0xff]  }
0x107f   :  { %v14877_v49 = vpop.f32.mrb[47].mxu0 }
0x1083   :  { %v1988_v53 = vpop.f32.mrb[52].mxu1 }
0x1084   :  { %v1996_v54 = vpack.c.bf16 %v1988_v53, %v1940_v45  ;;  %v14882_v55 = vpop.f32.mrb[53].mxu1 }
0x1085   :  { %v1991_v56 = vpop.f32.mrb[54].mxu1 }
0x1086   :  { %v14883_v59 = vpop.f32.mrb[55].mxu1  ;;  %14887 = vmatmul.mubr.msk.bf16.vlgmr.msra.gmra.mrb[48].mxu0 %vm679_vm1, %v1996_v54 }
0x1087   :  { %14897 = vmatpush3.bf16.xpose.msra.mxu0 %v2107_v57  ;;  %14898 = vmatprep.mubr.msk.bf16.mxu0 %vm17485_vm0, %v17484_v1 }
0x1088   :  { %14908 = vmatprep.subr.bf16.mxu0 %v17484_v1 }
0x108b   :  { %v2093_v60 = vpop.f32.mrb[56].mxu1 }
0x108c   :  { %v14894_v62 = vpop.f32.mrb[57].mxu1  ;;  %v2149_v63 = vsel %vm772_vm3, %v2093_v60, -inf }
0x108d   :  { %2150 = vmax.xlane.f32.xlu0 %v2149_v63  ;;  %v2096_v3 = vpop.f32.mrb[58].mxu1 }
0x108e   :  { %v14895_v4 = vpop.f32.mrb[59].mxu1  ;;  %14899 = vmatmul.mubr.msk.bf16.vlgmr.msra.gmra.mrb[52].mxu0 %vm679_vm1, %v2100_v2 }
0x108f   :  { %14910 = vmatprep.mubr.msk.bf16.mxu0 %vm17485_vm0, %v17484_v1 }
0x111a   :  { %v2151_v6 = vpop.xlane.xlu0 %2150 }
0x111b   :  { %v2155_v7 = vsub.f32 %v2093_v60, %v2151_v6 }
0x111d   :  { %v2157_v10 = vmul.f32 1.442695, %v2155_v7 }
0x111f   :  { %16464 = vpow2.f32 %v2157_v10 }
0x1129   :  { %v16465_v11 = vpop.eup %16464 }
0x112a   :  { %v2161_v13 = vsel %vm772_vm3, %v16465_v11, 0.0 }
0x112b   :  { %2162 = vadd.xlane.f32.xlu0 %v2161_v13 }
0x1159   :  { %v2040_v15 = vpop.f32.mrb[48].mxu0 }
0x115a   :  { %v18100_v16 = vadd.f32 %v2040_v15, %v18053_v14  ;;  %v14888_v18 = vpop.f32.mrb[49].mxu0 }
0x115b   :  { %v2043_v5 = vpop.f32.mrb[50].mxu0 }
0x115c   :  { %v18103_v8 = vadd.f32 %v2043_v5, %v18056_v17  ;;  %v14889_v19 = vpop.f32.mrb[51].mxu0 }
0x1161   :  { %v2143_v20 = vpop.f32.mrb[52].mxu0 }
0x1162   :  { %v14900_v9 = vpop.f32.mrb[53].mxu0  ;;  %v2152_v12 = vsel %vm772_vm3, %v2143_v20, -inf }
0x1163   :  { %2153 = vmax.xlane.f32.xlu1 %v2152_v12  ;;  %v2146_v21 = vpop.f32.mrb[54].mxu0 }
0x1164   :  { %v14901_v22 = vpop.f32.mrb[55].mxu0 }
0x1174   :  { %2221 = vrot.lane.b32.xlu1 %v17869_v61, %s17489_s19 }
0x1178   :  { %2326 = vrot.lane.b32.xlu1 %v17839_v42, %s17490_s11 }
0x117c   :  { %2376 = vrot.lane.b32.xlu1 %v17841_v44, %s17490_s11 }
0x1180   :  { %2374 = vrot.lane.b32.xlu1 %v17857_v51, %s17490_s11 }
0x11b8   :  { %v2163_v28 = vpop.xlane.xlu0 %2162 }
0x11f0   :  { %v2154_v14 = vpop.xlane.xlu1 %2153 }
0x11f1   :  { %v2156_v17 = vsub.f32 %v2143_v20, %v2154_v14 }
0x11f3   :  { %v2159_v23 = vmul.f32 1.442695, %v2156_v17 }
0x11f4   :  { %v2222_v24 = vpop.permute.xlu1 %2221 }
0x11f5   :  { %16466 = vpow2.f32 %v2159_v23  ;;  %v2227_v25 = vsel %vm802_vm2, %v2222_v24, 0 }
0x11f6   :  { %14909 = vmatpush3.bf16.msra.mxu0 %v2227_v25  ;;  %16468 = vrcp.f32 %v2163_v28 }
0x11f7   :  { %14920 = vmatprep.subr.bf16.mxu0 %v17484_v1 }
0x11f8   :  { %v2327_v40 = vpop.permute.xlu1 %2326 }
0x11f9   :  { %v2332_v43 = vsel %vm679_vm1, %v2327_v40, 0 }
0x11fc   :  { %v2377_v54 = vpop.permute.xlu1 %2376 }
0x11fd   :  { %v2382_v60 = vsel %vm679_vm1, %v2377_v54, 0 }
0x11ff   :  { %v16467_v26 = vpop.eup %16466 }
0x1200   :  { %v2164_v27 = vsel %vm772_vm3, %v16467_v26, 0.0  ;;  %v16469_v29 = vpop.eup %16468  ;;  %v2375_v4 = vpop.permute.xlu1 %2374 }
0x1201   :  { %2165 = vadd.xlane.f32.xlu0 %v2164_v27  ;;  %v2168_v34 = vmul.f32 %v16469_v29, %v16465_v11 }
0x1203   :  { %v2171_v37 = vpack.c.bf16 %v2168_v34, %v2168_v34 }
0x1217   :  { %2173 = vrot.lane.b32.xlu0 %v17867_v58, %s17489_s19 }
0x121b   :  { %2324 = vrot.lane.b32.xlu0 %v17848_v47, %s17490_s11 }
0x128e   :  { %v2166_v32 = vpop.xlane.xlu0 %2165 }
0x128f   :  { %16470 = vrcp.f32 %v2166_v32 }
0x1292   :  { %v2174_v35 = vpop.permute.xlu0 %2173 }
0x1293   :  { %v2179_v36 = vsel %vm802_vm2, %v2174_v35, 0 }
0x1294   :  { %14903 = vmatpush3.bf16.msra.mxu1 %v2179_v36 }
0x1295   :  { %14914 = vmatprep.subr.bf16.mxu1 %v17484_v1 }
0x1296   :  { %v2325_v45 = vpop.permute.xlu0 %2324 }
0x1297   :  { %14905 = vmatmul.mubr.msk.bf16.vlgmr.msra.gmra.mrb[60].mxu1 %vm772_vm3, %v2171_v37 }
0x1298   :  { %14916 = vmatprep.mubr.msk.bf16.mxu1 %vm17485_vm0, %v17484_v1  ;;  %14915 = vmatpush3.bf16.msra.mxu1 %v15949_v46 }
0x1299   :  { %v16471_v38 = vpop.eup %16470  ;;  %14926 = vmatprep.subr.bf16.mxu1 %v17484_v1 }
0x129a   :  { %v2170_v39 = vmul.f32 %v16471_v38, %v16467_v26 }
0x129c   :  { %v2172_v41 = vpack.c.bf16 %v2170_v39, %v2170_v39 }
0x129e   :  { %14911 = vmatmul.mubr.msk.bf16.vlgmr.msra.gmra.mrb[56].mxu0 %vm772_vm3, %v2172_v41 }
0x129f   :  { %14921 = vmatpush3.bf16.xpose.msra.mxu0 %v2332_v43  ;;  %14922 = vmatprep.mubr.msk.bf16.mxu0 %vm17485_vm0, %v17484_v1  ;;  %v15950_v43 = vld [vmem:[%s19807_s5 + $0x30] sm:$0xff]  }
0x12a0   :  { %14932 = vmatprep.subr.bf16.mxu0 %v17484_v1 }
0x12a6   :  { %14923 = vmatmul.mubr.msk.bf16.vlgmr.msra.gmra.mrb[60].mxu0 %vm679_vm1, %v2325_v45 }
0x12a7   :  { %14934 = vmatprep.mubr.msk.bf16.mxu0 %vm17485_vm0, %v17484_v1 }
0x136a   :  { %v2215_v48 = vpop.f32.mrb[60].mxu1 }
0x136b   :  { %v14906_v49 = vpop.f32.mrb[61].mxu1 }
0x136c   :  { %v2218_v50 = vpop.f32.mrb[62].mxu1 }
0x136d   :  { %v14907_v53 = vpop.f32.mrb[63].mxu1 }
0x1371   :  { %v2263_v55 = vpop.f32.mrb[56].mxu0 }
0x1372   :  { %v2271_v56 = vpack.c.bf16 %v2263_v55, %v2215_v48  ;;  %v14912_v57 = vpop.f32.mrb[57].mxu0 }
0x1373   :  { %v2266_v59 = vpop.f32.mrb[58].mxu0 }
0x1374   :  { %v14913_v62 = vpop.f32.mrb[59].mxu0  ;;  %14917 = vmatmul.mubr.msk.bf16.vlgmr.msra.gmra.mrb[64].mxu1 %vm679_vm1, %v2271_v56 }
0x1375   :  { %14927 = vmatpush3.bf16.xpose.msra.mxu1 %v2382_v60  ;;  %14928 = vmatprep.mubr.msk.bf16.mxu1 %vm17485_vm0, %v17484_v1 }
0x1376   :  { %14938 = vmatprep.subr.bf16.mxu1 %v17484_v1 }
0x1379   :  { %v2368_v63 = vpop.f32.mrb[60].mxu0 }
0x137a   :  { %v14924_v2 = vpop.f32.mrb[61].mxu0  ;;  %v2424_v3 = vsel %vm772_vm3, %v2368_v63, -inf }
0x137b   :  { %2425 = vmax.xlane.f32.xlu0 %v2424_v3  ;;  %v2371_v6 = vpop.f32.mrb[62].mxu0 }
0x137c   :  { %v14925_v7 = vpop.f32.mrb[63].mxu0  ;;  %14929 = vmatmul.mubr.msk.bf16.vlgmr.msra.gmra.mrb[68].mxu1 %vm679_vm1, %v2375_v4 }
0x137d   :  { %14940 = vmatprep.mubr.msk.bf16.mxu1 %vm17485_vm0, %v17484_v1 }
0x1408   :  { %v2426_v10 = vpop.xlane.xlu0 %2425 }
0x1409   :  { %v2430_v11 = vsub.f32 %v2368_v63, %v2426_v10 }
0x140b   :  { %v2432_v13 = vmul.f32 1.442695, %v2430_v11 }
0x140d   :  { %16472 = vpow2.f32 %v2432_v13 }
0x1417   :  { %v16473_v15 = vpop.eup %16472 }
0x1418   :  { %v2436_v18 = vsel %vm772_vm3, %v16473_v15, 0.0 }
0x1419   :  { %2437 = vadd.xlane.f32.xlu0 %v2436_v18 }
0x1447   :  { %v2315_v5 = vpop.f32.mrb[64].mxu1 }
0x1448   :  { %v18147_v19 = vadd.f32 %v2315_v5, %v18100_v16  ;;  %v14918_v20 = vpop.f32.mrb[65].mxu1 }
0x1449   :  { %v2318_v9 = vpop.f32.mrb[66].mxu1 }
0x144a   :  { %v18150_v12 = vadd.f32 %v2318_v9, %v18103_v8  ;;  %v14919_v21 = vpop.f32.mrb[67].mxu1 }
0x144f   :  { %v2418_v22 = vpop.f32.mrb[68].mxu1 }
0x1450   :  { %v14930_v14 = vpop.f32.mrb[69].mxu1  ;;  %v2427_v17 = vsel %vm772_vm3, %v2418_v22, -inf }
0x1451   :  { %2428 = vmax.xlane.f32.xlu1 %v2427_v17  ;;  %v2421_v23 = vpop.f32.mrb[70].mxu1 }
0x1452   :  { %v14931_v24 = vpop.f32.mrb[71].mxu1 }
0x1462   :  { %2496 = vrot.lane.b32.xlu1 %v17869_v61, %s17490_s11 }
0x1466   :  { %2601 = vrot.lane.b32.xlu1 %v17839_v42, %s17460_s9 }
0x146a   :  { %2651 = vrot.lane.b32.xlu1 %v17841_v44, %s17460_s9 }
0x146e   :  { %2649 = vrot.lane.b32.xlu1 %v17857_v51, %s17460_s9 }
0x14a6   :  { %v2438_v42 = vpop.xlane.xlu0 %2437 }
0x14de   :  { %v2429_v16 = vpop.xlane.xlu1 %2428 }
0x14df   :  { %v2431_v8 = vsub.f32 %v2418_v22, %v2429_v16 }
0x14e1   :  { %v2434_v25 = vmul.f32 1.442695, %v2431_v8 }
0x14e2   :  { %v2497_v26 = vpop.permute.xlu1 %2496 }
0x14e3   :  { %16474 = vpow2.f32 %v2434_v25  ;;  %v2502_v27 = vsel %vm802_vm2, %v2497_v26, 0 }
0x14e4   :  { %14939 = vmatpush3.bf16.msra.mxu1 %v2502_v27  ;;  %16476 = vrcp.f32 %v2438_v42 }
0x14e5   :  { %14950 = vmatprep.subr.bf16.mxu1 %v17484_v1 }
0x14e6   :  { %v2602_v38 = vpop.permute.xlu1 %2601 }
0x14e7   :  { %v2607_v40 = vsel %vm679_vm1, %v2602_v38, 0  ;;  %v15957_v38 = vld [vmem:[#allocation8 + $0xc] ss:$16 sps:$4 sm:$0xff]  }
0x14ea   :  { %v2652_v50 = vpop.permute.xlu1 %2651 }
0x14eb   :  { %v2657_v57 = vsel %vm679_vm1, %v2652_v50, 0  ;;  %v15984_v50 = vld [vmem:[#allocation8 + $0xa4] ss:$16 sps:$4 sm:$0xff]  }
0x14ed   :  { %v16475_v28 = vpop.eup %16474 }
0x14ee   :  { %v2439_v29 = vsel %vm772_vm3, %v16475_v28, 0.0  ;;  %v16477_v44 = vpop.eup %16476  ;;  %v2650_v2 = vpop.permute.xlu1 %2649 }
0x14ef   :  { %2440 = vadd.xlane.f32.xlu0 %v2439_v29  ;;  %v2443_v32 = vmul.f32 %v16477_v44, %v16473_v15 }
0x14f1   :  { %v2446_v36 = vpack.c.bf16 %v2443_v32, %v2443_v32 }
0x1505   :  { %2448 = vrot.lane.b32.xlu0 %v17867_v58, %s17490_s11 }
0x1509   :  { %2599 = vrot.lane.b32.xlu0 %v17848_v47, %s17460_s9 }
0x157c   :  { %v2441_v51 = vpop.xlane.xlu0 %2440 }
0x157d   :  { %16478 = vrcp.f32 %v2441_v51 }
0x1580   :  { %v2449_v34 = vpop.permute.xlu0 %2448 }
0x1581   :  { %v2454_v35 = vsel %vm802_vm2, %v2449_v34, 0 }
0x1582   :  { %14933 = vmatpush3.bf16.msra.mxu0 %v2454_v35 }
0x1583   :  { %14944 = vmatprep.subr.bf16.mxu0 %v17484_v1 }
0x1584   :  { %v2600_v41 = vpop.permute.xlu0 %2599 }
0x1585   :  { %14935 = vmatmul.mubr.msk.bf16.vlgmr.msra.gmra.mrb[64].mxu0 %vm772_vm3, %v2446_v36  ;;  %v15951_v36 = vld [vmem:[%s19807_s5 + $0x38] sm:$0xff]  }
0x1586   :  { %14946 = vmatprep.mubr.msk.bf16.mxu0 %vm17485_vm0, %v17484_v1  ;;  %14945 = vmatpush3.bf16.msra.mxu0 %v15950_v43  ;;  %v15964_v43 = vld [vmem:[#allocation8 + $0x40] ss:$16 sps:$4 sm:$0xff]  }
0x1587   :  { %v16479_v47 = vpop.eup %16478  ;;  %14956 = vmatprep.subr.bf16.mxu0 %v17484_v1 }
0x1588   :  { %v2445_v37 = vmul.f32 %v16479_v47, %v16475_v28  ;;  %v15952_v47 = vld [vmem:[#allocation8] ss:$16 sps:$4 sm:$0xff]  }
0x158a   :  { %v2447_v39 = vpack.c.bf16 %v2445_v37, %v2445_v37  ;;  %v15954_v37 = vld [vmem:[#allocation8 + $0x4] ss:$16 sps:$4 sm:$0xff]  }
0x158c   :  { %14941 = vmatmul.mubr.msk.bf16.vlgmr.msra.gmra.mrb[72].mxu1 %vm772_vm3, %v2447_v39  ;;  %v15960_v39 = vld [vmem:[#allocation8 + $0x24] ss:$16 sps:$4 sm:$0xff]  }
0x158d   :  { %14951 = vmatpush3.bf16.xpose.msra.mxu1 %v2607_v40  ;;  %14952 = vmatprep.mubr.msk.bf16.mxu1 %vm17485_vm0, %v17484_v1  ;;  %v15958_v40 = vld [vmem:[#allocation8 + $0x20] ss:$16 sps:$4 sm:$0xff]  }
0x158e   :  { %14962 = vmatprep.subr.bf16.mxu1 %v17484_v1 }
0x1594   :  { %14953 = vmatmul.mubr.msk.bf16.vlgmr.msra.gmra.mrb[76].mxu1 %vm679_vm1, %v2600_v41  ;;  %v15966_v41 = vld [vmem:[#allocation8 + $0x44] ss:$16 sps:$4 sm:$0xff]  }
0x1595   :  { %14964 = vmatprep.mubr.msk.bf16.mxu1 %vm17485_vm0, %v17484_v1 }
0x1658   :  { %v2490_v45 = vpop.f32.mrb[64].mxu0 }
0x1659   :  { %v14936_v46 = vpop.f32.mrb[65].mxu0 }
0x165a   :  { %v2493_v48 = vpop.f32.mrb[66].mxu0  ;;  %v15970_v46 = vld [vmem:[#allocation8 + $0x60] ss:$16 sps:$4 sm:$0xff]  }
0x165b   :  { %v14937_v49 = vpop.f32.mrb[67].mxu0  ;;  %v15978_v48 = vld [vmem:[#allocation8 + $0x84] ss:$16 sps:$4 sm:$0xff]  }
0x165c   :  { %v15976_v49 = vld [vmem:[#allocation8 + $0x80] ss:$16 sps:$4 sm:$0xff]  }
0x165f   :  { %v2538_v53 = vpop.f32.mrb[72].mxu1 }
0x1660   :  { %v2546_v54 = vpack.c.bf16 %v2538_v53, %v2490_v45  ;;  %v14942_v55 = vpop.f32.mrb[73].mxu1  ;;  %v15972_v45 = vld [vmem:[#allocation8 + $0x64] ss:$16 sps:$4 sm:$0xff]   ;;  %v15982_v53 = vld [vmem:[#allocation8 + $0xa0] ss:$16 sps:$4 sm:$0xff]  }
0x1661   :  { %v2541_v56 = vpop.f32.mrb[74].mxu1 }
0x1662   :  { %v14943_v59 = vpop.f32.mrb[75].mxu1  ;;  %14947 = vmatmul.mubr.msk.bf16.vlgmr.msra.gmra.mrb[68].mxu0 %vm679_vm1, %v2546_v54 }
0x1663   :  { %14957 = vmatpush3.bf16.xpose.msra.mxu0 %v2657_v57  ;;  %14958 = vmatprep.mubr.msk.bf16.mxu0 %vm17485_vm0, %v17484_v1 }
0x1664   :  { %14968 = vmatprep.subr.bf16.mxu0 %v17484_v1 }
0x1667   :  { %v2643_v60 = vpop.f32.mrb[76].mxu1 }
0x1668   :  { %v14954_v62 = vpop.f32.mrb[77].mxu1  ;;  %v2699_v63 = vsel %vm772_vm3, %v2643_v60, -inf }
0x1669   :  { %2700 = vmax.xlane.f32.xlu0 %v2699_v63  ;;  %v2646_v3 = vpop.f32.mrb[78].mxu1 }
0x166a   :  { %v14955_v4 = vpop.f32.mrb[79].mxu1  ;;  %14959 = vmatmul.mubr.msk.bf16.vlgmr.msra.gmra.mrb[72].mxu0 %vm679_vm1, %v2650_v2  ;;  %v15963_v2 = vld [vmem:[#allocation8 + $0x2c] ss:$16 sps:$4 sm:$0xff]  }
0x166b   :  { %14970 = vmatprep.mubr.msk.bf16.mxu0 %vm17485_vm0, %v17484_v1 }
0x16f6   :  { %v2701_v6 = vpop.xlane.xlu0 %2700 }
0x16f7   :  { %v2705_v7 = vsub.f32 %v2643_v60, %v2701_v6  ;;  %v15955_v60 = vld [vmem:[#allocation8 + $0x8] ss:$16 sps:$4 sm:$0xff]  }
0x16f8   :  { %v15961_v6 = vld [vmem:[#allocation8 + $0x28] ss:$16 sps:$4 sm:$0xff]  }
0x16f9   :  { %v2707_v10 = vmul.f32 1.442695, %v2705_v7  ;;  %v15969_v7 = vld [vmem:[#allocation8 + $0x4c] ss:$16 sps:$4 sm:$0xff]  }
0x16fb   :  { %16480 = vpow2.f32 %v2707_v10  ;;  %v15967_v10 = vld [vmem:[#allocation8 + $0x48] ss:$16 sps:$4 sm:$0xff]  }
0x1705   :  { %v16481_v11 = vpop.eup %16480 }
0x1706   :  { %v2711_v13 = vsel %vm772_vm3, %v16481_v11, 0.0 }
0x1707   :  { %2712 = vadd.xlane.f32.xlu0 %v2711_v13  ;;  %v15973_v13 = vld [vmem:[#allocation8 + $0x68] ss:$16 sps:$4 sm:$0xff]  }
0x1735   :  { %v2590_v15 = vpop.f32.mrb[68].mxu0 }
0x1736   :  { %v18194_v18 = vadd.f32 %v2590_v15, %v18147_v19  ;;  %v14948_v5 = vpop.f32.mrb[69].mxu0  ;;  %v15981_v15 = vld [vmem:[#allocation8 + $0x8c] ss:$16 sps:$4 sm:$0xff]  }
0x1737   :  { %v2593_v20 = vpop.f32.mrb[70].mxu0  ;;  %v15979_v5 = vld [vmem:[#allocation8 + $0x88] ss:$16 sps:$4 sm:$0xff]  }
0x1738   :  { %v18197_v9 = vadd.f32 %v2593_v20, %v18150_v12  ;;  %v14949_v21 = vpop.f32.mrb[71].mxu0  ;;  %v15987_v20 = vld [vmem:[#allocation8 + $0xac] ss:$16 sps:$4 sm:$0xff]  }
0x1739   :  { %v15985_v21 = vld [vmem:[#allocation8 + $0xa8] ss:$16 sps:$4 sm:$0xff]  }
0x173d   :  { %v2693_v22 = vpop.f32.mrb[72].mxu0 }
0x173e   :  { %v14960_v14 = vpop.f32.mrb[73].mxu0  ;;  %v2702_v17 = vsel %vm772_vm3, %v2693_v22, -inf }
0x173f   :  { %2703 = vmax.xlane.f32.xlu1 %v2702_v17  ;;  %v2696_v23 = vpop.f32.mrb[74].mxu0  ;;  %v15993_v14 = vld [vmem:[#allocation8 + $0xcc] ss:$16 sps:$4 sm:$0xff]   ;;  %v15988_v17 = vld [vmem:[#allocation8 + $0xc0] ss:$16 sps:$4 sm:$0xff]  }
0x1740   :  { %v14961_v24 = vpop.f32.mrb[75].mxu0  ;;  %v15991_v23 = vld [vmem:[#allocation8 + $0xc8] ss:$16 sps:$4 sm:$0xff]  }
0x1741   :  { %v15994_v24 = vld [vmem:[#allocation8 + $0xe0] ss:$16 sps:$4 sm:$0xff]  }
0x1750   :  { %2771 = vrot.lane.b32.xlu1 %v17869_v61, %s17460_s9 }
0x1794   :  { %v2713_v28 = vpop.xlane.xlu0 %2712 }
0x17cc   :  { %v2704_v16 = vpop.xlane.xlu1 %2703 }
0x17cd   :  { %v2706_v8 = vsub.f32 %v2693_v22, %v2704_v16  ;;  %v15990_v22 = vld [vmem:[#allocation8 + $0xc4] ss:$16 sps:$4 sm:$0xff]  }
0x17ce   :  { %v15996_v16 = vld [vmem:[#allocation8 + $0xe4] ss:$16 sps:$4 sm:$0xff]  }
0x17cf   :  { %v2709_v19 = vmul.f32 1.442695, %v2706_v8  ;;  %v15997_v8 = vld [vmem:[#allocation8 + $0xe8] ss:$16 sps:$4 sm:$0xff]  }
0x17d0   :  { %v2772_v25 = vpop.permute.xlu1 %2771 }
0x17d1   :  { %16482 = vpow2.f32 %v2709_v19  ;;  %v2777_v26 = vsel %vm802_vm2, %v2772_v25, 0  ;;  %v15999_v19 = vld [vmem:[#allocation8 + $0xec] ss:$16 sps:$4 sm:$0xff]  }
0x17d2   :  { %14969 = vmatpush3.bf16.msra.mxu0 %v2777_v26  ;;  %16484 = vrcp.f32 %v2713_v28  ;;  %v16002_v25 = vld [vmem:[#allocation10 + $0x4] ss:$8 sps:$4 sm:$0xff]   ;;  %v13783_v28 = vld [vmem:[%s19808_s12] ss:$0 sm:$0xff] }
0x17d3   :  { %3098 = vmatprep.subr.bf16.mxu0 %v15954_v37  ;;  %v16009_v37 = vld [vmem:[#allocation10 + $0x30] ss:$8 sps:$4 sm:$0xff]  }
0x17db   :  { %v16483_v12 = vpop.eup %16482 }
0x17dc   :  { %v2714_v27 = vsel %vm772_vm3, %v16483_v12, 0.0  ;;  %v16485_v29 = vpop.eup %16484 }
0x17dd   :  { %2715 = vadd.xlane.f32.xlu0 %v2714_v27  ;;  %v2718_v42 = vmul.f32 %v16485_v29, %v16481_v11  ;;  %v15975_v11 = vld [vmem:[#allocation8 + $0x6c] ss:$16 sps:$4 sm:$0xff]  }
0x17df   :  { %v2721_v32 = vpack.c.bf16 %v2718_v42, %v2718_v42 }
0x17f3   :  { %2723 = vrot.lane.b32.xlu0 %v17867_v58, %s17460_s9 }
0x186a   :  { %v2716_v61 = vpop.xlane.xlu0 %2715 }
0x186b   :  { %16486 = vrcp.f32 %v2716_v61 }
0x186e   :  { %v2724_v44 = vpop.permute.xlu0 %2723 }
0x186f   :  { %v2729_v51 = vsel %vm802_vm2, %v2724_v44, 0 }
0x1870   :  { %14963 = vmatpush3.bf16.msra.mxu1 %v2729_v51 }
0x1871   :  { %14974 = vmatprep.subr.bf16.mxu1 %v17484_v1 }
0x1873   :  { %14965 = vmatmul.mubr.msk.bf16.vlgmr.msra.gmra.mrb[80].mxu1 %vm772_vm3, %v2721_v32  ;;  %v16000_v32 = vld [vmem:[#allocation10] ss:$8 sps:$4 sm:$0xff]  }
0x1874   :  { %14976 = vmatprep.mubr.msk.bf16.mxu1 %vm17485_vm0, %v17484_v1  ;;  %14975 = vmatpush3.bf16.msra.mxu1 %v15951_v36  ;;  %v16008_v36 = vld [vmem:[#allocation10 + $0x24] ss:$8 sps:$4 sm:$0xff]  }
0x1875   :  { %v16487_v58 = vpop.eup %16486  ;;  %3141 = vmatprep.subr.bf16.mxu1 %v15957_v38  ;;  %v16012_v38 = vld [vmem:[#allocation10 + $0x40] ss:$8 sps:$4 sm:$0xff]  }
0x1876   :  { %v2720_v34 = vmul.f32 %v16487_v58, %v16483_v12 }
0x1878   :  { %v2722_v35 = vpack.c.bf16 %v2720_v34, %v2720_v34  ;;  %v16005_v34 = vld [vmem:[#allocation10 + $0x14] ss:$8 sps:$4 sm:$0xff]  }
0x187a   :  { %14971 = vmatmul.mubr.msk.bf16.vlgmr.msra.gmra.mrb[76].mxu0 %vm772_vm3, %v2722_v35  ;;  %v16003_v35 = vld [vmem:[#allocation10 + $0x10] ss:$8 sps:$4 sm:$0xff]  }
0x187b   :  { %3130 = vmatprep.mubr.bf16.mxu0 %v17483_v0  ;;  %3099 = vmatpush1.bf16.msra.mxu0 %v15952_v47  ;;  %v16006_v47 = vld [vmem:[#allocation10 + $0x20] ss:$8 sps:$4 sm:$0xff]  }
0x187c   :  { %3100 = vmatprep.subr.bf16.mxu0 %v15960_v39  ;;  %v16017_v39 = vld [vmem:[#allocation10 + $0x54] ss:$8 sps:$4 sm:$0xff]  }
0x187f   :  { %3101 = vmatpush1.bf16.msra.mxu0 %v15958_v40  ;;  %v16015_v40 = vld [vmem:[#allocation10 + $0x50] ss:$8 sps:$4 sm:$0xff]  }
0x1880   :  { %3102 = vmatprep.subr.bf16.mxu0 %v15966_v41  ;;  %v16020_v41 = vld [vmem:[#allocation10 + $0x64] ss:$8 sps:$4 sm:$0xff]  }
0x1883   :  { %3103 = vmatpush1.bf16.msra.mxu0 %v15964_v43  ;;  %v16018_v43 = vld [vmem:[#allocation10 + $0x60] ss:$8 sps:$4 sm:$0xff]  }
0x1884   :  { %3104 = vmatprep.subr.bf16.mxu0 %v15972_v45  ;;  %v16023_v45 = vld [vmem:[#allocation10 + $0x74] ss:$8 sps:$4 sm:$0xff]  }
0x1887   :  { %3105 = vmatpush1.bf16.msra.mxu0 %v15970_v46  ;;  %v16021_v46 = vld [vmem:[#allocation10 + $0x70] ss:$8 sps:$4 sm:$0xff]  }
0x1888   :  { %3106 = vmatprep.subr.bf16.mxu0 %v15978_v48  ;;  %v16026_v48 = vld [vmem:[#allocation10 + $0x84] ss:$8 sps:$4 sm:$0xff]  }
0x188b   :  { %3107 = vmatpush1.bf16.msra.mxu0 %v15976_v49  ;;  %v16024_v49 = vld [vmem:[#allocation10 + $0x80] ss:$8 sps:$4 sm:$0xff]  }
0x188c   :  { %3108 = vmatprep.subr.bf16.mxu0 %v15984_v50  ;;  %v16029_v50 = vld [vmem:[#allocation10 + $0x94] ss:$8 sps:$4 sm:$0xff]  }
0x188f   :  { %3109 = vmatpush1.bf16.msra.mxu0 %v15982_v53  ;;  %v16027_v53 = vld [vmem:[#allocation10 + $0x90] ss:$8 sps:$4 sm:$0xff]  }
0x1890   :  { %3110 = vmatprep.subr.bf16.mxu0 %v15990_v22 }
0x1893   :  { %3111 = vmatpush1.bf16.msra.mxu0 %v15988_v17 }
0x1894   :  { %3112 = vmatprep.subr.bf16.mxu0 %v15996_v16 }
0x1897   :  { %3113 = vmatpush1.bf16.msra.mxu0 %v15994_v24 }
0x1898   :  { %3656 = vmatprep.subr.bf16.mxu0 %v16002_v25 }
0x1946   :  { %v2765_v54 = vpop.f32.mrb[80].mxu1 }
0x1947   :  { %v14966_v55 = vpop.f32.mrb[81].mxu1 }
0x1948   :  { %v2768_v56 = vpop.f32.mrb[82].mxu1  ;;  %v16032_v55 = vld [vmem:[#allocation10 + $0xa4] ss:$8 sps:$4 sm:$0xff]  }
0x1949   :  { %v14967_v57 = vpop.f32.mrb[83].mxu1  ;;  %v16035_v56 = vld [vmem:[#allocation10 + $0xb4] ss:$8 sps:$4 sm:$0xff]  }
0x194a   :  { %v16033_v57 = vld [vmem:[#allocation10 + $0xb0] ss:$8 sps:$4 sm:$0xff]  }
0x194d   :  { %v2813_v59 = vpop.f32.mrb[76].mxu0 }
0x194e   :  { %v2821_v62 = vpack.c.bf16 %v2813_v59, %v2765_v54  ;;  %v14972_v63 = vpop.f32.mrb[77].mxu0  ;;  %v16030_v54 = vld [vmem:[#allocation10 + $0xa0] ss:$8 sps:$4 sm:$0xff]   ;;  %v16038_v59 = vld [vmem:[#allocation10 + $0xc4] ss:$8 sps:$4 sm:$0xff]  }
0x194f   :  { %v2816_v3 = vpop.f32.mrb[78].mxu0  ;;  %v16039_v63 = vld [vmem:[#allocation10 + $0xd0] ss:$8 sps:$4 sm:$0xff]  }
0x1950   :  { %v14973_v4 = vpop.f32.mrb[79].mxu0  ;;  %14977 = vmatmul.mubr.msk.bf16.vlgmr.msra.gmra.mrb[84].mxu1 %vm679_vm1, %v2821_v62  ;;  %v16041_v62 = vld [vmem:[#allocation10 + $0xd4] ss:$8 sps:$4 sm:$0xff]   ;;  %v16042_v3 = vld [vmem:[#allocation10 + $0xe0] ss:$8 sps:$4 sm:$0xff]  }
0x1951   :  { %3142 = vmatpush1.bf16.msra.mxu1 %v15955_v60  ;;  %3173 = vmatprep.mubr.bf16.mxu1 %v17483_v0  ;;  %v16036_v60 = vld [vmem:[#allocation10 + $0xc0] ss:$8 sps:$4 sm:$0xff]   ;;  %v16047_v4 = vld [vmem:[#allocation10 + $0xf4] ss:$8 sps:$4 sm:$0xff]  }
0x1952   :  { %3143 = vmatprep.subr.bf16.mxu1 %v15963_v2  ;;  %v16044_v2 = vld [vmem:[#allocation10 + $0xe4] ss:$8 sps:$4 sm:$0xff]  }
0x1955   :  { %3144 = vmatpush1.bf16.msra.mxu1 %v15961_v6  ;;  %v16045_v6 = vld [vmem:[#allocation10 + $0xf0] ss:$8 sps:$4 sm:$0xff]  }
0x1956   :  { %3145 = vmatprep.subr.bf16.mxu1 %v15969_v7  ;;  %v16050_v7 = vld [vmem:[#allocation10 + $0x104] ss:$8 sps:$4 sm:$0xff]  }
0x1959   :  { %3146 = vmatpush1.bf16.msra.mxu1 %v15967_v10  ;;  %v2916_v10 = vld [vmem:[%s19809_s3] sm:$0xf] }
0x195a   :  { %3147 = vmatprep.subr.bf16.mxu1 %v15975_v11  ;;  %v2932_v11 = vsub.s32 3, %v17828_v30 }
0x195d   :  { %3148 = vmatpush1.bf16.msra.mxu1 %v15973_v13  ;;  %v2921_v13 = vrot.slane %v2916_v10, %v17835_v33 }
0x195e   :  { %3149 = vmatprep.subr.bf16.mxu1 %v15981_v15  ;;  %v2929_v15 = vrot.slane %v2916_v10, %v17864_v52 }
0x1961   :  { %3150 = vmatpush1.bf16.msra.mxu1 %v15979_v5  ;;  %v2925_v5 = vrot.slane %v2916_v10, %v17831_v31 }
0x1962   :  { %3151 = vmatprep.subr.bf16.mxu1 %v15987_v20  ;;  %v2933_v20 = vrot.slane %v2916_v10, %v2932_v11 }
0x1965   :  { %3152 = vmatpush1.bf16.msra.mxu1 %v15985_v21 }
0x1966   :  { %3153 = vmatprep.subr.bf16.mxu1 %v15993_v14 }
0x1969   :  { %3154 = vmatpush1.bf16.msra.mxu1 %v15991_v23 }
0x196a   :  { %3155 = vmatprep.subr.bf16.mxu1 %v15999_v19 }
0x196d   :  { %3156 = vmatpush1.bf16.msra.mxu1 %v15997_v8 }
0x1a23   :  { %v2865_v26 = vpop.f32.mrb[84].mxu1 }
0x1a24   :  { %v2872_v12 = vadd.f32 %v2865_v26, %v18194_v18  ;;  %v14978_v27 = vpop.f32.mrb[85].mxu1  ;;  %v16011_v18 = vld [vmem:[#allocation10 + $0x34] ss:$8 sps:$4 sm:$0xff]  }
0x1a25   :  { %v2868_v29 = vpop.f32.mrb[86].mxu1 }
0x1a26   :  { %v2873_v61 = vadd.f32 %v2868_v29, %v18197_v9  ;;  %v14979_v42 = vpop.f32.mrb[87].mxu1  ;;  %v2881_v44 = vadd.f32 %v13783_v28, %v2872_v12  ;;  %v16014_v9 = vld [vmem:[#allocation10 + $0x44] ss:$8 sps:$4 sm:$0xff]  }
0x1a28   :  { %v2882_v51 = vadd.f32 %v13783_v28, %v2873_v61 }
0x1a2a   :  { %v2915_v58 = vpack.c.bf16 %v2882_v51, %v2881_v44 }
0x1a2c   :  { %3131 = vmatmul.mubr.bf16.vlgmr.msra.gmra.mrb[80].mxu0 %v2915_v58  ;;  %3174 = vmatmul.mubr.bf16.vlgmr.msra.gmra.mrb[88].mxu1 %v2915_v58 }
0x1a2d   :  { %3657 = vmatpush1.bf16.msra.mxu0 %v16000_v32 }
0x1a2e   :  { %3658 = vmatprep.subr.bf16.mxu0 %v16005_v34 }
0x1a31   :  { %3659 = vmatpush1.bf16.msra.mxu0 %v16003_v35 }
0x1a32   :  { %3660 = vmatprep.subr.bf16.mxu0 %v16008_v36 }
0x1a35   :  { %3661 = vmatpush1.bf16.msra.mxu0 %v16006_v47 }
0x1a36   :  { %3662 = vmatprep.subr.bf16.mxu0 %v16011_v18 }
0x1a39   :  { %3663 = vmatpush1.bf16.msra.mxu0 %v16009_v37 }
0x1a3a   :  { %3664 = vmatprep.subr.bf16.mxu0 %v16014_v9 }
0x1a3d   :  { %3665 = vmatpush1.bf16.msra.mxu0 %v16012_v38 }
0x1a3e   :  { %3666 = vmatprep.subr.bf16.mxu0 %v16017_v39 }
0x1a41   :  { %3667 = vmatpush1.bf16.msra.mxu0 %v16015_v40 }
0x1a42   :  { %3668 = vmatprep.subr.bf16.mxu0 %v16020_v41 }
0x1a45   :  { %3669 = vmatpush1.bf16.msra.mxu0 %v16018_v43 }
0x1a46   :  { %3670 = vmatprep.subr.bf16.mxu0 %v16023_v45 }
0x1a49   :  { %3671 = vmatpush1.bf16.msra.mxu0 %v16021_v46 }
0x1a4a   :  { %3672 = vmatprep.subr.bf16.mxu0 %v16026_v48 }
0x1a4d   :  { %3673 = vmatpush1.bf16.msra.mxu0 %v16024_v49 }
0x1a4e   :  { %3674 = vmatprep.subr.bf16.mxu0 %v16029_v50 }
0x1a51   :  { %3675 = vmatpush1.bf16.msra.mxu0 %v16027_v53 }
0x1a52   :  { %3676 = vmatprep.subr.bf16.mxu0 %v16032_v55 }
0x1a55   :  { %3677 = vmatpush1.bf16.msra.mxu0 %v16030_v54 }
0x1a56   :  { %3678 = vmatprep.subr.bf16.mxu0 %v16035_v56 }
0x1a59   :  { %3679 = vmatpush1.bf16.msra.mxu0 %v16033_v57 }
0x1a5a   :  { %3680 = vmatprep.subr.bf16.mxu0 %v16038_v59 }
0x1a5d   :  { %3681 = vmatpush1.bf16.msra.mxu0 %v16036_v60 }
0x1a5e   :  { %3682 = vmatprep.subr.bf16.mxu0 %v16041_v62 }
0x1a61   :  { %3683 = vmatpush1.bf16.msra.mxu0 %v16039_v63 }
0x1a62   :  { %3684 = vmatprep.subr.bf16.mxu0 %v16044_v2 }
0x1a65   :  { %3685 = vmatpush1.bf16.msra.mxu0 %v16042_v3 }
0x1a66   :  { %3686 = vmatprep.subr.bf16.mxu0 %v16047_v4 }
0x1a69   :  { %3687 = vmatpush1.bf16.msra.mxu0 %v16045_v6 }
0x1a6a   :  { %3699 = vmatprep.subr.bf16.mxu0 %v16050_v7 }
0x1aff   :  { %v3132_v21 = vpop.f32.mrb[80].mxu0  ;;  %v3175_v22 = vpop.f32.mrb[88].mxu1 }
0x1b00   :  { %v18226_v14 = vadd.f32 %v3132_v21, %v2921_v13  ;;  %v18228_v17 = vadd.f32 %v3175_v22, %v2929_v15  ;;  %v3134_v23 = vpop.f32.mrb[81].mxu0  ;;  %v3177_v24 = vpop.f32.mrb[89].mxu1 }
0x1b01   :  { %v18230_v16 = vadd.f32 %v3134_v23, %v2925_v5  ;;  %v18232_v8 = vadd.f32 %v3177_v24, %v2933_v20  ;;  %v3136_v19 = vpop.f32.mrb[82].mxu0  ;;  %v3179_v25 = vpop.f32.mrb[90].mxu1 }
0x1b02   :  { %v3192_v26 = vmul.f32 0.044715, %v18226_v14  ;;  %v3194_v12 = vmul.f32 0.044715, %v18228_v17  ;;  %v3137_v27 = vadd.f32 %v3136_v19, %v2921_v13  ;;  %v18236_v28 = vadd.f32 %v3179_v25, %v2929_v15  ;;  %v3138_v29 = vpop.f32.mrb[83].mxu0  ;;  %v3181_v61 = vpop.f32.mrb[91].mxu1 }
0x1b03   :  { %v3139_v42 = vadd.f32 %v3138_v29, %v2925_v5  ;;  %v18238_v44 = vadd.f32 %v3181_v61, %v2933_v20  ;;  %v3195_v35 = vmul.f32 0.044715, %v18232_v8  ;;  %v3193_v47 = vmul.f32 0.044715, %v18230_v16 }
0x1b04   :  { %v3200_v51 = vmul.f32 %v3192_v26, %v18226_v14  ;;  %v3202_v32 = vmul.f32 %v3194_v12, %v18228_v17  ;;  %v3196_v58 = vmul.f32 0.044715, %v3137_v27  ;;  %v3198_v34 = vmul.f32 0.044715, %v18236_v28 }
0x1b05   :  { %v3199_v36 = vmul.f32 0.044715, %v18238_v44  ;;  %v3197_v9 = vmul.f32 0.044715, %v3139_v42  ;;  %v3201_v38 = vmul.f32 %v3193_v47, %v18230_v16  ;;  %v3203_v49 = vmul.f32 %v3195_v35, %v18232_v8 }
0x1b06   :  { %v3204_v18 = vmul.f32 %v3196_v58, %v3137_v27  ;;  %v3206_v37 = vmul.f32 %v3198_v34, %v18236_v28  ;;  %v3208_v39 = vmul.f32 %v3200_v51, %v18226_v14  ;;  %v3210_v40 = vmul.f32 %v3202_v32, %v18228_v17 }
0x1b07   :  { %v3205_v43 = vmul.f32 %v3197_v9, %v3139_v42  ;;  %v3209_v46 = vmul.f32 %v3201_v38, %v18230_v16  ;;  %v3207_v50 = vmul.f32 %v3199_v36, %v18238_v44  ;;  %v3211_v57 = vmul.f32 %v3203_v49, %v18232_v8 }
0x1b08   :  { %v3214_v41 = vmul.f32 %v3206_v37, %v18236_v28  ;;  %v3212_v45 = vmul.f32 %v3204_v18, %v3137_v27  ;;  %v3216_v48 = vadd.f32 %v3208_v39, %v18226_v14  ;;  %v3218_v63 = vadd.f32 %v3210_v40, %v18228_v17 }
0x1b09   :  { %v3213_v53 = vmul.f32 %v3205_v43, %v3139_v42  ;;  %v3217_v55 = vadd.f32 %v3209_v46, %v18230_v16  ;;  %v3215_v59 = vmul.f32 %v3207_v50, %v18238_v44  ;;  %v3219_v4 = vadd.f32 %v3211_v57, %v18232_v8  ;;  %v16048_v43 = vld [vmem:[#allocation10 + $0x100] ss:$8 sps:$4 sm:$0xff]   ;;  %v16062_v57 = vld [vmem:[#allocation10 + $0x144] ss:$8 sps:$4 sm:$0xff]  }
0x1b0a   :  { %v3220_v54 = vadd.f32 %v3212_v45, %v3137_v27  ;;  %v3224_v56 = vmul.f32 0.7978846, %v3216_v48  ;;  %v3222_v2 = vadd.f32 %v3214_v41, %v18236_v28  ;;  %v3226_v15 = vmul.f32 0.7978846, %v3218_v63  ;;  %v16068_v63 = vld [vmem:[#allocation10 + $0x164] ss:$8 sps:$4 sm:$0xff]  }
0x1b0b   :  { %v3221_v60 = vadd.f32 %v3213_v53, %v3139_v42  ;;  %v3225_v3 = vmul.f32 0.7978846, %v3217_v55  ;;  %v3223_v6 = vadd.f32 %v3215_v59, %v18238_v44  ;;  %v3227_v10 = vmul.f32 0.7978846, %v3219_v4  ;;  %v16051_v53 = vld [vmem:[#allocation10 + $0x110] ss:$8 sps:$4 sm:$0xff]  }
0x1b0c   :  { %v3228_v62 = vmul.f32 0.7978846, %v3220_v54  ;;  %16488 = vtanh.f32 %v3224_v56  ;;  %v3230_v5 = vmul.f32 0.7978846, %v3222_v2  ;;  %v3184_v24 = vmul.f32 0.5, %v18226_v14 }
0x1b0d   :  { %v3229_v7 = vmul.f32 0.7978846, %v3221_v60  ;;  %v3231_v13 = vmul.f32 0.7978846, %v3223_v6  ;;  %v3188_v19 = vmul.f32 0.5, %v3137_v27  ;;  %v3185_v12 = vmul.f32 0.5, %v18230_v16 }
0x1b0e   :  { %16490 = vtanh.f32 %v3228_v62  ;;  %v3189_v51 = vmul.f32 0.5, %v3139_v42  ;;  %v3187_v36 = vmul.f32 0.5, %v18232_v8  ;;  %v3191_v47 = vmul.f32 0.5, %v18238_v44  ;;  %v16053_v8 = vld [vmem:[#allocation10 + $0x114] ss:$8 sps:$4 sm:$0xff]  }
0x1b0f   :  { %16492 = vtanh.f32 %v3225_v3  ;;  %v3186_v16 = vmul.f32 0.5, %v18228_v17  ;;  %v3190_v40 = vmul.f32 0.5, %v18236_v28  ;;  %v16056_v28 = vld [vmem:[#allocation10 + $0x124] ss:$8 sps:$4 sm:$0xff]   ;;  %v16054_v54 = vld [vmem:[#allocation10 + $0x120] ss:$8 sps:$4 sm:$0xff]  }
0x1b10   :  { %16494 = vtanh.f32 %v3229_v7  ;;  %v16059_v55 = vld [vmem:[#allocation10 + $0x134] ss:$8 sps:$4 sm:$0xff]   ;;  %v16057_v56 = vld [vmem:[#allocation10 + $0x130] ss:$8 sps:$4 sm:$0xff]   ;;  %v16060_v59 = vld [vmem:[#allocation10 + $0x140] ss:$8 sps:$4 sm:$0xff]  }
0x1b11   :  { %16496 = vtanh.f32 %v3227_v10  ;;  %v16065_v60 = vld [vmem:[#allocation10 + $0x154] ss:$8 sps:$4 sm:$0xff]   ;;  %v16063_v62 = vld [vmem:[#allocation10 + $0x150] ss:$8 sps:$4 sm:$0xff]   ;;  %v16066_v2 = vld [vmem:[#allocation10 + $0x160] ss:$8 sps:$4 sm:$0xff]  }
0x1b12   :  { %16498 = vtanh.f32 %v3231_v13  ;;  %v16071_v3 = vld [vmem:[#allocation10 + $0x174] ss:$8 sps:$4 sm:$0xff]   ;;  %v16069_v4 = vld [vmem:[#allocation10 + $0x170] ss:$8 sps:$4 sm:$0xff]   ;;  %v16074_v6 = vld [vmem:[#allocation10 + $0x184] ss:$8 sps:$4 sm:$0xff]  }
0x1b13   :  { %16500 = vtanh.f32 %v3226_v15  ;;  %v16072_v7 = vld [vmem:[#allocation10 + $0x180] ss:$8 sps:$4 sm:$0xff]   ;;  %v16077_v10 = vld [vmem:[#allocation10 + $0x194] ss:$8 sps:$4 sm:$0xff]   ;;  %v16075_v13 = vld [vmem:[#allocation10 + $0x190] ss:$8 sps:$4 sm:$0xff]  }
0x1b14   :  { %16502 = vtanh.f32 %v3230_v5  ;;  %v16080_v15 = vld [vmem:[#allocation10 + $0x1a4] ss:$8 sps:$4 sm:$0xff]   ;;  %v16078_v5 = vld [vmem:[#allocation10 + $0x1a0] ss:$8 sps:$4 sm:$0xff]  }
0x1b16   :  { %v16489_v20 = vpop.eup %16488 }
0x1b17   :  { %v3240_v22 = vadd.f32 1.0, %v16489_v20  ;;  %v16083_v20 = vld [vmem:[#allocation10 + $0x1b4] ss:$8 sps:$4 sm:$0xff]  }
0x1b18   :  { %v16491_v21 = vpop.eup %16490 }
0x1b19   :  { %v16493_v23 = vpop.eup %16492  ;;  %v3244_v25 = vadd.f32 1.0, %v16491_v21  ;;  %v3248_v58 = vmul.f32 %v3240_v22, %v3184_v24  ;;  %v16081_v21 = vld [vmem:[#allocation10 + $0x1b0] ss:$8 sps:$4 sm:$0xff]   ;;  %v16086_v22 = vld [vmem:[#allocation10 + $0x1c4] ss:$8 sps:$4 sm:$0xff]  }
0x1b1a   :  { %v16495_v26 = vpop.eup %16494  ;;  %v3241_v29 = vadd.f32 1.0, %v16493_v23  ;;  %v16084_v23 = vld [vmem:[#allocation10 + $0x1c0] ss:$8 sps:$4 sm:$0xff]   ;;  %v16089_v24 = vld [vmem:[#allocation10 + $0x1d4] ss:$8 sps:$4 sm:$0xff]  }
0x1b1b   :  { %v16497_v61 = vpop.eup %16496  ;;  %v3245_v32 = vadd.f32 1.0, %v16495_v26  ;;  %v3252_v34 = vmul.f32 %v3244_v25, %v3188_v19  ;;  %v16087_v19 = vld [vmem:[#allocation10 + $0x1d0] ss:$8 sps:$4 sm:$0xff]   ;;  %v16092_v25 = vld [vmem:[#allocation10 + $0x1e4] ss:$8 sps:$4 sm:$0xff]  }
0x1b1c   :  { %v16499_v35 = vpop.eup %16498  ;;  %v3243_v18 = vadd.f32 1.0, %v16497_v61  ;;  %v3249_v9 = vmul.f32 %v3241_v29, %v3185_v12  ;;  %v16090_v26 = vld [vmem:[#allocation10 + $0x1e0] ss:$8 sps:$4 sm:$0xff]   ;;  %v16095_v12 = vld [vmem:[#allocation10 + $0x1f4] ss:$8 sps:$4 sm:$0xff]  }
0x1b1d   :  { %v16501_v37 = vpop.eup %16500  ;;  %v3253_v14 = vmul.f32 %v3245_v32, %v3189_v51  ;;  %v3320_v27 = vpack.c.bf16 %v3252_v34, %v3248_v58  ;;  %v3247_v38 = vadd.f32 1.0, %v16499_v35  ;;  %v16093_v29 = vld [vmem:[#allocation10 + $0x1f0] ss:$8 sps:$4 sm:$0xff]   ;;  %v16096_v61 = vld [vmem:[#allocation11 + $0x40] sm:$0xff]   ;;  %v16098_v32 = vld [vmem:[#allocation11 + $0x48] sm:$0xff]  }
0x1b1e   :  { %v16503_v39 = vpop.eup %16502  ;;  %v3242_v42 = vadd.f32 1.0, %v16501_v37  ;;  %v3251_v45 = vmul.f32 %v3243_v18, %v3187_v36  ;;  %v16097_v51 = vld [vmem:[#allocation11] sm:$0xff]   ;;  %14359 = vmatprep.subr.bf16.mxu1 %v16096_v61  ;;  %v16099_v58 = vld [vmem:[#allocation11 + $0x8] sm:$0xff]   ;;  %v16100_v34 = vld [vmem:[#allocation11 + $0x50] sm:$0xff]  }
0x1b1f   :  { %v3321_v41 = vpack.c.bf16 %v3253_v14, %v3249_v9  ;;  %v3255_v46 = vmul.f32 %v3247_v38, %v3191_v47  ;;  %v3246_v48 = vadd.f32 1.0, %v16503_v39  ;;  %14360 = vmatpush3.bf16.msra.mxu1 %v16097_v51  ;;  %v16101_v35 = vld [vmem:[#allocation11 + $0x10] sm:$0xff]   ;;  %v16102_v36 = vld [vmem:[#allocation11 + $0x58] sm:$0xff]   ;;  %v16104_v18 = vld [vmem:[#allocation11 + $0x60] sm:$0xff]  }
0x1b20   :  { %v18268_v49 = vmul.f32 %v3242_v42, %v3186_v16  ;;  %14361 = vmatprep.subr.bf16.mxu1 %v16098_v32  ;;  %v16103_v47 = vld [vmem:[#allocation11 + $0x18] sm:$0xff]   ;;  %v16105_v37 = vld [vmem:[#allocation11 + $0x20] sm:$0xff]   ;;  %v16106_v9 = vld [vmem:[#allocation11 + $0x68] sm:$0xff]  }
0x1b21   :  { %3688 = vmatprep.mubr.bf16.mxu0 %v3321_v41  ;;  %v3323_v44 = vpack.c.bf16 %v3255_v46, %v3251_v45  ;;  %v18270_v50 = vmul.f32 %v3246_v48, %v3190_v40  ;;  %v16107_v14 = vld [vmem:[#allocation11 + $0x28] sm:$0xff]   ;;  %v16109_v38 = vld [vmem:[#allocation11 + $0x30] sm:$0xff]   ;;  %v16110_v39 = vld [vmem:[#allocation11 + $0x78] sm:$0xff]  }
0x1b22   :  { %3689 = vmatmul.mubr.bf16.vlgmr.msra.gmra.mrb[84].mxu0 %v3320_v27  ;;  %v16108_v27 = vld [vmem:[#allocation11 + $0x70] sm:$0xff]   ;;  %v16111_v16 = vld [vmem:[#allocation11 + $0x38] sm:$0xff]  }
0x1b23   :  { %3700 = vmatpush1.bf16.msra.mxu0 %v16048_v43  ;;  %3731 = vmatprep.mubr.bf16.mxu0 %v3323_v44  ;;  %v3322_v17 = vpack.c.bf16 %v18270_v50, %v18268_v49  ;;  %v16114_v40 = vld [vmem:[#allocation13 + $0x4] ss:$12 sps:$4 sm:$0xff]  }
0x1b24   :  { %3701 = vmatprep.subr.bf16.mxu0 %v16053_v8  ;;  %14362 = vmatpush3.bf16.msra.mxu1 %v16099_v58  ;;  %v3324_v42 = vld [vmem:[%s19810_s13] sm:$0x3] }
0x1b25   :  { %14363 = vmatprep.subr.bf16.mxu1 %v16100_v34  ;;  %v3329_v41 = vrot.slane %v3324_v42, %v17835_v33  ;;  %v3333_v43 = vrot.slane %v3324_v42, %v17831_v31  ;;  %v16124_v42 = vld [vmem:[#allocation13 + $0x60] ss:$12 sps:$4 sm:$0xff]  }
0x1b27   :  { %3702 = vmatpush1.bf16.msra.mxu0 %v16051_v53 }
0x1b28   :  { %3703 = vmatprep.subr.bf16.mxu0 %v16056_v28  ;;  %14364 = vmatpush3.bf16.msra.mxu1 %v16101_v35 }
0x1b29   :  { %14365 = vmatprep.subr.bf16.mxu1 %v16102_v36 }
0x1b2b   :  { %3704 = vmatpush1.bf16.msra.mxu0 %v16054_v54 }
0x1b2c   :  { %3705 = vmatprep.subr.bf16.mxu0 %v16059_v55  ;;  %14366 = vmatpush3.bf16.msra.mxu1 %v16103_v47 }
0x1b2d   :  { %14367 = vmatprep.subr.bf16.mxu1 %v16104_v18 }
0x1b2f   :  { %3706 = vmatpush1.bf16.msra.mxu0 %v16057_v56 }
0x1b30   :  { %3707 = vmatprep.subr.bf16.mxu0 %v16062_v57  ;;  %14368 = vmatpush3.bf16.msra.mxu1 %v16105_v37  ;;  %v16112_v37 = vld [vmem:[#allocation13] ss:$12 sps:$4 sm:$0xff]  }
0x1b31   :  { %14369 = vmatprep.subr.bf16.mxu1 %v16106_v9  ;;  %v16117_v9 = vld [vmem:[#allocation13 + $0x1c] ss:$12 sps:$4 sm:$0xff]  }
0x1b33   :  { %3708 = vmatpush1.bf16.msra.mxu0 %v16060_v59 }
0x1b34   :  { %3709 = vmatprep.subr.bf16.mxu0 %v16065_v60  ;;  %14370 = vmatpush3.bf16.msra.mxu1 %v16107_v14  ;;  %v16115_v14 = vld [vmem:[#allocation13 + $0x18] ss:$12 sps:$4 sm:$0xff]  }
0x1b35   :  { %14371 = vmatprep.subr.bf16.mxu1 %v16108_v27  ;;  %v16120_v27 = vld [vmem:[#allocation13 + $0x34] ss:$12 sps:$4 sm:$0xff]  }
0x1b37   :  { %3710 = vmatpush1.bf16.msra.mxu0 %v16063_v62 }
0x1b38   :  { %3711 = vmatprep.subr.bf16.mxu0 %v16068_v63  ;;  %14372 = vmatpush3.bf16.msra.mxu1 %v16109_v38  ;;  %v16118_v38 = vld [vmem:[#allocation13 + $0x30] ss:$12 sps:$4 sm:$0xff]  }
0x1b39   :  { %14373 = vmatprep.subr.bf16.mxu1 %v16110_v39  ;;  %v16123_v39 = vld [vmem:[#allocation13 + $0x4c] ss:$12 sps:$4 sm:$0xff]  }
0x1b3b   :  { %3712 = vmatpush1.bf16.msra.mxu0 %v16066_v2 }
0x1b3c   :  { %3713 = vmatprep.subr.bf16.mxu0 %v16071_v3  ;;  %14374 = vmatpush3.bf16.msra.mxu1 %v16111_v16  ;;  %v16121_v16 = vld [vmem:[#allocation13 + $0x48] ss:$12 sps:$4 sm:$0xff]  }
0x1b3d   :  { %4141 = vmatprep.subr.bf16.mxu1 %v16114_v40  ;;  %v16126_v40 = vld [vmem:[#allocation13 + $0x64] ss:$12 sps:$4 sm:$0xff]  }
0x1b3f   :  { %3714 = vmatpush1.bf16.msra.mxu0 %v16069_v4 }
0x1b40   :  { %3715 = vmatprep.subr.bf16.mxu0 %v16074_v6 }
0x1b43   :  { %3716 = vmatpush1.bf16.msra.mxu0 %v16072_v7 }
0x1b44   :  { %3717 = vmatprep.subr.bf16.mxu0 %v16077_v10 }
0x1b47   :  { %3718 = vmatpush1.bf16.msra.mxu0 %v16075_v13 }
0x1b48   :  { %3719 = vmatprep.subr.bf16.mxu0 %v16080_v15 }
0x1b4b   :  { %3720 = vmatpush1.bf16.msra.mxu0 %v16078_v5 }
0x1b4c   :  { %3721 = vmatprep.subr.bf16.mxu0 %v16083_v20 }
0x1b4f   :  { %3722 = vmatpush1.bf16.msra.mxu0 %v16081_v21 }
0x1b50   :  { %3723 = vmatprep.subr.bf16.mxu0 %v16086_v22 }
0x1b53   :  { %3724 = vmatpush1.bf16.msra.mxu0 %v16084_v23 }
0x1b54   :  { %3725 = vmatprep.subr.bf16.mxu0 %v16089_v24 }
0x1b57   :  { %3726 = vmatpush1.bf16.msra.mxu0 %v16087_v19 }
0x1b58   :  { %3727 = vmatprep.subr.bf16.mxu0 %v16092_v25 }
0x1b5b   :  { %3728 = vmatpush1.bf16.msra.mxu0 %v16090_v26 }
0x1b5c   :  { %3729 = vmatprep.subr.bf16.mxu0 %v16095_v12 }
0x1b5f   :  { %3730 = vmatpush1.bf16.msra.mxu0 %v16093_v29 }
0x1b60   :  { %15024 = vmatprep.subr.bf16.mxu0 %v17484_v1 }
0x1b62   :  { %3732 = vmatmul.mubr.bf16.vlgmr.msra.gmra.mrb[84].mxu0 %v3322_v17 }
0x1b63   :  { %15026 = vmatprep.mubr.msk.bf16.mxu0 %vm17485_vm0, %v17484_v1 }
0x1c35   :  { %v3733_v45 = vpop.f32.mrb[84].mxu0 }
0x1c36   :  { %v15748_v46 = vadd.f32 %v3733_v45, %v3329_v41  ;;  %v3735_v48 = vpop.f32.mrb[85].mxu0  ;;  %v16132_v45 = vld [vmem:[#allocation13 + $0x94] ss:$12 sps:$4 sm:$0xff]  }
0x1c37   :  { %v15749_v8 = vadd.f32 %v3735_v48, %v3333_v43  ;;  %v3737_v44 = vpop.f32.mrb[86].mxu0  ;;  %v16135_v48 = vld [vmem:[#allocation13 + $0xac] ss:$12 sps:$4 sm:$0xff]  }
0x1c38   :  { %v3746_v49 = vmul.f32 0.044715, %v15748_v46  ;;  %v15750_v50 = vadd.f32 %v3737_v44, %v3329_v41  ;;  %v3739_v53 = vpop.f32.mrb[87].mxu0  ;;  %v3742_v26 = vmul.f32 0.5, %v15748_v46  ;;  %v16129_v41 = vld [vmem:[#allocation13 + $0x7c] ss:$12 sps:$4 sm:$0xff]  }
0x1c39   :  { %v15751_v17 = vadd.f32 %v3739_v53, %v3333_v43  ;;  %v3747_v28 = vmul.f32 0.044715, %v15749_v8  ;;  %v3743_v61 = vmul.f32 0.5, %v15749_v8  ;;  %v16127_v43 = vld [vmem:[#allocation13 + $0x78] ss:$12 sps:$4 sm:$0xff]   ;;  %v3960_v53 = vld [vmem:[#allocation5 + $0x10] sm:$0xff] }
0x1c3a   :  { %v3750_v54 = vmul.f32 %v15748_v46, %v3746_v49  ;;  %v3748_v55 = vmul.f32 0.044715, %v15750_v50  ;;  %v3744_v12 = vmul.f32 0.5, %v15750_v50  ;;  %v3958_v44 = vld [vmem:[#allocation5] sm:$0xff]  ;;  %v3959_v49 = vld [vmem:[#allocation5 + $0x8] sm:$0xff] }
0x1c3b   :  { %v3749_v56 = vmul.f32 0.044715, %v15751_v17  ;;  %v3751_v57 = vmul.f32 %v15749_v8, %v3747_v28  ;;  %v3745_v51 = vmul.f32 0.5, %v15751_v17 }
0x1c3c   :  { %v3752_v59 = vmul.f32 %v15750_v50, %v3748_v55  ;;  %v3754_v60 = vmul.f32 %v15748_v46, %v3750_v54  ;;  %v16136_v54 = vld [vmem:[#allocation13 + $0x8] ss:$12 sps:$4 sm:$0xff]   ;;  %v16137_v55 = vld [vmem:[#allocation13 + $0x20] ss:$12 sps:$4 sm:$0xff]  }
0x1c3d   :  { %v3753_v62 = vmul.f32 %v15751_v17, %v3749_v56  ;;  %v3755_v63 = vmul.f32 %v15749_v8, %v3751_v57  ;;  %v16138_v56 = vld [vmem:[#allocation13 + $0x38] ss:$12 sps:$4 sm:$0xff]   ;;  %v16139_v57 = vld [vmem:[#allocation13 + $0x50] ss:$12 sps:$4 sm:$0xff]  }
0x1c3e   :  { %v3756_v2 = vmul.f32 %v15750_v50, %v3752_v59  ;;  %v3758_v3 = vadd.f32 %v15748_v46, %v3754_v60  ;;  %v16130_v46 = vld [vmem:[#allocation13 + $0x90] ss:$12 sps:$4 sm:$0xff]   ;;  %v16140_v59 = vld [vmem:[#allocation13 + $0x68] ss:$12 sps:$4 sm:$0xff]   ;;  %v16141_v60 = vld [vmem:[#allocation13 + $0x80] ss:$12 sps:$4 sm:$0xff]  }
0x1c3f   :  { %v3757_v4 = vmul.f32 %v15751_v17, %v3753_v62  ;;  %v3759_v6 = vadd.f32 %v15749_v8, %v3755_v63  ;;  %v16133_v8 = vld [vmem:[#allocation13 + $0xa8] ss:$12 sps:$4 sm:$0xff]   ;;  %v16142_v62 = vld [vmem:[#allocation13 + $0x98] ss:$12 sps:$4 sm:$0xff]   ;;  %v16143_v63 = vld [vmem:[#allocation13 + $0xb0] ss:$12 sps:$4 sm:$0xff]  }
0x1c40   :  { %v3760_v7 = vadd.f32 %v15750_v50, %v3756_v2  ;;  %v3762_v10 = vmul.f32 0.7978846, %v3758_v3  ;;  %v3994_v50 = vpack.c.bf16 %v3959_v49, %v3958_v44 }
0x1c41   :  { %v3761_v13 = vadd.f32 %v15751_v17, %v3757_v4  ;;  %v3763_v15 = vmul.f32 0.7978846, %v3759_v6  ;;  %v3961_v17 = vld [vmem:[#allocation5 + $0x18] sm:$0xff] }
0x1c42   :  { %v3764_v5 = vmul.f32 0.7978846, %v3760_v7  ;;  %16504 = vtanh.f32 %v3762_v10  ;;  %v3995_v28 = vpack.c.bf16 %v3961_v17, %v3960_v53 }
0x1c43   :  { %v3765_v20 = vmul.f32 0.7978846, %v3761_v13  ;;  %16506 = vtanh.f32 %v3763_v15  ;;  %v3996_v13 = vld [vmem:[%s19811_s15] sm:$0x7] }
0x1c44   :  { %16508 = vtanh.f32 %v3764_v5  ;;  %v4001_v15 = vrot.slane %v3996_v13, %v17835_v33 }
0x1c45   :  { %16510 = vtanh.f32 %v3765_v20  ;;  %v4005_v20 = vrot.slane %v3996_v13, %v17831_v31 }
0x1c4c   :  { %v16505_v21 = vpop.eup %16504 }
0x1c4d   :  { %v16507_v22 = vpop.eup %16506  ;;  %v3770_v23 = vadd.f32 1.0, %v16505_v21 }
0x1c4e   :  { %v16509_v24 = vpop.eup %16508  ;;  %v3771_v19 = vadd.f32 1.0, %v16507_v22 }
0x1c4f   :  { %v16511_v25 = vpop.eup %16510  ;;  %v3772_v29 = vadd.f32 1.0, %v16509_v24  ;;  %v3774_v58 = vmul.f32 %v3770_v23, %v3742_v26 }
0x1c50   :  { %v3773_v32 = vadd.f32 1.0, %v16511_v25  ;;  %v3775_v35 = vmul.f32 %v3771_v19, %v3743_v61 }
0x1c51   :  { %v3776_v34 = vmul.f32 %v3772_v29, %v3744_v12 }
0x1c52   :  { %v3777_v36 = vmul.f32 %v3773_v32, %v3745_v51 }
0x1c53   :  { %v3810_v47 = vpack.c.bf16 %v3776_v34, %v3774_v58 }
0x1c54   :  { %v3811_v18 = vpack.c.bf16 %v3777_v36, %v3775_v35 }
0x1c56   :  { %3947 = vmatprep.mubr.bf16.mxu1 %v3811_v18 }
0x1c57   :  { %3948 = vmatmul.mubr.bf16.vlgmr.msra.gmra.mrb[92].mxu1 %v3810_v47 }
0x1c58   :  { %4142 = vmatpush1.bf16.msra.mxu1 %v16112_v37  ;;  %4173 = vmatprep.mubr.bf16.mxu1 %v17483_v0 }
0x1c59   :  { %4143 = vmatprep.subr.bf16.mxu1 %v16117_v9 }
0x1c5c   :  { %4144 = vmatpush1.bf16.msra.mxu1 %v16115_v14 }
0x1c5d   :  { %4145 = vmatprep.subr.bf16.mxu1 %v16120_v27 }
0x1c60   :  { %4146 = vmatpush1.bf16.msra.mxu1 %v16118_v38 }
0x1c61   :  { %4147 = vmatprep.subr.bf16.mxu1 %v16123_v39 }
0x1c64   :  { %4148 = vmatpush1.bf16.msra.mxu1 %v16121_v16 }
0x1c65   :  { %4149 = vmatprep.subr.bf16.mxu1 %v16126_v40  ;;  %v4009_v40 = vrot.slane %v3996_v13, %v17864_v52 }
0x1c68   :  { %4150 = vmatpush1.bf16.msra.mxu1 %v16124_v42 }
0x1c69   :  { %4151 = vmatprep.subr.bf16.mxu1 %v16129_v41 }
0x1c6c   :  { %4152 = vmatpush1.bf16.msra.mxu1 %v16127_v43 }
0x1c6d   :  { %4153 = vmatprep.subr.bf16.mxu1 %v16132_v45 }
0x1c70   :  { %4154 = vmatpush1.bf16.msra.mxu1 %v16130_v46 }
0x1c71   :  { %4155 = vmatprep.subr.bf16.mxu1 %v16135_v48 }
0x1c74   :  { %4156 = vmatpush1.bf16.msra.mxu1 %v16133_v8 }
0x1c75   :  { %14980 = vmatprep.subr.bf16.mxu1 %v16136_v54 }
0x1c77   :  { %4174 = vmatmul.mubr.bf16.vlgmr.msra.gmra.mrb[96].mxu1 %v3994_v50 }
0x1c78   :  { %4183 = vmatprep.mubr.bf16.mxu1 %v17483_v0  ;;  %14981 = vmatpush3.bf16.msra.mxu1 %v16136_v54 }
0x1c79   :  { %14982 = vmatprep.subr.bf16.mxu1 %v16137_v55 }
0x1c7c   :  { %14983 = vmatpush3.bf16.msra.mxu1 %v16137_v55 }
0x1c7d   :  { %14984 = vmatprep.subr.bf16.mxu1 %v16138_v56 }
0x1c7f   :  { %4184 = vmatmul.mubr.bf16.gmra.mrb[100].mxu1 %v3995_v28 }
0x1c80   :  { %14996 = vmatprep.mubr.bf16.mxu1 %v3994_v50  ;;  %14985 = vmatpush3.bf16.msra.mxu1 %v16138_v56 }
0x1c81   :  { %14986 = vmatprep.subr.bf16.mxu1 %v16139_v57 }
0x1c84   :  { %14987 = vmatpush3.bf16.msra.mxu1 %v16139_v57 }
0x1c85   :  { %14988 = vmatprep.subr.bf16.mxu1 %v16140_v59 }
0x1c88   :  { %14989 = vmatpush3.bf16.msra.mxu1 %v16140_v59 }
0x1c89   :  { %14990 = vmatprep.subr.bf16.mxu1 %v16141_v60 }
0x1c8c   :  { %14991 = vmatpush3.bf16.msra.mxu1 %v16141_v60 }
0x1c8d   :  { %14992 = vmatprep.subr.bf16.mxu1 %v16142_v62 }
0x1c90   :  { %14993 = vmatpush3.bf16.msra.mxu1 %v16142_v62 }
0x1c91   :  { %14994 = vmatprep.subr.bf16.mxu1 %v16143_v63 }
0x1c94   :  { %14995 = vmatpush3.bf16.msra.mxu1 %v16143_v63 }
0x1c95   :  { %15000 = vmatprep.subr.bf16.mxu1 %v17484_v1 }
0x1c97   :  { %14997 = vmatmul.mubr.bf16.vlgmr.msra.gmra.mrb[104].mxu1 %v3995_v28 }
0x1c98   :  { %15002 = vmatprep.mubr.msk.bf16.mxu1 %vm17485_vm0, %v17484_v1 }
0x1d2a   :  { %v14375_v2 = vpop.f32.mrb[92].mxu1 }
0x1d2b   :  { %v14376_v3 = vpop.f32.mrb[93].mxu1 }
0x1d2c   :  { %v18285_v4 = vadd.f32 %v14376_v3, %v14375_v2  ;;  %v14378_v6 = vpop.f32.mrb[94].mxu1 }
0x1d2d   :  { %v14379_v7 = vpop.f32.mrb[95].mxu1 }
0x1d2e   :  { %v18287_v10 = vadd.f32 %v14379_v7, %v14378_v6 }
0x1d4a   :  { %v4175_v5 = vpop.f32.mrb[96].mxu1 }
0x1d4b   :  { %v4176_v21 = vadd.f32 %v4175_v5, %v4001_v15  ;;  %v4177_v22 = vpop.f32.mrb[97].mxu1 }
0x1d4c   :  { %v4179_v23 = vpop.f32.mrb[98].mxu1  ;;  %v4178_v25 = vadd.f32 %v4177_v22, %v4005_v20 }
0x1d4d   :  { %v4180_v24 = vadd.f32 %v4179_v23, %v4001_v15  ;;  %v4181_v19 = vpop.f32.mrb[99].mxu1  ;;  %v4243_v12 = vmul.f32 0.25, %v4176_v21 }
0x1d4e   :  { %v4182_v26 = vadd.f32 %v4181_v19, %v4005_v20 }
0x1d4f   :  { %v4244_v29 = vmul.f32 0.25, %v4180_v24 }
0x1d50   :  { %v18292_v61 = vpack.c.bf16 %v4182_v26, %v4178_v25 }
0x1d51   :  { %v18294_v51 = vpack.c.bf16 %v4244_v29, %v4243_v12 }
0x1d52   :  { %v4185_v32 = vpop.f32.mrb[100].mxu1  ;;  %v4255_v58 = vsel %vm679_vm1, %v18292_v61, 0 }
0x1d53   :  { %v4186_v34 = vadd.f32 %v4185_v32, %v4001_v15  ;;  %v4187_v35 = vpop.f32.mrb[101].mxu1  ;;  %15001 = vmatpush3.bf16.xpose.msra.mxu1 %v4255_v58 }
0x1d54   :  { %v4189_v36 = vpop.f32.mrb[102].mxu1  ;;  %15006 = vmatprep.subr.bf16.mxu1 %v17484_v1  ;;  %v4188_v37 = vadd.f32 %v4187_v35, %v4005_v20 }
0x1d55   :  { %v4190_v47 = vadd.f32 %v4189_v36, %v4001_v15  ;;  %v4191_v18 = vpop.f32.mrb[103].mxu1  ;;  %v4245_v14 = vmul.f32 0.25, %v4186_v34 }
0x1d56   :  { %v4192_v9 = vadd.f32 %v4191_v18, %v4005_v20 }
0x1d57   :  { %v4246_v27 = vmul.f32 0.25, %v4190_v47 }
0x1d58   :  { %v18299_v38 = vpack.c.bf16 %v4192_v9, %v4188_v37 }
0x1d59   :  { %v18301_v39 = vpack.c.bf16 %v4246_v27, %v4245_v14 }
0x1d5a   :  { %15003 = vmatmul.mubr.msk.bf16.vlgmr.msra.gmra.mrb[108].mxu1 %vm679_vm1, %v18294_v51  ;;  %v4302_v16 = vsel %vm679_vm1, %v18299_v38, 0 }
0x1d5b   :  { %15007 = vmatpush3.bf16.xpose.msra.mxu1 %v4302_v16  ;;  %15008 = vmatprep.mubr.msk.bf16.mxu1 %vm17485_vm0, %v17484_v1 }
0x1d5c   :  { %15012 = vmatprep.subr.bf16.mxu1 %v17484_v1 }
0x1d62   :  { %15009 = vmatmul.mubr.msk.bf16.vlgmr.msra.gmra.mrb[112].mxu1 %vm679_vm1, %v18301_v39 }
0x1d63   :  { %15014 = vmatprep.mubr.msk.bf16.mxu1 %vm17485_vm0, %v17484_v1 }
0x1d6a   :  { %v14998_v42 = vpop.f32.mrb[104].mxu1 }
0x1d6b   :  { %v4237_v41 = vadd.f32 %v14998_v42, %v4009_v40  ;;  %v4228_v43 = vpop.f32.mrb[105].mxu1 }
0x1d6c   :  { %v4229_v45 = vadd.f32 %v4228_v43, %v4009_v40  ;;  %v14999_v46 = vpop.f32.mrb[106].mxu1 }
0x1d6d   :  { %v4240_v48 = vadd.f32 %v14999_v46, %v4009_v40  ;;  %v4231_v8 = vpop.f32.mrb[107].mxu1 }
0x1d6e   :  { %v4232_v44 = vadd.f32 %v4231_v8, %v4009_v40 }
0x1d6f   :  { %v18315_v49 = vpack.c.bf16 %v4240_v48, %v4237_v41 }
0x1d70   :  { %v18317_v50 = vpack.c.bf16 %v4232_v44, %v4229_v45 }
0x1d72   :  { %15013 = vmatpush3.bf16.msra.mxu1 %v18317_v50 }
0x1d73   :  { %15018 = vmatprep.subr.bf16.mxu1 %v17484_v1 }
0x1e2d   :  { %v4291_v53 = vpop.f32.mrb[108].mxu1 }
0x1e2e   :  { %v15004_v17 = vpop.f32.mrb[109].mxu1  ;;  %v4345_v28 = vsel %vm679_vm1, %v4291_v53, -inf }
0x1e2f   :  { %4346 = vmax.xlane.f32.xlu1 %v4345_v28  ;;  %v4294_v54 = vpop.f32.mrb[110].mxu1 }
0x1e30   :  { %v15005_v55 = vpop.f32.mrb[111].mxu1  ;;  %v4348_v56 = vsel %vm679_vm1, %v4294_v54, -inf }
0x1e31   :  { %4349 = vmax.xlane.f32.xlu0 %v4348_v56 }
0x1e35   :  { %v4338_v57 = vpop.f32.mrb[112].mxu1 }
0x1e36   :  { %v15010_v59 = vpop.f32.mrb[113].mxu1  ;;  %v4351_v60 = vsel %vm679_vm1, %v4338_v57, -inf }
0x1e37   :  { %4352 = vmax.xlane.f32.xlu0 %v4351_v60  ;;  %v4341_v62 = vpop.f32.mrb[114].mxu1 }
0x1e38   :  { %v15011_v63 = vpop.f32.mrb[115].mxu1  ;;  %v4354_v2 = vsel %vm679_vm1, %v4341_v62, -inf }
0x1e39   :  { %4355 = vmax.xlane.f32.xlu1 %v4354_v2 }
0x1ebc   :  { %v4347_v3 = vpop.xlane.xlu1 %4346 }
0x1ebd   :  { %v4357_v6 = vsub.f32 %v4291_v53, %v4347_v3 }
0x1ebe   :  { %v4350_v7 = vpop.xlane.xlu0 %4349 }
0x1ebf   :  { %v4361_v13 = vmul.f32 1.442695, %v4357_v6  ;;  %v4358_v15 = vsub.f32 %v4294_v54, %v4350_v7 }
0x1ec1   :  { %16512 = vpow2.f32 %v4361_v13  ;;  %v4363_v5 = vmul.f32 1.442695, %v4358_v15 }
0x1ec3   :  { %16514 = vpow2.f32 %v4363_v5 }
0x1ec4   :  { %v4353_v20 = vpop.xlane.xlu0 %4352 }
0x1ec5   :  { %v4359_v21 = vsub.f32 %v4338_v57, %v4353_v20 }
0x1ec6   :  { %v4356_v22 = vpop.xlane.xlu1 %4355 }
0x1ec7   :  { %v4365_v23 = vmul.f32 1.442695, %v4359_v21  ;;  %v4360_v24 = vsub.f32 %v4341_v62, %v4356_v22 }
0x1ec9   :  { %16516 = vpow2.f32 %v4365_v23  ;;  %v4367_v19 = vmul.f32 1.442695, %v4360_v24 }
0x1ecb   :  { %v16513_v25 = vpop.eup %16512  ;;  %16518 = vpow2.f32 %v4367_v19 }
0x1ecc   :  { %v4369_v26 = vsel %vm679_vm1, %v16513_v25, 0.0 }
0x1ecd   :  { %v16515_v12 = vpop.eup %16514  ;;  %4370 = vadd.xlane.f32.xlu0 %v4369_v26 }
0x1ece   :  { %v4372_v29 = vsel %vm679_vm1, %v16515_v12, 0.0 }
0x1ecf   :  { %4373 = vadd.xlane.f32.xlu1 %v4372_v29 }
0x1ed3   :  { %v16517_v32 = vpop.eup %16516 }
0x1ed4   :  { %v4375_v58 = vsel %vm679_vm1, %v16517_v32, 0.0 }
0x1ed5   :  { %v16519_v34 = vpop.eup %16518  ;;  %4376 = vadd.xlane.f32.xlu0 %v4375_v58 }
0x1ed6   :  { %v4378_v35 = vsel %vm679_vm1, %v16519_v34, 0.0 }
0x1ed7   :  { %4379 = vadd.xlane.f32.xlu1 %v4378_v35 }
0x1ee8   :  { %4539 = vrot.lane.b32.xlu1 %v18301_v39, %s17486_s29 }
0x1eeb   :  { %4542 = vrot.lane.b32.xlu0 %v18299_v38, %s17486_s29 }
0x1eec   :  { %4489 = vrot.lane.b32.xlu1 %v18292_v61, %s17486_s29 }
0x1ef0   :  { %4486 = vrot.lane.b32.xlu1 %v18294_v51, %s17486_s29 }
0x1f5a   :  { %v4371_v36 = vpop.xlane.xlu0 %4370 }
0x1f5b   :  { %16520 = vrcp.f32 %v4371_v36 }
0x1f5c   :  { %v4374_v47 = vpop.xlane.xlu1 %4373 }
0x1f5d   :  { %16522 = vrcp.f32 %v4374_v47 }
0x1f62   :  { %v4377_v18 = vpop.xlane.xlu0 %4376 }
0x1f63   :  { %16524 = vrcp.f32 %v4377_v18 }
0x1f64   :  { %v4380_v37 = vpop.xlane.xlu1 %4379 }
0x1f65   :  { %v16521_v9 = vpop.eup %16520  ;;  %16526 = vrcp.f32 %v4380_v37 }
0x1f66   :  { %v4382_v27 = vmul.f32 %v16521_v9, %v16513_v25  ;;  %v4543_v44 = vpop.permute.xlu0 %4542 }
0x1f67   :  { %v16523_v14 = vpop.eup %16522  ;;  %v4548_v28 = vsel %vm679_vm1, %v4543_v44, 0 }
0x1f68   :  { %v4384_v16 = vmul.f32 %v16523_v14, %v16515_v12  ;;  %v4540_v40 = vpop.permute.xlu1 %4539 }
0x1f6a   :  { %v4389_v42 = vpack.c.bf16 %v4384_v16, %v4382_v27 }
0x1f6c   :  { %15015 = vmatmul.mubr.msk.bf16.vlgmr.msra.gmra.mrb[116].mxu1 %vm679_vm1, %v4389_v42  ;;  %v4490_v41 = vpop.permute.xlu1 %4489 }
0x1f6d   :  { %v16525_v43 = vpop.eup %16524  ;;  %15019 = vmatpush3.bf16.msra.mxu1 %v18315_v49  ;;  %v4495_v45 = vsel %vm679_vm1, %v4490_v41, 0  ;;  %15020 = vmatprep.mubr.msk.bf16.mxu1 %vm17485_vm0, %v17484_v1 }
0x1f6e   :  { %15025 = vmatpush3.bf16.xpose.msra.mxu0 %v4495_v45  ;;  %15030 = vmatprep.subr.bf16.mxu1 %v17484_v1  ;;  %v4386_v48 = vmul.f32 %v16525_v43, %v16517_v32 }
0x1f6f   :  { %v16527_v46 = vpop.eup %16526  ;;  %15036 = vmatprep.subr.bf16.mxu0 %v17484_v1 }
0x1f70   :  { %v4388_v8 = vmul.f32 %v16527_v46, %v16519_v34  ;;  %v4487_v17 = vpop.permute.xlu1 %4486 }
0x1f72   :  { %v4390_v53 = vpack.c.bf16 %v4388_v8, %v4386_v48 }
0x1f74   :  { %15021 = vmatmul.mubr.msk.bf16.vlgmr.msra.gmra.mrb[120].mxu1 %vm679_vm1, %v4390_v53 }
0x1f75   :  { %15027 = vmatmul.mubr.msk.bf16.vlgmr.msra.gmra.mrb[88].mxu0 %vm679_vm1, %v4487_v17  ;;  %15032 = vmatprep.mubr.msk.bf16.mxu1 %vm17485_vm0, %v17484_v1 }
0x1f76   :  { %15031 = vmatpush3.bf16.xpose.msra.mxu1 %v4548_v28  ;;  %15038 = vmatprep.mubr.msk.bf16.mxu0 %vm17485_vm0, %v17484_v1 }
0x1f77   :  { %15042 = vmatprep.subr.bf16.mxu1 %v17484_v1 }
0x1f7d   :  { %15033 = vmatmul.mubr.msk.bf16.vlgmr.msra.gmra.mrb[124].mxu1 %vm679_vm1, %v4540_v40 }
0x1f7e   :  { %15044 = vmatprep.mubr.msk.bf16.mxu1 %vm17485_vm0, %v17484_v1 }
0x203f   :  { %v18355_v54 = vpop.f32.mrb[116].mxu1 }
0x2040   :  { %v15016_v55 = vpop.f32.mrb[117].mxu1 }
0x2041   :  { %v18357_v56 = vpop.f32.mrb[118].mxu1 }
0x2042   :  { %v4483_v57 = vpack.c.bf16 %v18357_v56, %v18355_v54  ;;  %v15017_v59 = vpop.f32.mrb[119].mxu1 }
0x2047   :  { %v18361_v60 = vpop.f32.mrb[120].mxu1 }
0x2048   :  { %v15022_v62 = vpop.f32.mrb[121].mxu1  ;;  %v4531_v63 = vpop.f32.mrb[88].mxu0 }
0x2049   :  { %v18363_v2 = vpop.f32.mrb[122].mxu1  ;;  %v15028_v3 = vpop.f32.mrb[89].mxu0  ;;  %v4591_v19 = vsel %vm679_vm1, %v4531_v63, -inf }
0x204a   :  { %v4484_v6 = vpack.c.bf16 %v18363_v2, %v18361_v60  ;;  %v15023_v7 = vpop.f32.mrb[123].mxu1  ;;  %v18367_v13 = vpop.f32.mrb[90].mxu0 }
0x204b   :  { %v15029_v15 = vpop.f32.mrb[91].mxu0  ;;  %v4594_v42 = vsel %vm679_vm1, %v18367_v13, -inf }
0x2050   :  { %v4584_v5 = vpop.f32.mrb[124].mxu1 }
0x2051   :  { %v15034_v20 = vpop.f32.mrb[125].mxu1  ;;  %v4597_v21 = vsel %vm679_vm1, %v4584_v5, -inf }
0x2052   :  { %4598 = vmax.xlane.f32.xlu0 %v4597_v21  ;;  %v4587_v22 = vpop.f32.mrb[126].mxu1 }
0x2053   :  { %v15035_v23 = vpop.f32.mrb[127].mxu1  ;;  %v4600_v24 = vsel %vm679_vm1, %v4587_v22, -inf }
0x2054   :  { %4601 = vmax.xlane.f32.xlu1 %v4600_v24 }
0x2065   :  { %4861 = vrot.lane.b32.xlu1 %v18292_v61, %s17487_s2 }
0x2069   :  { %4859 = vrot.lane.b32.xlu1 %v18294_v51, %s17487_s2 }
0x206d   :  { %4912 = vrot.lane.b32.xlu1 %v18299_v38, %s17487_s2 }
0x2091   :  { %4592 = vmax.xlane.f32.xlu1 %v4591_v19 }
0x20a2   :  { %4638 = vrot.lane.b32.xlu1 %v18317_v50, %s17486_s29 }
0x20df   :  { %v4599_v25 = vpop.xlane.xlu0 %4598 }
0x20e0   :  { %v4605_v26 = vsub.f32 %v4584_v5, %v4599_v25 }
0x20e1   :  { %v4602_v12 = vpop.xlane.xlu1 %4601 }
0x20e2   :  { %v4611_v29 = vmul.f32 1.442695, %v4605_v26  ;;  %v4606_v32 = vsub.f32 %v4587_v22, %v4602_v12 }
0x20e4   :  { %16528 = vpow2.f32 %v4611_v29  ;;  %v4613_v58 = vmul.f32 1.442695, %v4606_v32 }
0x20e5   :  { %v4862_v18 = vpop.permute.xlu1 %4861 }
0x20e6   :  { %16530 = vpow2.f32 %v4613_v58  ;;  %v4867_v55 = vsel %vm679_vm1, %v4862_v18, 0 }
0x20e9   :  { %v4860_v37 = vpop.permute.xlu1 %4859 }
0x20ed   :  { %v4913_v9 = vpop.permute.xlu1 %4912 }
0x20ee   :  { %v16529_v34 = vpop.eup %16528  ;;  %v4918_v59 = vsel %vm679_vm1, %v4913_v9, 0 }
0x20ef   :  { %v4621_v35 = vsel %vm679_vm1, %v16529_v34, 0.0 }
0x20f0   :  { %v16531_v36 = vpop.eup %16530  ;;  %4622 = vadd.xlane.f32.xlu0 %v4621_v35 }
0x20f1   :  { %v4624_v47 = vsel %vm679_vm1, %v16531_v36, 0.0 }
0x20f4   :  { %4625 = vadd.xlane.f32.xlu0 %v4624_v47 }
0x210a   :  { %4686 = vrot.lane.b32.xlu0 %v18315_v49, %s17486_s29 }
0x210e   :  { %4910 = vrot.lane.b32.xlu0 %v18301_v39, %s17487_s2 }
0x211e   :  { %v4593_v14 = vpop.xlane.xlu1 %4592 }
0x211f   :  { %v4603_v27 = vsub.f32 %v4531_v63, %v4593_v14 }
0x2121   :  { %v4607_v16 = vmul.f32 1.442695, %v4603_v27 }
0x2122   :  { %v4639_v40 = vpop.permute.xlu1 %4638 }
0x2123   :  { %16532 = vpow2.f32 %v4607_v16  ;;  %15037 = vmatpush3.bf16.msra.mxu0 %v4639_v40 }
0x212d   :  { %v16533_v41 = vpop.eup %16532  ;;  %4595 = vmax.xlane.f32.xlu0 %v4594_v42  ;;  %v16144_v42 = vld [vmem:[#allocation14 + $0x8] sm:$0xff]  }
0x212e   :  { %v4615_v43 = vsel %vm679_vm1, %v16533_v41, 0.0  ;;  %15048 = vmatprep.subr.bf16.mxu0 %v16144_v42 }
0x2131   :  { %4616 = vadd.xlane.f32.xlu0 %v4615_v43 }
0x217d   :  { %v4623_v45 = vpop.xlane.xlu0 %4622 }
0x217e   :  { %16534 = vrcp.f32 %v4623_v45 }
0x2181   :  { %v4626_v46 = vpop.xlane.xlu0 %4625 }
0x2182   :  { %16536 = vrcp.f32 %v4626_v46 }
0x2185   :  { %v4687_v48 = vpop.permute.xlu0 %4686 }
0x2186   :  { %15043 = vmatpush3.bf16.msra.mxu1 %v4687_v48 }
0x2187   :  { %15060 = vmatprep.subr.bf16.mxu1 %v17484_v1 }
0x2188   :  { %v16535_v8 = vpop.eup %16534 }
0x2189   :  { %v4632_v53 = vmul.f32 %v16535_v8, %v16529_v34  ;;  %v4911_v62 = vpop.permute.xlu0 %4910 }
0x218c   :  { %v16537_v44 = vpop.eup %16536 }
0x218d   :  { %v4634_v17 = vmul.f32 %v16537_v44, %v16531_v36 }
0x218f   :  { %v4636_v28 = vpack.c.bf16 %v4634_v17, %v4632_v53 }
0x2191   :  { %15045 = vmatmul.mubr.msk.bf16.vlgmr.msra.gmra.mrb[128].mxu1 %vm679_vm1, %v4636_v28 }
0x2192   :  { %15061 = vmatpush3.bf16.xpose.msra.mxu1 %v4867_v55  ;;  %15062 = vmatprep.mubr.msk.bf16.mxu1 %vm17485_vm0, %v17484_v1 }
0x2193   :  { %15066 = vmatprep.subr.bf16.mxu1 %v17484_v1 }
0x2199   :  { %15063 = vmatmul.mubr.msk.bf16.vlgmr.msra.gmra.mrb[132].mxu1 %vm679_vm1, %v4860_v37 }
0x219a   :  { %15067 = vmatpush3.bf16.xpose.msra.mxu1 %v4918_v59  ;;  %15068 = vmatprep.mubr.msk.bf16.mxu1 %vm17485_vm0, %v17484_v1 }
0x219b   :  { %15078 = vmatprep.subr.bf16.mxu1 %v17484_v1 }
0x21a1   :  { %15069 = vmatmul.mubr.msk.bf16.vlgmr.msra.gmra.mrb[136].mxu1 %vm679_vm1, %v4911_v62 }
0x21a2   :  { %15080 = vmatprep.mubr.msk.bf16.mxu1 %vm17485_vm0, %v17484_v1 }
0x21ba   :  { %v4596_v63 = vpop.xlane.xlu0 %4595 }
0x21bb   :  { %v4604_v3 = vsub.f32 %v18367_v13, %v4596_v63 }
0x21bd   :  { %v4609_v7 = vmul.f32 1.442695, %v4604_v3 }
0x21be   :  { %v4617_v20 = vpop.xlane.xlu0 %4616 }
0x21bf   :  { %16538 = vpow2.f32 %v4609_v7 }
0x21c0   :  { %16540 = vrcp.f32 %v4617_v20 }
0x21c9   :  { %v16539_v15 = vpop.eup %16538 }
0x21ca   :  { %v4618_v5 = vsel %vm679_vm1, %v16539_v15, 0.0  ;;  %v16541_v22 = vpop.eup %16540 }
0x21cb   :  { %4619 = vadd.xlane.f32.xlu0 %v4618_v5  ;;  %v4628_v24 = vmul.f32 %v16541_v22, %v16533_v41  ;;  %v16145_v41 = vld [vmem:[#allocation14] sm:$0xff]  }
0x2258   :  { %v4620_v21 = vpop.xlane.xlu0 %4619 }
0x2259   :  { %16542 = vrcp.f32 %v4620_v21 }
0x2263   :  { %v16543_v23 = vpop.eup %16542 }
0x2264   :  { %v4630_v19 = vmul.f32 %v16543_v23, %v16539_v15  ;;  %v18405_v25 = vpop.f32.mrb[128].mxu1 }
0x2265   :  { %v15046_v26 = vpop.f32.mrb[129].mxu1 }
0x2266   :  { %v18407_v12 = vpop.f32.mrb[130].mxu1  ;;  %v4635_v13 = vpack.c.bf16 %v4630_v19, %v4628_v24 }
0x2267   :  { %v4736_v29 = vpack.c.bf16 %v18407_v12, %v18405_v25  ;;  %v15047_v32 = vpop.f32.mrb[131].mxu1 }
0x2268   :  { %15039 = vmatmul.mubr.msk.bf16.vlgmr.msra.gmra.mrb[92].mxu0 %vm679_vm1, %v4635_v13 }
0x2269   :  { %15049 = vmatpush3.bf16.msra.mxu0 %v16144_v42 }
0x226a   :  { %15054 = vmatprep.subr.bf16.mxu0 %v16145_v41 }
0x226c   :  { %v4903_v58 = vpop.f32.mrb[132].mxu1 }
0x226d   :  { %v15064_v34 = vpop.f32.mrb[133].mxu1  ;;  %v4961_v35 = vsel %vm679_vm1, %v4903_v58, -inf }
0x226e   :  { %4962 = vmax.xlane.f32.xlu0 %v4961_v35  ;;  %v4906_v36 = vpop.f32.mrb[134].mxu1 }
0x226f   :  { %v15065_v47 = vpop.f32.mrb[135].mxu1  ;;  %v4964_v18 = vsel %vm679_vm1, %v4906_v36, -inf }
0x2272   :  { %4965 = vmax.xlane.f32.xlu0 %v4964_v18 }
0x2274   :  { %v4954_v37 = vpop.f32.mrb[136].mxu1 }
0x2275   :  { %v15070_v9 = vpop.f32.mrb[137].mxu1  ;;  %v4967_v14 = vsel %vm679_vm1, %v4954_v37, -inf }
0x2276   :  { %4968 = vmax.xlane.f32.xlu0 %v4967_v14  ;;  %v4957_v27 = vpop.f32.mrb[138].mxu1 }
0x2277   :  { %v15071_v16 = vpop.f32.mrb[139].mxu1  ;;  %v4970_v40 = vsel %vm679_vm1, %v4957_v27, -inf }
0x227a   :  { %4971 = vmax.xlane.f32.xlu0 %v4970_v40 }
0x22fb   :  { %v4963_v43 = vpop.xlane.xlu0 %4962 }
0x22fc   :  { %v4973_v45 = vsub.f32 %v4903_v58, %v4963_v43 }
0x22fe   :  { %v4977_v46 = vmul.f32 1.442695, %v4973_v45 }
0x22ff   :  { %v4966_v48 = vpop.xlane.xlu0 %4965 }
0x2300   :  { %16544 = vpow2.f32 %v4977_v46  ;;  %v4974_v8 = vsub.f32 %v4906_v36, %v4966_v48 }
0x2302   :  { %v4979_v44 = vmul.f32 1.442695, %v4974_v8 }
0x2303   :  { %v4969_v53 = vpop.xlane.xlu0 %4968 }
0x2304   :  { %16546 = vpow2.f32 %v4979_v44  ;;  %v4975_v17 = vsub.f32 %v4954_v37, %v4969_v53 }
0x2306   :  { %v4981_v28 = vmul.f32 1.442695, %v4975_v17 }
0x2307   :  { %v4972_v55 = vpop.xlane.xlu0 %4971 }
0x2308   :  { %16548 = vpow2.f32 %v4981_v28  ;;  %v4976_v59 = vsub.f32 %v4957_v27, %v4972_v55  ;;  %v16146_v27 = vld [vmem:[#allocation14 + $0x10] sm:$0xff]  }
0x230a   :  { %v16545_v62 = vpop.eup %16544  ;;  %v4983_v63 = vmul.f32 1.442695, %v4976_v59 }
0x230b   :  { %v4985_v3 = vsel %vm679_vm1, %v16545_v62, 0.0 }
0x230c   :  { %16550 = vpow2.f32 %v4983_v63  ;;  %4986 = vadd.xlane.f32.xlu1 %v4985_v3 }
0x230e   :  { %v16547_v7 = vpop.eup %16546 }
0x230f   :  { %v4988_v15 = vsel %vm679_vm1, %v16547_v7, 0.0 }
0x2310   :  { %4989 = vadd.xlane.f32.xlu0 %v4988_v15 }
0x2312   :  { %v16549_v5 = vpop.eup %16548 }
0x2313   :  { %v4991_v20 = vsel %vm679_vm1, %v16549_v5, 0.0 }
0x2314   :  { %4992 = vadd.xlane.f32.xlu0 %v4991_v20 }
0x2316   :  { %v16551_v21 = vpop.eup %16550 }
0x2317   :  { %v4994_v22 = vsel %vm679_vm1, %v16551_v21, 0.0 }
0x2318   :  { %4995 = vadd.xlane.f32.xlu0 %v4994_v22 }
0x231d   :  { %5054 = vrot.lane.b32.xlu1 %v18315_v49, %s17487_s2 }
0x232e   :  { %5007 = vrot.lane.b32.xlu0 %v18317_v50, %s17487_s2 }
0x2332   :  { %5172 = vrot.lane.b32.xlu0 %v18292_v61, %s17488_s10 }
0x2336   :  { %5170 = vrot.lane.b32.xlu0 %v18294_v51, %s17488_s10 }
0x233a   :  { %5223 = vrot.lane.b32.xlu0 %v18299_v38, %s17488_s10 }
0x233b   :  { %v4678_v23 = vpop.f32.mrb[92].mxu0 }
0x233c   :  { %v15040_v24 = vpop.f32.mrb[93].mxu0 }
0x233d   :  { %v4681_v19 = vpop.f32.mrb[94].mxu0 }
0x233e   :  { %v4735_v26 = vpack.c.bf16 %v4681_v19, %v4678_v23  ;;  %v15041_v13 = vpop.f32.mrb[95].mxu0  ;;  %5221 = vrot.lane.b32.xlu0 %v18301_v39, %s17488_s10 }
0x2340   :  { %15050 = vmatprep.mubr.msk.bf16.mxu0 %vm679_vm1, %v4735_v26 }
0x2341   :  { %15051 = vmatmul.mubr.msk.bf16.vlgmr.msra.gmra.mrb[96].mxu0 %vm679_vm1, %v4736_v29 }
0x2342   :  { %15056 = vmatprep.mubr.msk.bf16.mxu0 %vm679_vm1, %v4483_v57  ;;  %15055 = vmatpush3.bf16.msra.mxu0 %v16145_v41 }
0x2343   :  { %15072 = vmatprep.subr.bf16.mxu0 %v17484_v1 }
0x234d   :  { %15057 = vmatmul.mubr.msk.bf16.vlgmr.msra.gmra.mrb[96].mxu0 %vm679_vm1, %v4484_v6 }
0x234e   :  { %15074 = vmatprep.mubr.msk.bf16.mxu0 %vm17485_vm0, %v17484_v1 }
0x2399   :  { %v4987_v32 = vpop.xlane.xlu1 %4986 }
0x239a   :  { %16552 = vrcp.f32 %v4987_v32 }
0x239d   :  { %v5055_v25 = vpop.permute.xlu1 %5054  ;;  %v4990_v12 = vpop.xlane.xlu0 %4989 }
0x239e   :  { %16554 = vrcp.f32 %v4990_v12  ;;  %15079 = vmatpush3.bf16.msra.mxu1 %v5055_v25 }
0x239f   :  { %15090 = vmatprep.subr.bf16.mxu1 %v17484_v1 }
0x23a1   :  { %v4993_v54 = vpop.xlane.xlu0 %4992 }
0x23a2   :  { %16556 = vrcp.f32 %v4993_v54 }
0x23a4   :  { %v16553_v57 = vpop.eup %16552 }
0x23a5   :  { %v4996_v56 = vpop.xlane.xlu0 %4995  ;;  %v4998_v60 = vmul.f32 %v16553_v57, %v16545_v62 }
0x23a6   :  { %16558 = vrcp.f32 %v4996_v56 }
0x23a8   :  { %v16555_v29 = vpop.eup %16554 }
0x23a9   :  { %v5000_v2 = vmul.f32 %v16555_v29, %v16547_v7  ;;  %v5008_v6 = vpop.permute.xlu0 %5007 }
0x23aa   :  { %15073 = vmatpush3.bf16.msra.mxu0 %v5008_v6 }
0x23ab   :  { %v5005_v58 = vpack.c.bf16 %v5000_v2, %v4998_v60  ;;  %15084 = vmatprep.subr.bf16.mxu0 %v16146_v27 }
0x23ac   :  { %v16557_v34 = vpop.eup %16556 }
0x23ad   :  { %15075 = vmatmul.mubr.msk.bf16.vlgmr.msra.gmra.mrb[100].mxu0 %vm679_vm1, %v5005_v58  ;;  %v5002_v36 = vmul.f32 %v16557_v34, %v16549_v5  ;;  %v5173_v18 = vpop.permute.xlu0 %5172 }
0x23ae   :  { %v5178_v9 = vsel %vm679_vm1, %v5173_v18, 0  ;;  %15085 = vmatpush3.bf16.msra.mxu0 %v16146_v27 }
0x23af   :  { %15096 = vmatprep.subr.bf16.mxu0 %v17484_v1 }
0x23b0   :  { %v16559_v35 = vpop.eup %16558 }
0x23b1   :  { %v5004_v47 = vmul.f32 %v16559_v35, %v16551_v21  ;;  %v5171_v14 = vpop.permute.xlu0 %5170 }
0x23b3   :  { %v5006_v37 = vpack.c.bf16 %v5004_v47, %v5002_v36 }
0x23b5   :  { %15081 = vmatmul.mubr.msk.bf16.vlgmr.msra.gmra.mrb[140].mxu1 %vm679_vm1, %v5006_v37  ;;  %v5224_v48 = vpop.permute.xlu0 %5223 }
0x23b6   :  { %15091 = vmatpush3.bf16.xpose.msra.mxu1 %v5178_v9  ;;  %15092 = vmatprep.mubr.msk.bf16.mxu1 %vm17485_vm0, %v17484_v1  ;;  %v5229_v17 = vsel %vm679_vm1, %v5224_v48, 0 }
0x23b7   :  { %15102 = vmatprep.subr.bf16.mxu1 %v17484_v1 }
0x23b9   :  { %v5222_v7 = vpop.permute.xlu0 %5221 }
0x23bd   :  { %15093 = vmatmul.mubr.msk.bf16.vlgmr.msra.gmra.mrb[144].mxu1 %vm679_vm1, %v5171_v14 }
0x23be   :  { %15104 = vmatprep.mubr.msk.bf16.mxu1 %vm17485_vm0, %v17484_v1 }
0x2480   :  { %v5047_v16 = vpop.f32.mrb[100].mxu0 }
0x2481   :  { %v15076_v40 = vpop.f32.mrb[101].mxu0 }
0x2482   :  { %v5050_v42 = vpop.f32.mrb[102].mxu0 }
0x2483   :  { %v5103_v41 = vpack.c.bf16 %v5050_v42, %v5047_v16  ;;  %v15077_v43 = vpop.f32.mrb[103].mxu0 }
0x2485   :  { %15086 = vmatprep.mubr.msk.bf16.mxu0 %vm679_vm1, %v5103_v41 }
0x2488   :  { %v5094_v45 = vpop.f32.mrb[140].mxu1 }
0x2489   :  { %v15082_v46 = vpop.f32.mrb[141].mxu1 }
0x248a   :  { %v5097_v8 = vpop.f32.mrb[142].mxu1 }
0x248b   :  { %v5104_v44 = vpack.c.bf16 %v5097_v8, %v5094_v45  ;;  %v15083_v53 = vpop.f32.mrb[143].mxu1 }
0x248d   :  { %15087 = vmatmul.mubr.msk.bf16.vlgmr.msra.gmra.mrb[96].mxu0 %vm679_vm1, %v5104_v44 }
0x248e   :  { %15097 = vmatpush3.bf16.xpose.msra.mxu0 %v5229_v17  ;;  %15098 = vmatprep.mubr.msk.bf16.mxu0 %vm17485_vm0, %v17484_v1 }
0x248f   :  { %15108 = vmatprep.subr.bf16.mxu0 %v17484_v1 }
0x2490   :  { %v5214_v28 = vpop.f32.mrb[144].mxu1 }
0x2491   :  { %v15094_v55 = vpop.f32.mrb[145].mxu1  ;;  %v5272_v59 = vsel %vm679_vm1, %v5214_v28, -inf }
0x2492   :  { %5273 = vmax.xlane.f32.xlu0 %v5272_v59  ;;  %v5217_v62 = vpop.f32.mrb[146].mxu1 }
0x2493   :  { %v15095_v63 = vpop.f32.mrb[147].mxu1  ;;  %v5275_v3 = vsel %vm679_vm1, %v5217_v62, -inf }
0x2494   :  { %5276 = vmax.xlane.f32.xlu1 %v5275_v3 }
0x2495   :  { %15099 = vmatmul.mubr.msk.bf16.vlgmr.msra.gmra.mrb[104].mxu0 %vm679_vm1, %v5222_v7 }
0x2496   :  { %15110 = vmatprep.mubr.msk.bf16.mxu0 %vm17485_vm0, %v17484_v1 }
0x24a5   :  { %5318 = vrot.lane.b32.xlu1 %v18317_v50, %s17488_s10 }
0x24a9   :  { %5481 = vrot.lane.b32.xlu1 %v18294_v51, %s17462_s0 }
0x24ad   :  { %5534 = vrot.lane.b32.xlu1 %v18299_v38, %s17462_s0 }
0x251f   :  { %v5274_v15 = vpop.xlane.xlu0 %5273 }
0x2520   :  { %v5284_v5 = vsub.f32 %v5214_v28, %v5274_v15 }
0x2521   :  { %v5277_v20 = vpop.xlane.xlu1 %5276 }
0x2522   :  { %v5288_v21 = vmul.f32 1.442695, %v5284_v5  ;;  %v5285_v22 = vsub.f32 %v5217_v62, %v5277_v20 }
0x2524   :  { %16560 = vpow2.f32 %v5288_v21  ;;  %v5290_v23 = vmul.f32 1.442695, %v5285_v22 }
0x2525   :  { %v5319_v24 = vpop.permute.xlu1 %5318 }
0x2526   :  { %16562 = vpow2.f32 %v5290_v23  ;;  %15103 = vmatpush3.bf16.msra.mxu1 %v5319_v24 }
0x2527   :  { %15120 = vmatprep.subr.bf16.mxu1 %v17484_v1 }
0x2529   :  { %v5482_v18 = vpop.permute.xlu1 %5481 }
0x252d   :  { %v5535_v9 = vpop.permute.xlu1 %5534 }
0x252e   :  { %v16561_v19 = vpop.eup %16560  ;;  %v5540_v14 = vsel %vm679_vm1, %v5535_v9, 0 }
0x252f   :  { %v5296_v26 = vsel %vm679_vm1, %v16561_v19, 0.0 }
0x2530   :  { %v16563_v13 = vpop.eup %16562  ;;  %5297 = vadd.xlane.f32.xlu0 %v5296_v26 }
0x2531   :  { %v5299_v32 = vsel %vm679_vm1, %v16563_v13, 0.0 }
0x2534   :  { %5300 = vadd.xlane.f32.xlu0 %v5299_v32 }
0x254a   :  { %5483 = vrot.lane.b32.xlu0 %v18292_v61, %s17462_s0 }
0x254e   :  { %5532 = vrot.lane.b32.xlu0 %v18301_v39, %s17462_s0 }
0x2568   :  { %v5265_v25 = vpop.f32.mrb[104].mxu0 }
0x2569   :  { %v15100_v12 = vpop.f32.mrb[105].mxu0  ;;  %v5278_v54 = vsel %vm679_vm1, %v5265_v25, -inf }
0x256a   :  { %v5268_v56 = vpop.f32.mrb[106].mxu0  ;;  %5279 = vmax.xlane.f32.xlu1 %v5278_v54 }
0x256b   :  { %v15101_v57 = vpop.f32.mrb[107].mxu0  ;;  %v5281_v29 = vsel %vm679_vm1, %v5268_v56, -inf }
0x256d   :  { %5282 = vmax.xlane.f32.xlu0 %v5281_v29  ;;  %v16147_v29 = vld [vmem:[#allocation14 + $0x18] sm:$0xff]  }
0x25bd   :  { %v5298_v60 = vpop.xlane.xlu0 %5297 }
0x25be   :  { %16564 = vrcp.f32 %v5298_v60 }
0x25c1   :  { %v5301_v2 = vpop.xlane.xlu0 %5300 }
0x25c2   :  { %16566 = vrcp.f32 %v5301_v2 }
0x25c5   :  { %v5484_v36 = vpop.permute.xlu0 %5483 }
0x25c6   :  { %v5489_v37 = vsel %vm679_vm1, %v5484_v36, 0 }
0x25c8   :  { %v16565_v6 = vpop.eup %16564 }
0x25c9   :  { %v5309_v34 = vmul.f32 %v16565_v6, %v16561_v19  ;;  %v5533_v27 = vpop.permute.xlu0 %5532 }
0x25cc   :  { %v16567_v58 = vpop.eup %16566 }
0x25cd   :  { %v5311_v35 = vmul.f32 %v16567_v58, %v16563_v13 }
0x25cf   :  { %v5316_v47 = vpack.c.bf16 %v5311_v35, %v5309_v34 }
0x25d1   :  { %15105 = vmatmul.mubr.msk.bf16.vlgmr.msra.gmra.mrb[148].mxu1 %vm679_vm1, %v5316_v47 }
0x25d2   :  { %15121 = vmatpush3.bf16.xpose.msra.mxu1 %v5489_v37  ;;  %15122 = vmatprep.mubr.msk.bf16.mxu1 %vm17485_vm0, %v17484_v1 }
0x25d3   :  { %15126 = vmatprep.subr.bf16.mxu1 %v17484_v1 }
0x25d9   :  { %15123 = vmatmul.mubr.msk.bf16.vlgmr.msra.gmra.mrb[152].mxu1 %vm679_vm1, %v5482_v18 }
0x25da   :  { %15127 = vmatpush3.bf16.xpose.msra.mxu1 %v5540_v14  ;;  %15128 = vmatprep.mubr.msk.bf16.mxu1 %vm17485_vm0, %v17484_v1 }
0x25db   :  { %15138 = vmatprep.subr.bf16.mxu1 %v17484_v1 }
0x25e1   :  { %15129 = vmatmul.mubr.msk.bf16.vlgmr.msra.gmra.mrb[156].mxu1 %vm679_vm1, %v5533_v27 }
0x25e2   :  { %15140 = vmatprep.mubr.msk.bf16.mxu1 %vm17485_vm0, %v17484_v1 }
0x25f7   :  { %v5280_v16 = vpop.xlane.xlu1 %5279 }
0x25f8   :  { %v5286_v40 = vsub.f32 %v5265_v25, %v5280_v16 }
0x25fa   :  { %v5292_v42 = vmul.f32 1.442695, %v5286_v40  ;;  %v5283_v41 = vpop.xlane.xlu0 %5282 }
0x25fb   :  { %v5287_v43 = vsub.f32 %v5268_v56, %v5283_v41 }
0x25fc   :  { %16568 = vpow2.f32 %v5292_v42 }
0x25fd   :  { %v5294_v45 = vmul.f32 1.442695, %v5287_v43 }
0x25ff   :  { %16570 = vpow2.f32 %v5294_v45 }
0x2606   :  { %v16569_v46 = vpop.eup %16568 }
0x2607   :  { %v5302_v48 = vsel %vm679_vm1, %v16569_v46, 0.0 }
0x2608   :  { %5303 = vadd.xlane.f32.xlu0 %v5302_v48 }
0x2609   :  { %v16571_v8 = vpop.eup %16570 }
0x260a   :  { %v5305_v44 = vsel %vm679_vm1, %v16571_v8, 0.0 }
0x260b   :  { %5306 = vadd.xlane.f32.xlu1 %v5305_v44 }
0x261e   :  { %5365 = vrot.lane.b32.xlu0 %v18315_v49, %s17488_s10 }
0x2695   :  { %v5304_v53 = vpop.xlane.xlu0 %5303 }
0x2696   :  { %16572 = vrcp.f32 %v5304_v53 }
0x2698   :  { %v5307_v17 = vpop.xlane.xlu1 %5306 }
0x2699   :  { %16574 = vrcp.f32 %v5307_v17  ;;  %v5366_v28 = vpop.permute.xlu0 %5365 }
0x269a   :  { %15109 = vmatpush3.bf16.msra.mxu0 %v5366_v28 }
0x269b   :  { %15114 = vmatprep.subr.bf16.mxu0 %v16147_v29 }
0x26a0   :  { %v16573_v55 = vpop.eup %16572 }
0x26a1   :  { %v5313_v62 = vmul.f32 %v16573_v55, %v16569_v46 }
0x26a3   :  { %v16575_v59 = vpop.eup %16574 }
0x26a4   :  { %v5315_v63 = vmul.f32 %v16575_v59, %v16571_v8  ;;  %v5358_v3 = vpop.f32.mrb[148].mxu1 }
0x26a5   :  { %v15106_v7 = vpop.f32.mrb[149].mxu1 }
0x26a6   :  { %v5361_v15 = vpop.f32.mrb[150].mxu1  ;;  %v5317_v5 = vpack.c.bf16 %v5315_v63, %v5313_v62 }
0x26a7   :  { %v5414_v20 = vpack.c.bf16 %v5361_v15, %v5358_v3  ;;  %v15107_v21 = vpop.f32.mrb[151].mxu1 }
0x26a8   :  { %15111 = vmatmul.mubr.msk.bf16.vlgmr.msra.gmra.mrb[108].mxu0 %vm679_vm1, %v5317_v5 }
0x26a9   :  { %15116 = vmatprep.mubr.msk.bf16.mxu0 %vm679_vm1, %v5414_v20  ;;  %15115 = vmatpush3.bf16.msra.mxu0 %v16147_v29 }
0x26aa   :  { %15132 = vmatprep.subr.bf16.mxu0 %v17484_v1 }
0x26ac   :  { %v5525_v22 = vpop.f32.mrb[152].mxu1 }
0x26ad   :  { %v15124_v23 = vpop.f32.mrb[153].mxu1  ;;  %v5583_v24 = vsel %vm679_vm1, %v5525_v22, -inf }
0x26ae   :  { %5584 = vmax.xlane.f32.xlu1 %v5583_v24  ;;  %v5528_v19 = vpop.f32.mrb[154].mxu1 }
0x26af   :  { %v15125_v26 = vpop.f32.mrb[155].mxu1  ;;  %v5586_v13 = vsel %vm679_vm1, %v5528_v19, -inf }
0x26b2   :  { %5587 = vmax.xlane.f32.xlu1 %v5586_v13 }
0x26b4   :  { %v5576_v32 = vpop.f32.mrb[156].mxu1 }
0x26b5   :  { %v15130_v25 = vpop.f32.mrb[157].mxu1  ;;  %v5589_v12 = vsel %vm679_vm1, %v5576_v32, -inf }
0x26b6   :  { %5590 = vmax.xlane.f32.xlu1 %v5589_v12  ;;  %v5579_v54 = vpop.f32.mrb[158].mxu1  ;;  %v16148_v12 = vld [vmem:[#allocation14 + $0x20] sm:$0xff]  }
0x26b7   :  { %v15131_v56 = vpop.f32.mrb[159].mxu1  ;;  %v5592_v57 = vsel %vm679_vm1, %v5579_v54, -inf }
0x26ba   :  { %5593 = vmax.xlane.f32.xlu1 %v5592_v57 }
0x273b   :  { %v5585_v60 = vpop.xlane.xlu1 %5584 }
0x273c   :  { %v5595_v2 = vsub.f32 %v5525_v22, %v5585_v60 }
0x273e   :  { %v5599_v6 = vmul.f32 1.442695, %v5595_v2 }
0x273f   :  { %v5588_v58 = vpop.xlane.xlu1 %5587 }
0x2740   :  { %16576 = vpow2.f32 %v5599_v6  ;;  %v5596_v34 = vsub.f32 %v5528_v19, %v5588_v58 }
0x2742   :  { %v5601_v35 = vmul.f32 1.442695, %v5596_v34 }
0x2743   :  { %v5591_v36 = vpop.xlane.xlu1 %5590 }
0x2744   :  { %16578 = vpow2.f32 %v5601_v35  ;;  %v5597_v47 = vsub.f32 %v5576_v32, %v5591_v36 }
0x2746   :  { %v5603_v18 = vmul.f32 1.442695, %v5597_v47 }
0x2747   :  { %v5594_v42 = vpop.xlane.xlu1 %5593 }
0x2748   :  { %16580 = vpow2.f32 %v5603_v18  ;;  %v5598_v41 = vsub.f32 %v5579_v54, %v5594_v42 }
0x274a   :  { %v16577_v37 = vpop.eup %16576  ;;  %v5605_v43 = vmul.f32 1.442695, %v5598_v41 }
0x274b   :  { %v5607_v9 = vsel %vm679_vm1, %v16577_v37, 0.0 }
0x274c   :  { %5608 = vadd.xlane.f32.xlu1 %v5607_v9  ;;  %16582 = vpow2.f32 %v5605_v43 }
0x274e   :  { %v16579_v14 = vpop.eup %16578 }
0x274f   :  { %v5610_v27 = vsel %vm679_vm1, %v16579_v14, 0.0 }
0x2750   :  { %5611 = vadd.xlane.f32.xlu1 %v5610_v27 }
0x2752   :  { %v16581_v16 = vpop.eup %16580 }
0x2753   :  { %v5613_v40 = vsel %vm679_vm1, %v16581_v16, 0.0 }
0x2754   :  { %5614 = vadd.xlane.f32.xlu0 %v5613_v40 }
0x2756   :  { %v16583_v53 = vpop.eup %16582 }
0x2757   :  { %v5616_v17 = vsel %vm679_vm1, %v16583_v53, 0.0 }
0x2761   :  { %5629 = vrot.lane.b32.xlu1 %v18317_v50, %s17462_s0 }
0x276a   :  { %5792 = vrot.lane.b32.xlu0 %v18294_v51, %s17489_s19 }
0x277b   :  { %v5405_v45 = vpop.f32.mrb[108].mxu0 }
0x277c   :  { %v15112_v46 = vpop.f32.mrb[109].mxu0 }
0x277d   :  { %v5408_v48 = vpop.f32.mrb[110].mxu0 }
0x277e   :  { %v5415_v8 = vpack.c.bf16 %v5408_v48, %v5405_v45  ;;  %v15113_v44 = vpop.f32.mrb[111].mxu0 }
0x2780   :  { %15117 = vmatmul.mubr.msk.bf16.vlgmr.msra.gmra.mrb[96].mxu0 %vm679_vm1, %v5415_v8 }
0x2781   :  { %15134 = vmatprep.mubr.msk.bf16.mxu0 %vm17485_vm0, %v17484_v1 }
0x2785   :  { %5617 = vadd.xlane.f32.xlu1 %v5616_v17 }
0x2796   :  { %5676 = vrot.lane.b32.xlu1 %v18315_v49, %s17462_s0 }
0x279a   :  { %5794 = vrot.lane.b32.xlu1 %v18292_v61, %s17489_s19 }
0x279e   :  { %5845 = vrot.lane.b32.xlu1 %v18299_v38, %s17489_s19 }
0x27a2   :  { %5843 = vrot.lane.b32.xlu1 %v18301_v39, %s17489_s19 }
0x27d9   :  { %v5609_v28 = vpop.xlane.xlu1 %5608 }
0x27da   :  { %16584 = vrcp.f32 %v5609_v28 }
0x27dd   :  { %v5612_v55 = vpop.xlane.xlu1 %5611 }
0x27de   :  { %16586 = vrcp.f32 %v5612_v55 }
0x27e1   :  { %v5630_v59 = vpop.permute.xlu1 %5629  ;;  %v5615_v5 = vpop.xlane.xlu0 %5614 }
0x27e2   :  { %15133 = vmatpush3.bf16.msra.mxu0 %v5630_v59  ;;  %16588 = vrcp.f32 %v5615_v5 }
0x27e3   :  { %15144 = vmatprep.subr.bf16.mxu0 %v16148_v12 }
0x27e4   :  { %v16585_v62 = vpop.eup %16584 }
0x27e5   :  { %v5620_v3 = vmul.f32 %v16585_v62, %v16577_v37  ;;  %v5793_v25 = vpop.permute.xlu0 %5792 }
0x27e8   :  { %v16587_v63 = vpop.eup %16586 }
0x27e9   :  { %v5622_v7 = vmul.f32 %v16587_v63, %v16579_v14 }
0x27eb   :  { %v5627_v15 = vpack.c.bf16 %v5622_v7, %v5620_v3 }
0x27ec   :  { %v16589_v22 = vpop.eup %16588 }
0x27ed   :  { %15135 = vmatmul.mubr.msk.bf16.vlgmr.msra.gmra.mrb[112].mxu0 %vm679_vm1, %v5627_v15  ;;  %v5624_v24 = vmul.f32 %v16589_v22, %v16581_v16 }
0x27ee   :  { %15145 = vmatpush3.bf16.msra.mxu0 %v16148_v12 }
0x27ef   :  { %15156 = vmatprep.subr.bf16.mxu0 %v17484_v1 }
0x2812   :  { %v5618_v20 = vpop.xlane.xlu1 %5617 }
0x2813   :  { %16590 = vrcp.f32 %v5618_v20 }
0x2816   :  { %v5677_v21 = vpop.permute.xlu1 %5676 }
0x2817   :  { %15139 = vmatpush3.bf16.msra.mxu1 %v5677_v21 }
0x2818   :  { %15150 = vmatprep.subr.bf16.mxu1 %v17484_v1 }
0x281a   :  { %v5795_v26 = vpop.permute.xlu1 %5794 }
0x281b   :  { %v5800_v32 = vsel %vm679_vm1, %v5795_v26, 0 }
0x281d   :  { %v16591_v23 = vpop.eup %16590 }
0x281e   :  { %v5626_v19 = vmul.f32 %v16591_v23, %v16583_v53  ;;  %v5846_v58 = vpop.permute.xlu1 %5845 }
0x281f   :  { %v5851_v47 = vsel %vm679_vm1, %v5846_v58, 0 }
0x2820   :  { %v5628_v13 = vpack.c.bf16 %v5626_v19, %v5624_v24 }
0x2822   :  { %15141 = vmatmul.mubr.msk.bf16.vlgmr.msra.gmra.mrb[160].mxu1 %vm679_vm1, %v5628_v13  ;;  %v5844_v40 = vpop.permute.xlu1 %5843 }
0x2823   :  { %15151 = vmatpush3.bf16.xpose.msra.mxu1 %v5800_v32  ;;  %15152 = vmatprep.mubr.msk.bf16.mxu1 %vm17485_vm0, %v17484_v1 }
0x2824   :  { %15162 = vmatprep.subr.bf16.mxu1 %v17484_v1 }
0x282a   :  { %15153 = vmatmul.mubr.msk.bf16.vlgmr.msra.gmra.mrb[164].mxu1 %vm679_vm1, %v5793_v25 }
0x282b   :  { %15164 = vmatprep.mubr.msk.bf16.mxu1 %vm17485_vm0, %v17484_v1 }
0x28c0   :  { %v5669_v54 = vpop.f32.mrb[112].mxu0 }
0x28c1   :  { %v15136_v56 = vpop.f32.mrb[113].mxu0 }
0x28c2   :  { %v5672_v57 = vpop.f32.mrb[114].mxu0 }
0x28c3   :  { %v5725_v29 = vpack.c.bf16 %v5672_v57, %v5669_v54  ;;  %v15137_v60 = vpop.f32.mrb[115].mxu0 }
0x28c5   :  { %15146 = vmatprep.mubr.msk.bf16.mxu0 %vm679_vm1, %v5725_v29 }
0x28f5   :  { %v5716_v2 = vpop.f32.mrb[160].mxu1 }
0x28f6   :  { %v15142_v6 = vpop.f32.mrb[161].mxu1 }
0x28f7   :  { %v5719_v34 = vpop.f32.mrb[162].mxu1 }
0x28f8   :  { %v5726_v35 = vpack.c.bf16 %v5719_v34, %v5716_v2  ;;  %v15143_v36 = vpop.f32.mrb[163].mxu1 }
0x28fa   :  { %15147 = vmatmul.mubr.msk.bf16.vlgmr.msra.gmra.mrb[96].mxu0 %vm679_vm1, %v5726_v35 }
0x28fb   :  { %15157 = vmatpush3.bf16.xpose.msra.mxu0 %v5851_v47  ;;  %15158 = vmatprep.mubr.msk.bf16.mxu0 %vm17485_vm0, %v17484_v1 }
0x28fc   :  { %15168 = vmatprep.subr.bf16.mxu0 %v17484_v1 }
0x28fd   :  { %v5836_v18 = vpop.f32.mrb[164].mxu1 }
0x28fe   :  { %v15154_v37 = vpop.f32.mrb[165].mxu1  ;;  %v5894_v9 = vsel %vm679_vm1, %v5836_v18, -inf }
0x28ff   :  { %5895 = vmax.xlane.f32.xlu1 %v5894_v9  ;;  %v5839_v14 = vpop.f32.mrb[166].mxu1 }
0x2900   :  { %v15155_v27 = vpop.f32.mrb[167].mxu1  ;;  %v5897_v16 = vsel %vm679_vm1, %v5839_v14, -inf }
0x2901   :  { %5898 = vmax.xlane.f32.xlu0 %v5897_v16 }
0x2902   :  { %15159 = vmatmul.mubr.msk.bf16.vlgmr.msra.gmra.mrb[116].mxu0 %vm679_vm1, %v5844_v40 }
0x2903   :  { %15170 = vmatprep.mubr.msk.bf16.mxu0 %vm17485_vm0, %v17484_v1 }
0x2910   :  { %6105 = vrot.lane.b32.xlu1 %v18292_v61, %s17490_s11 }
0x2917   :  { %5940 = vrot.lane.b32.xlu0 %v18317_v50, %s17489_s19 }
0x291b   :  { %6154 = vrot.lane.b32.xlu0 %v18301_v39, %s17490_s11 }
0x298c   :  { %v5896_v42 = vpop.xlane.xlu1 %5895 }
0x298d   :  { %v5906_v41 = vsub.f32 %v5836_v18, %v5896_v42 }
0x298e   :  { %v5899_v43 = vpop.xlane.xlu0 %5898 }
0x298f   :  { %v5910_v45 = vmul.f32 1.442695, %v5906_v41  ;;  %v5907_v46 = vsub.f32 %v5839_v14, %v5899_v43 }
0x2990   :  { %v6106_v15 = vpop.permute.xlu1 %6105 }
0x2991   :  { %16592 = vpow2.f32 %v5910_v45  ;;  %v5912_v48 = vmul.f32 1.442695, %v5907_v46  ;;  %v6111_v13 = vsel %vm679_vm1, %v6106_v15, 0 }
0x2992   :  { %v5941_v8 = vpop.permute.xlu0 %5940 }
0x2993   :  { %16594 = vpow2.f32 %v5912_v48  ;;  %15163 = vmatpush3.bf16.msra.mxu1 %v5941_v8 }
0x2994   :  { %15180 = vmatprep.subr.bf16.mxu1 %v17484_v1 }
0x2996   :  { %v6155_v12 = vpop.permute.xlu0 %6154 }
0x299b   :  { %v16593_v44 = vpop.eup %16592 }
0x299c   :  { %v5918_v53 = vsel %vm679_vm1, %v16593_v44, 0.0 }
0x299d   :  { %v16595_v17 = vpop.eup %16594  ;;  %5919 = vadd.xlane.f32.xlu1 %v5918_v53 }
0x299e   :  { %v5921_v28 = vsel %vm679_vm1, %v16595_v17, 0.0 }
0x29a1   :  { %5922 = vadd.xlane.f32.xlu1 %v5921_v28 }
0x29b2   :  { %6103 = vrot.lane.b32.xlu1 %v18294_v51, %s17490_s11 }
0x29b6   :  { %6156 = vrot.lane.b32.xlu1 %v18299_v38, %s17490_s11 }
0x29d5   :  { %v5887_v55 = vpop.f32.mrb[116].mxu0 }
0x29d6   :  { %v15160_v59 = vpop.f32.mrb[117].mxu0  ;;  %v5900_v7 = vsel %vm679_vm1, %v5887_v55, -inf }
0x29d7   :  { %v5890_v62 = vpop.f32.mrb[118].mxu0 }
0x29d8   :  { %v15161_v63 = vpop.f32.mrb[119].mxu0  ;;  %v5903_v3 = vsel %vm679_vm1, %v5890_v62, -inf }
0x29d9   :  { %5904 = vmax.xlane.f32.xlu0 %v5903_v3 }
0x29da   :  { %5901 = vmax.xlane.f32.xlu1 %v5900_v7  ;;  %v16149_v7 = vld [vmem:[#allocation14 + $0x28] sm:$0xff]  }
0x29eb   :  { %5987 = vrot.lane.b32.xlu1 %v18315_v49, %s17489_s19 }
0x2a2a   :  { %v5920_v5 = vpop.xlane.xlu1 %5919 }
0x2a2b   :  { %16596 = vrcp.f32 %v5920_v5 }
0x2a2e   :  { %v5923_v20 = vpop.xlane.xlu1 %5922 }
0x2a2f   :  { %16598 = vrcp.f32 %v5923_v20 }
0x2a32   :  { %v6104_v26 = vpop.permute.xlu1 %6103 }
0x2a35   :  { %v16597_v21 = vpop.eup %16596 }
0x2a36   :  { %v5931_v23 = vmul.f32 %v16597_v21, %v16593_v44  ;;  %v6157_v32 = vpop.permute.xlu1 %6156 }
0x2a37   :  { %v6162_v25 = vsel %vm679_vm1, %v6157_v32, 0 }
0x2a39   :  { %v16599_v22 = vpop.eup %16598 }
0x2a3a   :  { %v5933_v24 = vmul.f32 %v16599_v22, %v16595_v17 }
0x2a3c   :  { %v5938_v19 = vpack.c.bf16 %v5933_v24, %v5931_v23 }
0x2a3e   :  { %15165 = vmatmul.mubr.msk.bf16.vlgmr.msra.gmra.mrb[168].mxu1 %vm679_vm1, %v5938_v19 }
0x2a3f   :  { %15181 = vmatpush3.bf16.xpose.msra.mxu1 %v6111_v13  ;;  %15182 = vmatprep.mubr.msk.bf16.mxu1 %vm17485_vm0, %v17484_v1 }
0x2a40   :  { %15186 = vmatprep.subr.bf16.mxu1 %v17484_v1 }
0x2a46   :  { %15183 = vmatmul.mubr.msk.bf16.vlgmr.msra.gmra.mrb[172].mxu1 %vm679_vm1, %v6104_v26 }
0x2a47   :  { %15187 = vmatpush3.bf16.xpose.msra.mxu1 %v6162_v25  ;;  %15188 = vmatprep.mubr.msk.bf16.mxu1 %vm17485_vm0, %v17484_v1 }
0x2a48   :  { %15198 = vmatprep.subr.bf16.mxu1 %v17484_v1 }
0x2a4e   :  { %15189 = vmatmul.mubr.msk.bf16.vlgmr.msra.gmra.mrb[176].mxu1 %vm679_vm1, %v6155_v12 }
0x2a4f   :  { %15200 = vmatprep.mubr.msk.bf16.mxu1 %vm17485_vm0, %v17484_v1 }
0x2a66   :  { %v5905_v54 = vpop.xlane.xlu0 %5904 }
0x2a67   :  { %v5909_v56 = vsub.f32 %v5890_v62, %v5905_v54  ;;  %v5902_v57 = vpop.xlane.xlu1 %5901 }
0x2a68   :  { %v5908_v29 = vsub.f32 %v5887_v55, %v5902_v57 }
0x2a69   :  { %v5916_v60 = vmul.f32 1.442695, %v5909_v56 }
0x2a6a   :  { %v5914_v2 = vmul.f32 1.442695, %v5908_v29 }
0x2a6b   :  { %v5988_v6 = vpop.permute.xlu1 %5987 }
0x2a6c   :  { %16600 = vpow2.f32 %v5914_v2  ;;  %15169 = vmatpush3.bf16.msra.mxu0 %v5988_v6 }
0x2a6d   :  { %16602 = vpow2.f32 %v5916_v60  ;;  %15174 = vmatprep.subr.bf16.mxu0 %v16149_v7 }
0x2a76   :  { %v16601_v58 = vpop.eup %16600 }
0x2a77   :  { %v5924_v34 = vsel %vm679_vm1, %v16601_v58, 0.0  ;;  %v16603_v35 = vpop.eup %16602 }
0x2a78   :  { %5925 = vadd.xlane.f32.xlu0 %v5924_v34  ;;  %v5927_v36 = vsel %vm679_vm1, %v16603_v35, 0.0 }
0x2a7c   :  { %5928 = vadd.xlane.f32.xlu0 %v5927_v36 }
0x2b05   :  { %v5926_v47 = vpop.xlane.xlu0 %5925 }
0x2b06   :  { %16604 = vrcp.f32 %v5926_v47 }
0x2b09   :  { %v5929_v18 = vpop.xlane.xlu0 %5928 }
0x2b0a   :  { %16606 = vrcp.f32 %v5929_v18 }
0x2b10   :  { %v16605_v9 = vpop.eup %16604 }
0x2b11   :  { %v5980_v37 = vpop.f32.mrb[168].mxu1  ;;  %v5935_v41 = vmul.f32 %v16605_v9, %v16601_v58 }
0x2b12   :  { %v15166_v14 = vpop.f32.mrb[169].mxu1 }
0x2b13   :  { %v5983_v27 = vpop.f32.mrb[170].mxu1 }
0x2b14   :  { %v16607_v16 = vpop.eup %16606  ;;  %v6036_v40 = vpack.c.bf16 %v5983_v27, %v5980_v37  ;;  %v15167_v42 = vpop.f32.mrb[171].mxu1 }
0x2b15   :  { %v5937_v43 = vmul.f32 %v16607_v16, %v16603_v35 }
0x2b17   :  { %v5939_v45 = vpack.c.bf16 %v5937_v43, %v5935_v41 }
0x2b19   :  { %15171 = vmatmul.mubr.msk.bf16.vlgmr.msra.gmra.mrb[120].mxu0 %vm679_vm1, %v5939_v45  ;;  %v6147_v46 = vpop.f32.mrb[172].mxu1 }
0x2b1a   :  { %15176 = vmatprep.mubr.msk.bf16.mxu0 %vm679_vm1, %v6036_v40  ;;  %v15184_v48 = vpop.f32.mrb[173].mxu1  ;;  %v6205_v8 = vsel %vm679_vm1, %v6147_v46, -inf  ;;  %15175 = vmatpush3.bf16.msra.mxu0 %v16149_v7 }
0x2b1b   :  { %6206 = vmax.xlane.f32.xlu0 %v6205_v8  ;;  %v6150_v44 = vpop.f32.mrb[174].mxu1  ;;  %15192 = vmatprep.subr.bf16.mxu0 %v17484_v1 }
0x2b1c   :  { %v15185_v53 = vpop.f32.mrb[175].mxu1  ;;  %v6208_v17 = vsel %vm679_vm1, %v6150_v44, -inf }
0x2b1f   :  { %6209 = vmax.xlane.f32.xlu0 %v6208_v17  ;;  %v16150_v17 = vld [vmem:[#allocation14 + $0x30] sm:$0xff]  }
0x2b21   :  { %v6198_v28 = vpop.f32.mrb[176].mxu1 }
0x2b22   :  { %v15190_v55 = vpop.f32.mrb[177].mxu1  ;;  %v6211_v59 = vsel %vm679_vm1, %v6198_v28, -inf }
0x2b23   :  { %6212 = vmax.xlane.f32.xlu0 %v6211_v59  ;;  %v6201_v62 = vpop.f32.mrb[178].mxu1 }
0x2b24   :  { %v15191_v63 = vpop.f32.mrb[179].mxu1  ;;  %v6214_v3 = vsel %vm679_vm1, %v6201_v62, -inf }
0x2b27   :  { %6215 = vmax.xlane.f32.xlu0 %v6214_v3 }
0x2ba8   :  { %v6207_v15 = vpop.xlane.xlu0 %6206 }
0x2ba9   :  { %v6217_v5 = vsub.f32 %v6147_v46, %v6207_v15 }
0x2bab   :  { %v6221_v20 = vmul.f32 1.442695, %v6217_v5 }
0x2bac   :  { %v6210_v21 = vpop.xlane.xlu0 %6209 }
0x2bad   :  { %16608 = vpow2.f32 %v6221_v20  ;;  %v6218_v22 = vsub.f32 %v6150_v44, %v6210_v21 }
0x2baf   :  { %v6223_v23 = vmul.f32 1.442695, %v6218_v22 }
0x2bb0   :  { %v6213_v24 = vpop.xlane.xlu0 %6212 }
0x2bb1   :  { %16610 = vpow2.f32 %v6223_v23  ;;  %v6219_v19 = vsub.f32 %v6198_v28, %v6213_v24 }
0x2bb3   :  { %v6225_v26 = vmul.f32 1.442695, %v6219_v19 }
0x2bb4   :  { %v6216_v13 = vpop.xlane.xlu0 %6215 }
0x2bb5   :  { %16612 = vpow2.f32 %v6225_v26  ;;  %v6220_v32 = vsub.f32 %v6201_v62, %v6216_v13 }
0x2bb7   :  { %v16609_v25 = vpop.eup %16608  ;;  %v6227_v12 = vmul.f32 1.442695, %v6220_v32 }
0x2bb8   :  { %v6229_v54 = vsel %vm679_vm1, %v16609_v25, 0.0 }
0x2bb9   :  { %16614 = vpow2.f32 %v6227_v12  ;;  %6230 = vadd.xlane.f32.xlu1 %v6229_v54 }
0x2bbb   :  { %v16611_v56 = vpop.eup %16610 }
0x2bbc   :  { %v6232_v57 = vsel %vm679_vm1, %v16611_v56, 0.0 }
0x2bbd   :  { %6233 = vadd.xlane.f32.xlu0 %v6232_v57 }
0x2bbf   :  { %v16613_v29 = vpop.eup %16612 }
0x2bc0   :  { %v6235_v60 = vsel %vm679_vm1, %v16613_v29, 0.0 }
0x2bc1   :  { %6236 = vadd.xlane.f32.xlu0 %v6235_v60 }
0x2bc3   :  { %v16615_v2 = vpop.eup %16614 }
0x2bc4   :  { %v6238_v6 = vsel %vm679_vm1, %v16615_v2, 0.0 }
0x2bc5   :  { %6239 = vadd.xlane.f32.xlu0 %v6238_v6 }
0x2bca   :  { %6298 = vrot.lane.b32.xlu1 %v18315_v49, %s17490_s11 }
0x2bdb   :  { %6251 = vrot.lane.b32.xlu0 %v18317_v50, %s17490_s11 }
0x2bdf   :  { %6416 = vrot.lane.b32.xlu0 %v18292_v61, %s17460_s9 }
0x2be3   :  { %6467 = vrot.lane.b32.xlu0 %v18299_v38, %s17460_s9 }
0x2be7   :  { %6414 = vrot.lane.b32.xlu0 %v18294_v51, %s17460_s9 }
0x2beb   :  { %6465 = vrot.lane.b32.xlu0 %v18301_v39, %s17460_s9 }
0x2bec   :  { %v6027_v58 = vpop.f32.mrb[120].mxu0 }
0x2bed   :  { %v15172_v34 = vpop.f32.mrb[121].mxu0 }
0x2bee   :  { %v6030_v35 = vpop.f32.mrb[122].mxu0 }
0x2bef   :  { %v6037_v36 = vpack.c.bf16 %v6030_v35, %v6027_v58  ;;  %v15173_v47 = vpop.f32.mrb[123].mxu0 }
0x2bf1   :  { %15177 = vmatmul.mubr.msk.bf16.vlgmr.msra.gmra.mrb[96].mxu0 %vm679_vm1, %v6037_v36 }
0x2bf2   :  { %15194 = vmatprep.mubr.msk.bf16.mxu0 %vm17485_vm0, %v17484_v1 }
0x2c46   :  { %v6231_v61 = vpop.xlane.xlu1 %6230 }
0x2c47   :  { %16616 = vrcp.f32 %v6231_v61 }
0x2c4a   :  { %v6299_v18 = vpop.permute.xlu1 %6298  ;;  %v6234_v38 = vpop.xlane.xlu0 %6233 }
0x2c4b   :  { %16618 = vrcp.f32 %v6234_v38  ;;  %15199 = vmatpush3.bf16.msra.mxu1 %v6299_v18 }
0x2c4c   :  { %15210 = vmatprep.subr.bf16.mxu1 %v17484_v1 }
0x2c4e   :  { %v6237_v51 = vpop.xlane.xlu0 %6236 }
0x2c4f   :  { %16620 = vrcp.f32 %v6237_v51 }
0x2c51   :  { %v16617_v37 = vpop.eup %16616 }
0x2c52   :  { %v6240_v39 = vpop.xlane.xlu0 %6239  ;;  %v6242_v14 = vmul.f32 %v16617_v37, %v16609_v25 }
0x2c53   :  { %16622 = vrcp.f32 %v6240_v39 }
0x2c55   :  { %v16619_v9 = vpop.eup %16618 }
0x2c56   :  { %v6244_v27 = vmul.f32 %v16619_v9, %v16611_v56  ;;  %v6252_v16 = vpop.permute.xlu0 %6251 }
0x2c57   :  { %15193 = vmatpush3.bf16.msra.mxu0 %v6252_v16 }
0x2c58   :  { %v6249_v40 = vpack.c.bf16 %v6244_v27, %v6242_v14  ;;  %15204 = vmatprep.subr.bf16.mxu0 %v16150_v17 }
0x2c59   :  { %v16621_v42 = vpop.eup %16620 }
0x2c5a   :  { %15195 = vmatmul.mubr.msk.bf16.vlgmr.msra.gmra.mrb[124].mxu0 %vm679_vm1, %v6249_v40  ;;  %v6417_v43 = vpop.permute.xlu0 %6416  ;;  %v6246_v45 = vmul.f32 %v16621_v42, %v16613_v29 }
0x2c5b   :  { %v6422_v8 = vsel %vm679_vm1, %v6417_v43, 0  ;;  %15205 = vmatpush3.bf16.msra.mxu0 %v16150_v17 }
0x2c5c   :  { %15216 = vmatprep.subr.bf16.mxu0 %v17484_v1 }
0x2c5d   :  { %v16623_v41 = vpop.eup %16622 }
0x2c5e   :  { %v6248_v46 = vmul.f32 %v16623_v41, %v16615_v2  ;;  %v6468_v44 = vpop.permute.xlu0 %6467 }
0x2c5f   :  { %v6473_v21 = vsel %vm679_vm1, %v6468_v44, 0 }
0x2c60   :  { %v6250_v48 = vpack.c.bf16 %v6248_v46, %v6246_v45 }
0x2c62   :  { %15201 = vmatmul.mubr.msk.bf16.vlgmr.msra.gmra.mrb[180].mxu1 %vm679_vm1, %v6250_v48  ;;  %v6415_v53 = vpop.permute.xlu0 %6414 }
0x2c63   :  { %15211 = vmatpush3.bf16.xpose.msra.mxu1 %v6422_v8  ;;  %15212 = vmatprep.mubr.msk.bf16.mxu1 %vm17485_vm0, %v17484_v1 }
0x2c64   :  { %15222 = vmatprep.subr.bf16.mxu1 %v17484_v1 }
0x2c66   :  { %v6466_v32 = vpop.permute.xlu0 %6465 }
0x2c6a   :  { %15213 = vmatmul.mubr.msk.bf16.vlgmr.msra.gmra.mrb[184].mxu1 %vm679_vm1, %v6415_v53 }
0x2c6b   :  { %15224 = vmatprep.mubr.msk.bf16.mxu1 %vm17485_vm0, %v17484_v1 }
0x2d2d   :  { %v6291_v28 = vpop.f32.mrb[124].mxu0 }
0x2d2e   :  { %v15196_v55 = vpop.f32.mrb[125].mxu0 }
0x2d2f   :  { %v6294_v59 = vpop.f32.mrb[126].mxu0 }
0x2d30   :  { %v6347_v62 = vpack.c.bf16 %v6294_v59, %v6291_v28  ;;  %v15197_v63 = vpop.f32.mrb[127].mxu0 }
0x2d32   :  { %15206 = vmatprep.mubr.msk.bf16.mxu0 %vm679_vm1, %v6347_v62 }
0x2d35   :  { %v6338_v3 = vpop.f32.mrb[180].mxu1 }
0x2d36   :  { %v15202_v7 = vpop.f32.mrb[181].mxu1 }
0x2d37   :  { %v6341_v15 = vpop.f32.mrb[182].mxu1  ;;  %v16152_v7 = vld [vmem:[#allocation16] ss:$16 sps:$4 sm:$0xff]  }
0x2d38   :  { %v6348_v5 = vpack.c.bf16 %v6341_v15, %v6338_v3  ;;  %v15203_v20 = vpop.f32.mrb[183].mxu1  ;;  %v16151_v3 = vld [vmem:[#allocation14 + $0x38] sm:$0xff]   ;;  %v16154_v15 = vld [vmem:[#allocation16 + $0x4] ss:$16 sps:$4 sm:$0xff]  }
0x2d39   :  { %v16160_v20 = vld [vmem:[#allocation16 + $0x24] ss:$16 sps:$4 sm:$0xff]  }
0x2d3a   :  { %15207 = vmatmul.mubr.msk.bf16.vlgmr.msra.gmra.mrb[96].mxu0 %vm679_vm1, %v6348_v5  ;;  %v16157_v5 = vld [vmem:[#allocation16 + $0xc] ss:$16 sps:$4 sm:$0xff]  }
0x2d3b   :  { %15217 = vmatpush3.bf16.xpose.msra.mxu0 %v6473_v21  ;;  %15218 = vmatprep.mubr.msk.bf16.mxu0 %vm17485_vm0, %v17484_v1  ;;  %v16158_v21 = vld [vmem:[#allocation16 + $0x20] ss:$16 sps:$4 sm:$0xff]  }
0x2d3c   :  { %15228 = vmatprep.subr.bf16.mxu0 %v17484_v1 }
0x2d3d   :  { %v6458_v22 = vpop.f32.mrb[184].mxu1 }
0x2d3e   :  { %v15214_v23 = vpop.f32.mrb[185].mxu1  ;;  %v6516_v24 = vsel %vm679_vm1, %v6458_v22, -inf }
0x2d3f   :  { %6517 = vmax.xlane.f32.xlu0 %v6516_v24  ;;  %v6461_v19 = vpop.f32.mrb[186].mxu1  ;;  %v16164_v23 = vld [vmem:[#allocation16 + $0x40] ss:$16 sps:$4 sm:$0xff]   ;;  %v16172_v24 = vld [vmem:[#allocation16 + $0x64] ss:$16 sps:$4 sm:$0xff]  }
0x2d40   :  { %v15215_v26 = vpop.f32.mrb[187].mxu1  ;;  %v6519_v13 = vsel %vm679_vm1, %v6461_v19, -inf }
0x2d41   :  { %6520 = vmax.xlane.f32.xlu1 %v6519_v13  ;;  %v16178_v26 = vld [vmem:[#allocation16 + $0x84] ss:$16 sps:$4 sm:$0xff]   ;;  %v16176_v13 = vld [vmem:[#allocation16 + $0x80] ss:$16 sps:$4 sm:$0xff]  }
0x2d42   :  { %15219 = vmatmul.mubr.msk.bf16.vlgmr.msra.gmra.mrb[128].mxu0 %vm679_vm1, %v6466_v32  ;;  %v16184_v32 = vld [vmem:[#allocation16 + $0xa4] ss:$16 sps:$4 sm:$0xff]  }
0x2d43   :  { %15230 = vmatprep.mubr.msk.bf16.mxu0 %vm17485_vm0, %v17484_v1 }
0x2dcc   :  { %v6518_v25 = vpop.xlane.xlu0 %6517 }
0x2dcd   :  { %v6528_v12 = vsub.f32 %v6458_v22, %v6518_v25  ;;  %v16166_v22 = vld [vmem:[#allocation16 + $0x44] ss:$16 sps:$4 sm:$0xff]   ;;  %v16182_v25 = vld [vmem:[#allocation16 + $0xa0] ss:$16 sps:$4 sm:$0xff]  }
0x2dce   :  { %v6521_v29 = vpop.xlane.xlu1 %6520 }
0x2dcf   :  { %v6532_v54 = vmul.f32 1.442695, %v6528_v12  ;;  %v6529_v60 = vsub.f32 %v6461_v19, %v6521_v29  ;;  %v16170_v19 = vld [vmem:[#allocation16 + $0x60] ss:$16 sps:$4 sm:$0xff]  }
0x2dd1   :  { %16624 = vpow2.f32 %v6532_v54  ;;  %v6534_v2 = vmul.f32 1.442695, %v6529_v60 }
0x2dd3   :  { %16626 = vpow2.f32 %v6534_v2 }
0x2ddb   :  { %v16625_v56 = vpop.eup %16624 }
0x2ddc   :  { %v6540_v57 = vsel %vm679_vm1, %v16625_v56, 0.0 }
0x2ddd   :  { %6541 = vadd.xlane.f32.xlu1 %v6540_v57  ;;  %v16627_v61 = vpop.eup %16626 }
0x2dde   :  { %v6543_v18 = vsel %vm679_vm1, %v16627_v61, 0.0 }
0x2e15   :  { %v6509_v6 = vpop.f32.mrb[128].mxu0 }
0x2e16   :  { %v15220_v58 = vpop.f32.mrb[129].mxu0  ;;  %v6522_v34 = vsel %vm679_vm1, %v6509_v6, -inf }
0x2e17   :  { %v6512_v35 = vpop.f32.mrb[130].mxu0  ;;  %6523 = vmax.xlane.f32.xlu0 %v6522_v34  ;;  %v16155_v58 = vld [vmem:[#allocation16 + $0x8] ss:$16 sps:$4 sm:$0xff]  }
0x2e18   :  { %v15221_v36 = vpop.f32.mrb[131].mxu0  ;;  %v6525_v47 = vsel %vm679_vm1, %v6512_v35, -inf }
0x2e19   :  { %v16163_v36 = vld [vmem:[#allocation16 + $0x2c] ss:$16 sps:$4 sm:$0xff]  }
0x2e1b   :  { %6526 = vmax.xlane.f32.xlu0 %v6525_v47  ;;  %v16161_v47 = vld [vmem:[#allocation16 + $0x28] ss:$16 sps:$4 sm:$0xff]  }
0x2e1f   :  { %6544 = vadd.xlane.f32.xlu0 %v6543_v18  ;;  %v16167_v18 = vld [vmem:[#allocation16 + $0x48] ss:$16 sps:$4 sm:$0xff]  }
0x2e6a   :  { %v6542_v43 = vpop.xlane.xlu1 %6541 }
0x2ea4   :  { %v6524_v38 = vpop.xlane.xlu0 %6523 }
0x2ea5   :  { %v6530_v51 = vsub.f32 %v6509_v6, %v6524_v38  ;;  %v16175_v38 = vld [vmem:[#allocation16 + $0x6c] ss:$16 sps:$4 sm:$0xff]  }
0x2ea7   :  { %v6536_v39 = vmul.f32 1.442695, %v6530_v51  ;;  %v16173_v51 = vld [vmem:[#allocation16 + $0x68] ss:$16 sps:$4 sm:$0xff]  }
0x2ea8   :  { %v6527_v37 = vpop.xlane.xlu0 %6526 }
0x2ea9   :  { %16628 = vpow2.f32 %v6536_v39  ;;  %v6531_v9 = vsub.f32 %v6512_v35, %v6527_v37  ;;  %v16181_v39 = vld [vmem:[#allocation16 + $0x8c] ss:$16 sps:$4 sm:$0xff]   ;;  %v16179_v37 = vld [vmem:[#allocation16 + $0x88] ss:$16 sps:$4 sm:$0xff]  }
0x2eab   :  { %v6538_v14 = vmul.f32 1.442695, %v6531_v9  ;;  %v16187_v9 = vld [vmem:[#allocation16 + $0xac] ss:$16 sps:$4 sm:$0xff]  }
0x2eac   :  { %v6545_v41 = vpop.xlane.xlu0 %6544 }
0x2ead   :  { %16630 = vpow2.f32 %v6538_v14  ;;  %v16185_v14 = vld [vmem:[#allocation16 + $0xa8] ss:$16 sps:$4 sm:$0xff]  }
0x2eae   :  { %16632 = vrcp.f32 %v6545_v41  ;;  %v16194_v41 = vld [vmem:[#allocation16 + $0xe0] ss:$16 sps:$4 sm:$0xff]  }
0x2eaf   :  { %16634 = vrcp.f32 %v6542_v43  ;;  %v16196_v43 = vld [vmem:[#allocation16 + $0xe4] ss:$16 sps:$4 sm:$0xff]  }
0x2eb3   :  { %v16629_v27 = vpop.eup %16628 }
0x2eb4   :  { %v6546_v16 = vsel %vm679_vm1, %v16629_v27, 0.0 }
0x2eb5   :  { %6547 = vadd.xlane.f32.xlu1 %v6546_v16  ;;  %v16190_v16 = vld [vmem:[#allocation16 + $0xc4] ss:$16 sps:$4 sm:$0xff]  }
0x2eb7   :  { %v16631_v40 = vpop.eup %16630 }
0x2eb8   :  { %v6549_v42 = vsel %vm679_vm1, %v16631_v40, 0.0  ;;  %v16633_v45 = vpop.eup %16632 }
0x2eb9   :  { %6550 = vadd.xlane.f32.xlu0 %v6549_v42  ;;  %v16635_v48 = vpop.eup %16634  ;;  %v6555_v8 = vmul.f32 %v16633_v45, %v16627_v61  ;;  %v16169_v61 = vld [vmem:[#allocation16 + $0x4c] ss:$16 sps:$4 sm:$0xff]   ;;  %v16197_v45 = vld [vmem:[#allocation16 + $0xe8] ss:$16 sps:$4 sm:$0xff]  }
0x2eba   :  { %v6553_v44 = vmul.f32 %v16635_v48, %v16625_v56  ;;  %v16193_v42 = vld [vmem:[#allocation16 + $0xcc] ss:$16 sps:$4 sm:$0xff]  }
0x2ebb   :  { %v16202_v48 = vld [vmem:[#allocation17 + $0x4] ss:$8 sps:$4 sm:$0xff]  }
0x2ebc   :  { %v6560_v28 = vpack.c.bf16 %v6555_v8, %v6553_v44  ;;  %v13977_v44 = vld [vmem:[%s19812_s8] ss:$0 sm:$0xff] }
0x2ec6   :  { %6562 = vrot.lane.b32.xlu1 %v18317_v50, %s17460_s9 }
0x2ecf   :  { %6609 = vrot.lane.b32.xlu0 %v18315_v49, %s17460_s9 }
0x2f42   :  { %v6548_v46 = vpop.xlane.xlu1 %6547 }
0x2f43   :  { %16636 = vrcp.f32 %v6548_v46  ;;  %v16199_v46 = vld [vmem:[#allocation16 + $0xec] ss:$16 sps:$4 sm:$0xff]  }
0x2f46   :  { %v6551_v53 = vpop.xlane.xlu0 %6550  ;;  %v6563_v17 = vpop.permute.xlu1 %6562 }
0x2f47   :  { %16638 = vrcp.f32 %v6551_v53  ;;  %15223 = vmatpush3.bf16.msra.mxu1 %v6563_v17 }
0x2f48   :  { %6952 = vmatprep.subr.bf16.mxu1 %v16154_v15  ;;  %v16203_v15 = vld [vmem:[#allocation17 + $0x10] ss:$8 sps:$4 sm:$0xff]  }
0x2f4a   :  { %v6610_v55 = vpop.permute.xlu0 %6609  ;;  %15225 = vmatmul.mubr.msk.bf16.vlgmr.msra.gmra.mrb[188].mxu1 %vm679_vm1, %v6560_v28 }
0x2f4b   :  { %15229 = vmatpush3.bf16.msra.mxu0 %v6610_v55  ;;  %6984 = vmatprep.mubr.bf16.mxu1 %v17483_v0 }
0x2f4c   :  { %15234 = vmatprep.subr.bf16.mxu0 %v16151_v3  ;;  %6953 = vmatpush1.bf16.msra.mxu1 %v16152_v7  ;;  %v16205_v7 = vld [vmem:[#allocation17 + $0x14] ss:$8 sps:$4 sm:$0xff]  }
0x2f4d   :  { %v16637_v49 = vpop.eup %16636  ;;  %6954 = vmatprep.subr.bf16.mxu1 %v16160_v20  ;;  %v16206_v20 = vld [vmem:[#allocation17 + $0x20] ss:$8 sps:$4 sm:$0xff]  }
0x2f4e   :  { %v6557_v59 = vmul.f32 %v16637_v49, %v16629_v27  ;;  %v16188_v27 = vld [vmem:[#allocation16 + $0xc0] ss:$16 sps:$4 sm:$0xff]  }
0x2f50   :  { %6955 = vmatpush1.bf16.msra.mxu1 %v16158_v21  ;;  %v16211_v21 = vld [vmem:[#allocation17 + $0x34] ss:$8 sps:$4 sm:$0xff]  }
0x2f51   :  { %v16639_v50 = vpop.eup %16638  ;;  %6956 = vmatprep.subr.bf16.mxu1 %v16166_v22  ;;  %v16209_v22 = vld [vmem:[#allocation17 + $0x30] ss:$8 sps:$4 sm:$0xff]  }
0x2f52   :  { %v6559_v62 = vmul.f32 %v16639_v50, %v16631_v40  ;;  %v16191_v40 = vld [vmem:[#allocation16 + $0xc8] ss:$16 sps:$4 sm:$0xff]  }
0x2f54   :  { %v6561_v63 = vpack.c.bf16 %v6559_v62, %v6557_v59  ;;  %6957 = vmatpush1.bf16.msra.mxu1 %v16164_v23  ;;  %v16214_v23 = vld [vmem:[#allocation17 + $0x44] ss:$8 sps:$4 sm:$0xff]  }
0x2f55   :  { %6958 = vmatprep.subr.bf16.mxu1 %v16172_v24  ;;  %v16212_v24 = vld [vmem:[#allocation17 + $0x40] ss:$8 sps:$4 sm:$0xff]  }
0x2f56   :  { %15231 = vmatmul.mubr.msk.bf16.vlgmr.msra.gmra.mrb[132].mxu0 %vm679_vm1, %v6561_v63 }
0x2f57   :  { %15235 = vmatpush3.bf16.msra.mxu0 %v16151_v3  ;;  %v16200_v3 = vld [vmem:[#allocation17] ss:$8 sps:$4 sm:$0xff]  }
0x2f58   :  { %7005 = vmatprep.subr.bf16.mxu0 %v16157_v5  ;;  %6959 = vmatpush1.bf16.msra.mxu1 %v16170_v19  ;;  %v16208_v5 = vld [vmem:[#allocation17 + $0x24] ss:$8 sps:$4 sm:$0xff]   ;;  %v16217_v19 = vld [vmem:[#allocation17 + $0x54] ss:$8 sps:$4 sm:$0xff]  }
0x2f59   :  { %6960 = vmatprep.subr.bf16.mxu1 %v16178_v26  ;;  %v16215_v26 = vld [vmem:[#allocation17 + $0x50] ss:$8 sps:$4 sm:$0xff]  }
0x2f5c   :  { %6961 = vmatpush1.bf16.msra.mxu1 %v16176_v13  ;;  %v16220_v13 = vld [vmem:[#allocation17 + $0x64] ss:$8 sps:$4 sm:$0xff]  }
0x2f5d   :  { %6962 = vmatprep.subr.bf16.mxu1 %v16184_v32  ;;  %v16218_v32 = vld [vmem:[#allocation17 + $0x60] ss:$8 sps:$4 sm:$0xff]  }
0x2f60   :  { %6963 = vmatpush1.bf16.msra.mxu1 %v16182_v25  ;;  %v16223_v25 = vld [vmem:[#allocation17 + $0x74] ss:$8 sps:$4 sm:$0xff]  }
0x2f61   :  { %6964 = vmatprep.subr.bf16.mxu1 %v16190_v16 }
0x2f64   :  { %6965 = vmatpush1.bf16.msra.mxu1 %v16188_v27 }
0x2f65   :  { %6966 = vmatprep.subr.bf16.mxu1 %v16196_v43 }
0x2f68   :  { %6967 = vmatpush1.bf16.msra.mxu1 %v16194_v41 }
0x2f69   :  { %7606 = vmatprep.subr.bf16.mxu1 %v16202_v48 }
0x301d   :  { %v6602_v12 = vpop.f32.mrb[188].mxu1 }
0x301e   :  { %v15226_v54 = vpop.f32.mrb[189].mxu1 }
0x301f   :  { %v6605_v56 = vpop.f32.mrb[190].mxu1  ;;  %v16226_v54 = vld [vmem:[#allocation17 + $0x84] ss:$8 sps:$4 sm:$0xff]  }
0x3020   :  { %v6658_v57 = vpack.c.bf16 %v6605_v56, %v6602_v12  ;;  %v15227_v29 = vpop.f32.mrb[191].mxu1  ;;  %v16221_v12 = vld [vmem:[#allocation17 + $0x70] ss:$8 sps:$4 sm:$0xff]   ;;  %v16224_v56 = vld [vmem:[#allocation17 + $0x80] ss:$8 sps:$4 sm:$0xff]  }
0x3021   :  { %v16227_v29 = vld [vmem:[#allocation17 + $0x90] ss:$8 sps:$4 sm:$0xff]  }
0x3022   :  { %15236 = vmatprep.mubr.msk.bf16.mxu0 %vm679_vm1, %v6658_v57  ;;  %v16229_v57 = vld [vmem:[#allocation17 + $0x94] ss:$8 sps:$4 sm:$0xff]  }
0x3029   :  { %v6649_v60 = vpop.f32.mrb[132].mxu0 }
0x302a   :  { %v15232_v2 = vpop.f32.mrb[133].mxu0 }
0x302b   :  { %v6652_v6 = vpop.f32.mrb[134].mxu0  ;;  %v16230_v2 = vld [vmem:[#allocation17 + $0xa0] ss:$8 sps:$4 sm:$0xff]  }
0x302c   :  { %v6659_v34 = vpack.c.bf16 %v6652_v6, %v6649_v60  ;;  %v15233_v35 = vpop.f32.mrb[135].mxu0  ;;  %v16232_v60 = vld [vmem:[#allocation17 + $0xa4] ss:$8 sps:$4 sm:$0xff]   ;;  %v16235_v6 = vld [vmem:[#allocation17 + $0xb4] ss:$8 sps:$4 sm:$0xff]  }
0x302d   :  { %v16236_v35 = vld [vmem:[#allocation17 + $0xc0] ss:$8 sps:$4 sm:$0xff]  }
0x302e   :  { %15237 = vmatmul.mubr.msk.bf16.vlgmr.msra.gmra.mrb[96].mxu0 %vm679_vm1, %v6659_v34  ;;  %v16238_v34 = vld [vmem:[#allocation17 + $0xc4] ss:$8 sps:$4 sm:$0xff]  }
0x302f   :  { %7006 = vmatpush1.bf16.msra.mxu0 %v16155_v58  ;;  %7037 = vmatprep.mubr.bf16.mxu0 %v17483_v0  ;;  %v16233_v58 = vld [vmem:[#allocation17 + $0xb0] ss:$8 sps:$4 sm:$0xff]  }
0x3030   :  { %7007 = vmatprep.subr.bf16.mxu0 %v16163_v36  ;;  %v16239_v36 = vld [vmem:[#allocation17 + $0xd0] ss:$8 sps:$4 sm:$0xff]  }
0x3033   :  { %7008 = vmatpush1.bf16.msra.mxu0 %v16161_v47  ;;  %v16241_v47 = vld [vmem:[#allocation17 + $0xd4] ss:$8 sps:$4 sm:$0xff]  }
0x3034   :  { %7009 = vmatprep.subr.bf16.mxu0 %v16169_v61  ;;  %v16244_v61 = vld [vmem:[#allocation17 + $0xe4] ss:$8 sps:$4 sm:$0xff]  }
0x3037   :  { %7010 = vmatpush1.bf16.msra.mxu0 %v16167_v18  ;;  %v16242_v18 = vld [vmem:[#allocation17 + $0xe0] ss:$8 sps:$4 sm:$0xff]  }
0x3038   :  { %7011 = vmatprep.subr.bf16.mxu0 %v16175_v38  ;;  %v16247_v38 = vld [vmem:[#allocation17 + $0xf4] ss:$8 sps:$4 sm:$0xff]  }
0x303b   :  { %7012 = vmatpush1.bf16.msra.mxu0 %v16173_v51  ;;  %v16245_v51 = vld [vmem:[#allocation17 + $0xf0] ss:$8 sps:$4 sm:$0xff]  }
0x303c   :  { %7013 = vmatprep.subr.bf16.mxu0 %v16181_v39  ;;  %v16250_v39 = vld [vmem:[#allocation17 + $0x104] ss:$8 sps:$4 sm:$0xff]  }
0x303f   :  { %7014 = vmatpush1.bf16.msra.mxu0 %v16179_v37  ;;  %v6770_v37 = vld [vmem:[%s19813_s25] sm:$0xf] }
0x3040   :  { %7015 = vmatprep.subr.bf16.mxu0 %v16187_v9  ;;  %v18651_v9 = vrot.slane %v6770_v37, %v17835_v33  ;;  %v18657_v27 = vrot.slane %v6770_v37, %v17831_v31 }
0x3043   :  { %7016 = vmatpush1.bf16.msra.mxu0 %v16185_v14  ;;  %v18654_v14 = vrot.slane %v6770_v37, %v17864_v52  ;;  %v18666_v52 = vrot.slane %v6770_v37, %v2932_v11 }
0x3044   :  { %7017 = vmatprep.subr.bf16.mxu0 %v16193_v42 }
0x3047   :  { %7018 = vmatpush1.bf16.msra.mxu0 %v16191_v40 }
0x3048   :  { %7019 = vmatprep.subr.bf16.mxu0 %v16199_v46 }
0x304b   :  { %7020 = vmatpush1.bf16.msra.mxu0 %v16197_v45 }
0x3101   :  { %v15238_v8 = vpop.f32.mrb[96].mxu0 }
0x3102   :  { %v6706_v53 = vpop.f32.mrb[97].mxu0  ;;  %v6734_v28 = vadd.f32 %v15238_v8, %v13977_v44 }
0x3103   :  { %v15239_v17 = vpop.f32.mrb[98].mxu0  ;;  %v6732_v50 = vadd.f32 %v13977_v44, %v6706_v53 }
0x3104   :  { %v6735_v55 = vadd.f32 %v15239_v17, %v13977_v44  ;;  %v6709_v49 = vpop.f32.mrb[99].mxu0 }
0x3105   :  { %v6733_v59 = vadd.f32 %v13977_v44, %v6709_v49 }
0x3106   :  { %v6769_v62 = vpack.c.bf16 %v6735_v55, %v6734_v28 }
0x3107   :  { %v6768_v63 = vpack.c.bf16 %v6733_v59, %v6732_v50 }
0x3109   :  { %6985 = vmatmul.mubr.bf16.vlgmr.msra.gmra.mrb[192].mxu1 %v6768_v63  ;;  %7038 = vmatmul.mubr.bf16.vlgmr.msra.gmra.mrb[136].mxu0 %v6768_v63 }
0x310a   :  { %6994 = vmatprep.mubr.bf16.mxu1 %v17483_v0  ;;  %7047 = vmatprep.mubr.bf16.mxu0 %v17483_v0 }
0x310b   :  { %7607 = vmatpush1.bf16.msra.mxu1 %v16200_v3 }
0x310c   :  { %7608 = vmatprep.subr.bf16.mxu1 %v16205_v7 }
0x310f   :  { %7609 = vmatpush1.bf16.msra.mxu1 %v16203_v15 }
0x3110   :  { %7610 = vmatprep.subr.bf16.mxu1 %v16208_v5 }
0x3111   :  { %6995 = vmatmul.mubr.bf16.gmra.mrb[196].mxu1 %v6769_v62  ;;  %7048 = vmatmul.mubr.bf16.gmra.mrb[140].mxu0 %v6769_v62 }
0x3113   :  { %7611 = vmatpush1.bf16.msra.mxu1 %v16206_v20 }
0x3114   :  { %7612 = vmatprep.subr.bf16.mxu1 %v16211_v21 }
0x3117   :  { %7613 = vmatpush1.bf16.msra.mxu1 %v16209_v22 }
0x3118   :  { %7614 = vmatprep.subr.bf16.mxu1 %v16214_v23 }
0x311b   :  { %7615 = vmatpush1.bf16.msra.mxu1 %v16212_v24 }
0x311c   :  { %7616 = vmatprep.subr.bf16.mxu1 %v16217_v19 }
0x311f   :  { %7617 = vmatpush1.bf16.msra.mxu1 %v16215_v26 }
0x3120   :  { %7618 = vmatprep.subr.bf16.mxu1 %v16220_v13 }
0x3123   :  { %7619 = vmatpush1.bf16.msra.mxu1 %v16218_v32 }
0x3124   :  { %7620 = vmatprep.subr.bf16.mxu1 %v16223_v25 }
0x3127   :  { %7621 = vmatpush1.bf16.msra.mxu1 %v16221_v12 }
0x3128   :  { %7622 = vmatprep.subr.bf16.mxu1 %v16226_v54 }
0x312b   :  { %7623 = vmatpush1.bf16.msra.mxu1 %v16224_v56 }
0x312c   :  { %7624 = vmatprep.subr.bf16.mxu1 %v16229_v57 }
0x312f   :  { %7625 = vmatpush1.bf16.msra.mxu1 %v16227_v29 }
0x3130   :  { %7626 = vmatprep.subr.bf16.mxu1 %v16232_v60 }
0x3133   :  { %7627 = vmatpush1.bf16.msra.mxu1 %v16230_v2 }
0x3134   :  { %7628 = vmatprep.subr.bf16.mxu1 %v16235_v6 }
0x3137   :  { %7629 = vmatpush1.bf16.msra.mxu1 %v16233_v58 }
0x3138   :  { %7630 = vmatprep.subr.bf16.mxu1 %v16238_v34 }
0x313b   :  { %7631 = vmatpush1.bf16.msra.mxu1 %v16236_v35 }
0x313c   :  { %7632 = vmatprep.subr.bf16.mxu1 %v16241_v47 }
0x313f   :  { %7633 = vmatpush1.bf16.msra.mxu1 %v16239_v36 }
0x3140   :  { %7634 = vmatprep.subr.bf16.mxu1 %v16244_v61 }
0x3143   :  { %7635 = vmatpush1.bf16.msra.mxu1 %v16242_v18 }
0x3144   :  { %7636 = vmatprep.subr.bf16.mxu1 %v16247_v38 }
0x3147   :  { %7637 = vmatpush1.bf16.msra.mxu1 %v16245_v51 }
0x3148   :  { %7659 = vmatprep.subr.bf16.mxu1 %v16250_v39 }
0x31dc   :  { %v6986_v16 = vpop.f32.mrb[192].mxu1  ;;  %v7039_v40 = vpop.f32.mrb[136].mxu0 }
0x31dd   :  { %v6987_v42 = vadd.f32 %v6986_v16, %v18651_v9  ;;  %v7040_v41 = vadd.f32 %v7039_v40, %v18654_v14  ;;  %v6988_v43 = vpop.f32.mrb[193].mxu1  ;;  %v7041_v45 = vpop.f32.mrb[137].mxu0 }
0x31de   :  { %v18662_v46 = vadd.f32 %v6988_v43, %v18657_v27  ;;  %v6990_v48 = vpop.f32.mrb[194].mxu1  ;;  %v7043_v8 = vpop.f32.mrb[138].mxu0  ;;  %v18677_v30 = vadd.f32 %v7041_v45, %v18666_v52 }
0x31df   :  { %v7074_v44 = vmul.f32 0.044715, %v6987_v42  ;;  %v7076_v53 = vmul.f32 0.044715, %v7040_v41  ;;  %v6991_v17 = vadd.f32 %v6990_v48, %v18651_v9  ;;  %v18670_v28 = vadd.f32 %v7043_v8, %v18654_v14  ;;  %v6992_v55 = vpop.f32.mrb[195].mxu1  ;;  %v7045_v49 = vpop.f32.mrb[139].mxu0 }
0x31e0   :  { %v7075_v62 = vmul.f32 0.044715, %v18662_v46  ;;  %v18674_v63 = vadd.f32 %v6992_v55, %v18657_v27  ;;  %v18680_v5 = vmul.f32 0.5, %v6987_v42  ;;  %v18682_v20 = vmul.f32 0.5, %v7040_v41 }
0x31e1   :  { %v7090_v50 = vmul.f32 %v7074_v44, %v6987_v42  ;;  %v7092_v59 = vmul.f32 %v7076_v53, %v7040_v41  ;;  %v7078_v3 = vmul.f32 0.044715, %v6991_v17  ;;  %v7080_v11 = vmul.f32 0.044715, %v18670_v28 }
0x31e2   :  { %v7079_v22 = vmul.f32 0.044715, %v18674_v63  ;;  %v7091_v13 = vmul.f32 %v7075_v62, %v18662_v46  ;;  %v18689_v57 = vadd.f32 %v7045_v49, %v18666_v52  ;;  %v7077_v47 = vmul.f32 0.044715, %v18677_v30 }
0x31e3   :  { %v7106_v7 = vmul.f32 %v7090_v50, %v6987_v42  ;;  %v7108_v15 = vmul.f32 %v7092_v59, %v7040_v41  ;;  %v7094_v21 = vmul.f32 %v7078_v3, %v6991_v17  ;;  %v7096_v32 = vmul.f32 %v7080_v11, %v18670_v28 }
0x31e4   :  { %v6996_v23 = vpop.f32.mrb[196].mxu1  ;;  %v7049_v24 = vpop.f32.mrb[140].mxu0  ;;  %v7095_v56 = vmul.f32 %v7079_v22, %v18674_v63  ;;  %v7107_v51 = vmul.f32 %v7091_v13, %v18662_v46  ;;  %v7093_v59 = vmul.f32 %v7077_v47, %v18677_v30  ;;  %v7062_v62 = vmul.f32 0.5, %v6991_v17 }
0x31e5   :  { %v7122_v19 = vadd.f32 %v7106_v7, %v6987_v42  ;;  %v7124_v26 = vadd.f32 %v7108_v15, %v7040_v41  ;;  %v6998_v25 = vpop.f32.mrb[197].mxu1  ;;  %v7051_v12 = vpop.f32.mrb[141].mxu0  ;;  %v7110_v54 = vmul.f32 %v7094_v21, %v6991_v17  ;;  %v18692_v29 = vadd.f32 %v6996_v23, %v18651_v9 }
0x31e6   :  { %v7000_v60 = vpop.f32.mrb[198].mxu1  ;;  %v7053_v2 = vpop.f32.mrb[142].mxu0  ;;  %v7112_v34 = vmul.f32 %v7096_v32, %v18670_v28  ;;  %v18698_v38 = vadd.f32 %v7049_v24, %v18654_v14  ;;  %v18703_v37 = vadd.f32 %v6998_v25, %v18657_v27  ;;  %v7111_v40 = vmul.f32 %v7095_v56, %v18674_v63 }
0x31e7   :  { %v7138_v6 = vmul.f32 0.7978846, %v7122_v19  ;;  %v7140_v58 = vmul.f32 0.7978846, %v7124_v26  ;;  %v7002_v35 = vpop.f32.mrb[199].mxu1  ;;  %v7055_v36 = vpop.f32.mrb[143].mxu0  ;;  %v7126_v61 = vadd.f32 %v7110_v54, %v6991_v17  ;;  %v18709_v45 = vadd.f32 %v7051_v12, %v18666_v52 }
0x31e8   :  { %v7082_v18 = vmul.f32 0.044715, %v18692_v29  ;;  %v7128_v39 = vadd.f32 %v7112_v34, %v18670_v28  ;;  %v7081_v42 = vmul.f32 0.044715, %v18689_v57  ;;  %v7083_v43 = vmul.f32 0.044715, %v18703_v37 }
0x31e9   :  { %16640 = vtanh.f32 %v7138_v6  ;;  %v7142_v16 = vmul.f32 0.7978846, %v7126_v61  ;;  %v18712_v48 = vadd.f32 %v7000_v60, %v18651_v9  ;;  %v7084_v44 = vmul.f32 0.044715, %v18698_v38 }
0x31ea   :  { %16642 = vtanh.f32 %v7140_v58  ;;  %v7144_v41 = vmul.f32 0.7978846, %v7128_v39  ;;  %v7098_v8 = vmul.f32 %v7082_v18, %v18692_v29  ;;  %v18717_v53 = vadd.f32 %v7053_v2, %v18654_v14 }
0x31eb   :  { %16644 = vtanh.f32 %v7142_v16  ;;  %v7099_v55 = vmul.f32 %v7083_v43, %v18703_v37  ;;  %v7085_v49 = vmul.f32 0.044715, %v18709_v45  ;;  %v7086_v50 = vmul.f32 0.044715, %v18712_v48 }
0x31ec   :  { %16646 = vtanh.f32 %v7144_v41  ;;  %v18724_v9 = vadd.f32 %v7002_v35, %v18657_v27  ;;  %v18727_v3 = vadd.f32 %v7055_v36, %v18666_v52  ;;  %v7064_v7 = vmul.f32 0.5, %v18670_v28 }
0x31ed   :  { %v7097_v14 = vmul.f32 %v7081_v42, %v18689_v57  ;;  %v7115_v15 = vmul.f32 %v7099_v55, %v18703_v37  ;;  %v7102_v11 = vmul.f32 %v7086_v50, %v18712_v48  ;;  %v7100_v21 = vmul.f32 %v7084_v44, %v18698_v38 }
0x31ee   :  { %v7087_v22 = vmul.f32 0.044715, %v18724_v9  ;;  %v7089_v17 = vmul.f32 0.044715, %v18727_v3  ;;  %v7123_v27 = vadd.f32 %v7107_v51, %v18662_v46  ;;  %v7114_v23 = vmul.f32 %v7098_v8, %v18692_v29 }
0x31ef   :  { %v7101_v52 = vmul.f32 %v7085_v49, %v18709_v45  ;;  %v7088_v28 = vmul.f32 0.044715, %v18717_v53  ;;  %v7127_v24 = vadd.f32 %v7111_v40, %v18674_v63  ;;  %v7118_v19 = vmul.f32 %v7102_v11, %v18712_v48 }
0x31f0   :  { %v7103_v26 = vmul.f32 %v7087_v22, %v18724_v9  ;;  %v7105_v13 = vmul.f32 %v7089_v17, %v18727_v3  ;;  %v7139_v32 = vmul.f32 0.7978846, %v7123_v27  ;;  %v7109_v12 = vmul.f32 %v7093_v59, %v18677_v30 }
0x31f1   :  { %v7113_v54 = vmul.f32 %v7097_v14, %v18689_v57  ;;  %v7143_v56 = vmul.f32 0.7978846, %v7127_v24  ;;  %v7131_v60 = vadd.f32 %v7115_v15, %v18703_v37  ;;  %v7116_v6 = vmul.f32 %v7100_v21, %v18698_v38 }
0x31f2   :  { %v7119_v58 = vmul.f32 %v7103_v26, %v18724_v9  ;;  %16648 = vtanh.f32 %v7139_v32  ;;  %v7104_v35 = vmul.f32 %v7088_v28, %v18717_v53  ;;  %v7130_v47 = vadd.f32 %v7114_v23, %v18692_v29 }
0x31f3   :  { %v16641_v25 = vpop.eup %16640  ;;  %16650 = vtanh.f32 %v7143_v56  ;;  %v7147_v36 = vmul.f32 0.7978846, %v7131_v60  ;;  %v7117_v18 = vmul.f32 %v7101_v52, %v18709_v45  ;;  %v7121_v51 = vmul.f32 %v7105_v13, %v18727_v3 }
0x31f4   :  { %v16643_v2 = vpop.eup %16642  ;;  %v7170_v34 = vadd.f32 1.0, %v16641_v25  ;;  %v7135_v39 = vadd.f32 %v7119_v58, %v18724_v9  ;;  %v7134_v16 = vadd.f32 %v7118_v19, %v18712_v48  ;;  %v7146_v43 = vmul.f32 0.7978846, %v7130_v47 }
0x31f5   :  { %v16645_v61 = vpop.eup %16644  ;;  %16652 = vtanh.f32 %v7147_v36  ;;  %v7125_v55 = vadd.f32 %v7109_v12, %v18677_v30  ;;  %v7129_v49 = vadd.f32 %v7113_v54, %v18689_v57  ;;  %v7172_v59 = vadd.f32 1.0, %v16643_v2  ;;  %v16248_v36 = vld [vmem:[#allocation17 + $0x100] ss:$8 sps:$4 sm:$0xff]  }
0x31f6   :  { %v16647_v40 = vpop.eup %16646  ;;  %v7174_v42 = vadd.f32 1.0, %v16645_v61  ;;  %v7186_v41 = vmul.f32 %v7170_v34, %v18680_v5  ;;  %v7151_v8 = vmul.f32 0.7978846, %v7135_v39  ;;  %v7150_v44 = vmul.f32 0.7978846, %v7134_v16 }
0x31f7   :  { %16654 = vtanh.f32 %v7146_v43  ;;  %v7176_v14 = vadd.f32 1.0, %v16647_v40  ;;  %v7120_v15 = vmul.f32 %v7104_v35, %v18717_v53  ;;  %v7141_v11 = vmul.f32 0.7978846, %v7125_v55  ;;  %v16253_v61 = vld [vmem:[#allocation17 + $0x114] ss:$8 sps:$4 sm:$0xff]  }
0x31f8   :  { %v7190_v50 = vmul.f32 %v7174_v42, %v7062_v62  ;;  %16656 = vtanh.f32 %v7151_v8  ;;  %v7145_v21 = vmul.f32 0.7978846, %v7129_v49  ;;  %v18760_v5 = vmul.f32 %v7172_v59, %v18682_v20  ;;  %v16251_v49 = vld [vmem:[#allocation17 + $0x110] ss:$8 sps:$4 sm:$0xff]  }
0x31f9   :  { %16658 = vtanh.f32 %v7150_v44  ;;  %v18762_v17 = vmul.f32 %v7176_v14, %v7064_v7  ;;  %v7133_v27 = vadd.f32 %v7117_v18, %v18709_v45  ;;  %v7137_v62 = vadd.f32 %v7121_v51, %v18727_v3 }
0x31fa   :  { %v7266_v22 = vpack.c.bf16 %v7190_v50, %v7186_v41  ;;  %16660 = vtanh.f32 %v7141_v11  ;;  %v7132_v19 = vadd.f32 %v7116_v6, %v18698_v38  ;;  %v7136_v26 = vadd.f32 %v7120_v15, %v18717_v53 }
0x31fb   :  { %16662 = vtanh.f32 %v7145_v21  ;;  %v7268_v23 = vpack.c.bf16 %v18762_v17, %v18760_v5  ;;  %v7149_v28 = vmul.f32 0.7978846, %v7133_v27  ;;  %v7153_v24 = vmul.f32 0.7978846, %v7137_v62  ;;  %v16303_v5 = vld [vmem:[#allocation19 + $0x18] sm:$0xff]   ;;  %v16304_v17 = vld [vmem:[#allocation19 + $0x60] sm:$0xff]  }
0x31fc   :  { %v16649_v52 = vpop.eup %16648  ;;  %v7059_v7 = vmul.f32 0.5, %v18662_v46  ;;  %v7063_v13 = vmul.f32 0.5, %v18674_v63  ;;  %v7148_v12 = vmul.f32 0.7978846, %v7132_v19  ;;  %v7152_v54 = vmul.f32 0.7978846, %v7136_v26 }
0x31fd   :  { %v16651_v20 = vpop.eup %16650  ;;  %v7171_v32 = vadd.f32 1.0, %v16649_v52  ;;  %16664 = vtanh.f32 %v7149_v28  ;;  %v7067_v63 = vmul.f32 0.5, %v18703_v37  ;;  %v7071_v18 = vmul.f32 0.5, %v18724_v9  ;;  %v16259_v26 = vld [vmem:[#allocation17 + $0x134] ss:$8 sps:$4 sm:$0xff]  }
0x31fe   :  { %v7175_v25 = vadd.f32 1.0, %v16651_v20  ;;  %16666 = vtanh.f32 %v7153_v24  ;;  %v7066_v16 = vmul.f32 0.5, %v18692_v29  ;;  %v7070_v40 = vmul.f32 0.5, %v18712_v48  ;;  %v16256_v29 = vld [vmem:[#allocation17 + $0x124] ss:$8 sps:$4 sm:$0xff]  }
0x31ff   :  { %v16653_v56 = vpop.eup %16652  ;;  %v7187_v60 = vmul.f32 %v7171_v32, %v7059_v7  ;;  %16668 = vtanh.f32 %v7148_v12  ;;  %v7061_v44 = vmul.f32 0.5, %v18677_v30  ;;  %v7065_v9 = vmul.f32 0.5, %v18689_v57  ;;  %v16254_v30 = vld [vmem:[#allocation17 + $0x120] ss:$8 sps:$4 sm:$0xff]  }
0x3200   :  { %v7191_v2 = vmul.f32 %v7175_v25, %v7063_v13  ;;  %v7179_v34 = vadd.f32 1.0, %v16653_v56  ;;  %16670 = vtanh.f32 %v7152_v54  ;;  %v7069_v28 = vmul.f32 0.5, %v18709_v45  ;;  %v16257_v45 = vld [vmem:[#allocation17 + $0x130] ss:$8 sps:$4 sm:$0xff]  }
0x3201   :  { %v16655_v58 = vpop.eup %16654  ;;  %v7073_v24 = vmul.f32 0.5, %v18727_v3  ;;  %v7068_v20 = vmul.f32 0.5, %v18698_v38  ;;  %v7072_v25 = vmul.f32 0.5, %v18717_v53  ;;  %v16268_v53 = vld [vmem:[#allocation17 + $0x164] ss:$8 sps:$4 sm:$0xff]  }
0x3202   :  { %v16657_v6 = vpop.eup %16656  ;;  %v7267_v35 = vpack.c.bf16 %v7191_v2, %v7187_v60  ;;  %v7178_v47 = vadd.f32 1.0, %v16655_v58  ;;  %v7195_v43 = vmul.f32 %v7179_v34, %v7067_v63  ;;  %v16262_v60 = vld [vmem:[#allocation17 + $0x144] ss:$8 sps:$4 sm:$0xff]   ;;  %v16260_v2 = vld [vmem:[#allocation17 + $0x140] ss:$8 sps:$4 sm:$0xff]  }
0x3203   :  { %v16659_v46 = vpop.eup %16658  ;;  %v7183_v51 = vadd.f32 1.0, %v16657_v6  ;;  %v16265_v58 = vld [vmem:[#allocation17 + $0x154] ss:$8 sps:$4 sm:$0xff]   ;;  %v16263_v34 = vld [vmem:[#allocation17 + $0x150] ss:$8 sps:$4 sm:$0xff]  }
0x3204   :  { %v16661_v39 = vpop.eup %16660  ;;  %7638 = vmatprep.mubr.bf16.mxu1 %v7267_v35  ;;  %v7182_v42 = vadd.f32 1.0, %v16659_v46  ;;  %v7194_v37 = vmul.f32 %v7178_v47, %v7066_v16  ;;  %v16266_v6 = vld [vmem:[#allocation17 + $0x160] ss:$8 sps:$4 sm:$0xff]   ;;  %v16271_v35 = vld [vmem:[#allocation17 + $0x174] ss:$8 sps:$4 sm:$0xff]  }
0x3205   :  { %v16663_v41 = vpop.eup %16662  ;;  %7639 = vmatmul.mubr.bf16.vlgmr.msra.gmra.mrb[200].mxu1 %v7266_v22  ;;  %v7199_v8 = vmul.f32 %v7183_v51, %v7071_v18  ;;  %v7173_v55 = vadd.f32 1.0, %v16661_v39  ;;  %v16274_v47 = vld [vmem:[#allocation17 + $0x184] ss:$8 sps:$4 sm:$0xff]   ;;  %v16272_v46 = vld [vmem:[#allocation17 + $0x180] ss:$8 sps:$4 sm:$0xff]  }
0x3206   :  { %7660 = vmatpush1.bf16.msra.mxu1 %v16248_v36  ;;  %v7198_v50 = vmul.f32 %v7182_v42, %v7070_v40  ;;  %v7177_v59 = vadd.f32 1.0, %v16663_v41  ;;  %v16269_v36 = vld [vmem:[#allocation17 + $0x170] ss:$8 sps:$4 sm:$0xff]   ;;  %v16280_v18 = vld [vmem:[#allocation17 + $0x1a4] ss:$8 sps:$4 sm:$0xff]  }
0x3207   :  { %7661 = vmatprep.subr.bf16.mxu1 %v16253_v61  ;;  %v7271_v14 = vpack.c.bf16 %v7199_v8, %v7195_v43  ;;  %v16665_v15 = vpop.eup %16664  ;;  %v7189_v11 = vmul.f32 %v7173_v55, %v7061_v44  ;;  %v16277_v61 = vld [vmem:[#allocation17 + $0x194] ss:$8 sps:$4 sm:$0xff]   ;;  %v16275_v63 = vld [vmem:[#allocation17 + $0x190] ss:$8 sps:$4 sm:$0xff]   ;;  %v16278_v51 = vld [vmem:[#allocation17 + $0x1a0] ss:$8 sps:$4 sm:$0xff]  }
0x3208   :  { %v7270_v48 = vpack.c.bf16 %v7198_v50, %v7194_v37  ;;  %v7193_v21 = vmul.f32 %v7177_v59, %v7065_v9  ;;  %v16667_v22 = vpop.eup %16666  ;;  %v7181_v27 = vadd.f32 1.0, %v16665_v15  ;;  %v16283_v39 = vld [vmem:[#allocation17 + $0x1b4] ss:$8 sps:$4 sm:$0xff]   ;;  %v16281_v16 = vld [vmem:[#allocation17 + $0x1b0] ss:$8 sps:$4 sm:$0xff]   ;;  %v16296_v37 = vld [vmem:[#allocation19 + $0x40] sm:$0xff]  }
0x3209   :  { %7648 = vmatprep.mubr.bf16.mxu1 %v7271_v14  ;;  %v16669_v62 = vpop.eup %16668  ;;  %v7185_v57 = vadd.f32 1.0, %v16667_v22  ;;  %v16286_v40 = vld [vmem:[#allocation17 + $0x1c4] ss:$8 sps:$4 sm:$0xff]   ;;  %v16284_v42 = vld [vmem:[#allocation17 + $0x1c0] ss:$8 sps:$4 sm:$0xff]   ;;  %14479 = vmatprep.subr.bf16.mxu0 %v16296_v37  ;;  %v16300_v14 = vld [vmem:[#allocation19 + $0x50] sm:$0xff]  }
0x320a   :  { %7662 = vmatpush1.bf16.msra.mxu1 %v16251_v49  ;;  %v7269_v52 = vpack.c.bf16 %v7193_v21, %v7189_v11  ;;  %v16671_v19 = vpop.eup %16670  ;;  %v7180_v7 = vadd.f32 1.0, %v16669_v62  ;;  %v18781_v13 = vmul.f32 %v7181_v27, %v7069_v28  ;;  %v16289_v41 = vld [vmem:[#allocation17 + $0x1d4] ss:$8 sps:$4 sm:$0xff]   ;;  %v16287_v43 = vld [vmem:[#allocation17 + $0x1d0] ss:$8 sps:$4 sm:$0xff]   ;;  %v16297_v50 = vld [vmem:[#allocation19] sm:$0xff]  }
0x320b   :  { %7663 = vmatprep.subr.bf16.mxu1 %v16256_v29  ;;  %v18783_v32 = vmul.f32 %v7185_v57, %v7073_v24  ;;  %v7184_v12 = vadd.f32 1.0, %v16671_v19  ;;  %v16292_v8 = vld [vmem:[#allocation17 + $0x1e4] ss:$8 sps:$4 sm:$0xff]   ;;  %v16290_v44 = vld [vmem:[#allocation17 + $0x1e0] ss:$8 sps:$4 sm:$0xff]   ;;  %14480 = vmatpush3.bf16.msra.mxu0 %v16297_v50  ;;  %v16301_v29 = vld [vmem:[#allocation19 + $0x10] sm:$0xff]  }
0x320c   :  { %v7196_v54 = vmul.f32 %v7180_v7, %v7068_v20  ;;  %v16295_v55 = vld [vmem:[#allocation17 + $0x1f4] ss:$8 sps:$4 sm:$0xff]   ;;  %v16293_v49 = vld [vmem:[#allocation17 + $0x1f0] ss:$8 sps:$4 sm:$0xff]   ;;  %v16298_v9 = vld [vmem:[#allocation19 + $0x48] sm:$0xff]  }
0x320d   :  { %7649 = vmatmul.mubr.bf16.gmra.mrb[204].mxu1 %v7270_v48  ;;  %v7273_v3 = vpack.c.bf16 %v18783_v32, %v18781_v13  ;;  %v7200_v56 = vmul.f32 %v7184_v12, %v7072_v25  ;;  %v16299_v59 = vld [vmem:[#allocation19 + $0x8] sm:$0xff]   ;;  %14481 = vmatprep.subr.bf16.mxu0 %v16298_v9  ;;  %v16302_v15 = vld [vmem:[#allocation19 + $0x58] sm:$0xff]   ;;  %v16308_v21 = vld [vmem:[#allocation19 + $0x70] sm:$0xff]  }
0x320e   :  { %7664 = vmatpush1.bf16.msra.mxu1 %v16254_v30  ;;  %7691 = vmatprep.mubr.bf16.mxu1 %v7269_v52  ;;  %v16306_v48 = vld [vmem:[#allocation19 + $0x68] sm:$0xff]   ;;  %v16309_v22 = vld [vmem:[#allocation19 + $0x30] sm:$0xff]   ;;  %v16310_v27 = vld [vmem:[#allocation19 + $0x78] sm:$0xff]  }
0x320f   :  { %7665 = vmatprep.subr.bf16.mxu1 %v16259_v26  ;;  %v7272_v38 = vpack.c.bf16 %v7200_v56, %v7196_v54  ;;  %14482 = vmatpush3.bf16.msra.mxu0 %v16299_v59  ;;  %v16307_v11 = vld [vmem:[#allocation19 + $0x28] sm:$0xff]   ;;  %v16311_v62 = vld [vmem:[#allocation19 + $0x38] sm:$0xff]   ;;  %v7274_v30 = vld [vmem:[%s19814_s16] sm:$0x3] }
0x3210   :  { %14483 = vmatprep.subr.bf16.mxu0 %v16300_v14  ;;  %v7279_v52 = vrot.slane %v7274_v30, %v17835_v33  ;;  %v7283_v28 = vrot.slane %v7274_v30, %v17831_v31 }
0x3212   :  { %7666 = vmatpush1.bf16.msra.mxu1 %v16257_v45 }
0x3213   :  { %7667 = vmatprep.subr.bf16.mxu1 %v16262_v60  ;;  %14484 = vmatpush3.bf16.msra.mxu0 %v16301_v29 }
0x3214   :  { %14485 = vmatprep.subr.bf16.mxu0 %v16302_v15 }
0x3216   :  { %7668 = vmatpush1.bf16.msra.mxu1 %v16260_v2 }
0x3217   :  { %7669 = vmatprep.subr.bf16.mxu1 %v16265_v58  ;;  %14486 = vmatpush3.bf16.msra.mxu0 %v16303_v5 }
0x3218   :  { %14487 = vmatprep.subr.bf16.mxu0 %v16304_v17 }
0x321a   :  { %7670 = vmatpush1.bf16.msra.mxu1 %v16263_v34 }
0x321b   :  { %7671 = vmatprep.subr.bf16.mxu1 %v16268_v53 }
0x321e   :  { %7672 = vmatpush1.bf16.msra.mxu1 %v16266_v6 }
0x321f   :  { %7673 = vmatprep.subr.bf16.mxu1 %v16271_v35 }
0x3222   :  { %7674 = vmatpush1.bf16.msra.mxu1 %v16269_v36 }
0x3223   :  { %7675 = vmatprep.subr.bf16.mxu1 %v16274_v47 }
0x3226   :  { %7676 = vmatpush1.bf16.msra.mxu1 %v16272_v46 }
0x3227   :  { %7677 = vmatprep.subr.bf16.mxu1 %v16277_v61 }
0x322a   :  { %7678 = vmatpush1.bf16.msra.mxu1 %v16275_v63 }
0x322b   :  { %7679 = vmatprep.subr.bf16.mxu1 %v16280_v18 }
0x322e   :  { %7680 = vmatpush1.bf16.msra.mxu1 %v16278_v51 }
0x322f   :  { %7681 = vmatprep.subr.bf16.mxu1 %v16283_v39 }
0x3232   :  { %7682 = vmatpush1.bf16.msra.mxu1 %v16281_v16 }
0x3233   :  { %7683 = vmatprep.subr.bf16.mxu1 %v16286_v40 }
0x3236   :  { %7684 = vmatpush1.bf16.msra.mxu1 %v16284_v42 }
0x3237   :  { %7685 = vmatprep.subr.bf16.mxu1 %v16289_v41 }
0x323a   :  { %7686 = vmatpush1.bf16.msra.mxu1 %v16287_v43 }
0x323b   :  { %7687 = vmatprep.subr.bf16.mxu1 %v16292_v8 }
0x323e   :  { %7688 = vmatpush1.bf16.msra.mxu1 %v16290_v44 }
0x323f   :  { %7689 = vmatprep.subr.bf16.mxu1 %v16295_v55 }
0x3242   :  { %7690 = vmatpush1.bf16.msra.mxu1 %v16293_v49 }
0x3243   :  { %15280 = vmatprep.subr.bf16.mxu1 %v17484_v1 }
0x3245   :  { %7692 = vmatmul.mubr.bf16.vlgmr.msra.gmra.mrb[200].mxu1 %v7268_v23  ;;  %v16305_v23 = vld [vmem:[#allocation19 + $0x20] sm:$0xff]  }
0x3246   :  { %7701 = vmatprep.mubr.bf16.mxu1 %v7273_v3  ;;  %14488 = vmatpush3.bf16.msra.mxu0 %v16305_v23 }
0x3247   :  { %14489 = vmatprep.subr.bf16.mxu0 %v16306_v48 }
0x324a   :  { %14490 = vmatpush3.bf16.msra.mxu0 %v16307_v11 }
0x324b   :  { %14491 = vmatprep.subr.bf16.mxu0 %v16308_v21 }
0x324d   :  { %7702 = vmatmul.mubr.bf16.gmra.mrb[204].mxu1 %v7272_v38 }
0x324e   :  { %15282 = vmatprep.mubr.msk.bf16.mxu1 %vm17485_vm0, %v17484_v1  ;;  %14492 = vmatpush3.bf16.msra.mxu0 %v16309_v22 }
0x324f   :  { %14493 = vmatprep.subr.bf16.mxu0 %v16310_v27 }
0x3252   :  { %14494 = vmatpush3.bf16.msra.mxu0 %v16311_v62 }
0x3253   :  { %15240 = vmatprep.subr.bf16.mxu0 %v17484_v1 }
0x3318   :  { %v7693_v24 = vpop.f32.mrb[200].mxu1 }
0x3319   :  { %v18798_v57 = vadd.f32 %v7693_v24, %v7279_v52  ;;  %v7695_v19 = vpop.f32.mrb[201].mxu1 }
0x331a   :  { %v18800_v26 = vadd.f32 %v7695_v19, %v7283_v28  ;;  %v7697_v20 = vpop.f32.mrb[202].mxu1 }
0x331b   :  { %v7720_v7 = vmul.f32 0.044715, %v18798_v57  ;;  %v18803_v13 = vadd.f32 %v7697_v20, %v7279_v52  ;;  %v7699_v32 = vpop.f32.mrb[203].mxu1 }
0x331c   :  { %v7721_v25 = vmul.f32 0.044715, %v18800_v26  ;;  %v18806_v12 = vadd.f32 %v7699_v32, %v7283_v28  ;;  %v7712_v32 = vmul.f32 0.5, %v18798_v57 }
0x331d   :  { %v7728_v45 = vmul.f32 %v18798_v57, %v7720_v7  ;;  %v7722_v3 = vmul.f32 0.044715, %v18803_v13 }
0x331e   :  { %v7729_v54 = vmul.f32 %v18800_v26, %v7721_v25  ;;  %v7723_v56 = vmul.f32 0.044715, %v18806_v12  ;;  %v7714_v25 = vmul.f32 0.5, %v18803_v13 }
0x331f   :  { %v7736_v60 = vmul.f32 %v18798_v57, %v7728_v45  ;;  %v7730_v38 = vmul.f32 %v18803_v13, %v7722_v3  ;;  %v7713_v3 = vmul.f32 0.5, %v18800_v26 }
0x3320   :  { %v7737_v2 = vmul.f32 %v18800_v26, %v7729_v54  ;;  %v7731_v58 = vmul.f32 %v18806_v12, %v7723_v56  ;;  %v7703_v34 = vpop.f32.mrb[204].mxu1  ;;  %v7715_v54 = vmul.f32 0.5, %v18806_v12 }
0x3321   :  { %v7744_v53 = vadd.f32 %v18798_v57, %v7736_v60  ;;  %v7738_v6 = vmul.f32 %v18803_v13, %v7730_v38  ;;  %v18818_v35 = vadd.f32 %v7703_v34, %v7279_v52  ;;  %v7705_v36 = vpop.f32.mrb[205].mxu1 }
0x3322   :  { %v7739_v47 = vmul.f32 %v18806_v12, %v7731_v58  ;;  %v18821_v46 = vadd.f32 %v7705_v36, %v7283_v28  ;;  %v7707_v61 = vpop.f32.mrb[206].mxu1  ;;  %v7745_v63 = vadd.f32 %v18800_v26, %v7737_v2  ;;  %v16312_v36 = vld [vmem:[#allocation20] sm:$0xff]  }
0x3323   :  { %v7752_v18 = vmul.f32 0.7978846, %v7744_v53  ;;  %v7746_v51 = vadd.f32 %v18803_v13, %v7738_v6  ;;  %v7724_v39 = vmul.f32 0.044715, %v18818_v35  ;;  %v15758_v16 = vadd.f32 %v7707_v61, %v7279_v52  ;;  %v7709_v40 = vpop.f32.mrb[207].mxu1 }
0x3324   :  { %v7725_v42 = vmul.f32 0.044715, %v18821_v46  ;;  %v18827_v41 = vadd.f32 %v7709_v40, %v7283_v28  ;;  %v7747_v43 = vadd.f32 %v18806_v12, %v7739_v47  ;;  %v7753_v8 = vmul.f32 0.7978846, %v7745_v63 }
0x3325   :  { %16672 = vtanh.f32 %v7752_v18  ;;  %v7754_v44 = vmul.f32 0.7978846, %v7746_v51  ;;  %v7732_v55 = vmul.f32 %v18818_v35, %v7724_v39  ;;  %v7726_v49 = vmul.f32 0.044715, %v15758_v16  ;;  %v16313_v51 = vld [vmem:[#allocation20 + $0x8] sm:$0xff]  }
0x3326   :  { %v7733_v37 = vmul.f32 %v18821_v46, %v7725_v42  ;;  %v7727_v50 = vmul.f32 0.044715, %v18827_v41  ;;  %v7755_v9 = vmul.f32 0.7978846, %v7747_v43  ;;  %16674 = vtanh.f32 %v7753_v8 }
0x3327   :  { %16676 = vtanh.f32 %v7754_v44  ;;  %v7740_v59 = vmul.f32 %v18818_v35, %v7732_v55  ;;  %v7734_v14 = vmul.f32 %v15758_v16, %v7726_v49  ;;  %v7716_v26 = vmul.f32 0.5, %v18818_v35 }
0x3328   :  { %v7741_v29 = vmul.f32 %v18821_v46, %v7733_v37  ;;  %v7735_v15 = vmul.f32 %v18827_v41, %v7727_v50  ;;  %16678 = vtanh.f32 %v7755_v9  ;;  %v7718_v18 = vmul.f32 0.5, %v15758_v16  ;;  %v13880_v50 = vld [vmem:[%s19815_s18] ss:$0 sm:$0xff] }
0x3329   :  { %v7742_v5 = vmul.f32 %v15758_v16, %v7734_v14  ;;  %v7748_v17 = vadd.f32 %v18818_v35, %v7740_v59  ;;  %v7717_v39 = vmul.f32 0.5, %v18821_v46  ;;  %v7719_v40 = vmul.f32 0.5, %v18827_v41  ;;  %v16314_v35 = vld [vmem:[#allocation20 + $0x10] sm:$0xff]  }
0x332a   :  { %v7743_v23 = vmul.f32 %v18827_v41, %v7735_v15  ;;  %v7749_v48 = vadd.f32 %v18821_v46, %v7741_v29  ;;  %v16315_v46 = vld [vmem:[#allocation20 + $0x18] sm:$0xff]   ;;  %v16318_v9 = vld [vmem:[#allocation20 + $0x30] sm:$0xff]   ;;  %v3953_v59 = vadd.f32 %v18287_v10, %v13880_v50  ;;  %v3950_v14 = vadd.f32 %v18285_v4, %v13880_v50 }
0x332b   :  { %v7750_v11 = vadd.f32 %v15758_v16, %v7742_v5  ;;  %v7756_v21 = vmul.f32 0.7978846, %v7748_v17  ;;  %v16316_v16 = vld [vmem:[#allocation20 + $0x20] sm:$0xff]   ;;  %v16319_v29 = vld [vmem:[#allocation20 + $0x38] sm:$0xff]  }
0x332c   :  { %v7751_v22 = vadd.f32 %v18827_v41, %v7743_v23  ;;  %v7757_v27 = vmul.f32 0.7978846, %v7749_v48  ;;  %v16317_v41 = vld [vmem:[#allocation20 + $0x28] sm:$0xff]   ;;  %v16904_v15 = vld [vmem:[#allocation2 + $0x8] sm:$0xff]  ;;  %v16905_v23 = vld [vmem:[#allocation2] sm:$0xff] }
0x332d   :  { %v7758_v62 = vmul.f32 0.7978846, %v7750_v11  ;;  %16680 = vtanh.f32 %v7756_v21  ;;  %v18858_v5 = vadd.f32 %v16904_v15, %v3953_v59  ;;  %v16322_v17 = vld [vmem:[#allocation23 + $0x4] ss:$8 sps:$4 sm:$0xff]   ;;  %v18861_v48 = vadd.f32 %v16905_v23, %v3950_v14  ;;  %v16320_v11 = vld [vmem:[#allocation23] ss:$8 sps:$4 sm:$0xff]  }
0x332e   :  { %v7759_v30 = vmul.f32 0.7978846, %v7751_v22  ;;  %16682 = vtanh.f32 %v7757_v27  ;;  %v16323_v4 = vld [vmem:[#allocation23 + $0x10] ss:$8 sps:$4 sm:$0xff]   ;;  %v16325_v21 = vld [vmem:[#allocation23 + $0x14] ss:$8 sps:$4 sm:$0xff]  }
0x332f   :  { %v16673_v52 = vpop.eup %16672  ;;  %16684 = vtanh.f32 %v7758_v62  ;;  %v18865_v10 = vpack.c.bf16 %v18858_v5, %v18861_v48  ;;  %v16326_v22 = vld [vmem:[#allocation23 + $0x20] ss:$8 sps:$4 sm:$0xff]   ;;  %v16328_v27 = vld [vmem:[#allocation23 + $0x24] ss:$8 sps:$4 sm:$0xff]   ;;  %v16331_v62 = vld [vmem:[#allocation23 + $0x34] ss:$8 sps:$4 sm:$0xff]  }
0x3330   :  { %v16675_v28 = vpop.eup %16674  ;;  %v7768_v24 = vadd.f32 1.0, %v16673_v52  ;;  %16686 = vtanh.f32 %v7759_v30  ;;  %v16329_v30 = vld [vmem:[#allocation23 + $0x30] ss:$8 sps:$4 sm:$0xff]   ;;  %v16332_v52 = vld [vmem:[#allocation23 + $0x40] ss:$8 sps:$4 sm:$0xff]  }
0x3331   :  { %v16677_v19 = vpop.eup %16676  ;;  %v7769_v20 = vadd.f32 1.0, %v16675_v28  ;;  %v16334_v28 = vld [vmem:[#allocation23 + $0x44] ss:$8 sps:$4 sm:$0xff]  }
0x3332   :  { %v16679_v7 = vpop.eup %16678  ;;  %v7770_v45 = vadd.f32 1.0, %v16677_v19  ;;  %v7776_v60 = vmul.f32 %v7768_v24, %v7712_v32  ;;  %v16337_v24 = vld [vmem:[#allocation23 + $0x54] ss:$8 sps:$4 sm:$0xff]   ;;  %v16335_v19 = vld [vmem:[#allocation23 + $0x50] ss:$8 sps:$4 sm:$0xff]  }
0x3333   :  { %v7771_v56 = vadd.f32 1.0, %v16679_v7  ;;  %v7777_v2 = vmul.f32 %v7769_v20, %v7713_v3  ;;  %v16340_v20 = vld [vmem:[#allocation23 + $0x64] ss:$8 sps:$4 sm:$0xff]   ;;  %v16338_v7 = vld [vmem:[#allocation23 + $0x60] ss:$8 sps:$4 sm:$0xff]  }
0x3334   :  { %v7778_v38 = vmul.f32 %v7770_v45, %v7714_v25  ;;  %v16343_v32 = vld [vmem:[#allocation23 + $0x74] ss:$8 sps:$4 sm:$0xff]   ;;  %v16341_v25 = vld [vmem:[#allocation23 + $0x70] ss:$8 sps:$4 sm:$0xff]   ;;  %v14074_v3 = vld [vmem:[%s19816_s22] ss:$0 sm:$0xff] }
0x3335   :  { %v7779_v58 = vmul.f32 %v7771_v56, %v7715_v54 }
0x3336   :  { %v7816_v34 = vpack.c.bf16 %v7778_v38, %v7776_v60 }
0x3337   :  { %v16681_v53 = vpop.eup %16680  ;;  %v7817_v6 = vpack.c.bf16 %v7779_v58, %v7777_v2 }
0x3338   :  { %v16683_v47 = vpop.eup %16682  ;;  %v7772_v61 = vadd.f32 1.0, %v16681_v53  ;;  %v16906_v53 = vld [vmem:[#allocation5] sm:$0xff] }
0x3339   :  { %v16685_v63 = vpop.eup %16684  ;;  %7955 = vmatprep.mubr.bf16.mxu0 %v7817_v6  ;;  %v7773_v57 = vadd.f32 1.0, %v16683_v47 }
0x333a   :  { %v16687_v13 = vpop.eup %16686  ;;  %7956 = vmatmul.mubr.bf16.vlgmr.msra.gmra.mrb[144].mxu0 %v7816_v34  ;;  %v7774_v12 = vadd.f32 1.0, %v16685_v63  ;;  %v7780_v43 = vmul.f32 %v7772_v61, %v7716_v26 }
0x333b   :  { %15241 = vmatpush3.bf16.msra.mxu0 %v16312_v36  ;;  %v7775_v42 = vadd.f32 1.0, %v16687_v13  ;;  %v7781_v44 = vmul.f32 %v7773_v57, %v7717_v39  ;;  %v16907_v36 = vld [vmem:[#allocation5 + $0x8] sm:$0xff] }
0x333c   :  { %15242 = vmatprep.subr.bf16.mxu0 %v17484_v1  ;;  %v7782_v8 = vmul.f32 %v7774_v12, %v7718_v18 }
0x333d   :  { %v7783_v55 = vmul.f32 %v7775_v42, %v7719_v40  ;;  %v16908_v40 = vld [vmem:[#allocation5 + $0x10] sm:$0xff] }
0x333e   :  { %v7818_v49 = vpack.c.bf16 %v7782_v8, %v7780_v43  ;;  %v16909_v43 = vld [vmem:[#allocation5 + $0x18] sm:$0xff] }
0x333f   :  { %15243 = vmatpush3.bf16.msra.mxu0 %v16313_v51  ;;  %v7819_v37 = vpack.c.bf16 %v7783_v55, %v7781_v44 }
0x3340   :  { %15244 = vmatprep.subr.bf16.mxu0 %v17484_v1 }
0x3341   :  { %7963 = vmatprep.mubr.bf16.mxu0 %v7819_v37 }
0x3342   :  { %7964 = vmatmul.mubr.bf16.gmra.mrb[148].mxu0 %v7818_v49 }
0x3343   :  { %15245 = vmatpush3.bf16.msra.mxu0 %v16314_v35  ;;  %15256 = vmatprep.mubr.msk.bf16.mxu0 %vm17485_vm0, %v17484_v1 }
0x3344   :  { %15246 = vmatprep.subr.bf16.mxu0 %v17484_v1 }
0x3347   :  { %15247 = vmatpush3.bf16.msra.mxu0 %v16315_v46  ;;  %v14091_v46 = vld [vmem:[#allocation22] ss:$0 sm:$0xff] }
0x3348   :  { %15248 = vmatprep.subr.bf16.mxu0 %v17484_v1 }
0x334b   :  { %15249 = vmatpush3.bf16.msra.mxu0 %v16316_v16 }
0x334c   :  { %15250 = vmatprep.subr.bf16.mxu0 %v17484_v1 }
0x334f   :  { %15251 = vmatpush3.bf16.msra.mxu0 %v16317_v41 }
0x3350   :  { %15252 = vmatprep.subr.bf16.mxu0 %v17484_v1 }
0x3353   :  { %15253 = vmatpush3.bf16.msra.mxu0 %v16318_v9 }
0x3354   :  { %15254 = vmatprep.subr.bf16.mxu0 %v17484_v1 }
0x3357   :  { %15255 = vmatpush3.bf16.msra.mxu0 %v16319_v29 }
0x3358   :  { %8221 = vmatprep.subr.bf16.mxu0 %v16322_v17 }
0x335a   :  { %15257 = vmatmul.mubr.bf16.vlgmr.msra.gmra.mrb[152].mxu0 %v18865_v10 }
0x335b   :  { %8222 = vmatpush1.bf16.msra.mxu0 %v16320_v11  ;;  %15260 = vmatprep.mubr.msk.bf16.mxu0 %vm17485_vm0, %v17484_v1 }
0x335c   :  { %8223 = vmatprep.subr.bf16.mxu0 %v16325_v21 }
0x335f   :  { %8224 = vmatpush1.bf16.msra.mxu0 %v16323_v4 }
0x3360   :  { %8225 = vmatprep.subr.bf16.mxu0 %v16328_v27 }
0x3363   :  { %8226 = vmatpush1.bf16.msra.mxu0 %v16326_v22 }
0x3364   :  { %8227 = vmatprep.subr.bf16.mxu0 %v16331_v62  ;;  %v8129_v62 = vld [vmem:[#allocation25] sm:$0x3] }
0x3367   :  { %8228 = vmatpush1.bf16.msra.mxu0 %v16329_v30 }
0x3368   :  { %8229 = vmatprep.subr.bf16.mxu0 %v16334_v28 }
0x336b   :  { %8230 = vmatpush1.bf16.msra.mxu0 %v16332_v52 }
0x336c   :  { %8231 = vmatprep.subr.bf16.mxu0 %v16337_v24  ;;  %v8134_v24 = vrot.slane %v8129_v62, %v17835_v33 }
0x336f   :  { %8232 = vmatpush1.bf16.msra.mxu0 %v16335_v19 }
0x3370   :  { %8233 = vmatprep.subr.bf16.mxu0 %v16340_v20  ;;  %v8138_v20 = vrot.slane %v8129_v62, %v17831_v31 }
0x3373   :  { %8234 = vmatpush1.bf16.msra.mxu0 %v16338_v7 }
0x3374   :  { %8235 = vmatprep.subr.bf16.mxu0 %v16343_v32 }
0x3377   :  { %8236 = vmatpush1.bf16.msra.mxu0 %v16341_v25 }
0x3378   :  { %15268 = vmatprep.subr.bf16.mxu0 %v17484_v1 }
0x340d   :  { %v14495_v45 = vpop.f32.mrb[144].mxu0 }
0x340e   :  { %v14496_v54 = vpop.f32.mrb[145].mxu0 }
0x340f   :  { %v14497_v56 = vadd.f32 %v14496_v54, %v14495_v45  ;;  %v14498_v60 = vpop.f32.mrb[146].mxu0 }
0x3410   :  { %v14499_v38 = vpop.f32.mrb[147].mxu0 }
0x3411   :  { %v7958_v2 = vadd.f32 %v14497_v56, %v14074_v3  ;;  %v14500_v58 = vadd.f32 %v14499_v38, %v14498_v60 }
0x3413   :  { %v7961_v34 = vadd.f32 %v14500_v58, %v14074_v3  ;;  %v18872_v6 = vadd.f32 %v16906_v53, %v7958_v2 }
0x3415   :  { %v18874_v47 = vadd.f32 %v16907_v36, %v7961_v34  ;;  %v14501_v61 = vpop.f32.mrb[148].mxu0 }
0x3416   :  { %v14502_v63 = vpop.f32.mrb[149].mxu0 }
0x3417   :  { %v14503_v57 = vadd.f32 %v14502_v63, %v14501_v61  ;;  %v14504_v13 = vpop.f32.mrb[150].mxu0  ;;  %v18878_v26 = vpack.c.bf16 %v18874_v47, %v18872_v6 }
0x3418   :  { %v14505_v18 = vpop.f32.mrb[151].mxu0 }
0x3419   :  { %v7966_v12 = vadd.f32 %v14503_v57, %v14074_v3  ;;  %v14506_v51 = vadd.f32 %v14505_v18, %v14504_v13  ;;  %15261 = vmatmul.mubr.bf16.gmra.mrb[156].mxu0 %v18878_v26 }
0x341a   :  { %15264 = vmatprep.mubr.msk.bf16.mxu0 %vm17485_vm0, %v17484_v1 }
0x341b   :  { %v7969_v39 = vadd.f32 %v14506_v51, %v14074_v3  ;;  %v18883_v42 = vadd.f32 %v16908_v40, %v7966_v12 }
0x341d   :  { %v18885_v8 = vadd.f32 %v16909_v43, %v7969_v39 }
0x341f   :  { %v18889_v44 = vpack.c.bf16 %v18885_v8, %v18883_v42 }
0x3421   :  { %15265 = vmatmul.mubr.bf16.gmra.mrb[160].mxu0 %v18889_v44 }
0x3422   :  { %8253 = vmatprep.mubr.bf16.mxu0 %v17483_v0 }
0x3429   :  { %8254 = vmatmul.mubr.bf16.vlgmr.msra.gmra.mrb[164].mxu0 %v18878_v26 }
0x342a   :  { %8263 = vmatprep.mubr.bf16.mxu0 %v17483_v0 }
0x342d   :  { %v8084_v55 = vpop.f32.mrb[152].mxu0 }
0x342e   :  { %v15258_v49 = vpop.f32.mrb[153].mxu0  ;;  %v8085_v60 = vadd.f32 %v14091_v46, %v8084_v55 }
0x342f   :  { %v8087_v37 = vpop.f32.mrb[154].mxu0 }
0x3430   :  { %v15259_v35 = vpop.f32.mrb[155].mxu0  ;;  %v8107_v53 = vmul.f32 0.25, %v8085_v60  ;;  %v8088_v39 = vadd.f32 %v14091_v46, %v8087_v37 }
0x3431   :  { %8264 = vmatmul.mubr.bf16.gmra.mrb[168].mxu0 %v18889_v44 }
0x3432   :  { %8273 = vmatprep.mubr.bf16.mxu0 %v17483_v0  ;;  %v18915_v51 = vpack.c.bf16 %v8107_v53, %v8107_v53  ;;  %v8108_v35 = vmul.f32 0.25, %v8088_v39 }
0x3439   :  { %8274 = vmatmul.mubr.bf16.gmra.mrb[172].mxu0 %v18865_v10 }
0x343a   :  { %15270 = vmatprep.mubr.msk.bf16.mxu0 %vm17485_vm0, %v17484_v1 }
0x34ec   :  { %v8092_v16 = vpop.f32.mrb[156].mxu0 }
0x34ed   :  { %v8093_v41 = vadd.f32 %v14091_v46, %v8092_v16  ;;  %v15262_v50 = vpop.f32.mrb[157].mxu0 }
0x34ee   :  { %v8095_v9 = vpop.f32.mrb[158].mxu0 }
0x34ef   :  { %v8096_v59 = vadd.f32 %v14091_v46, %v8095_v9  ;;  %v15263_v14 = vpop.f32.mrb[159].mxu0  ;;  %v8109_v29 = vmul.f32 0.25, %v8093_v41 }
0x34f0   :  { %v18936_v14 = vpack.c.bf16 %v8108_v35, %v8108_v35 }
0x34f1   :  { %v8110_v15 = vmul.f32 0.25, %v8096_v59 }
0x34f3   :  { %v18900_v17 = vpack.c.bf16 %v8110_v15, %v8109_v29 }
0x34f4   :  { %v8100_v23 = vpop.f32.mrb[160].mxu0 }
0x34f5   :  { %v8101_v11 = vadd.f32 %v14091_v46, %v8100_v23  ;;  %v15266_v4 = vpop.f32.mrb[161].mxu0 }
0x34f6   :  { %v8103_v21 = vpop.f32.mrb[162].mxu0 }
0x34f7   :  { %v8104_v22 = vadd.f32 %v14091_v46, %v8103_v21  ;;  %v15267_v27 = vpop.f32.mrb[163].mxu0  ;;  %v8111_v30 = vmul.f32 0.25, %v8101_v11 }
0x34f9   :  { %v8112_v52 = vmul.f32 0.25, %v8104_v22 }
0x34fb   :  { %v18902_v28 = vpack.c.bf16 %v8112_v52, %v8111_v30 }
0x34fc   :  { %v8255_v19 = vpop.f32.mrb[164].mxu0 }
0x34fd   :  { %v8257_v7 = vpop.f32.mrb[165].mxu0  ;;  %v8256_v25 = vadd.f32 %v8255_v19, %v8134_v24 }
0x34fe   :  { %v8259_v32 = vpop.f32.mrb[166].mxu0  ;;  %v8258_v54 = vadd.f32 %v8257_v7, %v8138_v20 }
0x34ff   :  { %v8260_v45 = vadd.f32 %v8259_v32, %v8134_v24  ;;  %v8261_v3 = vpop.f32.mrb[167].mxu0 }
0x3500   :  { %v8262_v56 = vadd.f32 %v8261_v3, %v8138_v20 }
0x3501   :  { %v18906_v38 = vpack.c.bf16 %v8260_v45, %v8256_v25 }
0x3502   :  { %v18908_v2 = vpack.c.bf16 %v8262_v56, %v8258_v54 }
0x3503   :  { %v8292_v58 = vsel %vm679_vm1, %v18906_v38, 0 }
0x3504   :  { %v8265_v34 = vpop.f32.mrb[168].mxu0  ;;  %15269 = vmatpush3.bf16.xpose.msra.mxu0 %v8292_v58  ;;  %15281 = vmatpush3.bf16.msra.mxu1 %v18908_v2 }
0x3505   :  { %v8267_v36 = vpop.f32.mrb[169].mxu0  ;;  %15274 = vmatprep.subr.bf16.mxu0 %v17484_v1  ;;  %15292 = vmatprep.subr.bf16.mxu1 %v17484_v1  ;;  %v8266_v63 = vadd.f32 %v8265_v34, %v8134_v24 }
0x3506   :  { %v8269_v61 = vpop.f32.mrb[170].mxu0  ;;  %v8268_v18 = vadd.f32 %v8267_v36, %v8138_v20 }
0x3507   :  { %v8270_v57 = vadd.f32 %v8269_v61, %v8134_v24  ;;  %v8271_v13 = vpop.f32.mrb[171].mxu0 }
0x3508   :  { %v8272_v12 = vadd.f32 %v8271_v13, %v8138_v20 }
0x3509   :  { %v18917_v40 = vpack.c.bf16 %v8270_v57, %v8266_v63 }
0x350a   :  { %v18919_v43 = vpack.c.bf16 %v8272_v12, %v8268_v18 }
0x350b   :  { %15271 = vmatmul.mubr.msk.bf16.vlgmr.msra.gmra.mrb[176].mxu0 %vm679_vm1, %v18915_v51  ;;  %v8338_v55 = vsel %vm679_vm1, %v18917_v40, 0 }
0x350c   :  { %v8275_v49 = vpop.f32.mrb[172].mxu0  ;;  %15275 = vmatpush3.bf16.xpose.msra.mxu0 %v8338_v55  ;;  %15276 = vmatprep.mubr.msk.bf16.mxu0 %vm17485_vm0, %v17484_v1 }
0x350d   :  { %v18927_v16 = vadd.f32 %v8275_v49, %v8134_v24  ;;  %v8277_v41 = vpop.f32.mrb[173].mxu0  ;;  %15286 = vmatprep.subr.bf16.mxu0 %v17484_v1 }
0x350e   :  { %v18930_v37 = vadd.f32 %v8277_v41, %v8138_v20  ;;  %v8279_v46 = vpop.f32.mrb[174].mxu0 }
0x350f   :  { %v18932_v50 = vadd.f32 %v8279_v46, %v8134_v24  ;;  %v8281_v9 = vpop.f32.mrb[175].mxu0 }
0x3510   :  { %v18934_v59 = vadd.f32 %v8281_v9, %v8138_v20 }
0x3513   :  { %15277 = vmatmul.mubr.msk.bf16.vlgmr.msra.gmra.mrb[180].mxu0 %vm679_vm1, %v18936_v14 }
0x3514   :  { %15287 = vmatpush3.bf16.msra.mxu0 %v18919_v43  ;;  %15288 = vmatprep.mubr.msk.bf16.mxu0 %vm17485_vm0, %v17484_v1 }
0x3515   :  { %15298 = vmatprep.subr.bf16.mxu0 %v17484_v1 }
0x35de   :  { %v8328_v29 = vpop.f32.mrb[176].mxu0 }
0x35df   :  { %v15272_v15 = vpop.f32.mrb[177].mxu0  ;;  %v8380_v23 = vsel %vm679_vm1, %v8328_v29, -inf }
0x35e0   :  { %8381 = vmax.xlane.f32.xlu1 %v8380_v23  ;;  %v8331_v11 = vpop.f32.mrb[178].mxu0 }
0x35e1   :  { %v15273_v4 = vpop.f32.mrb[179].mxu0 }
0x35e6   :  { %v8374_v21 = vpop.f32.mrb[180].mxu0 }
0x35e7   :  { %v15278_v22 = vpop.f32.mrb[181].mxu0  ;;  %v8383_v27 = vsel %vm679_vm1, %v8374_v21, -inf }
0x35e8   :  { %8384 = vmax.xlane.f32.xlu0 %v8383_v27  ;;  %v8377_v62 = vpop.f32.mrb[182].mxu0 }
0x35e9   :  { %v15279_v30 = vpop.f32.mrb[183].mxu0 }
0x35f1   :  { %8499 = vrot.lane.b32.xlu1 %v18906_v38, %s17486_s29 }
0x366d   :  { %v8382_v52 = vpop.xlane.xlu1 %8381 }
0x366e   :  { %v8386_v24 = vsub.f32 %v8328_v29, %v8382_v52 }
0x3670   :  { %v8388_v19 = vmul.f32 1.442695, %v8386_v24 }
0x3671   :  { %v8500_v56 = vpop.permute.xlu1 %8499 }
0x3672   :  { %16688 = vpow2.f32 %v8388_v19  ;;  %v8505_v61 = vsel %vm679_vm1, %v8500_v56, 0 }
0x3675   :  { %v8385_v20 = vpop.xlane.xlu0 %8384 }
0x3676   :  { %v8387_v7 = vsub.f32 %v8374_v21, %v8385_v20 }
0x3678   :  { %v8390_v32 = vmul.f32 1.442695, %v8387_v7 }
0x367a   :  { %16690 = vpow2.f32 %v8390_v32 }
0x367c   :  { %v16689_v25 = vpop.eup %16688 }
0x367d   :  { %v8392_v45 = vsel %vm679_vm1, %v16689_v25, 0.0 }
0x367e   :  { %8393 = vadd.xlane.f32.xlu1 %v8392_v45 }
0x3684   :  { %v16691_v3 = vpop.eup %16690 }
0x3685   :  { %v8395_v54 = vsel %vm679_vm1, %v16691_v3, 0.0 }
0x3686   :  { %8396 = vadd.xlane.f32.xlu0 %v8395_v54 }
0x368f   :  { %8496 = vrot.lane.b32.xlu1 %v18915_v51, %s17486_s29 }
0x3693   :  { %8548 = vrot.lane.b32.xlu1 %v18936_v14, %s17486_s29 }
0x369c   :  { %8551 = vrot.lane.b32.xlu0 %v18917_v40, %s17486_s29 }
0x370b   :  { %v8394_v60 = vpop.xlane.xlu1 %8393 }
0x370c   :  { %16692 = vrcp.f32 %v8394_v60 }
0x370f   :  { %v8497_v12 = vpop.permute.xlu1 %8496 }
0x3713   :  { %v8397_v58 = vpop.xlane.xlu0 %8396  ;;  %v8549_v55 = vpop.permute.xlu1 %8548 }
0x3714   :  { %16694 = vrcp.f32 %v8397_v58 }
0x3716   :  { %v16693_v34 = vpop.eup %16692 }
0x3717   :  { %v8399_v53 = vmul.f32 %v16693_v34, %v16689_v25  ;;  %v8552_v13 = vpop.permute.xlu0 %8551 }
0x3718   :  { %v8557_v39 = vsel %vm679_vm1, %v8552_v13, 0 }
0x3719   :  { %v8402_v36 = vpack.c.bf16 %v8399_v53, %v8399_v53 }
0x371b   :  { %15283 = vmatmul.mubr.msk.bf16.vlgmr.msra.gmra.mrb[208].mxu1 %vm679_vm1, %v8402_v36 }
0x371c   :  { %15293 = vmatpush3.bf16.xpose.msra.mxu1 %v8505_v61  ;;  %15294 = vmatprep.mubr.msk.bf16.mxu1 %vm17485_vm0, %v17484_v1 }
0x371d   :  { %15304 = vmatprep.subr.bf16.mxu1 %v17484_v1 }
0x371e   :  { %v16695_v63 = vpop.eup %16694 }
0x371f   :  { %v8401_v57 = vmul.f32 %v16695_v63, %v16691_v3 }
0x3721   :  { %v8403_v18 = vpack.c.bf16 %v8401_v57, %v8401_v57 }
0x3723   :  { %15289 = vmatmul.mubr.msk.bf16.vlgmr.msra.gmra.mrb[184].mxu0 %vm679_vm1, %v8403_v18  ;;  %15295 = vmatmul.mubr.msk.bf16.vlgmr.msra.gmra.mrb[212].mxu1 %vm679_vm1, %v8497_v12 }
0x3724   :  { %15299 = vmatpush3.bf16.xpose.msra.mxu0 %v8557_v39  ;;  %15300 = vmatprep.mubr.msk.bf16.mxu0 %vm17485_vm0, %v17484_v1 }
0x3725   :  { %15310 = vmatprep.subr.bf16.mxu0 %v17484_v1  ;;  %15306 = vmatprep.mubr.msk.bf16.mxu1 %vm17485_vm0, %v17484_v1 }
0x372b   :  { %15301 = vmatmul.mubr.msk.bf16.vlgmr.msra.gmra.mrb[188].mxu0 %vm679_vm1, %v8549_v55  ;;  %v16344_v55 = vld [vmem:[#allocation26] sm:$0xff]  }
0x372c   :  { %15312 = vmatprep.mubr.msk.bf16.mxu0 %vm17485_vm0, %v17484_v1 }
0x37ee   :  { %v18972_v49 = vpop.f32.mrb[208].mxu1 }
0x37ef   :  { %v15284_v35 = vpop.f32.mrb[209].mxu1 }
0x37f0   :  { %v8446_v41 = vpop.f32.mrb[210].mxu1 }
0x37f1   :  { %v15285_v46 = vpop.f32.mrb[211].mxu1 }
0x37f6   :  { %v18974_v9 = vpop.f32.mrb[184].mxu0  ;;  %v8541_v29 = vpop.f32.mrb[212].mxu1 }
0x37f7   :  { %v8494_v15 = vpack.c.bf16 %v18974_v9, %v18972_v49  ;;  %v15290_v23 = vpop.f32.mrb[185].mxu0  ;;  %v15296_v11 = vpop.f32.mrb[213].mxu1  ;;  %v8599_v4 = vsel %vm679_vm1, %v8541_v29, -inf }
0x37f8   :  { %v8544_v21 = vpop.f32.mrb[214].mxu1  ;;  %8600 = vmax.xlane.f32.xlu0 %v8599_v4  ;;  %v8489_v22 = vpop.f32.mrb[186].mxu0 }
0x37f9   :  { %v15291_v27 = vpop.f32.mrb[187].mxu0  ;;  %v15297_v62 = vpop.f32.mrb[215].mxu1 }
0x37fe   :  { %v8593_v30 = vpop.f32.mrb[188].mxu0 }
0x37ff   :  { %v15302_v52 = vpop.f32.mrb[189].mxu0  ;;  %v8602_v24 = vsel %vm679_vm1, %v8593_v30, -inf }
0x3800   :  { %8603 = vmax.xlane.f32.xlu1 %v8602_v24  ;;  %v8596_v19 = vpop.f32.mrb[190].mxu0 }
0x3801   :  { %v15303_v20 = vpop.f32.mrb[191].mxu0 }
0x3811   :  { %8624 = vrot.lane.b32.xlu1 %v18908_v2, %s17486_s29 }
0x3815   :  { %8822 = vrot.lane.b32.xlu1 %v18906_v38, %s17487_s2 }
0x3819   :  { %8872 = vrot.lane.b32.xlu1 %v18917_v40, %s17487_s2 }
0x381d   :  { %8870 = vrot.lane.b32.xlu1 %v18936_v14, %s17487_s2 }
0x3885   :  { %v8601_v7 = vpop.xlane.xlu0 %8600 }
0x3886   :  { %v8605_v32 = vsub.f32 %v8541_v29, %v8601_v7  ;;  %v16345_v29 = vld [vmem:[#allocation26 + $0x8] sm:$0xff]  }
0x3888   :  { %v8607_v25 = vmul.f32 1.442695, %v8605_v32 }
0x388a   :  { %16696 = vpow2.f32 %v8607_v25 }
0x388d   :  { %v8604_v45 = vpop.xlane.xlu1 %8603 }
0x388e   :  { %v8606_v3 = vsub.f32 %v8593_v30, %v8604_v45 }
0x3890   :  { %v8609_v54 = vmul.f32 1.442695, %v8606_v3 }
0x3891   :  { %v8625_v56 = vpop.permute.xlu1 %8624 }
0x3892   :  { %16698 = vpow2.f32 %v8609_v54  ;;  %15305 = vmatpush3.bf16.msra.mxu1 %v8625_v56 }
0x3893   :  { %15316 = vmatprep.subr.bf16.mxu1 %v17484_v1 }
0x3894   :  { %v16697_v60 = vpop.eup %16696 }
0x3895   :  { %v8611_v58 = vsel %vm679_vm1, %v16697_v60, 0.0  ;;  %v8823_v35 = vpop.permute.xlu1 %8822 }
0x3896   :  { %8612 = vadd.xlane.f32.xlu0 %v8611_v58  ;;  %v8828_v30 = vsel %vm679_vm1, %v8823_v35, 0 }
0x3899   :  { %v8873_v41 = vpop.permute.xlu1 %8872 }
0x389a   :  { %v8878_v46 = vsel %vm679_vm1, %v8873_v41, 0 }
0x389c   :  { %v16699_v34 = vpop.eup %16698 }
0x389d   :  { %v8614_v53 = vsel %vm679_vm1, %v16699_v34, 0.0  ;;  %v8871_v9 = vpop.permute.xlu1 %8870 }
0x389e   :  { %8615 = vadd.xlane.f32.xlu0 %v8614_v53 }
0x38b4   :  { %8671 = vrot.lane.b32.xlu0 %v18919_v43, %s17486_s29 }
0x38b8   :  { %8820 = vrot.lane.b32.xlu0 %v18915_v51, %s17487_s2 }
0x3923   :  { %v8613_v36 = vpop.xlane.xlu0 %8612 }
0x3924   :  { %16700 = vrcp.f32 %v8613_v36 }
0x392b   :  { %v8616_v61 = vpop.xlane.xlu0 %8615 }
0x392c   :  { %16702 = vrcp.f32 %v8616_v61 }
0x392e   :  { %v16701_v63 = vpop.eup %16700 }
0x392f   :  { %v8672_v57 = vpop.permute.xlu0 %8671  ;;  %v8618_v13 = vmul.f32 %v16701_v63, %v16697_v60 }
0x3930   :  { %15311 = vmatpush3.bf16.msra.mxu0 %v8672_v57 }
0x3931   :  { %v8621_v18 = vpack.c.bf16 %v8618_v13, %v8618_v13  ;;  %15322 = vmatprep.subr.bf16.mxu0 %v17484_v1 }
0x3933   :  { %15307 = vmatmul.mubr.msk.bf16.vlgmr.msra.gmra.mrb[216].mxu1 %vm679_vm1, %v8621_v18  ;;  %v8821_v20 = vpop.permute.xlu0 %8820 }
0x3934   :  { %15318 = vmatprep.mubr.msk.bf16.mxu1 %vm17485_vm0, %v17484_v1  ;;  %15317 = vmatpush3.bf16.msra.mxu1 %v16345_v29 }
0x3935   :  { %15328 = vmatprep.subr.bf16.mxu1 %v17484_v1 }
0x3936   :  { %v16703_v12 = vpop.eup %16702 }
0x3937   :  { %v8620_v39 = vmul.f32 %v16703_v12, %v16699_v34 }
0x3939   :  { %v8622_v49 = vpack.c.bf16 %v8620_v39, %v8620_v39 }
0x393b   :  { %15313 = vmatmul.mubr.msk.bf16.vlgmr.msra.gmra.mrb[192].mxu0 %vm679_vm1, %v8622_v49 }
0x393c   :  { %15323 = vmatpush3.bf16.msra.mxu0 %v16344_v55  ;;  %15324 = vmatprep.mubr.msk.bf16.mxu0 %vm17485_vm0, %v17484_v1 }
0x393d   :  { %15334 = vmatprep.subr.bf16.mxu0 %v17484_v1 }
0x3943   :  { %15325 = vmatmul.mubr.msk.bf16.vlgmr.msra.gmra.mrb[196].mxu0 %vm679_vm1, %v8494_v15 }
0x3944   :  { %15336 = vmatprep.mubr.msk.bf16.mxu0 %vm17485_vm0, %v17484_v1 }
0x3945   :  { %15335 = vmatpush3.bf16.xpose.msra.mxu0 %v8878_v46 }
0x3946   :  { %15346 = vmatprep.subr.bf16.mxu0 %v17484_v1 }
0x394c   :  { %15337 = vmatmul.mubr.msk.bf16.vlgmr.msra.gmra.mrb[200].mxu0 %vm679_vm1, %v8871_v9 }
0x394d   :  { %15348 = vmatprep.mubr.msk.bf16.mxu0 %vm17485_vm0, %v17484_v1 }
0x3a06   :  { %v8664_v23 = vpop.f32.mrb[216].mxu1 }
0x3a07   :  { %v15308_v15 = vpop.f32.mrb[217].mxu1 }
0x3a08   :  { %v8667_v11 = vpop.f32.mrb[218].mxu1 }
0x3a09   :  { %v15309_v4 = vpop.f32.mrb[219].mxu1 }
0x3a0e   :  { %v8711_v21 = vpop.f32.mrb[192].mxu0 }
0x3a0f   :  { %v8719_v22 = vpack.c.bf16 %v8711_v21, %v8664_v23  ;;  %v15314_v27 = vpop.f32.mrb[193].mxu0 }
0x3a10   :  { %v8714_v62 = vpop.f32.mrb[194].mxu0 }
0x3a11   :  { %v15315_v52 = vpop.f32.mrb[195].mxu0  ;;  %15319 = vmatmul.mubr.msk.bf16.vlgmr.msra.gmra.mrb[220].mxu1 %vm679_vm1, %v8719_v22 }
0x3a12   :  { %15329 = vmatpush3.bf16.xpose.msra.mxu1 %v8828_v30  ;;  %15330 = vmatprep.mubr.msk.bf16.mxu1 %vm17485_vm0, %v17484_v1 }
0x3a13   :  { %15340 = vmatprep.subr.bf16.mxu1 %v17484_v1 }
0x3a16   :  { %v8813_v24 = vpop.f32.mrb[196].mxu0 }
0x3a17   :  { %v15326_v19 = vpop.f32.mrb[197].mxu0 }
0x3a18   :  { %v8816_v7 = vpop.f32.mrb[198].mxu0 }
0x3a19   :  { %v15327_v32 = vpop.f32.mrb[199].mxu0  ;;  %15331 = vmatmul.mubr.msk.bf16.vlgmr.msra.gmra.mrb[224].mxu1 %vm679_vm1, %v8821_v20 }
0x3a1a   :  { %15342 = vmatprep.mubr.msk.bf16.mxu1 %vm17485_vm0, %v17484_v1 }
0x3a1f   :  { %v8914_v25 = vpop.f32.mrb[200].mxu0 }
0x3a20   :  { %v15338_v45 = vpop.f32.mrb[201].mxu0  ;;  %v8923_v3 = vsel %vm679_vm1, %v8914_v25, -inf }
0x3a21   :  { %8924 = vmax.xlane.f32.xlu1 %v8923_v3  ;;  %v8917_v54 = vpop.f32.mrb[202].mxu0 }
0x3a22   :  { %v15339_v56 = vpop.f32.mrb[203].mxu0 }
0x3a32   :  { %8944 = vrot.lane.b32.xlu1 %v18908_v2, %s17487_s2 }
0x3a36   :  { %9093 = vrot.lane.b32.xlu1 %v18906_v38, %s17488_s10 }
0x3a3a   :  { %9143 = vrot.lane.b32.xlu1 %v18917_v40, %s17488_s10 }
0x3a3e   :  { %9141 = vrot.lane.b32.xlu1 %v18936_v14, %s17488_s10 }
0x3aae   :  { %v8925_v60 = vpop.xlane.xlu1 %8924 }
0x3aaf   :  { %v8927_v34 = vsub.f32 %v8914_v25, %v8925_v60  ;;  %v16346_v25 = vld [vmem:[#allocation26 + $0x10] sm:$0xff]  }
0x3ab1   :  { %v8930_v53 = vmul.f32 1.442695, %v8927_v34 }
0x3ab2   :  { %v8945_v58 = vpop.permute.xlu1 %8944 }
0x3ab3   :  { %15341 = vmatpush3.bf16.msra.mxu1 %v8945_v58  ;;  %16704 = vpow2.f32 %v8930_v53 }
0x3ab4   :  { %15352 = vmatprep.subr.bf16.mxu1 %v17484_v1 }
0x3ab6   :  { %v9094_v52 = vpop.permute.xlu1 %9093 }
0x3ab7   :  { %v9099_v20 = vsel %vm679_vm1, %v9094_v52, 0 }
0x3aba   :  { %v9144_v60 = vpop.permute.xlu1 %9143 }
0x3abd   :  { %v16705_v49 = vpop.eup %16704 }
0x3abe   :  { %v8935_v46 = vsel %vm679_vm1, %v16705_v49, 0.0 }
0x3ae4   :  { %v8763_v36 = vpop.f32.mrb[220].mxu1 }
0x3ae5   :  { %v19030_v61 = vadd.f32 %v8813_v24, %v8763_v36  ;;  %v15320_v63 = vpop.f32.mrb[221].mxu1 }
0x3ae6   :  { %v8766_v57 = vpop.f32.mrb[222].mxu1  ;;  %v9149_v63 = vsel %vm679_vm1, %v9144_v60, 0  ;;  %v16347_v60 = vld [vmem:[#allocation26 + $0x18] sm:$0xff]  }
0x3ae7   :  { %v19032_v13 = vadd.f32 %v8816_v7, %v8766_v57  ;;  %v15321_v18 = vpop.f32.mrb[223].mxu1 }
0x3aec   :  { %v8864_v12 = vpop.f32.mrb[224].mxu1 }
0x3aed   :  { %v15332_v39 = vpop.f32.mrb[225].mxu1  ;;  %v8920_v55 = vsel %vm679_vm1, %v8864_v12, -inf }
0x3aee   :  { %8921 = vmax.xlane.f32.xlu0 %v8920_v55  ;;  %v8867_v35 = vpop.f32.mrb[226].mxu1 }
0x3aef   :  { %v15333_v41 = vpop.f32.mrb[227].mxu1  ;;  %v9142_v35 = vpop.permute.xlu1 %9141 }
0x3af2   :  { %8936 = vadd.xlane.f32.xlu0 %v8935_v46 }
0x3b7b   :  { %v8922_v9 = vpop.xlane.xlu0 %8921 }
0x3b7c   :  { %v8926_v29 = vsub.f32 %v8864_v12, %v8922_v9 }
0x3b7e   :  { %v8928_v23 = vmul.f32 1.442695, %v8926_v29 }
0x3b7f   :  { %v8937_v4 = vpop.xlane.xlu0 %8936 }
0x3b80   :  { %16706 = vpow2.f32 %v8928_v23 }
0x3b81   :  { %16708 = vrcp.f32 %v8937_v4 }
0x3b8a   :  { %v16707_v15 = vpop.eup %16706 }
0x3b8b   :  { %v8932_v11 = vsel %vm679_vm1, %v16707_v15, 0.0  ;;  %v16709_v21 = vpop.eup %16708 }
0x3b8c   :  { %8933 = vadd.xlane.f32.xlu0 %v8932_v11  ;;  %v8941_v27 = vmul.f32 %v16709_v21, %v16705_v49 }
0x3b8e   :  { %v8943_v30 = vpack.c.bf16 %v8941_v27, %v8941_v27 }
0x3ba2   :  { %8990 = vrot.lane.b32.xlu0 %v18919_v43, %s17487_s2 }
0x3ba6   :  { %9091 = vrot.lane.b32.xlu0 %v18915_v51, %s17488_s10 }
0x3c19   :  { %v8934_v22 = vpop.xlane.xlu0 %8933 }
0x3c1a   :  { %16710 = vrcp.f32 %v8934_v22 }
0x3c1d   :  { %v8991_v62 = vpop.permute.xlu0 %8990 }
0x3c1e   :  { %15347 = vmatpush3.bf16.msra.mxu0 %v8991_v62 }
0x3c1f   :  { %15358 = vmatprep.subr.bf16.mxu0 %v17484_v1 }
0x3c21   :  { %15349 = vmatmul.mubr.msk.bf16.vlgmr.msra.gmra.mrb[204].mxu0 %vm679_vm1, %v8943_v30  ;;  %v9092_v32 = vpop.permute.xlu0 %9091 }
0x3c22   :  { %15360 = vmatprep.mubr.msk.bf16.mxu0 %vm17485_vm0, %v17484_v1 }
0x3c24   :  { %v16711_v24 = vpop.eup %16710 }
0x3c25   :  { %v8939_v19 = vmul.f32 %v16711_v24, %v16707_v15 }
0x3c27   :  { %15359 = vmatpush3.bf16.xpose.msra.mxu0 %v9099_v20  ;;  %v8942_v7 = vpack.c.bf16 %v8939_v19, %v8939_v19 }
0x3c28   :  { %15370 = vmatprep.subr.bf16.mxu0 %v17484_v1 }
0x3c29   :  { %15343 = vmatmul.mubr.msk.bf16.vlgmr.msra.gmra.mrb[228].mxu1 %vm679_vm1, %v8942_v7 }
0x3c2a   :  { %15354 = vmatprep.mubr.msk.bf16.mxu1 %vm17485_vm0, %v17484_v1  ;;  %15353 = vmatpush3.bf16.msra.mxu1 %v16346_v25 }
0x3c2b   :  { %15364 = vmatprep.subr.bf16.mxu1 %v17484_v1 }
0x3c2e   :  { %15361 = vmatmul.mubr.msk.bf16.vlgmr.msra.gmra.mrb[208].mxu0 %vm679_vm1, %v9092_v32 }
0x3c2f   :  { %15372 = vmatprep.mubr.msk.bf16.mxu0 %vm17485_vm0, %v17484_v1 }
0x3cf4   :  { %v9030_v45 = vpop.f32.mrb[204].mxu0 }
0x3cf5   :  { %v15350_v3 = vpop.f32.mrb[205].mxu0 }
0x3cf6   :  { %v9033_v54 = vpop.f32.mrb[206].mxu0 }
0x3cf7   :  { %v15351_v56 = vpop.f32.mrb[207].mxu0 }
0x3cfc   :  { %v8984_v58 = vpop.f32.mrb[228].mxu1 }
0x3cfd   :  { %v9038_v34 = vpack.c.bf16 %v9030_v45, %v8984_v58  ;;  %v15344_v53 = vpop.f32.mrb[229].mxu1 }
0x3cfe   :  { %v8987_v36 = vpop.f32.mrb[230].mxu1 }
0x3cff   :  { %v15345_v57 = vpop.f32.mrb[231].mxu1  ;;  %15355 = vmatmul.mubr.msk.bf16.vlgmr.msra.gmra.mrb[232].mxu1 %vm679_vm1, %v9038_v34 }
0x3d00   :  { %15365 = vmatpush3.bf16.xpose.msra.mxu1 %v9149_v63  ;;  %15366 = vmatprep.mubr.msk.bf16.mxu1 %vm17485_vm0, %v17484_v1 }
0x3d01   :  { %v9135_v18 = vpop.f32.mrb[208].mxu0  ;;  %15376 = vmatprep.subr.bf16.mxu1 %v17484_v1 }
0x3d02   :  { %v15362_v12 = vpop.f32.mrb[209].mxu0  ;;  %v9191_v39 = vsel %vm679_vm1, %v9135_v18, -inf }
0x3d03   :  { %9192 = vmax.xlane.f32.xlu0 %v9191_v39  ;;  %v9138_v55 = vpop.f32.mrb[210].mxu0 }
0x3d04   :  { %v15363_v49 = vpop.f32.mrb[211].mxu0 }
0x3d07   :  { %15367 = vmatmul.mubr.msk.bf16.vlgmr.msra.gmra.mrb[236].mxu1 %vm679_vm1, %v9142_v35 }
0x3d08   :  { %15378 = vmatprep.mubr.msk.bf16.mxu1 %vm17485_vm0, %v17484_v1 }
0x3d90   :  { %v9193_v41 = vpop.xlane.xlu0 %9192 }
0x3d91   :  { %v9197_v46 = vsub.f32 %v9135_v18, %v9193_v41 }
0x3d93   :  { %v9199_v9 = vmul.f32 1.442695, %v9197_v46 }
0x3d95   :  { %16712 = vpow2.f32 %v9199_v9 }
0x3d9f   :  { %v16713_v29 = vpop.eup %16712 }
0x3da0   :  { %v9203_v23 = vsel %vm679_vm1, %v16713_v29, 0.0 }
0x3da1   :  { %9204 = vadd.xlane.f32.xlu0 %v9203_v23 }
0x3dd2   :  { %v9082_v15 = vpop.f32.mrb[232].mxu1 }
0x3dd3   :  { %v19065_v11 = vadd.f32 %v9082_v15, %v19030_v61  ;;  %v15356_v4 = vpop.f32.mrb[233].mxu1 }
0x3dd4   :  { %v9085_v21 = vpop.f32.mrb[234].mxu1 }
0x3dd5   :  { %v19068_v22 = vadd.f32 %v9085_v21, %v19032_v13  ;;  %v15357_v27 = vpop.f32.mrb[235].mxu1 }
0x3dda   :  { %v9185_v62 = vpop.f32.mrb[236].mxu1 }
0x3ddb   :  { %v15368_v30 = vpop.f32.mrb[237].mxu1  ;;  %v9194_v52 = vsel %vm679_vm1, %v9185_v62, -inf }
0x3ddc   :  { %9195 = vmax.xlane.f32.xlu1 %v9194_v52  ;;  %v9188_v24 = vpop.f32.mrb[238].mxu1 }
0x3ddd   :  { %v15369_v19 = vpop.f32.mrb[239].mxu1 }
0x3ded   :  { %9215 = vrot.lane.b32.xlu1 %v18908_v2, %s17488_s10 }
0x3df1   :  { %9364 = vrot.lane.b32.xlu1 %v18906_v38, %s17462_s0 }
0x3df5   :  { %9414 = vrot.lane.b32.xlu1 %v18917_v40, %s17462_s0 }
0x3df9   :  { %9412 = vrot.lane.b32.xlu1 %v18936_v14, %s17462_s0 }
0x3e2e   :  { %v9205_v61 = vpop.xlane.xlu0 %9204 }
0x3e2f   :  { %16714 = vrcp.f32 %v9205_v61 }
0x3e39   :  { %v16715_v13 = vpop.eup %16714 }
0x3e3a   :  { %v9210_v32 = vmul.f32 %v16715_v13, %v16713_v29 }
0x3e3c   :  { %v9213_v3 = vpack.c.bf16 %v9210_v32, %v9210_v32 }
0x3e69   :  { %v9196_v20 = vpop.xlane.xlu1 %9195 }
0x3e6a   :  { %v9198_v7 = vsub.f32 %v9185_v62, %v9196_v20 }
0x3e6c   :  { %v9201_v25 = vmul.f32 1.442695, %v9198_v7 }
0x3e6d   :  { %v9216_v45 = vpop.permute.xlu1 %9215 }
0x3e6e   :  { %16716 = vpow2.f32 %v9201_v25  ;;  %15371 = vmatpush3.bf16.msra.mxu0 %v9216_v45 }
0x3e6f   :  { %15382 = vmatprep.subr.bf16.mxu0 %v17484_v1 }
0x3e71   :  { %15373 = vmatmul.mubr.msk.bf16.vlgmr.msra.gmra.mrb[212].mxu0 %vm679_vm1, %v9213_v3  ;;  %v9365_v63 = vpop.permute.xlu1 %9364 }
0x3e72   :  { %15384 = vmatprep.mubr.msk.bf16.mxu0 %vm17485_vm0, %v17484_v1  ;;  %15383 = vmatpush3.bf16.msra.mxu0 %v16347_v60  ;;  %v9370_v18 = vsel %vm679_vm1, %v9365_v63, 0 }
0x3e73   :  { %15394 = vmatprep.subr.bf16.mxu0 %v17484_v1 }
0x3e75   :  { %v9415_v41 = vpop.permute.xlu1 %9414 }
0x3e76   :  { %v9420_v15 = vsel %vm679_vm1, %v9415_v41, 0  ;;  %v16348_v41 = vld [vmem:[#allocation26 + $0x20] sm:$0xff]  }
0x3e78   :  { %v16717_v54 = vpop.eup %16716 }
0x3e79   :  { %v9206_v56 = vsel %vm679_vm1, %v16717_v54, 0.0  ;;  %v9413_v30 = vpop.permute.xlu1 %9412 }
0x3e7a   :  { %9207 = vadd.xlane.f32.xlu0 %v9206_v56 }
0x3e90   :  { %9261 = vrot.lane.b32.xlu0 %v18919_v43, %s17488_s10 }
0x3e94   :  { %9362 = vrot.lane.b32.xlu0 %v18915_v51, %s17462_s0 }
0x3f07   :  { %v9208_v58 = vpop.xlane.xlu0 %9207 }
0x3f08   :  { %16718 = vrcp.f32 %v9208_v58 }
0x3f0b   :  { %v9262_v34 = vpop.permute.xlu0 %9261 }
0x3f0c   :  { %15377 = vmatpush3.bf16.msra.mxu1 %v9262_v34 }
0x3f0d   :  { %15388 = vmatprep.subr.bf16.mxu1 %v17484_v1 }
0x3f0f   :  { %v9363_v12 = vpop.permute.xlu0 %9362 }
0x3f12   :  { %v16719_v53 = vpop.eup %16718 }
0x3f13   :  { %v9212_v36 = vmul.f32 %v16719_v53, %v16717_v54 }
0x3f15   :  { %v9214_v57 = vpack.c.bf16 %v9212_v36, %v9212_v36 }
0x3f17   :  { %15379 = vmatmul.mubr.msk.bf16.vlgmr.msra.gmra.mrb[240].mxu1 %vm679_vm1, %v9214_v57 }
0x3f18   :  { %15389 = vmatpush3.bf16.xpose.msra.mxu1 %v9370_v18  ;;  %15390 = vmatprep.mubr.msk.bf16.mxu1 %vm17485_vm0, %v17484_v1 }
0x3f19   :  { %15400 = vmatprep.subr.bf16.mxu1 %v17484_v1 }
0x3f1f   :  { %15391 = vmatmul.mubr.msk.bf16.vlgmr.msra.gmra.mrb[244].mxu1 %vm679_vm1, %v9363_v12 }
0x3f20   :  { %15402 = vmatprep.mubr.msk.bf16.mxu1 %vm17485_vm0, %v17484_v1 }
0x3f44   :  { %v9255_v39 = vpop.f32.mrb[212].mxu0 }
0x3f45   :  { %v15374_v55 = vpop.f32.mrb[213].mxu0 }
0x3f46   :  { %v9258_v49 = vpop.f32.mrb[214].mxu0 }
0x3f47   :  { %v15375_v35 = vpop.f32.mrb[215].mxu0 }
0x3fea   :  { %v9301_v46 = vpop.f32.mrb[240].mxu1 }
0x3feb   :  { %v9309_v9 = vpack.c.bf16 %v9301_v46, %v9255_v39  ;;  %v15380_v29 = vpop.f32.mrb[241].mxu1 }
0x3fec   :  { %v9304_v23 = vpop.f32.mrb[242].mxu1 }
0x3fed   :  { %v15381_v4 = vpop.f32.mrb[243].mxu1  ;;  %15385 = vmatmul.mubr.msk.bf16.vlgmr.msra.gmra.mrb[216].mxu0 %vm679_vm1, %v9309_v9 }
0x3fee   :  { %15395 = vmatpush3.bf16.xpose.msra.mxu0 %v9420_v15  ;;  %15396 = vmatprep.mubr.msk.bf16.mxu0 %vm17485_vm0, %v17484_v1 }
0x3fef   :  { %15406 = vmatprep.subr.bf16.mxu0 %v17484_v1 }
0x3ff2   :  { %v9406_v21 = vpop.f32.mrb[244].mxu1 }
0x3ff3   :  { %v15392_v27 = vpop.f32.mrb[245].mxu1  ;;  %v9462_v62 = vsel %vm679_vm1, %v9406_v21, -inf }
0x3ff4   :  { %9463 = vmax.xlane.f32.xlu0 %v9462_v62  ;;  %v9409_v52 = vpop.f32.mrb[246].mxu1 }
0x3ff5   :  { %v15393_v24 = vpop.f32.mrb[247].mxu1  ;;  %15397 = vmatmul.mubr.msk.bf16.vlgmr.msra.gmra.mrb[220].mxu0 %vm679_vm1, %v9413_v30 }
0x3ff6   :  { %15408 = vmatprep.mubr.msk.bf16.mxu0 %vm17485_vm0, %v17484_v1 }
0x4081   :  { %v9464_v19 = vpop.xlane.xlu0 %9463 }
0x4082   :  { %v9468_v61 = vsub.f32 %v9406_v21, %v9464_v19 }
0x4084   :  { %v9470_v13 = vmul.f32 1.442695, %v9468_v61 }
0x4086   :  { %16720 = vpow2.f32 %v9470_v13 }
0x4090   :  { %v16721_v20 = vpop.eup %16720 }
0x4091   :  { %v9474_v7 = vsel %vm679_vm1, %v16721_v20, 0.0 }
0x4092   :  { %9475 = vadd.xlane.f32.xlu0 %v9474_v7 }
0x40c0   :  { %v9353_v32 = vpop.f32.mrb[216].mxu0 }
0x40c1   :  { %v19109_v25 = vadd.f32 %v9353_v32, %v19065_v11  ;;  %v15386_v45 = vpop.f32.mrb[217].mxu0 }
0x40c2   :  { %v9356_v3 = vpop.f32.mrb[218].mxu0 }
0x40c3   :  { %v19112_v54 = vadd.f32 %v9356_v3, %v19068_v22  ;;  %v15387_v56 = vpop.f32.mrb[219].mxu0 }
0x40c8   :  { %v9456_v60 = vpop.f32.mrb[220].mxu0 }
0x40c9   :  { %v15398_v58 = vpop.f32.mrb[221].mxu0  ;;  %v9465_v34 = vsel %vm679_vm1, %v9456_v60, -inf }
0x40ca   :  { %9466 = vmax.xlane.f32.xlu1 %v9465_v34  ;;  %v9459_v53 = vpop.f32.mrb[222].mxu0 }
0x40cb   :  { %v15399_v36 = vpop.f32.mrb[223].mxu0 }
0x40db   :  { %9486 = vrot.lane.b32.xlu1 %v18908_v2, %s17462_s0 }
0x40df   :  { %9635 = vrot.lane.b32.xlu1 %v18906_v38, %s17489_s19 }
0x40e3   :  { %9685 = vrot.lane.b32.xlu1 %v18917_v40, %s17489_s19 }
0x40e7   :  { %9683 = vrot.lane.b32.xlu1 %v18936_v14, %s17489_s19 }
0x411f   :  { %v9476_v11 = vpop.xlane.xlu0 %9475 }
0x4120   :  { %16722 = vrcp.f32 %v9476_v11 }
0x412a   :  { %v16723_v22 = vpop.eup %16722 }
0x412b   :  { %v9481_v18 = vmul.f32 %v16723_v22, %v16721_v20 }
0x412d   :  { %v9484_v55 = vpack.c.bf16 %v9481_v18, %v9481_v18 }
0x4157   :  { %v9467_v63 = vpop.xlane.xlu1 %9466 }
0x4158   :  { %v9469_v57 = vsub.f32 %v9456_v60, %v9467_v63 }
0x415a   :  { %v9472_v12 = vmul.f32 1.442695, %v9469_v57 }
0x415b   :  { %v9487_v39 = vpop.permute.xlu1 %9486 }
0x415c   :  { %16724 = vpow2.f32 %v9472_v12  ;;  %15401 = vmatpush3.bf16.msra.mxu1 %v9487_v39 }
0x415d   :  { %15412 = vmatprep.subr.bf16.mxu1 %v17484_v1 }
0x415f   :  { %15403 = vmatmul.mubr.msk.bf16.vlgmr.msra.gmra.mrb[248].mxu1 %vm679_vm1, %v9484_v55  ;;  %v9636_v15 = vpop.permute.xlu1 %9635 }
0x4160   :  { %15414 = vmatprep.mubr.msk.bf16.mxu1 %vm17485_vm0, %v17484_v1  ;;  %15413 = vmatpush3.bf16.msra.mxu1 %v16348_v41  ;;  %v9641_v21 = vsel %vm679_vm1, %v9636_v15, 0 }
0x4161   :  { %15424 = vmatprep.subr.bf16.mxu1 %v17484_v1 }
0x4163   :  { %v9686_v19 = vpop.permute.xlu1 %9685 }
0x4164   :  { %v9691_v32 = vsel %vm679_vm1, %v9686_v19, 0  ;;  %v16349_v19 = vld [vmem:[#allocation26 + $0x28] sm:$0xff]  }
0x4166   :  { %v16725_v49 = vpop.eup %16724 }
0x4167   :  { %v9477_v35 = vsel %vm679_vm1, %v16725_v49, 0.0  ;;  %v9684_v58 = vpop.permute.xlu1 %9683 }
0x4168   :  { %9478 = vadd.xlane.f32.xlu0 %v9477_v35 }
0x417e   :  { %9532 = vrot.lane.b32.xlu0 %v18919_v43, %s17462_s0 }
0x4182   :  { %9633 = vrot.lane.b32.xlu0 %v18915_v51, %s17489_s19 }
0x41f5   :  { %v9479_v46 = vpop.xlane.xlu0 %9478 }
0x41f6   :  { %16726 = vrcp.f32 %v9479_v46 }
0x41f9   :  { %v9533_v9 = vpop.permute.xlu0 %9532 }
0x41fa   :  { %15407 = vmatpush3.bf16.msra.mxu0 %v9533_v9 }
0x41fb   :  { %15418 = vmatprep.subr.bf16.mxu0 %v17484_v1 }
0x41fd   :  { %v9634_v27 = vpop.permute.xlu0 %9633 }
0x4200   :  { %v16727_v29 = vpop.eup %16726 }
0x4201   :  { %v9483_v23 = vmul.f32 %v16727_v29, %v16725_v49 }
0x4203   :  { %v9485_v4 = vpack.c.bf16 %v9483_v23, %v9483_v23 }
0x4205   :  { %15409 = vmatmul.mubr.msk.bf16.vlgmr.msra.gmra.mrb[224].mxu0 %vm679_vm1, %v9485_v4 }
0x4206   :  { %15419 = vmatpush3.bf16.xpose.msra.mxu0 %v9641_v21  ;;  %15420 = vmatprep.mubr.msk.bf16.mxu0 %vm17485_vm0, %v17484_v1 }
0x4207   :  { %15430 = vmatprep.subr.bf16.mxu0 %v17484_v1 }
0x420d   :  { %15421 = vmatmul.mubr.msk.bf16.vlgmr.msra.gmra.mrb[228].mxu0 %vm679_vm1, %v9634_v27 }
0x420e   :  { %15432 = vmatprep.mubr.msk.bf16.mxu0 %vm17485_vm0, %v17484_v1 }
0x4232   :  { %v9526_v62 = vpop.f32.mrb[248].mxu1 }
0x4233   :  { %v15404_v30 = vpop.f32.mrb[249].mxu1 }
0x4234   :  { %v9529_v52 = vpop.f32.mrb[250].mxu1 }
0x4235   :  { %v15405_v24 = vpop.f32.mrb[251].mxu1 }
0x42d8   :  { %v9572_v61 = vpop.f32.mrb[224].mxu0 }
0x42d9   :  { %v9580_v13 = vpack.c.bf16 %v9572_v61, %v9526_v62  ;;  %v15410_v20 = vpop.f32.mrb[225].mxu0 }
0x42da   :  { %v9575_v7 = vpop.f32.mrb[226].mxu0 }
0x42db   :  { %v15411_v45 = vpop.f32.mrb[227].mxu0  ;;  %15415 = vmatmul.mubr.msk.bf16.vlgmr.msra.gmra.mrb[252].mxu1 %vm679_vm1, %v9580_v13 }
0x42dc   :  { %15425 = vmatpush3.bf16.xpose.msra.mxu1 %v9691_v32  ;;  %15426 = vmatprep.mubr.msk.bf16.mxu1 %vm17485_vm0, %v17484_v1 }
0x42dd   :  { %15436 = vmatprep.subr.bf16.mxu1 %v17484_v1 }
0x42e0   :  { %v9677_v3 = vpop.f32.mrb[228].mxu0 }
0x42e1   :  { %v15422_v56 = vpop.f32.mrb[229].mxu0  ;;  %v9733_v60 = vsel %vm679_vm1, %v9677_v3, -inf }
0x42e2   :  { %9734 = vmax.xlane.f32.xlu0 %v9733_v60  ;;  %v9680_v34 = vpop.f32.mrb[230].mxu0 }
0x42e3   :  { %v15423_v53 = vpop.f32.mrb[231].mxu0  ;;  %15427 = vmatmul.mubr.msk.bf16.vlgmr.msra.gmra.mrb[0].mxu1 %vm679_vm1, %v9684_v58 }
0x42e4   :  { %15438 = vmatprep.mubr.msk.bf16.mxu1 %vm17485_vm0, %v17484_v1 }
0x436f   :  { %v9735_v36 = vpop.xlane.xlu0 %9734 }
0x4370   :  { %v9739_v11 = vsub.f32 %v9677_v3, %v9735_v36 }
0x4372   :  { %v9741_v22 = vmul.f32 1.442695, %v9739_v11 }
0x4374   :  { %16728 = vpow2.f32 %v9741_v22 }
0x437e   :  { %v16729_v63 = vpop.eup %16728 }
0x437f   :  { %v9745_v57 = vsel %vm679_vm1, %v16729_v63, 0.0 }
0x4380   :  { %9746 = vadd.xlane.f32.xlu0 %v9745_v57 }
0x43ae   :  { %v9624_v18 = vpop.f32.mrb[252].mxu1 }
0x43af   :  { %v19153_v12 = vadd.f32 %v9624_v18, %v19109_v25  ;;  %v15416_v39 = vpop.f32.mrb[253].mxu1 }
0x43b0   :  { %v9627_v55 = vpop.f32.mrb[254].mxu1 }
0x43b1   :  { %v19156_v49 = vadd.f32 %v9627_v55, %v19112_v54  ;;  %v15417_v35 = vpop.f32.mrb[255].mxu1 }
0x43b6   :  { %v9727_v41 = vpop.f32.mrb[0].mxu1 }
0x43b7   :  { %v15428_v46 = vpop.f32.mrb[1].mxu1  ;;  %v9736_v9 = vsel %vm679_vm1, %v9727_v41, -inf }
0x43b8   :  { %9737 = vmax.xlane.f32.xlu1 %v9736_v9  ;;  %v9730_v29 = vpop.f32.mrb[2].mxu1 }
0x43b9   :  { %v15429_v23 = vpop.f32.mrb[3].mxu1 }
0x43c9   :  { %9757 = vrot.lane.b32.xlu1 %v18908_v2, %s17489_s19 }
0x43cd   :  { %9906 = vrot.lane.b32.xlu1 %v18906_v38, %s17490_s11 }
0x43d1   :  { %9956 = vrot.lane.b32.xlu1 %v18917_v40, %s17490_s11 }
0x43d5   :  { %9954 = vrot.lane.b32.xlu1 %v18936_v14, %s17490_s11 }
0x440d   :  { %v9747_v25 = vpop.xlane.xlu0 %9746 }
0x440e   :  { %16730 = vrcp.f32 %v9747_v25 }
0x4418   :  { %v16731_v54 = vpop.eup %16730 }
0x4419   :  { %v9752_v21 = vmul.f32 %v16731_v54, %v16729_v63 }
0x441b   :  { %v9755_v30 = vpack.c.bf16 %v9752_v21, %v9752_v21 }
0x4445   :  { %v9738_v15 = vpop.xlane.xlu1 %9737 }
0x4446   :  { %v9740_v4 = vsub.f32 %v9727_v41, %v9738_v15 }
0x4448   :  { %v9743_v27 = vmul.f32 1.442695, %v9740_v4 }
0x4449   :  { %v9758_v62 = vpop.permute.xlu1 %9757 }
0x444a   :  { %16732 = vpow2.f32 %v9743_v27  ;;  %15431 = vmatpush3.bf16.msra.mxu0 %v9758_v62 }
0x444b   :  { %15442 = vmatprep.subr.bf16.mxu0 %v17484_v1 }
0x444d   :  { %15433 = vmatmul.mubr.msk.bf16.vlgmr.msra.gmra.mrb[232].mxu0 %vm679_vm1, %v9755_v30  ;;  %v9907_v32 = vpop.permute.xlu1 %9906 }
0x444e   :  { %15444 = vmatprep.mubr.msk.bf16.mxu0 %vm17485_vm0, %v17484_v1  ;;  %15443 = vmatpush3.bf16.msra.mxu0 %v16349_v19  ;;  %v9912_v3 = vsel %vm679_vm1, %v9907_v32, 0 }
0x444f   :  { %15454 = vmatprep.subr.bf16.mxu0 %v17484_v1 }
0x4451   :  { %v9957_v36 = vpop.permute.xlu1 %9956 }
0x4452   :  { %v9962_v18 = vsel %vm679_vm1, %v9957_v36, 0 }
0x4454   :  { %v16733_v52 = vpop.eup %16732 }
0x4455   :  { %v9748_v24 = vsel %vm679_vm1, %v16733_v52, 0.0  ;;  %v9955_v46 = vpop.permute.xlu1 %9954 }
0x4456   :  { %9749 = vadd.xlane.f32.xlu0 %v9748_v24 }
0x446c   :  { %9803 = vrot.lane.b32.xlu0 %v18919_v43, %s17489_s19 }
0x4470   :  { %9904 = vrot.lane.b32.xlu0 %v18915_v51, %s17490_s11 }
0x44e3   :  { %v9750_v61 = vpop.xlane.xlu0 %9749 }
0x44e4   :  { %16734 = vrcp.f32 %v9750_v61 }
0x44e7   :  { %v9804_v13 = vpop.permute.xlu0 %9803 }
0x44e8   :  { %15437 = vmatpush3.bf16.msra.mxu1 %v9804_v13 }
0x44e9   :  { %15448 = vmatprep.subr.bf16.mxu1 %v17484_v1 }
0x44eb   :  { %v9905_v56 = vpop.permute.xlu0 %9904 }
0x44ee   :  { %v16735_v20 = vpop.eup %16734 }
0x44ef   :  { %v9754_v7 = vmul.f32 %v16735_v20, %v16733_v52 }
0x44f1   :  { %v9756_v45 = vpack.c.bf16 %v9754_v7, %v9754_v7 }
0x44f3   :  { %15439 = vmatmul.mubr.msk.bf16.vlgmr.msra.gmra.mrb[4].mxu1 %vm679_vm1, %v9756_v45 }
0x44f4   :  { %15449 = vmatpush3.bf16.xpose.msra.mxu1 %v9912_v3  ;;  %15450 = vmatprep.mubr.msk.bf16.mxu1 %vm17485_vm0, %v17484_v1 }
0x44f5   :  { %15460 = vmatprep.subr.bf16.mxu1 %v17484_v1 }
0x44fb   :  { %15451 = vmatmul.mubr.msk.bf16.vlgmr.msra.gmra.mrb[8].mxu1 %vm679_vm1, %v9905_v56 }
0x44fc   :  { %15462 = vmatprep.mubr.msk.bf16.mxu1 %vm17485_vm0, %v17484_v1 }
0x4520   :  { %v9797_v60 = vpop.f32.mrb[232].mxu0 }
0x4521   :  { %v15434_v58 = vpop.f32.mrb[233].mxu0 }
0x4522   :  { %v9800_v34 = vpop.f32.mrb[234].mxu0 }
0x4523   :  { %v15435_v53 = vpop.f32.mrb[235].mxu0 }
0x45c6   :  { %v9843_v11 = vpop.f32.mrb[4].mxu1 }
0x45c7   :  { %v9851_v22 = vpack.c.bf16 %v9843_v11, %v9797_v60  ;;  %v15440_v63 = vpop.f32.mrb[5].mxu1 }
0x45c8   :  { %v9846_v57 = vpop.f32.mrb[6].mxu1 }
0x45c9   :  { %v15441_v39 = vpop.f32.mrb[7].mxu1  ;;  %15445 = vmatmul.mubr.msk.bf16.vlgmr.msra.gmra.mrb[236].mxu0 %vm679_vm1, %v9851_v22 }
0x45ca   :  { %15455 = vmatpush3.bf16.xpose.msra.mxu0 %v9962_v18  ;;  %15456 = vmatprep.mubr.msk.bf16.mxu0 %vm17485_vm0, %v17484_v1 }
0x45cb   :  { %15466 = vmatprep.subr.bf16.mxu0 %v17484_v1 }
0x45ce   :  { %v9948_v55 = vpop.f32.mrb[8].mxu1 }
0x45cf   :  { %v15452_v35 = vpop.f32.mrb[9].mxu1  ;;  %v10004_v41 = vsel %vm679_vm1, %v9948_v55, -inf }
0x45d0   :  { %10005 = vmax.xlane.f32.xlu0 %v10004_v41  ;;  %v9951_v9 = vpop.f32.mrb[10].mxu1 }
0x45d1   :  { %v15453_v29 = vpop.f32.mrb[11].mxu1  ;;  %15457 = vmatmul.mubr.msk.bf16.vlgmr.msra.gmra.mrb[240].mxu0 %vm679_vm1, %v9955_v46 }
0x45d2   :  { %15468 = vmatprep.mubr.msk.bf16.mxu0 %vm17485_vm0, %v17484_v1 }
0x465d   :  { %v10006_v23 = vpop.xlane.xlu0 %10005 }
0x465e   :  { %v10010_v25 = vsub.f32 %v9948_v55, %v10006_v23 }
0x4660   :  { %v10012_v54 = vmul.f32 1.442695, %v10010_v25 }
0x4662   :  { %16736 = vpow2.f32 %v10012_v54 }
0x466c   :  { %v16737_v15 = vpop.eup %16736 }
0x466d   :  { %v10016_v4 = vsel %vm679_vm1, %v16737_v15, 0.0 }
0x466e   :  { %10017 = vadd.xlane.f32.xlu0 %v10016_v4 }
0x469c   :  { %v9895_v21 = vpop.f32.mrb[236].mxu0 }
0x469d   :  { %v19197_v27 = vadd.f32 %v9895_v21, %v19153_v12  ;;  %v15446_v62 = vpop.f32.mrb[237].mxu0 }
0x469e   :  { %v9898_v30 = vpop.f32.mrb[238].mxu0 }
0x469f   :  { %v19200_v52 = vadd.f32 %v9898_v30, %v19156_v49  ;;  %v15447_v24 = vpop.f32.mrb[239].mxu0 }
0x46a4   :  { %v9998_v19 = vpop.f32.mrb[240].mxu0 }
0x46a5   :  { %v15458_v61 = vpop.f32.mrb[241].mxu0  ;;  %v10007_v13 = vsel %vm679_vm1, %v9998_v19, -inf }
0x46a6   :  { %10008 = vmax.xlane.f32.xlu1 %v10007_v13  ;;  %v10001_v20 = vpop.f32.mrb[242].mxu0 }
0x46a7   :  { %v15459_v7 = vpop.f32.mrb[243].mxu0 }
0x46b7   :  { %10028 = vrot.lane.b32.xlu1 %v18908_v2, %s17490_s11 }
0x46bb   :  { %10177 = vrot.lane.b32.xlu1 %v18906_v38, %s17460_s9 }
0x46bf   :  { %10227 = vrot.lane.b32.xlu1 %v18917_v40, %s17460_s9 }
0x46c3   :  { %10225 = vrot.lane.b32.xlu1 %v18936_v14, %s17460_s9  ;;  %v16350_v14 = vld [vmem:[#allocation26 + $0x30] sm:$0xff]  }
0x46fb   :  { %v10018_v12 = vpop.xlane.xlu0 %10017 }
0x46fc   :  { %16738 = vrcp.f32 %v10018_v12 }
0x4706   :  { %v16739_v49 = vpop.eup %16738 }
0x4707   :  { %v10023_v3 = vmul.f32 %v16739_v49, %v16737_v15 }
0x4709   :  { %v10026_v58 = vpack.c.bf16 %v10023_v3, %v10023_v3 }
0x4733   :  { %v10009_v32 = vpop.xlane.xlu1 %10008 }
0x4734   :  { %v10011_v45 = vsub.f32 %v9998_v19, %v10009_v32 }
0x4736   :  { %v10014_v56 = vmul.f32 1.442695, %v10011_v45 }
0x4737   :  { %v10029_v60 = vpop.permute.xlu1 %10028 }
0x4738   :  { %16740 = vpow2.f32 %v10014_v56  ;;  %15461 = vmatpush3.bf16.msra.mxu1 %v10029_v60 }
0x4739   :  { %15472 = vmatprep.subr.bf16.mxu1 %v17484_v1 }
0x473b   :  { %15463 = vmatmul.mubr.msk.bf16.vlgmr.msra.gmra.mrb[12].mxu1 %vm679_vm1, %v10026_v58  ;;  %v10178_v22 = vpop.permute.xlu1 %10177 }
0x473c   :  { %15474 = vmatprep.mubr.msk.bf16.mxu1 %vm17485_vm0, %v17484_v1  ;;  %15473 = vmatpush3.bf16.msra.mxu1 %v16350_v14  ;;  %v10183_v57 = vsel %vm679_vm1, %v10178_v22, 0 }
0x473d   :  { %15484 = vmatprep.subr.bf16.mxu1 %v17484_v1 }
0x473f   :  { %v10228_v41 = vpop.permute.xlu1 %10227 }
0x4740   :  { %v10233_v25 = vsel %vm679_vm1, %v10228_v41, 0 }
0x4742   :  { %v16741_v38 = vpop.eup %16740 }
0x4743   :  { %v10019_v40 = vsel %vm679_vm1, %v16741_v38, 0.0  ;;  %v10226_v62 = vpop.permute.xlu1 %10225 }
0x4744   :  { %10020 = vadd.xlane.f32.xlu0 %v10019_v40 }
0x475a   :  { %10074 = vrot.lane.b32.xlu0 %v18919_v43, %s17490_s11 }
0x475e   :  { %10175 = vrot.lane.b32.xlu0 %v18915_v51, %s17460_s9 }
0x47d1   :  { %v10021_v34 = vpop.xlane.xlu0 %10020 }
0x47d2   :  { %16742 = vrcp.f32 %v10021_v34 }
0x47d5   :  { %v10075_v53 = vpop.permute.xlu0 %10074 }
0x47d6   :  { %15467 = vmatpush3.bf16.msra.mxu0 %v10075_v53 }
0x47d7   :  { %15478 = vmatprep.subr.bf16.mxu0 %v17484_v1 }
0x47d9   :  { %v10176_v51 = vpop.permute.xlu0 %10175 }
0x47dc   :  { %v16743_v36 = vpop.eup %16742 }
0x47dd   :  { %v10025_v11 = vmul.f32 %v16743_v36, %v16741_v38 }
0x47df   :  { %v10027_v63 = vpack.c.bf16 %v10025_v11, %v10025_v11 }
0x47e1   :  { %15469 = vmatmul.mubr.msk.bf16.vlgmr.msra.gmra.mrb[244].mxu0 %vm679_vm1, %v10027_v63 }
0x47e2   :  { %15479 = vmatpush3.bf16.xpose.msra.mxu0 %v10183_v57  ;;  %15480 = vmatprep.mubr.msk.bf16.mxu0 %vm17485_vm0, %v17484_v1 }
0x47e3   :  { %15490 = vmatprep.subr.bf16.mxu0 %v17484_v1 }
0x47e9   :  { %15481 = vmatmul.mubr.msk.bf16.vlgmr.msra.gmra.mrb[248].mxu0 %vm679_vm1, %v10176_v51  ;;  %v16351_v51 = vld [vmem:[#allocation26 + $0x38] sm:$0xff]  }
0x47ea   :  { %15492 = vmatprep.mubr.msk.bf16.mxu0 %vm17485_vm0, %v17484_v1 }
0x480e   :  { %v10068_v18 = vpop.f32.mrb[12].mxu1 }
0x480f   :  { %v15464_v39 = vpop.f32.mrb[13].mxu1 }
0x4810   :  { %v10071_v55 = vpop.f32.mrb[14].mxu1 }
0x4811   :  { %v15465_v35 = vpop.f32.mrb[15].mxu1 }
0x4812   :  { %v19260_v35 = vpack.c.bf16 %v18927_v16, %v18927_v16 }
0x48b4   :  { %v10114_v46 = vpop.f32.mrb[244].mxu0 }
0x48b5   :  { %v10122_v9 = vpack.c.bf16 %v10114_v46, %v10068_v18  ;;  %v15470_v29 = vpop.f32.mrb[245].mxu0 }
0x48b6   :  { %v10117_v23 = vpop.f32.mrb[246].mxu0 }
0x48b7   :  { %v15471_v54 = vpop.f32.mrb[247].mxu0  ;;  %15475 = vmatmul.mubr.msk.bf16.vlgmr.msra.gmra.mrb[16].mxu1 %vm679_vm1, %v10122_v9  ;;  %v19270_v9 = vpack.c.bf16 %v18930_v37, %v18930_v37  ;;  %v19281_v37 = vpack.c.bf16 %v18932_v50, %v18932_v50  ;;  %v19291_v50 = vpack.c.bf16 %v18934_v59, %v18934_v59 }
0x48b8   :  { %15485 = vmatpush3.bf16.xpose.msra.mxu1 %v10233_v25  ;;  %15486 = vmatprep.mubr.msk.bf16.mxu1 %vm17485_vm0, %v17484_v1 }
0x48b9   :  { %15496 = vmatprep.subr.bf16.mxu1 %v17484_v1  ;;  %v10596_v16 = vsel %vm802_vm2, %v19270_v9, 0 }
0x48bc   :  { %v10219_v15 = vpop.f32.mrb[248].mxu0 }
0x48bd   :  { %v15482_v4 = vpop.f32.mrb[249].mxu0  ;;  %v10275_v21 = vsel %vm679_vm1, %v10219_v15, -inf }
0x48be   :  { %10276 = vmax.xlane.f32.xlu0 %v10275_v21  ;;  %v10222_v30 = vpop.f32.mrb[250].mxu0 }
0x48bf   :  { %v15483_v24 = vpop.f32.mrb[251].mxu0  ;;  %15487 = vmatmul.mubr.msk.bf16.vlgmr.msra.gmra.mrb[20].mxu1 %vm679_vm1, %v10226_v62 }
0x48c0   :  { %15498 = vmatprep.mubr.msk.bf16.mxu1 %vm17485_vm0, %v17484_v1  ;;  %v10501_v24 = vsel %vm679_vm1, %v19281_v37, 0 }
0x494b   :  { %v10277_v19 = vpop.xlane.xlu0 %10276 }
0x494c   :  { %v10281_v61 = vsub.f32 %v10219_v15, %v10277_v19 }
0x494e   :  { %v10283_v13 = vmul.f32 1.442695, %v10281_v61 }
0x4950   :  { %16744 = vpow2.f32 %v10283_v13 }
0x495a   :  { %v16745_v20 = vpop.eup %16744 }
0x495b   :  { %v10287_v7 = vsel %vm679_vm1, %v16745_v20, 0.0 }
0x495c   :  { %10288 = vadd.xlane.f32.xlu0 %v10287_v7  ;;  %v10643_v7 = vsel %vm802_vm2, %v19291_v50, 0 }
0x498a   :  { %v10166_v12 = vpop.f32.mrb[16].mxu1 }
0x498b   :  { %v19241_v49 = vadd.f32 %v10166_v12, %v19197_v27  ;;  %v15476_v32 = vpop.f32.mrb[17].mxu1  ;;  %v14220_v12 = vld [vmem:[#allocation28] ss:$0 sm:$0xff] }
0x498c   :  { %v10169_v45 = vpop.f32.mrb[18].mxu1 }
0x498d   :  { %v19244_v3 = vadd.f32 %v10169_v45, %v19200_v52  ;;  %v15477_v56 = vpop.f32.mrb[19].mxu1 }
0x4992   :  { %v10269_v60 = vpop.f32.mrb[20].mxu1 }
0x4993   :  { %v15488_v58 = vpop.f32.mrb[21].mxu1  ;;  %v10278_v38 = vsel %vm679_vm1, %v10269_v60, -inf }
0x4994   :  { %10279 = vmax.xlane.f32.xlu1 %v10278_v38  ;;  %v10272_v40 = vpop.f32.mrb[22].mxu1 }
0x4995   :  { %v15489_v14 = vpop.f32.mrb[23].mxu1 }
0x49a5   :  { %10299 = vrot.lane.b32.xlu1 %v18908_v2, %s17460_s9 }
0x49e9   :  { %v10289_v34 = vpop.xlane.xlu0 %10288 }
0x49ea   :  { %16746 = vrcp.f32 %v10289_v34 }
0x49f4   :  { %v16747_v27 = vpop.eup %16746 }
0x49f5   :  { %v10294_v11 = vmul.f32 %v16747_v27, %v16745_v20 }
0x49f7   :  { %v10297_v63 = vpack.c.bf16 %v10294_v11, %v10294_v11 }
0x4a21   :  { %v10280_v53 = vpop.xlane.xlu1 %10279 }
0x4a22   :  { %v10282_v36 = vsub.f32 %v10269_v60, %v10280_v53 }
0x4a24   :  { %v10285_v22 = vmul.f32 1.442695, %v10282_v36 }
0x4a25   :  { %v10300_v52 = vpop.permute.xlu1 %10299 }
0x4a26   :  { %16748 = vpow2.f32 %v10285_v22  ;;  %15491 = vmatpush3.bf16.msra.mxu0 %v10300_v52 }
0x4a27   :  { %15502 = vmatprep.subr.bf16.mxu0 %v17484_v1 }
0x4a29   :  { %15493 = vmatmul.mubr.msk.bf16.vlgmr.msra.gmra.mrb[252].mxu0 %vm679_vm1, %v10297_v63 }
0x4a2a   :  { %15504 = vmatprep.mubr.msk.bf16.mxu0 %vm17485_vm0, %v17484_v1  ;;  %15503 = vmatpush3.bf16.msra.mxu0 %v16351_v51 }
0x4a2b   :  { %15514 = vmatprep.subr.bf16.mxu0 %v17484_v1 }
0x4a30   :  { %v16749_v57 = vpop.eup %16748 }
0x4a31   :  { %v10290_v2 = vsel %vm679_vm1, %v16749_v57, 0.0 }
0x4a32   :  { %10291 = vadd.xlane.f32.xlu0 %v10290_v2 }
0x4a48   :  { %10345 = vrot.lane.b32.xlu0 %v18919_v43, %s17460_s9  ;;  %v10454_v43 = vsel %vm679_vm1, %v19260_v35, 0 }
0x4abf   :  { %v10292_v18 = vpop.xlane.xlu0 %10291 }
0x4ac0   :  { %16750 = vrcp.f32 %v10292_v18 }
0x4ac3   :  { %v10346_v39 = vpop.permute.xlu0 %10345 }
0x4ac4   :  { %15497 = vmatpush3.bf16.msra.mxu1 %v10346_v39 }
0x4ac5   :  { %15508 = vmatprep.subr.bf16.mxu1 %v17484_v1 }
0x4aca   :  { %v16751_v55 = vpop.eup %16750 }
0x4acb   :  { %v10296_v41 = vmul.f32 %v16751_v55, %v16749_v57 }
0x4acd   :  { %v10298_v46 = vpack.c.bf16 %v10296_v41, %v10296_v41 }
0x4acf   :  { %15499 = vmatmul.mubr.msk.bf16.vlgmr.msra.gmra.mrb[24].mxu1 %vm679_vm1, %v10298_v46 }
0x4ad0   :  { %15509 = vmatpush3.bf16.xpose.msra.mxu1 %v10454_v43  ;;  %15510 = vmatprep.mubr.msk.bf16.mxu1 %vm17485_vm0, %v17484_v1 }
0x4ad1   :  { %15520 = vmatprep.subr.bf16.mxu1 %v17484_v1 }
0x4ad7   :  { %15511 = vmatmul.mubr.msk.bf16.vlgmr.msra.gmra.mrb[28].mxu1 %vm679_vm1, %v18900_v17 }
0x4ad8   :  { %15521 = vmatpush3.bf16.msra.mxu1 %v10596_v16  ;;  %15522 = vmatprep.mubr.msk.bf16.mxu1 %vm17485_vm0, %v17484_v1 }
0x4ad9   :  { %15532 = vmatprep.subr.bf16.mxu1 %v17484_v1 }
0x4afc   :  { %v10339_v29 = vpop.f32.mrb[252].mxu0 }
0x4afd   :  { %v15494_v23 = vpop.f32.mrb[253].mxu0 }
0x4afe   :  { %v10342_v25 = vpop.f32.mrb[254].mxu0 }
0x4aff   :  { %v15495_v54 = vpop.f32.mrb[255].mxu0 }
0x4ba2   :  { %v10385_v15 = vpop.f32.mrb[24].mxu1 }
0x4ba3   :  { %v10393_v4 = vpack.c.bf16 %v10385_v15, %v10339_v29  ;;  %v15500_v21 = vpop.f32.mrb[25].mxu1 }
0x4ba4   :  { %v10388_v62 = vpop.f32.mrb[26].mxu1 }
0x4ba5   :  { %v15501_v30 = vpop.f32.mrb[27].mxu1  ;;  %15505 = vmatmul.mubr.msk.bf16.vlgmr.msra.gmra.mrb[0].mxu0 %vm679_vm1, %v10393_v4 }
0x4ba6   :  { %15515 = vmatpush3.bf16.xpose.msra.mxu0 %v10501_v24  ;;  %15516 = vmatprep.mubr.msk.bf16.mxu0 %vm17485_vm0, %v17484_v1 }
0x4ba7   :  { %15526 = vmatprep.subr.bf16.mxu0 %v17484_v1 }
0x4baa   :  { %v19293_v19 = vpop.f32.mrb[28].mxu1 }
0x4bab   :  { %v15512_v61 = vpop.f32.mrb[29].mxu1  ;;  %v10544_v41 = vsel %vm772_vm3, %v19293_v19, -inf }
0x4bac   :  { %v19295_v13 = vpop.f32.mrb[30].mxu1 }
0x4bad   :  { %v15513_v20 = vpop.f32.mrb[31].mxu1  ;;  %15517 = vmatmul.mubr.msk.bf16.vlgmr.msra.gmra.mrb[4].mxu0 %vm679_vm1, %v18902_v28  ;;  %v10547_v46 = vsel %vm772_vm3, %v19295_v13, -inf }
0x4bae   :  { %15527 = vmatpush3.bf16.msra.mxu0 %v10643_v7  ;;  %15528 = vmatprep.mubr.msk.bf16.mxu0 %vm17485_vm0, %v17484_v1 }
0x4baf   :  { %15538 = vmatprep.subr.bf16.mxu0 %v17484_v1 }
0x4c78   :  { %v10437_v59 = vpop.f32.mrb[0].mxu0 }
0x4c79   :  { %v10444_v32 = vadd.f32 %v10437_v59, %v19241_v49  ;;  %v15506_v45 = vpop.f32.mrb[1].mxu0 }
0x4c7a   :  { %v10440_v56 = vpop.f32.mrb[2].mxu0 }
0x4c7b   :  { %v12965_v60 = vadd.f32 %v14220_v12, %v10444_v32  ;;  %v10445_v58 = vadd.f32 %v10440_v56, %v19244_v3  ;;  %v15507_v38 = vpop.f32.mrb[3].mxu0 }
0x4c7d   :  { %v12966_v40 = vadd.f32 %v14220_v12, %v10445_v58  ;;  %v19307_v14 = vadd.f32 %v12965_v60, %v18861_v48 }
0x4c7f   :  { %v19310_v34 = vadd.f32 %v12966_v40, %v18858_v5 }
0x4c80   :  { %v10537_v27 = vpop.f32.mrb[4].mxu0 }
0x4c81   :  { %v13009_v53 = vpack.c.bf16 %v19310_v34, %v19307_v14  ;;  %v15518_v36 = vpop.f32.mrb[5].mxu0  ;;  %v10550_v49 = vsel %vm772_vm3, %v10537_v27, -inf }
0x4c82   :  { %10551 = vmax.xlane.f32.xlu1 %v10550_v49  ;;  %v10540_v11 = vpop.f32.mrb[6].mxu0 }
0x4c83   :  { %v15519_v22 = vpop.f32.mrb[7].mxu0  ;;  %v10553_v3 = vsel %vm772_vm3, %v10540_v11, -inf }
0x4c84   :  { %10554 = vmax.xlane.f32.xlu0 %v10553_v3 }
0x4d0f   :  { %v10552_v52 = vpop.xlane.xlu1 %10551 }
0x4d10   :  { %v10558_v63 = vsub.f32 %v10537_v27, %v10552_v52 }
0x4d11   :  { %v10555_v48 = vpop.xlane.xlu0 %10554 }
0x4d12   :  { %v10564_v57 = vmul.f32 1.442695, %v10558_v63  ;;  %v10559_v2 = vsub.f32 %v10540_v11, %v10555_v48 }
0x4d14   :  { %16752 = vpow2.f32 %v10564_v57  ;;  %v10566_v5 = vmul.f32 1.442695, %v10559_v2 }
0x4d16   :  { %16754 = vpow2.f32 %v10566_v5 }
0x4d1e   :  { %v16753_v51 = vpop.eup %16752 }
0x4d1f   :  { %v10574_v18 = vsel %vm772_vm3, %v16753_v51, 0.0 }
0x4d20   :  { %v16755_v39 = vpop.eup %16754  ;;  %10575 = vadd.xlane.f32.xlu1 %v10574_v18 }
0x4d21   :  { %v10577_v55 = vsel %vm772_vm3, %v16755_v39, 0.0 }
0x4d22   :  { %10578 = vadd.xlane.f32.xlu0 %v10577_v55 }
0x4d31   :  { %10747 = vrot.lane.b32.xlu1 %v19281_v37, %s17486_s29 }
0x4d38   :  { %10744 = vrot.lane.b32.xlu0 %v18902_v28, %s17486_s29 }
0x4d55   :  { %10545 = vmax.xlane.f32.xlu1 %v10544_v41 }
0x4d57   :  { %10548 = vmax.xlane.f32.xlu0 %v10547_v46 }
0x4dad   :  { %v10576_v43 = vpop.xlane.xlu1 %10575 }
0x4dae   :  { %16756 = vrcp.f32 %v10576_v43 }
0x4daf   :  { %v10579_v16 = vpop.xlane.xlu0 %10578 }
0x4db0   :  { %16758 = vrcp.f32 %v10579_v16 }
0x4db1   :  { %v10748_v15 = vpop.permute.xlu1 %10747 }
0x4db2   :  { %v10753_v21 = vsel %vm679_vm1, %v10748_v15, 0 }
0x4db3   :  { %v10745_v62 = vpop.permute.xlu0 %10744 }
0x4db8   :  { %v16757_v29 = vpop.eup %16756 }
0x4db9   :  { %v10585_v25 = vmul.f32 %v16757_v29, %v16753_v51 }
0x4dba   :  { %v16759_v23 = vpop.eup %16758 }
0x4dbb   :  { %v10587_v54 = vmul.f32 %v16759_v23, %v16755_v39 }
0x4dbd   :  { %v10589_v4 = vpack.c.bf16 %v10587_v54, %v10585_v25 }
0x4dbf   :  { %15529 = vmatmul.mubr.msk.bf16.vlgmr.msra.gmra.mrb[8].mxu0 %vm772_vm3, %v10589_v4 }
0x4dc0   :  { %15539 = vmatpush3.bf16.xpose.msra.mxu0 %v10753_v21  ;;  %15540 = vmatprep.mubr.msk.bf16.mxu0 %vm17485_vm0, %v17484_v1 }
0x4dc1   :  { %15550 = vmatprep.subr.bf16.mxu0 %v17484_v1 }
0x4dc7   :  { %15541 = vmatmul.mubr.msk.bf16.vlgmr.msra.gmra.mrb[12].mxu0 %vm679_vm1, %v10745_v62 }
0x4dc8   :  { %15552 = vmatprep.mubr.msk.bf16.mxu0 %vm17485_vm0, %v17484_v1 }
0x4de2   :  { %v10546_v30 = vpop.xlane.xlu1 %10545 }
0x4de3   :  { %v10556_v24 = vsub.f32 %v19293_v19, %v10546_v30 }
0x4de4   :  { %v10549_v61 = vpop.xlane.xlu0 %10548 }
0x4de5   :  { %v10560_v20 = vmul.f32 1.442695, %v10556_v24  ;;  %v10557_v7 = vsub.f32 %v19295_v13, %v10549_v61 }
0x4de7   :  { %16760 = vpow2.f32 %v10560_v20  ;;  %v10562_v59 = vmul.f32 1.442695, %v10557_v7 }
0x4de9   :  { %16762 = vpow2.f32 %v10562_v59 }
0x4df1   :  { %v16761_v12 = vpop.eup %16760 }
0x4df2   :  { %v10568_v32 = vsel %vm772_vm3, %v16761_v12, 0.0 }
0x4df3   :  { %v16763_v45 = vpop.eup %16762  ;;  %10569 = vadd.xlane.f32.xlu1 %v10568_v32 }
0x4df4   :  { %v10571_v56 = vsel %vm772_vm3, %v16763_v45, 0.0 }
0x4df5   :  { %10572 = vadd.xlane.f32.xlu0 %v10571_v56 }
0x4e04   :  { %10694 = vrot.lane.b32.xlu1 %v19260_v35, %s17486_s29 }
0x4e0b   :  { %10691 = vrot.lane.b32.xlu0 %v18900_v17, %s17486_s29 }
0x4e80   :  { %v10570_v19 = vpop.xlane.xlu1 %10569 }
0x4e81   :  { %16764 = vrcp.f32 %v10570_v19 }
0x4e82   :  { %v10573_v13 = vpop.xlane.xlu0 %10572 }
0x4e83   :  { %16766 = vrcp.f32 %v10573_v13 }
0x4e84   :  { %v10695_v27 = vpop.permute.xlu1 %10694 }
0x4e85   :  { %v10700_v49 = vsel %vm679_vm1, %v10695_v27, 0 }
0x4e86   :  { %v10692_v48 = vpop.permute.xlu0 %10691 }
0x4e8b   :  { %v16765_v60 = vpop.eup %16764 }
0x4e8c   :  { %v10581_v38 = vmul.f32 %v16765_v60, %v16761_v12 }
0x4e8d   :  { %v16767_v58 = vpop.eup %16766 }
0x4e8e   :  { %v10583_v40 = vmul.f32 %v16767_v58, %v16763_v45 }
0x4e90   :  { %v10588_v36 = vpack.c.bf16 %v10583_v40, %v10581_v38 }
0x4e92   :  { %15523 = vmatmul.mubr.msk.bf16.vlgmr.msra.gmra.mrb[32].mxu1 %vm772_vm3, %v10588_v36  ;;  %v19344_v11 = vpop.f32.mrb[8].mxu0 }
0x4e93   :  { %15533 = vmatpush3.bf16.xpose.msra.mxu1 %v10700_v49  ;;  %v15530_v22 = vpop.f32.mrb[9].mxu0  ;;  %15534 = vmatprep.mubr.msk.bf16.mxu1 %vm17485_vm0, %v17484_v1 }
0x4e94   :  { %v19348_v3 = vpop.f32.mrb[10].mxu0  ;;  %15544 = vmatprep.subr.bf16.mxu1 %v17484_v1 }
0x4e95   :  { %v10689_v52 = vpack.c.bf16 %v19348_v3, %v19344_v11  ;;  %v15531_v63 = vpop.f32.mrb[11].mxu0 }
0x4e9a   :  { %15535 = vmatmul.mubr.msk.bf16.vlgmr.msra.gmra.mrb[36].mxu1 %vm679_vm1, %v10692_v48  ;;  %v10789_v57 = vpop.f32.mrb[12].mxu0 }
0x4e9b   :  { %v15542_v2 = vpop.f32.mrb[13].mxu0  ;;  %v10802_v5 = vsel %vm772_vm3, %v10789_v57, -inf  ;;  %15546 = vmatprep.mubr.msk.bf16.mxu1 %vm17485_vm0, %v17484_v1 }
0x4e9c   :  { %10803 = vmax.xlane.f32.xlu1 %v10802_v5  ;;  %v10792_v51 = vpop.f32.mrb[14].mxu0 }
0x4e9d   :  { %v15543_v18 = vpop.f32.mrb[15].mxu0  ;;  %v10805_v39 = vsel %vm772_vm3, %v10792_v51, -inf }
0x4e9e   :  { %10806 = vmax.xlane.f32.xlu0 %v10805_v39 }
0x4ead   :  { %10893 = vrot.lane.b32.xlu1 %v19291_v50, %s17486_s29 }
0x4f29   :  { %v10804_v55 = vpop.xlane.xlu1 %10803 }
0x4f2a   :  { %v10810_v41 = vsub.f32 %v10789_v57, %v10804_v55 }
0x4f2b   :  { %v10807_v46 = vpop.xlane.xlu0 %10806 }
0x4f2c   :  { %v10816_v43 = vmul.f32 1.442695, %v10810_v41  ;;  %v10811_v16 = vsub.f32 %v10792_v51, %v10807_v46 }
0x4f2d   :  { %v10894_v29 = vpop.permute.xlu1 %10893 }
0x4f2e   :  { %16768 = vpow2.f32 %v10816_v43  ;;  %v10818_v23 = vmul.f32 1.442695, %v10811_v16  ;;  %v10899_v25 = vsel %vm802_vm2, %v10894_v29, 0 }
0x4f2f   :  { %15551 = vmatpush3.bf16.msra.mxu0 %v10899_v25 }
0x4f30   :  { %16770 = vpow2.f32 %v10818_v23  ;;  %15568 = vmatprep.subr.bf16.mxu0 %v17484_v1 }
0x4f38   :  { %v16769_v54 = vpop.eup %16768 }
0x4f39   :  { %v10826_v15 = vsel %vm772_vm3, %v16769_v54, 0.0 }
0x4f3a   :  { %v16771_v4 = vpop.eup %16770  ;;  %10827 = vadd.xlane.f32.xlu1 %v10826_v15 }
0x4f3b   :  { %v10829_v21 = vsel %vm772_vm3, %v16771_v4, 0.0 }
0x4f3c   :  { %10830 = vadd.xlane.f32.xlu0 %v10829_v21 }
0x4f4b   :  { %11068 = vrot.lane.b32.xlu1 %v18900_v17, %s17487_s2 }
0x4f4f   :  { %11121 = vrot.lane.b32.xlu1 %v19281_v37, %s17487_s2 }
0x4f52   :  { %11070 = vrot.lane.b32.xlu0 %v19260_v35, %s17487_s2 }
0x4f56   :  { %11119 = vrot.lane.b32.xlu0 %v18902_v28, %s17487_s2 }
0x4f65   :  { %v19372_v62 = vpop.f32.mrb[32].mxu1 }
0x4f66   :  { %v15524_v30 = vpop.f32.mrb[33].mxu1 }
0x4f67   :  { %v19374_v24 = vpop.f32.mrb[34].mxu1 }
0x4f68   :  { %v10688_v61 = vpack.c.bf16 %v19374_v24, %v19372_v62  ;;  %v15525_v20 = vpop.f32.mrb[35].mxu1 }
0x4f6d   :  { %v10736_v7 = vpop.f32.mrb[36].mxu1 }
0x4f6e   :  { %v15536_v59 = vpop.f32.mrb[37].mxu1  ;;  %v10796_v45 = vsel %vm772_vm3, %v10736_v7, -inf }
0x4f6f   :  { %v10739_v12 = vpop.f32.mrb[38].mxu1 }
0x4f70   :  { %v15537_v32 = vpop.f32.mrb[39].mxu1  ;;  %v10799_v56 = vsel %vm772_vm3, %v10739_v12, -inf }
0x4f73   :  { %10797 = vmax.xlane.f32.xlu1 %v10796_v45 }
0x4f75   :  { %10800 = vmax.xlane.f32.xlu0 %v10799_v56 }
0x4fc7   :  { %v10828_v19 = vpop.xlane.xlu1 %10827 }
0x4fc8   :  { %16772 = vrcp.f32 %v10828_v19 }
0x4fc9   :  { %v10831_v13 = vpop.xlane.xlu0 %10830 }
0x4fca   :  { %16774 = vrcp.f32 %v10831_v13 }
0x4fcb   :  { %v11069_v49 = vpop.permute.xlu1 %11068 }
0x4fcd   :  { %v11071_v27 = vpop.permute.xlu0 %11070 }
0x4fce   :  { %v11076_v22 = vsel %vm679_vm1, %v11071_v27, 0 }
0x4fcf   :  { %v11122_v63 = vpop.permute.xlu1 %11121 }
0x4fd0   :  { %v11127_v48 = vsel %vm679_vm1, %v11122_v63, 0 }
0x4fd1   :  { %v11120_v57 = vpop.permute.xlu0 %11119 }
0x4fd2   :  { %v16773_v60 = vpop.eup %16772 }
0x4fd3   :  { %v10837_v38 = vmul.f32 %v16773_v60, %v16769_v54 }
0x4fd4   :  { %v16775_v58 = vpop.eup %16774 }
0x4fd5   :  { %v10839_v40 = vmul.f32 %v16775_v58, %v16771_v4 }
0x4fd7   :  { %v10841_v36 = vpack.c.bf16 %v10839_v40, %v10837_v38 }
0x4fd9   :  { %15553 = vmatmul.mubr.msk.bf16.vlgmr.msra.gmra.mrb[16].mxu0 %vm772_vm3, %v10841_v36 }
0x4fda   :  { %15569 = vmatpush3.bf16.xpose.msra.mxu0 %v11076_v22  ;;  %15570 = vmatprep.mubr.msk.bf16.mxu0 %vm17485_vm0, %v17484_v1 }
0x4fdb   :  { %15574 = vmatprep.subr.bf16.mxu0 %v17484_v1 }
0x4fe1   :  { %15571 = vmatmul.mubr.msk.bf16.vlgmr.msra.gmra.mrb[20].mxu0 %vm679_vm1, %v11069_v49 }
0x4fe2   :  { %15575 = vmatpush3.bf16.xpose.msra.mxu0 %v11127_v48  ;;  %15576 = vmatprep.mubr.msk.bf16.mxu0 %vm17485_vm0, %v17484_v1  ;;  %v16352_v48 = vld [vmem:[#allocation26 + $0x8] sm:$0xff]  }
0x4fe3   :  { %15586 = vmatprep.subr.bf16.mxu0 %v17484_v1 }
0x4fe9   :  { %15577 = vmatmul.mubr.msk.bf16.vlgmr.msra.gmra.mrb[24].mxu0 %vm679_vm1, %v11120_v57  ;;  %v16353_v57 = vld [vmem:[#allocation26] sm:$0xff]  }
0x4fea   :  { %15588 = vmatprep.mubr.msk.bf16.mxu0 %vm17485_vm0, %v17484_v1 }
0x5000   :  { %v10798_v2 = vpop.xlane.xlu1 %10797 }
0x5001   :  { %v10808_v5 = vsub.f32 %v10736_v7, %v10798_v2 }
0x5002   :  { %v10801_v51 = vpop.xlane.xlu0 %10800 }
0x5003   :  { %v10812_v18 = vmul.f32 1.442695, %v10808_v5  ;;  %v10809_v39 = vsub.f32 %v10739_v12, %v10801_v51 }
0x5005   :  { %16776 = vpow2.f32 %v10812_v18  ;;  %v10814_v55 = vmul.f32 1.442695, %v10809_v39 }
0x5007   :  { %16778 = vpow2.f32 %v10814_v55 }
0x500f   :  { %v16777_v41 = vpop.eup %16776 }
0x5010   :  { %v10820_v46 = vsel %vm772_vm3, %v16777_v41, 0.0 }
0x5011   :  { %v16779_v43 = vpop.eup %16778  ;;  %10821 = vadd.xlane.f32.xlu0 %v10820_v46 }
0x5012   :  { %v10823_v16 = vsel %vm772_vm3, %v16779_v43, 0.0 }
0x5013   :  { %10824 = vadd.xlane.f32.xlu1 %v10823_v16 }
0x5027   :  { %10843 = vrot.lane.b32.xlu0 %v19270_v9, %s17486_s29 }
0x509e   :  { %v10822_v29 = vpop.xlane.xlu0 %10821 }
0x509f   :  { %16780 = vrcp.f32 %v10822_v29 }
0x50a0   :  { %v10825_v23 = vpop.xlane.xlu1 %10824 }
0x50a1   :  { %16782 = vrcp.f32 %v10825_v23 }
0x50a2   :  { %v10844_v25 = vpop.permute.xlu0 %10843 }
0x50a3   :  { %v10849_v54 = vsel %vm802_vm2, %v10844_v25, 0 }
0x50a4   :  { %15545 = vmatpush3.bf16.msra.mxu1 %v10849_v54 }
0x50a5   :  { %15556 = vmatprep.subr.bf16.mxu1 %v16352_v48 }
0x50a9   :  { %v16781_v15 = vpop.eup %16780 }
0x50aa   :  { %v10833_v21 = vmul.f32 %v16781_v15, %v16777_v41 }
0x50ab   :  { %v16783_v4 = vpop.eup %16782 }
0x50ac   :  { %v10835_v30 = vmul.f32 %v16783_v4, %v16779_v43  ;;  %v19398_v20 = vpop.f32.mrb[16].mxu0 }
0x50ad   :  { %v15554_v7 = vpop.f32.mrb[17].mxu0 }
0x50ae   :  { %v10840_v59 = vpack.c.bf16 %v10835_v30, %v10833_v21  ;;  %v10938_v12 = vpop.f32.mrb[18].mxu0 }
0x50af   :  { %v10945_v32 = vpack.c.bf16 %v10938_v12, %v19398_v20  ;;  %v15555_v45 = vpop.f32.mrb[19].mxu0 }
0x50b0   :  { %15547 = vmatmul.mubr.msk.bf16.vlgmr.msra.gmra.mrb[40].mxu1 %vm772_vm3, %v10840_v59 }
0x50b1   :  { %15557 = vmatpush3.bf16.msra.mxu1 %v16352_v48 }
0x50b2   :  { %15562 = vmatprep.subr.bf16.mxu1 %v16353_v57 }
0x50b4   :  { %v11112_v56 = vpop.f32.mrb[20].mxu0 }
0x50b5   :  { %v15572_v19 = vpop.f32.mrb[21].mxu0  ;;  %v11170_v13 = vsel %vm772_vm3, %v11112_v56, -inf }
0x50b6   :  { %11171 = vmax.xlane.f32.xlu1 %v11170_v13  ;;  %v11115_v60 = vpop.f32.mrb[22].mxu0 }
0x50b7   :  { %v15573_v58 = vpop.f32.mrb[23].mxu0  ;;  %v11173_v38 = vsel %vm772_vm3, %v11115_v60, -inf }
0x50ba   :  { %11174 = vmax.xlane.f32.xlu1 %v11173_v38 }
0x50bc   :  { %v11163_v40 = vpop.f32.mrb[24].mxu0 }
0x50bd   :  { %v15578_v27 = vpop.f32.mrb[25].mxu0  ;;  %v11176_v36 = vsel %vm772_vm3, %v11163_v40, -inf }
0x50be   :  { %11177 = vmax.xlane.f32.xlu1 %v11176_v36  ;;  %v11166_v49 = vpop.f32.mrb[26].mxu0 }
0x50bf   :  { %v15579_v22 = vpop.f32.mrb[27].mxu0  ;;  %v11179_v63 = vsel %vm772_vm3, %v11166_v49, -inf }
0x50c2   :  { %11180 = vmax.xlane.f32.xlu1 %v11179_v63 }
0x5143   :  { %v11172_v2 = vpop.xlane.xlu1 %11171 }
0x5144   :  { %v11182_v5 = vsub.f32 %v11112_v56, %v11172_v2 }
0x5146   :  { %v11186_v51 = vmul.f32 1.442695, %v11182_v5 }
0x5147   :  { %v11175_v18 = vpop.xlane.xlu1 %11174 }
0x5148   :  { %16784 = vpow2.f32 %v11186_v51  ;;  %v11183_v39 = vsub.f32 %v11115_v60, %v11175_v18  ;;  %v16354_v51 = vld [vmem:[#allocation26 + $0x10] sm:$0xff]  }
0x514a   :  { %v11188_v55 = vmul.f32 1.442695, %v11183_v39 }
0x514b   :  { %v11178_v41 = vpop.xlane.xlu1 %11177 }
0x514c   :  { %16786 = vpow2.f32 %v11188_v55  ;;  %v11184_v46 = vsub.f32 %v11163_v40, %v11178_v41 }
0x514e   :  { %v11190_v43 = vmul.f32 1.442695, %v11184_v46 }
0x514f   :  { %v11181_v4 = vpop.xlane.xlu1 %11180 }
0x5150   :  { %16788 = vpow2.f32 %v11190_v43  ;;  %v11185_v21 = vsub.f32 %v11166_v49, %v11181_v4 }
0x5152   :  { %v16785_v16 = vpop.eup %16784  ;;  %v11192_v30 = vmul.f32 1.442695, %v11185_v21 }
0x5153   :  { %v11194_v29 = vsel %vm772_vm3, %v16785_v16, 0.0 }
0x5154   :  { %11195 = vadd.xlane.f32.xlu1 %v11194_v29  ;;  %16790 = vpow2.f32 %v11192_v30 }
0x5156   :  { %v16787_v23 = vpop.eup %16786 }
0x5157   :  { %v11197_v25 = vsel %vm772_vm3, %v16787_v23, 0.0 }
0x5158   :  { %11198 = vadd.xlane.f32.xlu1 %v11197_v25 }
0x515a   :  { %v16789_v54 = vpop.eup %16788 }
0x515b   :  { %v11200_v15 = vsel %vm772_vm3, %v16789_v54, 0.0 }
0x515c   :  { %11201 = vadd.xlane.f32.xlu0 %v11200_v15 }
0x515e   :  { %v16791_v56 = vpop.eup %16790 }
0x515f   :  { %v11203_v19 = vsel %vm772_vm3, %v16791_v56, 0.0 }
0x5169   :  { %11216 = vrot.lane.b32.xlu1 %v19270_v9, %s17487_s2 }
0x5172   :  { %11383 = vrot.lane.b32.xlu0 %v18900_v17, %s17488_s10 }
0x5183   :  { %v10885_v20 = vpop.f32.mrb[40].mxu1 }
0x5184   :  { %v15548_v7 = vpop.f32.mrb[41].mxu1 }
0x5185   :  { %v10888_v59 = vpop.f32.mrb[42].mxu1 }
0x5186   :  { %v10944_v12 = vpack.c.bf16 %v10888_v59, %v10885_v20  ;;  %v15549_v45 = vpop.f32.mrb[43].mxu1 }
0x5188   :  { %15558 = vmatprep.mubr.msk.bf16.mxu1 %vm679_vm1, %v10944_v12 }
0x5189   :  { %15559 = vmatmul.mubr.msk.bf16.vlgmr.msra.gmra.mrb[44].mxu1 %vm679_vm1, %v10945_v32 }
0x518a   :  { %15564 = vmatprep.mubr.msk.bf16.mxu1 %vm679_vm1, %v10688_v61  ;;  %15563 = vmatpush3.bf16.msra.mxu1 %v16353_v57 }
0x518b   :  { %15580 = vmatprep.subr.bf16.mxu1 %v17484_v1 }
0x518d   :  { %11204 = vadd.xlane.f32.xlu1 %v11203_v19 }
0x5195   :  { %15565 = vmatmul.mubr.msk.bf16.vlgmr.msra.gmra.mrb[44].mxu1 %vm679_vm1, %v10689_v52 }
0x5196   :  { %15582 = vmatprep.mubr.msk.bf16.mxu1 %vm17485_vm0, %v17484_v1 }
0x519e   :  { %11265 = vrot.lane.b32.xlu1 %v19291_v50, %s17487_s2 }
0x51a2   :  { %11385 = vrot.lane.b32.xlu1 %v19260_v35, %s17488_s10 }
0x51a6   :  { %11436 = vrot.lane.b32.xlu1 %v19281_v37, %s17488_s10 }
0x51aa   :  { %11434 = vrot.lane.b32.xlu1 %v18902_v28, %s17488_s10 }
0x51e1   :  { %v11196_v62 = vpop.xlane.xlu1 %11195 }
0x51e2   :  { %16792 = vrcp.f32 %v11196_v62 }
0x51e5   :  { %v11199_v11 = vpop.xlane.xlu1 %11198 }
0x51e6   :  { %16794 = vrcp.f32 %v11199_v11 }
0x51e9   :  { %v11217_v3 = vpop.permute.xlu1 %11216  ;;  %v11202_v58 = vpop.xlane.xlu0 %11201 }
0x51ea   :  { %v11222_v52 = vsel %vm802_vm2, %v11217_v3, 0  ;;  %16796 = vrcp.f32 %v11202_v58 }
0x51eb   :  { %15581 = vmatpush3.bf16.msra.mxu1 %v11222_v52 }
0x51ec   :  { %v16793_v24 = vpop.eup %16792  ;;  %15592 = vmatprep.subr.bf16.mxu1 %v16354_v51 }
0x51ed   :  { %v11207_v32 = vmul.f32 %v16793_v24, %v16785_v16  ;;  %v11384_v5 = vpop.permute.xlu0 %11383 }
0x51f0   :  { %v16795_v61 = vpop.eup %16794 }
0x51f1   :  { %v11209_v13 = vmul.f32 %v16795_v61, %v16787_v23 }
0x51f3   :  { %v11214_v60 = vpack.c.bf16 %v11209_v13, %v11207_v32 }
0x51f4   :  { %v16797_v36 = vpop.eup %16796 }
0x51f5   :  { %15583 = vmatmul.mubr.msk.bf16.vlgmr.msra.gmra.mrb[48].mxu1 %vm772_vm3, %v11214_v60  ;;  %v11211_v22 = vmul.f32 %v16797_v36, %v16789_v54 }
0x51f6   :  { %15593 = vmatpush3.bf16.msra.mxu1 %v16354_v51 }
0x51f7   :  { %15604 = vmatprep.subr.bf16.mxu1 %v17484_v1 }
0x521a   :  { %v11205_v38 = vpop.xlane.xlu1 %11204 }
0x521b   :  { %16798 = vrcp.f32 %v11205_v38 }
0x521e   :  { %v11266_v40 = vpop.permute.xlu1 %11265 }
0x521f   :  { %v11271_v27 = vsel %vm802_vm2, %v11266_v40, 0 }
0x5220   :  { %15587 = vmatpush3.bf16.msra.mxu0 %v11271_v27 }
0x5221   :  { %15598 = vmatprep.subr.bf16.mxu0 %v17484_v1 }
0x5222   :  { %v11386_v48 = vpop.permute.xlu1 %11385 }
0x5223   :  { %v11391_v2 = vsel %vm679_vm1, %v11386_v48, 0 }
0x5225   :  { %v16799_v49 = vpop.eup %16798 }
0x5226   :  { %v11213_v63 = vmul.f32 %v16799_v49, %v16791_v56  ;;  %v11437_v29 = vpop.permute.xlu1 %11436 }
0x5227   :  { %v11442_v15 = vsel %vm679_vm1, %v11437_v29, 0 }
0x5228   :  { %v11215_v57 = vpack.c.bf16 %v11213_v63, %v11211_v22 }
0x522a   :  { %15589 = vmatmul.mubr.msk.bf16.vlgmr.msra.gmra.mrb[28].mxu0 %vm772_vm3, %v11215_v57  ;;  %v11435_v12 = vpop.permute.xlu1 %11434 }
0x522b   :  { %15599 = vmatpush3.bf16.xpose.msra.mxu0 %v11391_v2  ;;  %15600 = vmatprep.mubr.msk.bf16.mxu0 %vm17485_vm0, %v17484_v1 }
0x522c   :  { %15610 = vmatprep.subr.bf16.mxu0 %v17484_v1 }
0x5232   :  { %15601 = vmatmul.mubr.msk.bf16.vlgmr.msra.gmra.mrb[32].mxu0 %vm679_vm1, %v11384_v5 }
0x5233   :  { %15612 = vmatprep.mubr.msk.bf16.mxu0 %vm17485_vm0, %v17484_v1 }
0x52c8   :  { %v11258_v18 = vpop.f32.mrb[48].mxu1 }
0x52c9   :  { %v15584_v39 = vpop.f32.mrb[49].mxu1 }
0x52ca   :  { %v11261_v55 = vpop.f32.mrb[50].mxu1 }
0x52cb   :  { %v11316_v41 = vpack.c.bf16 %v11261_v55, %v11258_v18  ;;  %v15585_v46 = vpop.f32.mrb[51].mxu1 }
0x52cd   :  { %15594 = vmatprep.mubr.msk.bf16.mxu1 %vm679_vm1, %v11316_v41 }
0x52fd   :  { %v11307_v43 = vpop.f32.mrb[28].mxu0 }
0x52fe   :  { %v15590_v16 = vpop.f32.mrb[29].mxu0 }
0x52ff   :  { %v11310_v23 = vpop.f32.mrb[30].mxu0 }
0x5300   :  { %v11317_v25 = vpack.c.bf16 %v11310_v23, %v11307_v43  ;;  %v15591_v54 = vpop.f32.mrb[31].mxu0 }
0x5302   :  { %15595 = vmatmul.mubr.msk.bf16.vlgmr.msra.gmra.mrb[44].mxu1 %vm679_vm1, %v11317_v25 }
0x5303   :  { %15605 = vmatpush3.bf16.xpose.msra.mxu1 %v11442_v15  ;;  %15606 = vmatprep.mubr.msk.bf16.mxu1 %vm17485_vm0, %v17484_v1 }
0x5304   :  { %15616 = vmatprep.subr.bf16.mxu1 %v17484_v1 }
0x5305   :  { %v11427_v4 = vpop.f32.mrb[32].mxu0 }
0x5306   :  { %v15602_v21 = vpop.f32.mrb[33].mxu0  ;;  %v11485_v30 = vsel %vm772_vm3, %v11427_v4, -inf }
0x5307   :  { %11486 = vmax.xlane.f32.xlu1 %v11485_v30  ;;  %v11430_v20 = vpop.f32.mrb[34].mxu0 }
0x5308   :  { %v15603_v7 = vpop.f32.mrb[35].mxu0  ;;  %v11488_v59 = vsel %vm772_vm3, %v11430_v20, -inf }
0x5309   :  { %11489 = vmax.xlane.f32.xlu0 %v11488_v59 }
0x530a   :  { %15607 = vmatmul.mubr.msk.bf16.vlgmr.msra.gmra.mrb[52].mxu1 %vm679_vm1, %v11435_v12 }
0x530b   :  { %15618 = vmatprep.mubr.msk.bf16.mxu1 %vm17485_vm0, %v17484_v1 }
0x5318   :  { %11700 = vrot.lane.b32.xlu1 %v19260_v35, %s17462_s0 }
0x531f   :  { %11531 = vrot.lane.b32.xlu0 %v19270_v9, %s17488_s10 }
0x5323   :  { %11749 = vrot.lane.b32.xlu0 %v18902_v28, %s17462_s0 }
0x5394   :  { %v11487_v45 = vpop.xlane.xlu1 %11486 }
0x5395   :  { %v11497_v56 = vsub.f32 %v11427_v4, %v11487_v45 }
0x5396   :  { %v11490_v19 = vpop.xlane.xlu0 %11489 }
0x5397   :  { %v11501_v62 = vmul.f32 1.442695, %v11497_v56  ;;  %v11498_v11 = vsub.f32 %v11430_v20, %v11490_v19 }
0x5398   :  { %v11701_v22 = vpop.permute.xlu1 %11700 }
0x5399   :  { %16800 = vpow2.f32 %v11501_v62  ;;  %v11503_v3 = vmul.f32 1.442695, %v11498_v11  ;;  %v11706_v55 = vsel %vm679_vm1, %v11701_v22, 0 }
0x539a   :  { %v11532_v52 = vpop.permute.xlu0 %11531 }
0x539b   :  { %16802 = vpow2.f32 %v11503_v3  ;;  %v11537_v24 = vsel %vm802_vm2, %v11532_v52, 0 }
0x539c   :  { %15611 = vmatpush3.bf16.msra.mxu0 %v11537_v24 }
0x539d   :  { %15628 = vmatprep.subr.bf16.mxu0 %v17484_v1 }
0x539e   :  { %v11750_v43 = vpop.permute.xlu0 %11749 }
0x53a3   :  { %v16801_v61 = vpop.eup %16800 }
0x53a4   :  { %v11509_v32 = vsel %vm772_vm3, %v16801_v61, 0.0 }
0x53a5   :  { %v16803_v13 = vpop.eup %16802  ;;  %11510 = vadd.xlane.f32.xlu1 %v11509_v32 }
0x53a6   :  { %v11512_v60 = vsel %vm772_vm3, %v16803_v13, 0.0 }
0x53a9   :  { %11513 = vadd.xlane.f32.xlu1 %v11512_v60 }
0x53ba   :  { %11698 = vrot.lane.b32.xlu1 %v18900_v17, %s17462_s0 }
0x53be   :  { %11751 = vrot.lane.b32.xlu1 %v19281_v37, %s17462_s0 }
0x53dd   :  { %v11478_v58 = vpop.f32.mrb[52].mxu1 }
0x53de   :  { %v15608_v38 = vpop.f32.mrb[53].mxu1  ;;  %v11491_v49 = vsel %vm772_vm3, %v11478_v58, -inf }
0x53df   :  { %v11481_v40 = vpop.f32.mrb[54].mxu1 }
0x53e0   :  { %v15609_v27 = vpop.f32.mrb[55].mxu1  ;;  %v11494_v36 = vsel %vm772_vm3, %v11481_v40, -inf }
0x53e1   :  { %11495 = vmax.xlane.f32.xlu0 %v11494_v36 }
0x53e2   :  { %11492 = vmax.xlane.f32.xlu1 %v11491_v49 }
0x53f3   :  { %11580 = vrot.lane.b32.xlu1 %v19291_v50, %s17488_s10 }
0x5432   :  { %v11511_v63 = vpop.xlane.xlu1 %11510 }
0x5433   :  { %16804 = vrcp.f32 %v11511_v63 }
0x5436   :  { %v11514_v48 = vpop.xlane.xlu1 %11513 }
0x5437   :  { %16806 = vrcp.f32 %v11514_v48 }
0x543a   :  { %v11699_v39 = vpop.permute.xlu1 %11698 }
0x543d   :  { %v16805_v57 = vpop.eup %16804 }
0x543e   :  { %v11522_v5 = vmul.f32 %v16805_v57, %v16801_v61  ;;  %v11752_v41 = vpop.permute.xlu1 %11751 }
0x543f   :  { %v11757_v46 = vsel %vm679_vm1, %v11752_v41, 0 }
0x5441   :  { %v16807_v2 = vpop.eup %16806 }
0x5442   :  { %v11524_v51 = vmul.f32 %v16807_v2, %v16803_v13 }
0x5444   :  { %v11529_v18 = vpack.c.bf16 %v11524_v51, %v11522_v5  ;;  %v16355_v5 = vld [vmem:[#allocation26 + $0x18] sm:$0xff]  }
0x5446   :  { %15613 = vmatmul.mubr.msk.bf16.vlgmr.msra.gmra.mrb[36].mxu0 %vm772_vm3, %v11529_v18 }
0x5447   :  { %15629 = vmatpush3.bf16.xpose.msra.mxu0 %v11706_v55  ;;  %15630 = vmatprep.mubr.msk.bf16.mxu0 %vm17485_vm0, %v17484_v1 }
0x5448   :  { %15634 = vmatprep.subr.bf16.mxu0 %v17484_v1 }
0x544e   :  { %15631 = vmatmul.mubr.msk.bf16.vlgmr.msra.gmra.mrb[40].mxu0 %vm679_vm1, %v11699_v39 }
0x544f   :  { %15635 = vmatpush3.bf16.xpose.msra.mxu0 %v11757_v46  ;;  %15636 = vmatprep.mubr.msk.bf16.mxu0 %vm17485_vm0, %v17484_v1 }
0x5450   :  { %15646 = vmatprep.subr.bf16.mxu0 %v17484_v1 }
0x5456   :  { %15637 = vmatmul.mubr.msk.bf16.vlgmr.msra.gmra.mrb[44].mxu0 %vm679_vm1, %v11750_v43 }
0x5457   :  { %15648 = vmatprep.mubr.msk.bf16.mxu0 %vm17485_vm0, %v17484_v1 }
0x546e   :  { %v11496_v16 = vpop.xlane.xlu0 %11495 }
0x546f   :  { %v11500_v29 = vsub.f32 %v11481_v40, %v11496_v16  ;;  %v11493_v23 = vpop.xlane.xlu1 %11492 }
0x5470   :  { %v11499_v25 = vsub.f32 %v11478_v58, %v11493_v23 }
0x5471   :  { %v11507_v54 = vmul.f32 1.442695, %v11500_v29 }
0x5472   :  { %v11505_v15 = vmul.f32 1.442695, %v11499_v25 }
0x5473   :  { %v11581_v4 = vpop.permute.xlu1 %11580 }
0x5474   :  { %16808 = vpow2.f32 %v11505_v15  ;;  %v11586_v21 = vsel %vm802_vm2, %v11581_v4, 0 }
0x5475   :  { %15617 = vmatpush3.bf16.msra.mxu1 %v11586_v21  ;;  %16810 = vpow2.f32 %v11507_v54 }
0x5476   :  { %15622 = vmatprep.subr.bf16.mxu1 %v16355_v5 }
0x547e   :  { %v16809_v30 = vpop.eup %16808 }
0x547f   :  { %v11515_v20 = vsel %vm772_vm3, %v16809_v30, 0.0  ;;  %v16811_v7 = vpop.eup %16810 }
0x5480   :  { %11516 = vadd.xlane.f32.xlu0 %v11515_v20  ;;  %v11518_v59 = vsel %vm772_vm3, %v16811_v7, 0.0 }
0x5484   :  { %11519 = vadd.xlane.f32.xlu0 %v11518_v59 }
0x550d   :  { %v11517_v12 = vpop.xlane.xlu0 %11516 }
0x550e   :  { %16812 = vrcp.f32 %v11517_v12 }
0x5511   :  { %v11520_v45 = vpop.xlane.xlu0 %11519 }
0x5512   :  { %16814 = vrcp.f32 %v11520_v45 }
0x5518   :  { %v16813_v19 = vpop.eup %16812 }
0x5519   :  { %v11573_v56 = vpop.f32.mrb[36].mxu0  ;;  %v11526_v61 = vmul.f32 %v16813_v19, %v16809_v30 }
0x551a   :  { %v15614_v62 = vpop.f32.mrb[37].mxu0 }
0x551b   :  { %v11576_v11 = vpop.f32.mrb[38].mxu0 }
0x551c   :  { %v16815_v3 = vpop.eup %16814  ;;  %v11631_v52 = vpack.c.bf16 %v11576_v11, %v11573_v56  ;;  %v15615_v24 = vpop.f32.mrb[39].mxu0 }
0x551d   :  { %v11528_v32 = vmul.f32 %v16815_v3, %v16811_v7 }
0x551f   :  { %v11530_v13 = vpack.c.bf16 %v11528_v32, %v11526_v61 }
0x5521   :  { %15619 = vmatmul.mubr.msk.bf16.vlgmr.msra.gmra.mrb[56].mxu1 %vm772_vm3, %v11530_v13  ;;  %v11742_v60 = vpop.f32.mrb[40].mxu0 }
0x5522   :  { %15624 = vmatprep.mubr.msk.bf16.mxu1 %vm679_vm1, %v11631_v52  ;;  %v15632_v58 = vpop.f32.mrb[41].mxu0  ;;  %v11800_v38 = vsel %vm772_vm3, %v11742_v60, -inf  ;;  %15623 = vmatpush3.bf16.msra.mxu1 %v16355_v5 }
0x5523   :  { %11801 = vmax.xlane.f32.xlu0 %v11800_v38  ;;  %v11745_v40 = vpop.f32.mrb[42].mxu0  ;;  %15640 = vmatprep.subr.bf16.mxu1 %v17484_v1 }
0x5524   :  { %v15633_v27 = vpop.f32.mrb[43].mxu0  ;;  %v11803_v36 = vsel %vm772_vm3, %v11745_v40, -inf }
0x5527   :  { %11804 = vmax.xlane.f32.xlu0 %v11803_v36 }
0x5529   :  { %v11793_v49 = vpop.f32.mrb[44].mxu0 }
0x552a   :  { %v15638_v22 = vpop.f32.mrb[45].mxu0  ;;  %v11806_v63 = vsel %vm772_vm3, %v11793_v49, -inf }
0x552b   :  { %11807 = vmax.xlane.f32.xlu0 %v11806_v63  ;;  %v11796_v48 = vpop.f32.mrb[46].mxu0 }
0x552c   :  { %v15639_v57 = vpop.f32.mrb[47].mxu0  ;;  %v11809_v2 = vsel %vm772_vm3, %v11796_v48, -inf }
0x552f   :  { %11810 = vmax.xlane.f32.xlu0 %v11809_v2 }
0x55b0   :  { %v11802_v51 = vpop.xlane.xlu0 %11801 }
0x55b1   :  { %v11812_v18 = vsub.f32 %v11742_v60, %v11802_v51 }
0x55b3   :  { %v11816_v39 = vmul.f32 1.442695, %v11812_v18 }
0x55b4   :  { %v11805_v55 = vpop.xlane.xlu0 %11804 }
0x55b5   :  { %16816 = vpow2.f32 %v11816_v39  ;;  %v11813_v41 = vsub.f32 %v11745_v40, %v11805_v55  ;;  %v16356_v39 = vld [vmem:[#allocation26 + $0x20] sm:$0xff]  }
0x55b7   :  { %v11818_v46 = vmul.f32 1.442695, %v11813_v41 }
0x55b8   :  { %v11808_v43 = vpop.xlane.xlu0 %11807 }
0x55b9   :  { %16818 = vpow2.f32 %v11818_v46  ;;  %v11814_v16 = vsub.f32 %v11793_v49, %v11808_v43 }
0x55bb   :  { %v11820_v29 = vmul.f32 1.442695, %v11814_v16 }
0x55bc   :  { %v11811_v23 = vpop.xlane.xlu0 %11810 }
0x55bd   :  { %16820 = vpow2.f32 %v11820_v29  ;;  %v11815_v25 = vsub.f32 %v11796_v48, %v11811_v23 }
0x55bf   :  { %v16817_v54 = vpop.eup %16816  ;;  %v11822_v15 = vmul.f32 1.442695, %v11815_v25 }
0x55c0   :  { %v11824_v4 = vsel %vm772_vm3, %v16817_v54, 0.0 }
0x55c1   :  { %16822 = vpow2.f32 %v11822_v15  ;;  %11825 = vadd.xlane.f32.xlu1 %v11824_v4 }
0x55c3   :  { %v16819_v21 = vpop.eup %16818 }
0x55c4   :  { %v11827_v30 = vsel %vm772_vm3, %v16819_v21, 0.0 }
0x55c5   :  { %11828 = vadd.xlane.f32.xlu0 %v11827_v30 }
0x55c7   :  { %v16821_v20 = vpop.eup %16820 }
0x55c8   :  { %v11830_v7 = vsel %vm772_vm3, %v16821_v20, 0.0 }
0x55c9   :  { %11831 = vadd.xlane.f32.xlu0 %v11830_v7 }
0x55cb   :  { %v16823_v59 = vpop.eup %16822 }
0x55cc   :  { %v11833_v12 = vsel %vm772_vm3, %v16823_v59, 0.0 }
0x55cd   :  { %11834 = vadd.xlane.f32.xlu0 %v11833_v12 }
0x55d2   :  { %11895 = vrot.lane.b32.xlu1 %v19291_v50, %s17462_s0 }
0x55e3   :  { %11846 = vrot.lane.b32.xlu0 %v19270_v9, %s17462_s0  ;;  %s17491_s0 = smov [#allocation34]  }
0x55e4   :  { %s13639_s23 = sshll.u32 %s17491_s0, 4  ;;  %s13640_s23 = int_to_ptr.vmem [resolvable:$true] %s13639_s23 }
0x55e5   :  { %s17351_s30 = scalar_lea.vmem %s13640_s23, 256  ;;  %p17356_p7 = scmp.lt.s32.totalorder %s13640_s23, %s13640_s23 }
0x55e6   :  { %p17352_p6 = scmp.ne.s32.totalorder %s13640_s23, %s17351_s30  ;;  %p17357_p8 = scmp.lt.s32.totalorder %s17351_s30, %s17351_s30 }
0x55e7   :  { %12015 = vrot.lane.b32.xlu0 %v19260_v35, %s17489_s19 }
0x55e8   :  { %p17358_p9 = por %p17357_p8, %p17356_p7 }
0x55ea   :  { %p17359_p10 = pnand %p17358_p9, %p17352_p6 }
0x55eb   :  { %12013 = vrot.lane.b32.xlu0 %v18900_v17, %s17489_s19 }
0x55ef   :  { %12066 = vrot.lane.b32.xlu0 %v19281_v37, %s17489_s19 }
0x55f3   :  { %12064 = vrot.lane.b32.xlu0 %v18902_v28, %s17489_s19 }
0x55f4   :  { %v11622_v45 = vpop.f32.mrb[56].mxu1 }
0x55f5   :  { %v15620_v56 = vpop.f32.mrb[57].mxu1 }
0x55f6   :  { %v11625_v19 = vpop.f32.mrb[58].mxu1 }
0x55f7   :  { %v11632_v62 = vpack.c.bf16 %v11625_v19, %v11622_v45  ;;  %v15621_v11 = vpop.f32.mrb[59].mxu1 }
0x55f9   :  { %15625 = vmatmul.mubr.msk.bf16.vlgmr.msra.gmra.mrb[44].mxu1 %vm679_vm1, %v11632_v62 }
0x55fa   :  { %15642 = vmatprep.mubr.msk.bf16.mxu1 %vm17485_vm0, %v17484_v1 }
0x564e   :  { %v11826_v3 = vpop.xlane.xlu1 %11825 }
0x564f   :  { %16824 = vrcp.f32 %v11826_v3 }
0x5652   :  { %v11896_v52 = vpop.permute.xlu1 %11895  ;;  %v11829_v24 = vpop.xlane.xlu0 %11828 }
0x5653   :  { %v11901_v61 = vsel %vm802_vm2, %v11896_v52, 0  ;;  %16826 = vrcp.f32 %v11829_v24 }
0x5654   :  { %15647 = vmatpush3.bf16.msra.mxu0 %v11901_v61 }
0x5655   :  { %15658 = vmatprep.subr.bf16.mxu0 %v17484_v1 }
0x5656   :  { %v11832_v32 = vpop.xlane.xlu0 %11831 }
0x5657   :  { %16828 = vrcp.f32 %v11832_v32 }
0x5659   :  { %v16825_v60 = vpop.eup %16824 }
0x565a   :  { %v11835_v13 = vpop.xlane.xlu0 %11834  ;;  %v11837_v38 = vmul.f32 %v16825_v60, %v16817_v54 }
0x565b   :  { %16830 = vrcp.f32 %v11835_v13 }
0x565d   :  { %v16827_v58 = vpop.eup %16826 }
0x565e   :  { %v11839_v40 = vmul.f32 %v16827_v58, %v16819_v21  ;;  %v11847_v27 = vpop.permute.xlu0 %11846 }
0x565f   :  { %v11852_v36 = vsel %vm802_vm2, %v11847_v27, 0 }
0x5660   :  { %v11844_v49 = vpack.c.bf16 %v11839_v40, %v11837_v38  ;;  %15641 = vmatpush3.bf16.msra.mxu1 %v11852_v36 }
0x5661   :  { %v16829_v22 = vpop.eup %16828  ;;  %15652 = vmatprep.subr.bf16.mxu1 %v16356_v39 }
0x5662   :  { %v11841_v48 = vmul.f32 %v16829_v22, %v16821_v20  ;;  %v12016_v2 = vpop.permute.xlu0 %12015 }
0x5663   :  { %15643 = vmatmul.mubr.msk.bf16.vlgmr.msra.gmra.mrb[60].mxu1 %vm772_vm3, %v11844_v49  ;;  %v12021_v51 = vsel %vm679_vm1, %v12016_v2, 0 }
0x5664   :  { %15653 = vmatpush3.bf16.msra.mxu1 %v16356_v39 }
0x5665   :  { %v16831_v63 = vpop.eup %16830  ;;  %15664 = vmatprep.subr.bf16.mxu1 %v17484_v1 }
0x5666   :  { %v11843_v57 = vmul.f32 %v16831_v63, %v16823_v59  ;;  %v12014_v18 = vpop.permute.xlu0 %12013 }
0x5668   :  { %v11845_v5 = vpack.c.bf16 %v11843_v57, %v11841_v48 }
0x566a   :  { %15649 = vmatmul.mubr.msk.bf16.vlgmr.msra.gmra.mrb[48].mxu0 %vm772_vm3, %v11845_v5  ;;  %v12067_v25 = vpop.permute.xlu0 %12066 }
0x566b   :  { %15659 = vmatpush3.bf16.xpose.msra.mxu0 %v12021_v51  ;;  %15660 = vmatprep.mubr.msk.bf16.mxu0 %vm17485_vm0, %v17484_v1  ;;  %v12072_v21 = vsel %vm679_vm1, %v12067_v25, 0 }
0x566c   :  { %15670 = vmatprep.subr.bf16.mxu0 %v17484_v1 }
0x566e   :  { %v12065_v56 = vpop.permute.xlu0 %12064 }
0x5672   :  { %15661 = vmatmul.mubr.msk.bf16.vlgmr.msra.gmra.mrb[52].mxu0 %vm679_vm1, %v12014_v18 }
0x5673   :  { %15672 = vmatprep.mubr.msk.bf16.mxu0 %vm17485_vm0, %v17484_v1 }
0x5736   :  { %v11888_v55 = vpop.f32.mrb[60].mxu1 }
0x5737   :  { %v15644_v41 = vpop.f32.mrb[61].mxu1 }
0x5738   :  { %v11891_v46 = vpop.f32.mrb[62].mxu1 }
0x5739   :  { %v11946_v43 = vpack.c.bf16 %v11891_v46, %v11888_v55  ;;  %v15645_v16 = vpop.f32.mrb[63].mxu1 }
0x573b   :  { %15654 = vmatprep.mubr.msk.bf16.mxu1 %vm679_vm1, %v11946_v43 }
0x573d   :  { %v11937_v29 = vpop.f32.mrb[48].mxu0 }
0x573e   :  { %v15650_v23 = vpop.f32.mrb[49].mxu0 }
0x573f   :  { %v11940_v54 = vpop.f32.mrb[50].mxu0 }
0x5740   :  { %v11947_v15 = vpack.c.bf16 %v11940_v54, %v11937_v29  ;;  %v15651_v4 = vpop.f32.mrb[51].mxu0 }
0x5742   :  { %15655 = vmatmul.mubr.msk.bf16.vlgmr.msra.gmra.mrb[44].mxu1 %vm679_vm1, %v11947_v15 }
0x5743   :  { %15665 = vmatpush3.bf16.xpose.msra.mxu1 %v12072_v21  ;;  %15666 = vmatprep.mubr.msk.bf16.mxu1 %vm17485_vm0, %v17484_v1 }
0x5744   :  { %15676 = vmatprep.subr.bf16.mxu1 %v17484_v1 }
0x5745   :  { %v12057_v30 = vpop.f32.mrb[52].mxu0 }
0x5746   :  { %v15662_v20 = vpop.f32.mrb[53].mxu0  ;;  %v12115_v7 = vsel %vm772_vm3, %v12057_v30, -inf }
0x5747   :  { %12116 = vmax.xlane.f32.xlu0 %v12115_v7  ;;  %v12060_v59 = vpop.f32.mrb[54].mxu0 }
0x5748   :  { %v15663_v12 = vpop.f32.mrb[55].mxu0  ;;  %v12118_v45 = vsel %vm772_vm3, %v12060_v59, -inf }
0x5749   :  { %12119 = vmax.xlane.f32.xlu1 %v12118_v45 }
0x574a   :  { %15667 = vmatmul.mubr.msk.bf16.vlgmr.msra.gmra.mrb[64].mxu1 %vm679_vm1, %v12065_v56 }
0x574b   :  { %15678 = vmatprep.mubr.msk.bf16.mxu1 %vm17485_vm0, %v17484_v1 }
0x575a   :  { %12161 = vrot.lane.b32.xlu1 %v19270_v9, %s17489_s19 }
0x575e   :  { %12328 = vrot.lane.b32.xlu1 %v18900_v17, %s17490_s11 }
0x5762   :  { %12381 = vrot.lane.b32.xlu1 %v19281_v37, %s17490_s11 }
0x57d4   :  { %v12117_v19 = vpop.xlane.xlu0 %12116 }
0x57d5   :  { %v12127_v62 = vsub.f32 %v12057_v30, %v12117_v19 }
0x57d6   :  { %v12120_v11 = vpop.xlane.xlu1 %12119 }
0x57d7   :  { %v12131_v3 = vmul.f32 1.442695, %v12127_v62  ;;  %v12128_v52 = vsub.f32 %v12060_v59, %v12120_v11 }
0x57d9   :  { %16832 = vpow2.f32 %v12131_v3  ;;  %v12133_v24 = vmul.f32 1.442695, %v12128_v52 }
0x57da   :  { %v12162_v61 = vpop.permute.xlu1 %12161 }
0x57db   :  { %16834 = vpow2.f32 %v12133_v24  ;;  %v12167_v32 = vsel %vm802_vm2, %v12162_v61, 0 }
0x57dc   :  { %15671 = vmatpush3.bf16.msra.mxu0 %v12167_v32 }
0x57dd   :  { %15688 = vmatprep.subr.bf16.mxu0 %v17484_v1 }
0x57de   :  { %v12329_v41 = vpop.permute.xlu1 %12328 }
0x57e2   :  { %v12382_v43 = vpop.permute.xlu1 %12381 }
0x57e3   :  { %v16833_v13 = vpop.eup %16832  ;;  %v12387_v16 = vsel %vm679_vm1, %v12382_v43, 0 }
0x57e4   :  { %v12139_v60 = vsel %vm772_vm3, %v16833_v13, 0.0 }
0x57e5   :  { %v16835_v58 = vpop.eup %16834  ;;  %12140 = vadd.xlane.f32.xlu0 %v12139_v60 }
0x57e6   :  { %v12142_v38 = vsel %vm772_vm3, %v16835_v58, 0.0 }
0x57e9   :  { %12143 = vadd.xlane.f32.xlu0 %v12142_v38 }
0x57ff   :  { %12330 = vrot.lane.b32.xlu0 %v19260_v35, %s17490_s11 }
0x5803   :  { %12379 = vrot.lane.b32.xlu0 %v18902_v28, %s17490_s11 }
0x581d   :  { %v12108_v40 = vpop.f32.mrb[64].mxu1 }
0x581e   :  { %v15668_v27 = vpop.f32.mrb[65].mxu1  ;;  %v12121_v36 = vsel %vm772_vm3, %v12108_v40, -inf }
0x581f   :  { %v12111_v49 = vpop.f32.mrb[66].mxu1  ;;  %12122 = vmax.xlane.f32.xlu1 %v12121_v36 }
0x5820   :  { %v15669_v22 = vpop.f32.mrb[67].mxu1  ;;  %v12124_v63 = vsel %vm772_vm3, %v12111_v49, -inf }
0x5822   :  { %12125 = vmax.xlane.f32.xlu0 %v12124_v63 }
0x5872   :  { %v12141_v48 = vpop.xlane.xlu0 %12140 }
0x5873   :  { %16836 = vrcp.f32 %v12141_v48 }
0x5876   :  { %v12144_v57 = vpop.xlane.xlu0 %12143 }
0x5877   :  { %16838 = vrcp.f32 %v12144_v57 }
0x587a   :  { %v12331_v39 = vpop.permute.xlu0 %12330 }
0x587b   :  { %v12336_v46 = vsel %vm679_vm1, %v12331_v39, 0 }
0x587d   :  { %v16837_v2 = vpop.eup %16836 }
0x587e   :  { %v12152_v51 = vmul.f32 %v16837_v2, %v16833_v13  ;;  %v12380_v29 = vpop.permute.xlu0 %12379 }
0x5881   :  { %v16839_v5 = vpop.eup %16838 }
0x5882   :  { %v12154_v18 = vmul.f32 %v16839_v5, %v16835_v58 }
0x5884   :  { %v12159_v55 = vpack.c.bf16 %v12154_v18, %v12152_v51  ;;  %v16357_v18 = vld [vmem:[#allocation26 + $0x28] sm:$0xff]  }
0x5886   :  { %15673 = vmatmul.mubr.msk.bf16.vlgmr.msra.gmra.mrb[56].mxu0 %vm772_vm3, %v12159_v55 }
0x5887   :  { %15689 = vmatpush3.bf16.xpose.msra.mxu0 %v12336_v46  ;;  %15690 = vmatprep.mubr.msk.bf16.mxu0 %vm17485_vm0, %v17484_v1 }
0x5888   :  { %15694 = vmatprep.subr.bf16.mxu0 %v17484_v1 }
0x588e   :  { %15691 = vmatmul.mubr.msk.bf16.vlgmr.msra.gmra.mrb[60].mxu0 %vm679_vm1, %v12329_v41 }
0x588f   :  { %15695 = vmatpush3.bf16.xpose.msra.mxu0 %v12387_v16  ;;  %15696 = vmatprep.mubr.msk.bf16.mxu0 %vm17485_vm0, %v17484_v1 }
0x5890   :  { %15706 = vmatprep.subr.bf16.mxu0 %v17484_v1 }
0x5896   :  { %15697 = vmatmul.mubr.msk.bf16.vlgmr.msra.gmra.mrb[64].mxu0 %vm679_vm1, %v12380_v29 }
0x5897   :  { %15708 = vmatprep.mubr.msk.bf16.mxu0 %vm17485_vm0, %v17484_v1 }
0x58ac   :  { %v12123_v23 = vpop.xlane.xlu1 %12122 }
0x58ad   :  { %v12129_v25 = vsub.f32 %v12108_v40, %v12123_v23 }
0x58af   :  { %v12135_v54 = vmul.f32 1.442695, %v12129_v25  ;;  %v12126_v15 = vpop.xlane.xlu0 %12125 }
0x58b0   :  { %v12130_v4 = vsub.f32 %v12111_v49, %v12126_v15 }
0x58b1   :  { %16840 = vpow2.f32 %v12135_v54 }
0x58b2   :  { %v12137_v21 = vmul.f32 1.442695, %v12130_v4 }
0x58b4   :  { %16842 = vpow2.f32 %v12137_v21 }
0x58bb   :  { %v16841_v30 = vpop.eup %16840 }
0x58bc   :  { %v12145_v20 = vsel %vm772_vm3, %v16841_v30, 0.0 }
0x58bd   :  { %12146 = vadd.xlane.f32.xlu0 %v12145_v20 }
0x58be   :  { %v16843_v7 = vpop.eup %16842 }
0x58bf   :  { %v12148_v59 = vsel %vm772_vm3, %v16843_v7, 0.0 }
0x58c0   :  { %12149 = vadd.xlane.f32.xlu1 %v12148_v59 }
0x58d3   :  { %12210 = vrot.lane.b32.xlu0 %v19291_v50, %s17489_s19 }
0x594a   :  { %v12147_v12 = vpop.xlane.xlu0 %12146 }
0x594b   :  { %16844 = vrcp.f32 %v12147_v12 }
0x594d   :  { %v12150_v45 = vpop.xlane.xlu1 %12149 }
0x594e   :  { %16846 = vrcp.f32 %v12150_v45  ;;  %v12211_v56 = vpop.permute.xlu0 %12210 }
0x594f   :  { %v12216_v19 = vsel %vm802_vm2, %v12211_v56, 0 }
0x5950   :  { %15677 = vmatpush3.bf16.msra.mxu1 %v12216_v19 }
0x5951   :  { %15682 = vmatprep.subr.bf16.mxu1 %v16357_v18 }
0x5955   :  { %v16845_v62 = vpop.eup %16844 }
0x5956   :  { %v12156_v3 = vmul.f32 %v16845_v62, %v16841_v30 }
0x5958   :  { %v16847_v11 = vpop.eup %16846 }
0x5959   :  { %v12158_v52 = vmul.f32 %v16847_v11, %v16843_v7  ;;  %v12203_v24 = vpop.f32.mrb[56].mxu0 }
0x595a   :  { %v15674_v61 = vpop.f32.mrb[57].mxu0 }
0x595b   :  { %v12160_v32 = vpack.c.bf16 %v12158_v52, %v12156_v3  ;;  %v12206_v13 = vpop.f32.mrb[58].mxu0 }
0x595c   :  { %v12261_v60 = vpack.c.bf16 %v12206_v13, %v12203_v24  ;;  %v15675_v58 = vpop.f32.mrb[59].mxu0 }
0x595d   :  { %15679 = vmatmul.mubr.msk.bf16.vlgmr.msra.gmra.mrb[68].mxu1 %vm772_vm3, %v12160_v32 }
0x595e   :  { %15684 = vmatprep.mubr.msk.bf16.mxu1 %vm679_vm1, %v12261_v60  ;;  %15683 = vmatpush3.bf16.msra.mxu1 %v16357_v18 }
0x595f   :  { %15700 = vmatprep.subr.bf16.mxu1 %v17484_v1 }
0x5961   :  { %v12372_v38 = vpop.f32.mrb[60].mxu0 }
0x5962   :  { %v15692_v40 = vpop.f32.mrb[61].mxu0  ;;  %v12430_v27 = vsel %vm772_vm3, %v12372_v38, -inf }
0x5963   :  { %12431 = vmax.xlane.f32.xlu1 %v12430_v27  ;;  %v12375_v36 = vpop.f32.mrb[62].mxu0 }
0x5964   :  { %v15693_v49 = vpop.f32.mrb[63].mxu0  ;;  %v12433_v22 = vsel %vm772_vm3, %v12375_v36, -inf }
0x5967   :  { %12434 = vmax.xlane.f32.xlu1 %v12433_v22 }
0x5969   :  { %v12423_v63 = vpop.f32.mrb[64].mxu0 }
0x596a   :  { %v15698_v48 = vpop.f32.mrb[65].mxu0  ;;  %v12436_v57 = vsel %vm772_vm3, %v12423_v63, -inf }
0x596b   :  { %12437 = vmax.xlane.f32.xlu1 %v12436_v57  ;;  %v12426_v2 = vpop.f32.mrb[66].mxu0 }
0x596c   :  { %v15699_v5 = vpop.f32.mrb[67].mxu0  ;;  %v12439_v51 = vsel %vm772_vm3, %v12426_v2, -inf }
0x596f   :  { %12440 = vmax.xlane.f32.xlu1 %v12439_v51  ;;  %v16358_v51 = vld [vmem:[#allocation26 + $0x30] sm:$0xff]  }
0x59f0   :  { %v12432_v39 = vpop.xlane.xlu1 %12431 }
0x59f1   :  { %v12442_v55 = vsub.f32 %v12372_v38, %v12432_v39 }
0x59f3   :  { %v12446_v41 = vmul.f32 1.442695, %v12442_v55 }
0x59f4   :  { %v12435_v46 = vpop.xlane.xlu1 %12434 }
0x59f5   :  { %16848 = vpow2.f32 %v12446_v41  ;;  %v12443_v43 = vsub.f32 %v12375_v36, %v12435_v46 }
0x59f7   :  { %v12448_v16 = vmul.f32 1.442695, %v12443_v43 }
0x59f8   :  { %v12438_v29 = vpop.xlane.xlu1 %12437 }
0x59f9   :  { %16850 = vpow2.f32 %v12448_v16  ;;  %v12444_v23 = vsub.f32 %v12423_v63, %v12438_v29 }
0x59fb   :  { %v12450_v25 = vmul.f32 1.442695, %v12444_v23 }
0x59fc   :  { %v12441_v7 = vpop.xlane.xlu1 %12440 }
0x59fd   :  { %16852 = vpow2.f32 %v12450_v25  ;;  %v12445_v59 = vsub.f32 %v12426_v2, %v12441_v7 }
0x59ff   :  { %v16849_v54 = vpop.eup %16848  ;;  %v12452_v12 = vmul.f32 1.442695, %v12445_v59 }
0x5a00   :  { %v12454_v15 = vsel %vm772_vm3, %v16849_v54, 0.0 }
0x5a01   :  { %12455 = vadd.xlane.f32.xlu1 %v12454_v15  ;;  %16854 = vpow2.f32 %v12452_v12 }
0x5a03   :  { %v16851_v4 = vpop.eup %16850 }
0x5a04   :  { %v12457_v21 = vsel %vm772_vm3, %v16851_v4, 0.0 }
0x5a05   :  { %12458 = vadd.xlane.f32.xlu1 %v12457_v21 }
0x5a07   :  { %v16853_v30 = vpop.eup %16852 }
0x5a08   :  { %v12460_v20 = vsel %vm772_vm3, %v16853_v30, 0.0 }
0x5a09   :  { %12461 = vadd.xlane.f32.xlu0 %v12460_v20 }
0x5a0b   :  { %v16855_v3 = vpop.eup %16854 }
0x5a0c   :  { %v12463_v52 = vsel %vm772_vm3, %v16855_v3, 0.0 }
0x5a16   :  { %12476 = vrot.lane.b32.xlu1 %v19270_v9, %s17490_s11 }
0x5a1f   :  { %12696 = vrot.lane.b32.xlu0 %v19281_v37, %s17460_s9 }
0x5a30   :  { %v12252_v45 = vpop.f32.mrb[68].mxu1 }
0x5a31   :  { %v15680_v56 = vpop.f32.mrb[69].mxu1 }
0x5a32   :  { %v12255_v19 = vpop.f32.mrb[70].mxu1 }
0x5a33   :  { %v12262_v62 = vpack.c.bf16 %v12255_v19, %v12252_v45  ;;  %v15681_v11 = vpop.f32.mrb[71].mxu1 }
0x5a35   :  { %15685 = vmatmul.mubr.msk.bf16.vlgmr.msra.gmra.mrb[44].mxu1 %vm679_vm1, %v12262_v62 }
0x5a36   :  { %15702 = vmatprep.mubr.msk.bf16.mxu1 %vm17485_vm0, %v17484_v1 }
0x5a3a   :  { %12464 = vadd.xlane.f32.xlu1 %v12463_v52 }
0x5a4b   :  { %12525 = vrot.lane.b32.xlu1 %v19291_v50, %s17490_s11 }
0x5a4f   :  { %12645 = vrot.lane.b32.xlu1 %v19260_v35, %s17460_s9 }
0x5a53   :  { %12643 = vrot.lane.b32.xlu1 %v18900_v17, %s17460_s9 }
0x5a57   :  { %12694 = vrot.lane.b32.xlu1 %v18902_v28, %s17460_s9 }
0x5a8e   :  { %v12456_v37 = vpop.xlane.xlu1 %12455 }
0x5a8f   :  { %16856 = vrcp.f32 %v12456_v37 }
0x5a92   :  { %v12459_v24 = vpop.xlane.xlu1 %12458 }
0x5a93   :  { %16858 = vrcp.f32 %v12459_v24 }
0x5a96   :  { %v12477_v61 = vpop.permute.xlu1 %12476  ;;  %v12462_v35 = vpop.xlane.xlu0 %12461 }
0x5a97   :  { %v12482_v32 = vsel %vm802_vm2, %v12477_v61, 0  ;;  %16860 = vrcp.f32 %v12462_v35 }
0x5a98   :  { %15701 = vmatpush3.bf16.msra.mxu1 %v12482_v32 }
0x5a99   :  { %v16857_v13 = vpop.eup %16856  ;;  %15712 = vmatprep.subr.bf16.mxu1 %v16358_v51 }
0x5a9a   :  { %v12467_v58 = vmul.f32 %v16857_v13, %v16849_v54  ;;  %v12697_v29 = vpop.permute.xlu0 %12696 }
0x5a9b   :  { %v12702_v15 = vsel %vm679_vm1, %v12697_v29, 0 }
0x5a9d   :  { %v16859_v60 = vpop.eup %16858 }
0x5a9e   :  { %v12469_v38 = vmul.f32 %v16859_v60, %v16851_v4 }
0x5aa0   :  { %v12474_v40 = vpack.c.bf16 %v12469_v38, %v12467_v58 }
0x5aa1   :  { %v16861_v36 = vpop.eup %16860 }
0x5aa2   :  { %15703 = vmatmul.mubr.msk.bf16.vlgmr.msra.gmra.mrb[72].mxu1 %vm772_vm3, %v12474_v40  ;;  %v12471_v22 = vmul.f32 %v16861_v36, %v16853_v30 }
0x5aa3   :  { %15713 = vmatpush3.bf16.msra.mxu1 %v16358_v51 }
0x5aa4   :  { %15724 = vmatprep.subr.bf16.mxu1 %v17484_v1 }
0x5ac7   :  { %v12465_v17 = vpop.xlane.xlu1 %12464 }
0x5ac8   :  { %16862 = vrcp.f32 %v12465_v17 }
0x5acb   :  { %v12526_v28 = vpop.permute.xlu1 %12525 }
0x5acc   :  { %v12531_v27 = vsel %vm802_vm2, %v12526_v28, 0 }
0x5acd   :  { %15707 = vmatpush3.bf16.msra.mxu0 %v12531_v27 }
0x5ace   :  { %15718 = vmatprep.subr.bf16.mxu0 %v17484_v1 }
0x5acf   :  { %v12646_v48 = vpop.permute.xlu1 %12645 }
0x5ad0   :  { %v12651_v2 = vsel %vm679_vm1, %v12646_v48, 0 }
0x5ad2   :  { %v16863_v49 = vpop.eup %16862 }
0x5ad3   :  { %v12473_v63 = vmul.f32 %v16863_v49, %v16855_v3  ;;  %v12644_v5 = vpop.permute.xlu1 %12643 }
0x5ad5   :  { %v12475_v57 = vpack.c.bf16 %v12473_v63, %v12471_v22 }
0x5ad7   :  { %15709 = vmatmul.mubr.msk.bf16.vlgmr.msra.gmra.mrb[68].mxu0 %vm772_vm3, %v12475_v57  ;;  %v12695_v12 = vpop.permute.xlu1 %12694 }
0x5ad8   :  { %15719 = vmatpush3.bf16.xpose.msra.mxu0 %v12651_v2  ;;  %15720 = vmatprep.mubr.msk.bf16.mxu0 %vm17485_vm0, %v17484_v1 }
0x5ad9   :  { %15730 = vmatprep.subr.bf16.mxu0 %v17484_v1 }
0x5adf   :  { %15721 = vmatmul.mubr.msk.bf16.vlgmr.msra.gmra.mrb[72].mxu0 %vm679_vm1, %v12644_v5 }
0x5ae0   :  { %15732 = vmatprep.mubr.msk.bf16.mxu0 %vm17485_vm0, %v17484_v1 }
0x5b75   :  { %v12518_v18 = vpop.f32.mrb[72].mxu1 }
0x5b76   :  { %v15704_v39 = vpop.f32.mrb[73].mxu1 }
0x5b77   :  { %v12521_v55 = vpop.f32.mrb[74].mxu1 }
0x5b78   :  { %v12576_v41 = vpack.c.bf16 %v12521_v55, %v12518_v18  ;;  %v15705_v46 = vpop.f32.mrb[75].mxu1  ;;  %v16361_v55 = vld [vmem:[#allocation31 + $0x4] ss:$8 sps:$4 sm:$0xff]  }
0x5b7a   :  { %15714 = vmatprep.mubr.msk.bf16.mxu1 %vm679_vm1, %v12576_v41 }
0x5baa   :  { %v12567_v43 = vpop.f32.mrb[68].mxu0 }
0x5bab   :  { %v15710_v16 = vpop.f32.mrb[69].mxu0 }
0x5bac   :  { %v12570_v23 = vpop.f32.mrb[70].mxu0 }
0x5bad   :  { %v12577_v25 = vpack.c.bf16 %v12570_v23, %v12567_v43  ;;  %v15711_v54 = vpop.f32.mrb[71].mxu0 }
0x5bae   :  { %v16362_v54 = vld [vmem:[#allocation31 + $0x10] ss:$8 sps:$4 sm:$0xff]  }
0x5baf   :  { %15715 = vmatmul.mubr.msk.bf16.vlgmr.msra.gmra.mrb[44].mxu1 %vm679_vm1, %v12577_v25 }
0x5bb0   :  { %15725 = vmatpush3.bf16.xpose.msra.mxu1 %v12702_v15  ;;  %15726 = vmatprep.mubr.msk.bf16.mxu1 %vm17485_vm0, %v17484_v1  ;;  %v16367_v15 = vld [vmem:[#allocation31 + $0x24] ss:$8 sps:$4 sm:$0xff]  }
0x5bb1   :  { %15736 = vmatprep.subr.bf16.mxu1 %v17484_v1 }
0x5bb2   :  { %v12687_v4 = vpop.f32.mrb[72].mxu0 }
0x5bb3   :  { %v15722_v21 = vpop.f32.mrb[73].mxu0  ;;  %v12745_v30 = vsel %vm772_vm3, %v12687_v4, -inf }
0x5bb4   :  { %12746 = vmax.xlane.f32.xlu1 %v12745_v30  ;;  %v12690_v20 = vpop.f32.mrb[74].mxu0  ;;  %v16365_v21 = vld [vmem:[#allocation31 + $0x20] ss:$8 sps:$4 sm:$0xff]  }
0x5bb5   :  { %v15723_v7 = vpop.f32.mrb[75].mxu0  ;;  %v12748_v59 = vsel %vm772_vm3, %v12690_v20, -inf }
0x5bb6   :  { %12749 = vmax.xlane.f32.xlu0 %v12748_v59 }
0x5bb7   :  { %15727 = vmatmul.mubr.msk.bf16.vlgmr.msra.gmra.mrb[76].mxu1 %vm679_vm1, %v12695_v12 }
0x5bb8   :  { %15738 = vmatprep.mubr.msk.bf16.mxu1 %vm17485_vm0, %v17484_v1 }
0x5c41   :  { %v12747_v45 = vpop.xlane.xlu1 %12746 }
0x5c42   :  { %v12757_v56 = vsub.f32 %v12687_v4, %v12747_v45  ;;  %v16368_v45 = vld [vmem:[#allocation31 + $0x30] ss:$8 sps:$4 sm:$0xff]  }
0x5c43   :  { %v12750_v3 = vpop.xlane.xlu0 %12749 }
0x5c44   :  { %v12761_v19 = vmul.f32 1.442695, %v12757_v56  ;;  %v12758_v52 = vsub.f32 %v12690_v20, %v12750_v3  ;;  %v16370_v20 = vld [vmem:[#allocation31 + $0x34] ss:$8 sps:$4 sm:$0xff]   ;;  %v16373_v56 = vld [vmem:[#allocation31 + $0x44] ss:$8 sps:$4 sm:$0xff]  }
0x5c45   :  { %v16379_v3 = vld [vmem:[#allocation31 + $0x64] ss:$8 sps:$4 sm:$0xff]  }
0x5c46   :  { %16864 = vpow2.f32 %v12761_v19  ;;  %v12763_v37 = vmul.f32 1.442695, %v12758_v52  ;;  %v16371_v19 = vld [vmem:[#allocation31 + $0x40] ss:$8 sps:$4 sm:$0xff]  }
0x5c47   :  { %v16377_v52 = vld [vmem:[#allocation31 + $0x60] ss:$8 sps:$4 sm:$0xff]  }
0x5c48   :  { %16866 = vpow2.f32 %v12763_v37  ;;  %v16382_v37 = vld [vmem:[#allocation31 + $0x74] ss:$8 sps:$4 sm:$0xff]  }
0x5c50   :  { %v16865_v62 = vpop.eup %16864 }
0x5c51   :  { %v12769_v11 = vsel %vm772_vm3, %v16865_v62, 0.0 }
0x5c52   :  { %12770 = vadd.xlane.f32.xlu0 %v12769_v11  ;;  %v16867_v58 = vpop.eup %16866  ;;  %v16374_v11 = vld [vmem:[#allocation31 + $0x50] ss:$8 sps:$4 sm:$0xff]  }
0x5c53   :  { %v12772_v38 = vsel %vm772_vm3, %v16867_v58, 0.0 }
0x5c8a   :  { %v12738_v24 = vpop.f32.mrb[76].mxu1 }
0x5c8b   :  { %v15728_v61 = vpop.f32.mrb[77].mxu1  ;;  %v12751_v32 = vsel %vm772_vm3, %v12738_v24, -inf }
0x5c8c   :  { %v12741_v13 = vpop.f32.mrb[78].mxu1  ;;  %12752 = vmax.xlane.f32.xlu1 %v12751_v32  ;;  %v16383_v61 = vld [vmem:[#allocation26 + $0x38] sm:$0xff]   ;;  %v16384_v32 = vld [vmem:[#allocation29] ss:$8 sps:$4 sm:$0xff]  }
0x5c8d   :  { %v15729_v60 = vpop.f32.mrb[79].mxu1  ;;  %v12754_v1 = vsel %vm772_vm3, %v12741_v13, -inf }
0x5c8e   :  { %v16389_v60 = vld [vmem:[#allocation29 + $0x14] ss:$8 sps:$4 sm:$0xff]  }
0x5c90   :  { %12755 = vmax.xlane.f32.xlu1 %v12754_v1  ;;  %v16387_v1 = vld [vmem:[#allocation29 + $0x10] ss:$8 sps:$4 sm:$0xff]  }
0x5c94   :  { %12773 = vadd.xlane.f32.xlu1 %v12772_v38 }
0x5cdf   :  { %v12771_v2 = vpop.xlane.xlu0 %12770 }
0x5d19   :  { %v12753_v40 = vpop.xlane.xlu1 %12752 }
0x5d1a   :  { %v12759_v35 = vsub.f32 %v12738_v24, %v12753_v40  ;;  %v16380_v24 = vld [vmem:[#allocation31 + $0x70] ss:$8 sps:$4 sm:$0xff]  }
0x5d1c   :  { %v12765_v17 = vmul.f32 1.442695, %v12759_v35 }
0x5d1d   :  { %v12756_v28 = vpop.xlane.xlu1 %12755 }
0x5d1e   :  { %16868 = vpow2.f32 %v12765_v17  ;;  %v12760_v27 = vsub.f32 %v12741_v13, %v12756_v28  ;;  %v16386_v13 = vld [vmem:[#allocation29 + $0x4] ss:$8 sps:$4 sm:$0xff]  }
0x5d20   :  { %v12767_v36 = vmul.f32 1.442695, %v12760_v27 }
0x5d21   :  { %v12774_v57 = vpop.xlane.xlu1 %12773 }
0x5d22   :  { %16870 = vpow2.f32 %v12767_v36  ;;  %v16390_v36 = vld [vmem:[#allocation29 + $0x20] ss:$8 sps:$4 sm:$0xff]  }
0x5d23   :  { %16872 = vrcp.f32 %v12774_v57  ;;  %v16396_v57 = vld [vmem:[#allocation29 + $0x40] ss:$8 sps:$4 sm:$0xff]  }
0x5d24   :  { %16874 = vrcp.f32 %v12771_v2  ;;  %v16401_v2 = vld [vmem:[#allocation29 + $0x54] ss:$8 sps:$4 sm:$0xff]  }
0x5d28   :  { %v16869_v49 = vpop.eup %16868 }
0x5d29   :  { %v12775_v22 = vsel %vm772_vm3, %v16869_v49, 0.0 }
0x5d2a   :  { %12776 = vadd.xlane.f32.xlu0 %v12775_v22  ;;  %v16395_v22 = vld [vmem:[#allocation29 + $0x34] ss:$8 sps:$4 sm:$0xff]  }
0x5d2c   :  { %v16871_v63 = vpop.eup %16870 }
0x5d2d   :  { %v12778_v48 = vsel %vm772_vm3, %v16871_v63, 0.0  ;;  %v16873_v5 = vpop.eup %16872 }
0x5d2e   :  { %12779 = vadd.xlane.f32.xlu1 %v12778_v48  ;;  %v16875_v18 = vpop.eup %16874  ;;  %v12784_v39 = vmul.f32 %v16873_v5, %v16867_v58  ;;  %v16398_v48 = vld [vmem:[#allocation29 + $0x44] ss:$8 sps:$4 sm:$0xff]   ;;  %v16399_v5 = vld [vmem:[#allocation29 + $0x50] ss:$8 sps:$4 sm:$0xff]  }
0x5d2f   :  { %v12782_v43 = vmul.f32 %v16875_v18, %v16865_v62  ;;  %v16376_v62 = vld [vmem:[#allocation31 + $0x54] ss:$8 sps:$4 sm:$0xff]   ;;  %v16402_v18 = vld [vmem:[#allocation29 + $0x60] ss:$8 sps:$4 sm:$0xff]  }
0x5d31   :  { %v12789_v29 = vpack.c.bf16 %v12784_v39, %v12782_v43  ;;  %v16407_v39 = vld [vmem:[#allocation29 + $0x74] ss:$8 sps:$4 sm:$0xff]  }
0x5d3f   :  { %12840 = vrot.lane.b32.xlu1 %v19291_v50, %s17460_s9  ;;  %v16359_v50 = vld [vmem:[#allocation31] ss:$8 sps:$4 sm:$0xff]  }
0x5d40   :  { %12791 = vrot.lane.b32.xlu0 %v19270_v9, %s17460_s9  ;;  %v16364_v9 = vld [vmem:[#allocation31 + $0x14] ss:$8 sps:$4 sm:$0xff]   ;;  %s19817_s9 = sld [smem:[#allocation66_spill]] }
0x5db7   :  { %v12777_v51 = vpop.xlane.xlu0 %12776 }
0x5db8   :  { %16876 = vrcp.f32 %v12777_v51  ;;  %v16404_v51 = vld [vmem:[#allocation29 + $0x64] ss:$8 sps:$4 sm:$0xff]  }
0x5dbb   :  { %v12780_v41 = vpop.xlane.xlu1 %12779  ;;  %v12792_v46 = vpop.permute.xlu0 %12791 }
0x5dbc   :  { %16878 = vrcp.f32 %v12780_v41  ;;  %v12797_v16 = vsel %vm802_vm2, %v12792_v46, 0  ;;  %v16910_v46 = vld [vmem:[#allocation28] ss:$0 sm:$0xff] }
0x5dbd   :  { %15731 = vmatpush3.bf16.msra.mxu0 %v12797_v16 }
0x5dbe   :  { %13092 = vmatprep.subr.bf16.mxu0 %v16361_v55  ;;  %v16405_v55 = vld [vmem:[#allocation29 + $0x70] ss:$8 sps:$4 sm:$0xff]  }
0x5dbf   :  { %v12841_v23 = vpop.permute.xlu1 %12840 }
0x5dc0   :  { %v12846_v25 = vsel %vm802_vm2, %v12841_v23, 0  ;;  %15733 = vmatmul.mubr.msk.bf16.vlgmr.msra.gmra.mrb[76].mxu0 %vm772_vm3, %v12789_v29 }
0x5dc1   :  { %15737 = vmatpush3.bf16.msra.mxu1 %v12846_v25  ;;  %13093 = vmatpush1.bf16.msra.mxu0 %v16359_v50 }
0x5dc2   :  { %13094 = vmatprep.subr.bf16.mxu0 %v16364_v9  ;;  %13124 = vmatprep.mubr.bf16.mxu0 %v17483_v0  ;;  %v16877_v4 = vpop.eup %16876 }
0x5dc3   :  { %v12786_v7 = vmul.f32 %v16877_v4, %v16869_v49  ;;  %15742 = vmatprep.subr.bf16.mxu1 %v16383_v61  ;;  %v16392_v49 = vld [vmem:[#allocation29 + $0x24] ss:$8 sps:$4 sm:$0xff]  }
0x5dc5   :  { %13095 = vmatpush1.bf16.msra.mxu0 %v16362_v54 }
0x5dc6   :  { %v16879_v30 = vpop.eup %16878  ;;  %13096 = vmatprep.subr.bf16.mxu0 %v16367_v15 }
0x5dc7   :  { %v12788_v59 = vmul.f32 %v16879_v30, %v16871_v63  ;;  %v16393_v63 = vld [vmem:[#allocation29 + $0x30] ss:$8 sps:$4 sm:$0xff]  }
0x5dc9   :  { %v12790_v12 = vpack.c.bf16 %v12788_v59, %v12786_v7  ;;  %13097 = vmatpush1.bf16.msra.mxu0 %v16365_v21  ;;  %v16412_v7 = vld [vmem:[#allocation32 + $0x50] sm:$0xff]  }
0x5dca   :  { %13098 = vmatprep.subr.bf16.mxu0 %v16370_v20  ;;  %v16413_v59 = vld [vmem:[#allocation32 + $0x10] sm:$0xff]  }
0x5dcb   :  { %15739 = vmatmul.mubr.msk.bf16.vlgmr.msra.gmra.mrb[80].mxu1 %vm772_vm3, %v12790_v12  ;;  %v16415_v12 = vld [vmem:[#allocation32 + $0x18] sm:$0xff]  }
0x5dcc   :  { %15743 = vmatpush3.bf16.msra.mxu1 %v16383_v61 }
0x5dcd   :  { %13099 = vmatpush1.bf16.msra.mxu0 %v16368_v45  ;;  %v16419_v45 = vld [vmem:[#allocation32 + $0x28] sm:$0xff]  }
0x5dce   :  { %13100 = vmatprep.subr.bf16.mxu0 %v16373_v56  ;;  %v16420_v56 = vld [vmem:[#allocation32 + $0x70] sm:$0xff]  }
0x5dd1   :  { %13101 = vmatpush1.bf16.msra.mxu0 %v16371_v19  ;;  %v16421_v19 = vld [vmem:[#allocation32 + $0x30] sm:$0xff]  }
0x5dd2   :  { %13102 = vmatprep.subr.bf16.mxu0 %v16376_v62  ;;  %v16422_v62 = vld [vmem:[#allocation32 + $0x78] sm:$0xff]  }
0x5dd5   :  { %13103 = vmatpush1.bf16.msra.mxu0 %v16374_v11  ;;  %v16423_v11 = vld [vmem:[#allocation32 + $0x38] sm:$0xff]  }
0x5dd6   :  { %13104 = vmatprep.subr.bf16.mxu0 %v16379_v3  ;;  %v13298_v3 = vld [vmem:[%s19817_s9] sm:$0x3] }
0x5dd9   :  { %13105 = vmatpush1.bf16.msra.mxu0 %v16377_v52  ;;  %v19661_v52 = vrot.slane %v13298_v3, %v17835_v33 }
0x5dda   :  { %13106 = vmatprep.subr.bf16.mxu0 %v16382_v37  ;;  %v19664_v37 = vrot.slane %v13298_v3, %v17831_v31 }
0x5ddd   :  { %13107 = vmatpush1.bf16.msra.mxu0 %v16380_v24 }
0x5dde   :  { %13235 = vmatprep.subr.bf16.mxu0 %v16386_v13 }
0x5de0   :  { %13125 = vmatmul.mubr.bf16.vlgmr.msra.gmra.mrb[80].mxu0 %v13009_v53 }
0x5de1   :  { %13134 = vmatprep.mubr.bf16.mxu0 %v17483_v0  ;;  %13236 = vmatpush1.bf16.msra.mxu0 %v16384_v32 }
0x5de2   :  { %13237 = vmatprep.subr.bf16.mxu0 %v16389_v60 }
0x5de5   :  { %13238 = vmatpush1.bf16.msra.mxu0 %v16387_v1 }
0x5de6   :  { %13239 = vmatprep.subr.bf16.mxu0 %v16392_v49 }
0x5de9   :  { %13240 = vmatpush1.bf16.msra.mxu0 %v16390_v36 }
0x5dea   :  { %13241 = vmatprep.subr.bf16.mxu0 %v16395_v22 }
0x5ded   :  { %13242 = vmatpush1.bf16.msra.mxu0 %v16393_v63 }
0x5dee   :  { %13243 = vmatprep.subr.bf16.mxu0 %v16398_v48 }
0x5df1   :  { %13244 = vmatpush1.bf16.msra.mxu0 %v16396_v57 }
0x5df2   :  { %13245 = vmatprep.subr.bf16.mxu0 %v16401_v2 }
0x5df5   :  { %13246 = vmatpush1.bf16.msra.mxu0 %v16399_v5 }
0x5df6   :  { %13247 = vmatprep.subr.bf16.mxu0 %v16404_v51 }
0x5df9   :  { %13248 = vmatpush1.bf16.msra.mxu0 %v16402_v18 }
0x5dfa   :  { %13249 = vmatprep.subr.bf16.mxu0 %v16407_v39 }
0x5dfd   :  { %13250 = vmatpush1.bf16.msra.mxu0 %v16405_v55 }
0x5e93   :  { %v12833_v58 = vpop.f32.mrb[76].mxu0 }
0x5e94   :  { %v15734_v38 = vpop.f32.mrb[77].mxu0 }
0x5e95   :  { %v12836_v40 = vpop.f32.mrb[78].mxu0 }
0x5e96   :  { %v12891_v35 = vpack.c.bf16 %v12836_v40, %v12833_v58  ;;  %v15735_v17 = vpop.f32.mrb[79].mxu0 }
0x5e98   :  { %15744 = vmatprep.mubr.msk.bf16.mxu1 %vm679_vm1, %v12891_v35 }
0x5e9e   :  { %v12882_v14 = vpop.f32.mrb[80].mxu1 }
0x5e9f   :  { %v15740_v34 = vpop.f32.mrb[81].mxu1 }
0x5ea0   :  { %v12885_v53 = vpop.f32.mrb[82].mxu1 }
0x5ea1   :  { %v12892_v28 = vpack.c.bf16 %v12885_v53, %v12882_v14  ;;  %v15741_v27 = vpop.f32.mrb[83].mxu1 }
0x5ea3   :  { %15745 = vmatmul.mubr.msk.bf16.vlgmr.msra.gmra.mrb[44].mxu1 %vm679_vm1, %v12892_v28 }
0x5f76   :  { %v15746_v41 = vpop.f32.mrb[44].mxu1 }
0x5f77   :  { %v12971_v43 = vadd.f32 %v16910_v46, %v15746_v41  ;;  %v12939_v16 = vpop.f32.mrb[45].mxu1 }
0x5f78   :  { %v12969_v50 = vadd.f32 %v16910_v46, %v12939_v16  ;;  %v15747_v29 = vpop.f32.mrb[46].mxu1 }
0x5f79   :  { %v12972_v9 = vadd.f32 %v16910_v46, %v15747_v29  ;;  %v12942_v23 = vpop.f32.mrb[47].mxu1  ;;  %v12975_v54 = vadd.f32 %v12971_v43, %v18883_v42  ;;  %v16410_v42 = vld [vmem:[#allocation32 + $0x48] sm:$0xff]  }
0x5f7a   :  { %v12970_v25 = vadd.f32 %v16910_v46, %v12942_v23  ;;  %v12973_v4 = vadd.f32 %v12969_v50, %v18872_v6  ;;  %v16408_v6 = vld [vmem:[#allocation32 + $0x40] sm:$0xff]  }
0x5f7b   :  { %v12976_v15 = vadd.f32 %v12972_v9, %v18885_v8  ;;  %14686 = vmatprep.subr.bf16.mxu1 %v16408_v6  ;;  %v16411_v8 = vld [vmem:[#allocation32 + $0x8] sm:$0xff]  }
0x5f7c   :  { %v12974_v21 = vadd.f32 %v12970_v25, %v18874_v47  ;;  %v16409_v47 = vld [vmem:[#allocation32] sm:$0xff]  }
0x5f7d   :  { %v13011_v30 = vpack.c.bf16 %v12976_v15, %v12975_v54  ;;  %14687 = vmatpush3.bf16.msra.mxu1 %v16409_v47 }
0x5f7e   :  { %v13010_v20 = vpack.c.bf16 %v12974_v21, %v12973_v4  ;;  %14688 = vmatprep.subr.bf16.mxu1 %v16410_v42 }
0x5f80   :  { %13135 = vmatmul.mubr.bf16.gmra.mrb[84].mxu0 %v13010_v20 }
0x5f81   :  { %13144 = vmatprep.mubr.bf16.mxu0 %v17483_v0  ;;  %14689 = vmatpush3.bf16.msra.mxu1 %v16411_v8 }
0x5f82   :  { %14690 = vmatprep.subr.bf16.mxu1 %v16412_v7 }
0x5f85   :  { %14691 = vmatpush3.bf16.msra.mxu1 %v16413_v59 }
0x5f88   :  { %13145 = vmatmul.mubr.bf16.gmra.mrb[88].mxu0 %v13011_v30 }
0x5f89   :  { %13267 = vmatprep.mubr.bf16.mxu0 %v17483_v0 }
0x5f90   :  { %13268 = vmatmul.mubr.bf16.vlgmr.msra.gmra.mrb[80].mxu0 %v18865_v10  ;;  %v16414_v10 = vld [vmem:[#allocation32 + $0x58] sm:$0xff]  }
0x5f91   :  { %13277 = vmatprep.mubr.bf16.mxu0 %v17483_v0  ;;  %14692 = vmatprep.subr.bf16.mxu1 %v16414_v10 }
0x5f92   :  { %14693 = vmatpush3.bf16.msra.mxu1 %v16415_v12 }
0x5f98   :  { %13278 = vmatmul.mubr.bf16.gmra.mrb[84].mxu0 %v18878_v26  ;;  %v16416_v26 = vld [vmem:[#allocation32 + $0x60] sm:$0xff]  }
0x5f99   :  { %13287 = vmatprep.mubr.bf16.mxu0 %v17483_v0  ;;  %v16417_v0 = vld [vmem:[#allocation32 + $0x20] sm:$0xff]   ;;  %14694 = vmatprep.subr.bf16.mxu1 %v16416_v26 }
0x5f9a   :  { %14695 = vmatpush3.bf16.msra.mxu1 %v16417_v0 }
0x5fa0   :  { %13288 = vmatmul.mubr.bf16.gmra.mrb[88].mxu0 %v18889_v44  ;;  %v16418_v44 = vld [vmem:[#allocation32 + $0x68] sm:$0xff]  }
0x5fa1   :  { %14696 = vmatprep.subr.bf16.mxu1 %v16418_v44 }
0x5fa2   :  { %14697 = vmatpush3.bf16.msra.mxu1 %v16419_v45 }
0x5fa3   :  { %14698 = vmatprep.subr.bf16.mxu1 %v16420_v56 }
0x5fa6   :  { %14699 = vmatpush3.bf16.msra.mxu1 %v16421_v19 }
0x5fa7   :  { %14700 = vmatprep.subr.bf16.mxu1 %v16422_v62 }
0x5faa   :  { %14701 = vmatpush3.bf16.msra.mxu1 %v16423_v11 }
0x6063   :  { %v13269_v24 = vpop.f32.mrb[80].mxu0 }
0x6064   :  { %v19667_v61 = vadd.f32 %v19661_v52, %v13269_v24  ;;  %v13271_v32 = vpop.f32.mrb[81].mxu0 }
0x6065   :  { %v19670_v13 = vadd.f32 %v19664_v37, %v13271_v32  ;;  %v13273_v60 = vpop.f32.mrb[82].mxu0 }
0x6066   :  { %v13334_v1 = vmul.f32 0.044715, %v19667_v61  ;;  %v19674_v58 = vadd.f32 %v19661_v52, %v13273_v60  ;;  %v13275_v38 = vpop.f32.mrb[83].mxu0  ;;  %v13322_v32 = vmul.f32 0.5, %v19667_v61 }
0x6067   :  { %v13335_v33 = vmul.f32 0.044715, %v19670_v13  ;;  %v19678_v31 = vadd.f32 %v19664_v37, %v13275_v38 }
0x6068   :  { %v13346_v40 = vmul.f32 %v13334_v1, %v19667_v61  ;;  %v13336_v35 = vmul.f32 0.044715, %v19674_v58 }
0x6069   :  { %v13347_v17 = vmul.f32 %v13335_v33, %v19670_v13  ;;  %v13337_v14 = vmul.f32 0.044715, %v19678_v31 }
0x606a   :  { %v13358_v34 = vmul.f32 %v13346_v40, %v19667_v61  ;;  %v13348_v53 = vmul.f32 %v13336_v35, %v19674_v58 }
0x606b   :  { %v13359_v28 = vmul.f32 %v13347_v17, %v19670_v13  ;;  %v13349_v27 = vmul.f32 %v13337_v14, %v19678_v31  ;;  %v13279_v36 = vpop.f32.mrb[84].mxu0  ;;  %v13323_v14 = vmul.f32 0.5, %v19670_v13 }
0x606c   :  { %v13370_v49 = vadd.f32 %v13358_v34, %v19667_v61  ;;  %v13360_v22 = vmul.f32 %v13348_v53, %v19674_v58  ;;  %v19691_v63 = vadd.f32 %v19661_v52, %v13279_v36  ;;  %v13281_v48 = vpop.f32.mrb[85].mxu0  ;;  %v13324_v36 = vmul.f32 0.5, %v19674_v58 }
0x606d   :  { %v13361_v57 = vmul.f32 %v13349_v27, %v19678_v31  ;;  %v19695_v2 = vadd.f32 %v19664_v37, %v13281_v48  ;;  %v13283_v5 = vpop.f32.mrb[86].mxu0  ;;  %v13371_v51 = vadd.f32 %v13359_v28, %v19670_v13  ;;  %v13325_v13 = vmul.f32 0.5, %v19678_v31 }
0x606e   :  { %v13382_v18 = vmul.f32 0.7978846, %v13370_v49  ;;  %v13372_v39 = vadd.f32 %v13360_v22, %v19674_v58  ;;  %v13338_v55 = vmul.f32 0.044715, %v19691_v63  ;;  %v13285_v41 = vpop.f32.mrb[87].mxu0  ;;  %v19702_v43 = vadd.f32 %v19661_v52, %v13283_v5 }
0x606f   :  { %v13339_v46 = vmul.f32 0.044715, %v19695_v2  ;;  %v19705_v16 = vadd.f32 %v19664_v37, %v13285_v41  ;;  %v13373_v50 = vadd.f32 %v13361_v57, %v19678_v31  ;;  %v13383_v23 = vmul.f32 0.7978846, %v13371_v51 }
0x6070   :  { %16880 = vtanh.f32 %v13382_v18  ;;  %v13384_v29 = vmul.f32 0.7978846, %v13372_v39  ;;  %v13350_v9 = vmul.f32 %v13338_v55, %v19691_v63  ;;  %v13340_v54 = vmul.f32 0.044715, %v19702_v43 }
0x6071   :  { %v13351_v25 = vmul.f32 %v13339_v46, %v19695_v2  ;;  %v13341_v15 = vmul.f32 0.044715, %v19705_v16  ;;  %v13385_v21 = vmul.f32 0.7978846, %v13373_v50 }
0x6072   :  { %16882 = vtanh.f32 %v13384_v29  ;;  %v13362_v4 = vmul.f32 %v13350_v9, %v19691_v63  ;;  %v13352_v20 = vmul.f32 %v13340_v54, %v19702_v43 }
0x6073   :  { %v13363_v30 = vmul.f32 %v13351_v25, %v19695_v2  ;;  %v13353_v6 = vmul.f32 %v13341_v15, %v19705_v16  ;;  %v13289_v47 = vpop.f32.mrb[88].mxu0  ;;  %16884 = vtanh.f32 %v13383_v23 }
0x6074   :  { %v13374_v42 = vadd.f32 %v13362_v4, %v19691_v63  ;;  %v19718_v8 = vadd.f32 %v19661_v52, %v13289_v47  ;;  %v13291_v7 = vpop.f32.mrb[89].mxu0  ;;  %16886 = vtanh.f32 %v13385_v21  ;;  %v13364_v59 = vmul.f32 %v13352_v20, %v19702_v43 }
0x6075   :  { %v13365_v10 = vmul.f32 %v13353_v6, %v19705_v16  ;;  %v19723_v12 = vadd.f32 %v19664_v37, %v13291_v7  ;;  %v13293_v26 = vpop.f32.mrb[90].mxu0  ;;  %v13375_v0 = vadd.f32 %v13363_v30, %v19695_v2  ;;  %v13326_v47 = vmul.f32 0.5, %v19691_v63 }
0x6076   :  { %v13386_v44 = vmul.f32 0.7978846, %v13374_v42  ;;  %v13342_v45 = vmul.f32 0.044715, %v19718_v8  ;;  %v19728_v56 = vadd.f32 %v19661_v52, %v13293_v26  ;;  %v13295_v19 = vpop.f32.mrb[91].mxu0  ;;  %v13376_v62 = vadd.f32 %v13364_v59, %v19702_v43 }
0x6077   :  { %v13343_v11 = vmul.f32 0.044715, %v19723_v12  ;;  %v19733_v3 = vadd.f32 %v19664_v37, %v13295_v19  ;;  %v13377_v24 = vadd.f32 %v13365_v10, %v19705_v16  ;;  %v13387_v40 = vmul.f32 0.7978846, %v13375_v0 }
0x6078   :  { %16888 = vtanh.f32 %v13386_v44  ;;  %v13354_v60 = vmul.f32 %v13342_v45, %v19718_v8  ;;  %v13344_v1 = vmul.f32 0.044715, %v19728_v56  ;;  %v13388_v38 = vmul.f32 0.7978846, %v13376_v62 }
0x6079   :  { %v13355_v52 = vmul.f32 %v13343_v11, %v19723_v12  ;;  %v13345_v33 = vmul.f32 0.044715, %v19733_v3  ;;  %v13389_v34 = vmul.f32 0.7978846, %v13377_v24  ;;  %v13328_v42 = vmul.f32 0.5, %v19702_v43 }
0x607a   :  { %v16881_v35 = vpop.eup %16880  ;;  %v13366_v17 = vmul.f32 %v13354_v60, %v19718_v8  ;;  %v13356_v37 = vmul.f32 %v13344_v1, %v19728_v56  ;;  %16890 = vtanh.f32 %v13388_v38  ;;  %v13327_v10 = vmul.f32 0.5, %v19695_v2 }
0x607b   :  { %v13406_v61 = vadd.f32 1.0, %v16881_v35  ;;  %v13367_v53 = vmul.f32 %v13355_v52, %v19723_v12  ;;  %v13357_v28 = vmul.f32 %v13345_v33, %v19733_v3  ;;  %16892 = vtanh.f32 %v13387_v40 }
0x607c   :  { %v16883_v27 = vpop.eup %16882  ;;  %v13378_v49 = vadd.f32 %v13366_v17, %v19718_v8  ;;  %v13368_v22 = vmul.f32 %v13356_v37, %v19728_v56  ;;  %16894 = vtanh.f32 %v13389_v34  ;;  %v13329_v45 = vmul.f32 0.5, %v19705_v16 }
0x607d   :  { %v16885_v48 = vpop.eup %16884  ;;  %v13408_v57 = vadd.f32 1.0, %v16883_v27  ;;  %v13369_v5 = vmul.f32 %v13357_v28, %v19733_v3  ;;  %v13379_v41 = vadd.f32 %v13367_v53, %v19723_v12  ;;  %v13418_v58 = vmul.f32 %v13406_v61, %v13322_v32 }
0x607e   :  { %v16887_v51 = vpop.eup %16886  ;;  %v13390_v18 = vmul.f32 0.7978846, %v13378_v49  ;;  %v13380_v39 = vadd.f32 %v13368_v22, %v19728_v56  ;;  %v13407_v55 = vadd.f32 1.0, %v16885_v48  ;;  %v13330_v43 = vmul.f32 0.5, %v19718_v8 }
0x607f   :  { %v13420_v46 = vmul.f32 %v13408_v57, %v13324_v36  ;;  %v13409_v50 = vadd.f32 1.0, %v16887_v51  ;;  %v13381_v29 = vadd.f32 %v13369_v5, %v19733_v3  ;;  %v13391_v23 = vmul.f32 0.7978846, %v13379_v41 }
0x6080   :  { %16896 = vtanh.f32 %v13390_v18  ;;  %v13392_v9 = vmul.f32 0.7978846, %v13380_v39  ;;  %v13419_v54 = vmul.f32 %v13407_v55, %v13323_v14  ;;  %v13332_v52 = vmul.f32 0.5, %v19728_v56  ;;  %v14253_v56 = vld [vmem:[%s17661_s6] ss:$0 sm:$0xff] }
0x6081   :  { %v13462_v25 = vpack.c.bf16 %v13420_v46, %v13418_v58  ;;  %v13421_v15 = vmul.f32 %v13409_v50, %v13325_v13  ;;  %v13393_v31 = vmul.f32 0.7978846, %v13381_v29  ;;  %v13331_v40 = vmul.f32 0.5, %v19723_v12 }
0x6082   :  { %v16889_v4 = vpop.eup %16888  ;;  %16898 = vtanh.f32 %v13392_v9  ;;  %v13333_v37 = vmul.f32 0.5, %v19733_v3 }
0x6083   :  { %v13463_v21 = vpack.c.bf16 %v13421_v15, %v13419_v54  ;;  %16900 = vtanh.f32 %v13391_v23  ;;  %v13410_v30 = vadd.f32 1.0, %v16889_v4 }
0x6084   :  { %16902 = vtanh.f32 %v13393_v31  ;;  %v16891_v20 = vpop.eup %16890 }
0x6085   :  { %13603 = vmatprep.mubr.bf16.mxu1 %v13463_v21  ;;  %v16893_v6 = vpop.eup %16892  ;;  %v13412_v7 = vadd.f32 1.0, %v16891_v20  ;;  %v13422_v0 = vmul.f32 %v13410_v30, %v13326_v47 }
0x6086   :  { %13604 = vmatmul.mubr.bf16.vlgmr.msra.gmra.mrb[84].mxu1 %v13462_v25  ;;  %v16895_v59 = vpop.eup %16894  ;;  %v13411_v26 = vadd.f32 1.0, %v16893_v6 }
0x6087   :  { %v13424_v44 = vmul.f32 %v13412_v7, %v13328_v42  ;;  %v13413_v19 = vadd.f32 1.0, %v16895_v59 }
0x6088   :  { %v13423_v24 = vmul.f32 %v13411_v26, %v13327_v10 }
0x6089   :  { %v13464_v11 = vpack.c.bf16 %v13424_v44, %v13422_v0  ;;  %v13425_v32 = vmul.f32 %v13413_v19, %v13329_v45 }
0x608a   :  { %v16897_v62 = vpop.eup %16896 }
0x608b   :  { %v13414_v60 = vadd.f32 1.0, %v16897_v62  ;;  %v13465_v63 = vpack.c.bf16 %v13425_v32, %v13423_v24 }
0x608c   :  { %v16899_v1 = vpop.eup %16898 }
0x608d   :  { %v16901_v38 = vpop.eup %16900  ;;  %v13416_v33 = vadd.f32 1.0, %v16899_v1  ;;  %13611 = vmatprep.mubr.bf16.mxu1 %v13465_v63  ;;  %v13426_v35 = vmul.f32 %v13414_v60, %v13330_v43 }
0x608e   :  { %v16903_v2 = vpop.eup %16902  ;;  %v13415_v16 = vadd.f32 1.0, %v16901_v38  ;;  %13612 = vmatmul.mubr.bf16.gmra.mrb[88].mxu1 %v13464_v11 }
0x608f   :  { %v13428_v17 = vmul.f32 %v13416_v33, %v13332_v52  ;;  %v13417_v14 = vadd.f32 1.0, %v16903_v2 }
0x6090   :  { %v13427_v61 = vmul.f32 %v13415_v16, %v13331_v40 }
0x6091   :  { %v13466_v34 = vpack.c.bf16 %v13428_v17, %v13426_v35  ;;  %v13429_v53 = vmul.f32 %v13417_v14, %v13333_v37 }
0x6093   :  { %v13467_v28 = vpack.c.bf16 %v13429_v53, %v13427_v61 }
0x6095   :  { %13619 = vmatprep.mubr.bf16.mxu1 %v13467_v28 }
0x6096   :  { %13620 = vmatmul.mubr.bf16.gmra.mrb[92].mxu1 %v13466_v34 }
0x6159   :  { %v14702_v8 = vpop.f32.mrb[84].mxu1 }
0x615a   :  { %v14703_v27 = vpop.f32.mrb[85].mxu1 }
0x615b   :  { %v14704_v36 = vadd.f32 %v14703_v27, %v14702_v8  ;;  %v14705_v49 = vpop.f32.mrb[86].mxu1 }
0x615c   :  { %v14706_v22 = vpop.f32.mrb[87].mxu1 }
0x615d   :  { %v13606_v12 = vadd.f32 %v14704_v36, %v14253_v56  ;;  %v14707_v48 = vadd.f32 %v14706_v22, %v14705_v49 }
0x615f   :  { %13628 = vst [vmem:[#allocation34] sm:$0xff] %v13606_v12  ;;  %v13609_v57 = vadd.f32 %v14707_v48, %v14253_v56 }
0x6161   :  { %13629 = vst [vmem:[#allocation34 + $0x8] sm:$0xff] %v13609_v57  ;;  %v14708_v3 = vpop.f32.mrb[88].mxu1 }
0x6162   :  { %17362 = shalt.err (!%p17359_p10)
}
0x6163   :  { %s17363_s6 = scalar_lea.hbm %s17666_s4, 256 }
0x6164   :  { %p17364_p11 = scmp.ne.s32.totalorder %s17666_s4, %s17363_s6  ;;  %p17367_p12 = scmp.lt.u32.totalorder %s17363_s6, %s17666_s4 }
0x6166   :  { %p17369_p13 = pnand %p17367_p12, %p17364_p11 }
0x6168   :  { %17372 = shalt.err (!%p17369_p13)
}
0x6169   :  { %13645 = dma.vmem_to_hbm [thread:$0]  %s13640_s23, 256, %s17666_s4, [#allocation4], %s17457_s26, %s17457_s26, %s17458_s28   ;;  %v14709_v5 = vpop.f32.mrb[89].mxu1 }
0x616a   :  { %v14710_v13 = vadd.f32 %v14709_v5, %v14708_v3  ;;  %v14711_v51 = vpop.f32.mrb[90].mxu1  ;;  %s17492_s24 = smov [#allocation35]  }
0x616b   :  { %v14712_v18 = vpop.f32.mrb[91].mxu1  ;;  %s13651_s17 = sshll.u32 %s17492_s24, 4  ;;  %s13652_s17 = int_to_ptr.vmem [resolvable:$true] %s13651_s17 }
0x616c   :  { %v13614_v39 = vadd.f32 %v14710_v13, %v14253_v56  ;;  %v14713_v55 = vadd.f32 %v14712_v18, %v14711_v51  ;;  %v14714_v58 = vpop.f32.mrb[92].mxu1  ;;  %s17373_s4 = scalar_lea.vmem %s13652_s17, 512  ;;  %p17378_p1 = scmp.lt.s32.totalorder %s13652_s17, %s13652_s17 }
0x616d   :  { %v14715_v46 = vpop.f32.mrb[93].mxu1  ;;  %p17374_p0 = scmp.ne.s32.totalorder %s13652_s17, %s17373_s4  ;;  %p17379_p2 = scmp.lt.s32.totalorder %s17373_s4, %s17373_s4 }
0x616e   :  { %13630 = vst [vmem:[#allocation35] sm:$0xff] %v13614_v39  ;;  %v13617_v41 = vadd.f32 %v14713_v55, %v14253_v56  ;;  %v14716_v50 = vadd.f32 %v14715_v46, %v14714_v58  ;;  %v14717_v29 = vpop.f32.mrb[94].mxu1 }
0x616f   :  { %v14718_v9 = vpop.f32.mrb[95].mxu1  ;;  %p17380_p3 = por %p17379_p2, %p17378_p1 }
0x6170   :  { %13631 = vst [vmem:[#allocation35 + $0x8] sm:$0xff] %v13617_v41  ;;  %v13622_v23 = vadd.f32 %v14716_v50, %v14253_v56  ;;  %v14719_v25 = vadd.f32 %v14718_v9, %v14717_v29 }
0x6171   :  { %p17381_p4 = pnand %p17380_p3, %p17374_p0 }
0x6172   :  { %13632 = vst [vmem:[#allocation35 + $0x10] sm:$0xff] %v13622_v23  ;;  %v13625_v54 = vadd.f32 %v14719_v25, %v14253_v56 }
0x6174   :  { %13633 = vst [vmem:[#allocation35 + $0x18] sm:$0xff] %v13625_v54 }
0x6175   :  { %17384 = shalt.err (!%p17381_p4)
}
0x6176   :  { %s17385_s1 = scalar_lea.hbm %s17671_s20, 512 }
0x6177   :  { %p17386_p5 = scmp.ne.s32.totalorder %s17671_s20, %s17385_s1  ;;  %p17389_p6 = scmp.lt.u32.totalorder %s17385_s1, %s17671_s20 }
0x6179   :  { %p17391_p7 = pnand %p17389_p6, %p17386_p5 }
0x617b   :  { %17394 = shalt.err (!%p17391_p7)
}
0x617c   :  { %13657 = dma.vmem_to_hbm [thread:$0]  %s13652_s17, 512, %s17671_s20, [#allocation36], %s17457_s26, %s17457_s26, %s17458_s28  }
0x617d   :  { %17417 = dma.done.wait [#allocation4], 256  }
0x617e   :  { %17418 = vsyncadd [#allocation4], 4294967040 }
0x617f   :  { %17419 = dma.done.wait [#allocation36], 512  }
0x6180   :  { %17420 = vsyncadd [#allocation36], 4294966784 }
0x6181   :  { %13664 = vsyncpa [#allocation3], 1 }
0x6182   :  { %13665 = vsyncpa [#allocation6], 1 }
0x6183   :  { %13666 = vsyncpa [#allocation9], 1 }
0x6184   :  { %13667 = vsyncpa [#allocation12], 1 }
0x6185   :  { %13668 = vsyncpa [#allocation15], 1 }
0x6186   :  { %13669 = vsyncpa [#allocation18], 1 }
0x6187   :  { %13670 = vsyncpa [#allocation21], 1 }
0x6188   :  { %13671 = vsyncpa [#allocation24], 1 }
0x6189   :  { %13672 = vsyncpa [#allocation27], 1 }
0x618a   :  { %13673 = vsyncpa [#allocation30], 1 }
0x618b   :  { %13674 = vsyncpa [#allocation33], 1 }
0x618c   :  { %13675 = vsyncpa [#allocation4], 1 }
0x618d   :  { %13676 = vsyncpa [#allocation36], 1 }

</bundles_post_ra>
